<compile_context>
chip_gen: v5e
topology: v5e:2x2
jax: 0.10.0
libtpu: 0.0.40
codegen_flags: <defaults>
</compile_context>

<pallas_src>
import jax
import jax.numpy as jnp
from jax.experimental import pallas as pl
from jax.experimental.pallas import tpu as pltpu

BN_EPS = 1e-5
NEG_SLOPE = 0.2


def _round_up(x, m):
    return (x + m - 1) // m * m


# ---------------------------------------------------------------------------
# Kernel 1: conv1 as whole-K matmul + bias + LeakyReLU (K = 48, tiny weight)
# ---------------------------------------------------------------------------
def _matmul_bias_act_kernel(x_ref, w_ref, b_ref, o_ref):
    y = jnp.dot(x_ref[...], w_ref[...], preferred_element_type=jnp.float32)
    y = y + b_ref[...]
    y = jnp.where(y >= 0, y, NEG_SLOPE * y)
    o_ref[...] = y.astype(o_ref.dtype)


def conv1_matmul(patches, w, b):
    """patches:(Bp*196, 48) bf16, w:(48,128) bf16 (BN scale folded), b:(128,) f32
    -> (Bp*196, 128) bf16.  Weight/bias resident; grid only over M with
    tm = 784 (= 4 samples) so there are always >= 2 parallel blocks."""
    M, K = patches.shape
    _, N = w.shape
    tm = 784
    assert M % tm == 0, M
    b2d = b.astype(jnp.float32).reshape(1, N)
    return pl.pallas_call(
        _matmul_bias_act_kernel,
        out_shape=jax.ShapeDtypeStruct((M, N), jnp.bfloat16),
        grid_spec=pltpu.PrefetchScalarGridSpec(
            num_scalar_prefetch=0,
            grid=(M // tm,),
            in_specs=[
                pl.BlockSpec((tm, K), lambda i: (i, 0)),
                pl.BlockSpec((K, N), lambda i: (0, 0)),
                pl.BlockSpec((1, N), lambda i: (0, 0)),
            ],
            out_specs=pl.BlockSpec((tm, N), lambda i: (i, 0)),
        ),
        compiler_params=pltpu.CompilerParams(
            dimension_semantics=("parallel",)),
    )(patches, w, b2d)


# ---------------------------------------------------------------------------
# Kernel 2: conv2 with ON-CHIP im2col (space-to-depth input, 16 resident taps)
# ---------------------------------------------------------------------------
def _conv2_kernel(x_ref, w_ref, b_ref, o_ref):
    # x_ref: (Bt, 32, 9, 128) f32  space-to-depth padded conv1 activations:
    #        dim1 = (row_parity*2 + col_parity)*8 + row_half,  dim2 = col_half.
    # w_ref: (16, 128, 256) bf16   tap-major conv2 weight (BN scale folded).
    # o_ref: (Bt*56, 256)          rows = b*56 + oh*8 + ow (ow==7 is a pad col).
    acc = jnp.zeros(o_ref.shape, jnp.float32)
    for i in range(4):          # kernel row offset
        for j in range(4):      # kernel col offset
            p = (i % 2) * 2 + (j % 2)
            qi, qj = i // 2, j // 2
            start = p * 8 + qi
            # contiguous VMEM slice: 16x re-read from VMEM instead of a 4x
            # im2col duplication in HBM.
            x_tap = x_ref[:, pl.ds(start, 7), pl.ds(qj, 8), :]   # (Bt,7,8,128)
            lhs = x_tap.reshape(-1, 128).astype(jnp.bfloat16)    # (Bt*56,128)
            acc = acc + jnp.dot(lhs, w_ref[i * 4 + j],
                                preferred_element_type=jnp.float32)
    y = acc + b_ref[...]
    y = jnp.where(y >= 0, y, NEG_SLOPE * y)
    o_ref[...] = y.astype(o_ref.dtype)


def conv2_fused(x_s2d, w, b, *, bt):
    """x_s2d:(Bp, 32, 9, 128) f32, w:(16,128,256) bf16, b:(256,) f32
    -> (Bp*56, 256) bf16.  Weight fully VMEM resident (DMA'd once); grid only
    over batch tiles of `bt` samples (parallel)."""
    Bp = x_s2d.shape[0]
    assert Bp % bt == 0
    b2d = b.astype(jnp.float32).reshape(1, 256)
    return pl.pallas_call(
        _conv2_kernel,
        out_shape=jax.ShapeDtypeStruct((Bp * 56, 256), jnp.bfloat16),
        grid_spec=pltpu.PrefetchScalarGridSpec(
            num_scalar_prefetch=0,
            grid=(Bp // bt,),
            in_specs=[
                pl.BlockSpec((bt, 32, 9, 128), lambda s: (s, 0, 0, 0)),
                pl.BlockSpec((16, 128, 256), lambda s: (0, 0, 0)),
                pl.BlockSpec((1, 256), lambda s: (0, 0)),
            ],
            out_specs=pl.BlockSpec((bt * 56, 256), lambda s: (s, 0)),
        ),
        compiler_params=pltpu.CompilerParams(
            dimension_semantics=("parallel",)),
    )(x_s2d, w, b2d)


# ---------------------------------------------------------------------------
# Kernel 3: fused FC tail  leaky(x @ w1 + b1) @ w2 + b2,  M-tiled + K split
# ---------------------------------------------------------------------------
def _fc_tail_kernel(x_ref, w1_ref, b1_ref, w2_ref, b2_ref, o_ref, acc_ref):
    k = pl.program_id(1)

    @pl.when(k == 0)
    def _():
        acc_ref[...] = jnp.zeros_like(acc_ref)

    acc_ref[...] += jnp.dot(x_ref[...], w1_ref[...],
                            preferred_element_type=jnp.float32)

    @pl.when(k == pl.num_programs(1) - 1)
    def _():
        h = acc_ref[...] + b1_ref[...]
        h = jnp.where(h >= 0, h, NEG_SLOPE * h)
        y = jnp.dot(h.astype(w2_ref.dtype), w2_ref[...],
                    preferred_element_type=jnp.float32)
        o_ref[...] = (y + b2_ref[...]).astype(o_ref.dtype)


def fused_fc_tail(x, w1, b1, w2, b2, *, nk=7):
    """x:(Bp, 14336) bf16, w1:(14336, 256) bf16 (BN scale folded, rows permuted
    to the conv2 kernel's flatten order, zero rows at the pad column),
    b1:(256,) f32, w2:(256, Lp) bf16 (lane padded), b2:(Lp,) f32 -> (Bp, Lp) f32.
    Grid = (M blocks [parallel], nk [arbitrary, inner]); M tile capped at 256
    rows so blocks stay ~2 MB (v5e-safe)."""
    M, K = x.shape
    _, N1 = w1.shape
    _, N2p = w2.shape
    assert K % nk == 0 and (K // nk) % 128 == 0
    tk = K // nk
    tm = next(t for t in (256, 128, 64, 32, 16, 8) if t <= M and M % t == 0)

    b1r = b1.astype(jnp.float32).reshape(1, N1)
    b2r = b2.astype(jnp.float32).reshape(1, N2p)

    return pl.pallas_call(
        _fc_tail_kernel,
        out_shape=jax.ShapeDtypeStruct((M, N2p), jnp.float32),
        grid_spec=pltpu.PrefetchScalarGridSpec(
            num_scalar_prefetch=0,
            grid=(M // tm, nk),
            in_specs=[
                pl.BlockSpec((tm, tk), lambda m, k: (m, k)),
                pl.BlockSpec((tk, N1), lambda m, k: (k, 0)),
                pl.BlockSpec((1, N1), lambda m, k: (0, 0)),
                pl.BlockSpec((N1, N2p), lambda m, k: (0, 0)),
                pl.BlockSpec((1, N2p), lambda m, k: (0, 0)),
            ],
            out_specs=pl.BlockSpec((tm, N2p), lambda m, k: (m, 0)),
            scratch_shapes=[pltpu.VMEM((tm, N1), jnp.float32)],
        ),
        compiler_params=pltpu.CompilerParams(
            dimension_semantics=("parallel", "arbitrary")),
    )(x, w1, b1r, w2, b2r)


# ---------------------------------------------------------------------------
# conv1 im2col (XLA glue; patches are only (Bp*196, 48) bf16 -> negligible)
# ---------------------------------------------------------------------------
def im2col(x_nhwc, kh, kw, stride, pad):
    B, H, W, C = x_nhwc.shape
    x_p = jnp.pad(x_nhwc, ((0, 0), (pad, pad), (pad, pad), (0, 0)))
    OH = (H + 2 * pad - kh) // stride + 1
    OW = (W + 2 * pad - kw) // stride + 1
    cols = []
    for i in range(kh):
        for j in range(kw):
            cols.append(x_p[:, i:i + stride * OH:stride,
                            j:j + stride * OW:stride, :])
    patches = jnp.stack(cols, axis=3)  # (B, OH, OW, kh*kw, C)
    return patches.reshape(B * OH * OW, kh * kw * C), OH, OW


# ---------------------------------------------------------------------------
# Parameters (PyTorch layout) + one-time Pallas prep (outside jit)
# ---------------------------------------------------------------------------
def _fold_bn(gamma, beta, mean, var, lin_bias=None):
    scale = gamma / jnp.sqrt(var + BN_EPS)
    bias = beta - mean * scale
    if lin_bias is not None:
        bias = bias + lin_bias * scale
    return scale, bias


def make_encoder_params(key, latent_size):
    k1, k2, k3, k4 = jax.random.split(key, 4)
    std = 0.02  # DCGAN-style init, deterministic via PRNGKey
    p = {}
    p["conv1_w"] = jax.random.normal(k1, (128, 3, 4, 4), jnp.float32) * std
    p["bn1"] = (jnp.ones(128), jnp.zeros(128), jnp.zeros(128), jnp.ones(128))
    p["conv2_w"] = jax.random.normal(k2, (256, 128, 4, 4), jnp.float32) * std
    p["bn2"] = (jnp.ones(256), jnp.zeros(256), jnp.zeros(256), jnp.ones(256))
    p["fc1_w"] = jax.random.normal(k3, (7 * 7 * 256, 256), jnp.float32) * std
    p["fc1_b"] = jnp.zeros(256, jnp.float32)
    p["bn3"] = (jnp.ones(256), jnp.zeros(256), jnp.zeros(256), jnp.ones(256))
    p["fc2_w"] = jax.random.normal(k4, (256, latent_size), jnp.float32) * std
    p["fc2_b"] = jnp.zeros(latent_size, jnp.float32)
    return p


def prepare_pallas_params(params, latent_size):
    """One-time weight plumbing (outside jit): fold BN scale into weight
    columns (slightly less precise than an f32 post-scale; fine at 1e-2 tol),
    reshape conv weights for the kernels, permute/pad fc1 rows to the conv2
    kernel's (h, w_pad8, c) flatten order, pad fc2 to 128 lanes, cast bf16."""
    prep = {}
    # conv1: (O,I,kh,kw) -> (kh*kw*I, O) im2col weight
    s1, b1 = _fold_bn(*params["bn1"])
    w1 = jnp.transpose(params["conv1_w"], (2, 3, 1, 0)).reshape(4 * 4 * 3, 128)
    prep["conv1_w"] = (w1 * s1[None, :]).astype(jnp.bfloat16)
    prep["conv1_b"] = b1.astype(jnp.float32)
    # conv2: (O,I,kh,kw) -> (16 taps, I, O)
    s2, b2 = _fold_bn(*params["bn2"])
    w2 = jnp.transpose(params["conv2_w"], (2, 3, 1, 0)).reshape(16, 128, 256)
    prep["conv2_w"] = (w2 * s2[None, None, :]).astype(jnp.bfloat16)
    prep["conv2_b"] = b2.astype(jnp.float32)
    # fc1: PyTorch flattens NCHW (row = c*49 + h*7 + w); the conv2 kernel emits
    # per-sample rows ordered (h, w_pad8, c) with a zero-weight pad column w==7.
    s3, b3 = _fold_bn(*params["bn3"], lin_bias=params["fc1_b"])
    fc1 = params["fc1_w"] * s3[None, :]                   # (12544, 256)
    fc1 = fc1.reshape(256, 7, 7, 256)                     # (c, h, w, out)
    fc1 = jnp.transpose(fc1, (1, 2, 0, 3))                # (h, w, c, out)
    fc1 = jnp.pad(fc1, ((0, 0), (0, 1), (0, 0), (0, 0)))  # pad w: 7 -> 8 (zeros)
    prep["fc1_w"] = fc1.reshape(7 * 8 * 256, 256).astype(jnp.bfloat16)
    prep["fc1_b"] = b3.astype(jnp.float32)
    # fc2: pad output dim to 128 lanes once, here.
    lp = _round_up(latent_size, 128)
    prep["fc2_w"] = jnp.pad(params["fc2_w"],
                            ((0, 0), (0, lp - latent_size))).astype(jnp.bfloat16)
    prep["fc2_b"] = jnp.pad(params["fc2_b"],
                            (0, lp - latent_size)).astype(jnp.float32)
    return prep


# ---------------------------------------------------------------------------
# Encoder forward (Pallas path)
# ---------------------------------------------------------------------------
def encoder_forward(prep, input_images_nchw, *, latent_size):
    B, C, H, W = input_images_nchw.shape
    assert C == 3 and H == 28 and W == 28

    # Pad the batch ONCE so every downstream M dim is tile friendly; padded
    # rows are carried through and dropped with a single slice at the end.
    Bp = _round_up(B, 8)
    x = input_images_nchw
    if Bp != B:
        x = jnp.pad(x, ((0, Bp - B), (0, 0), (0, 0), (0, 0)))
    x = jnp.transpose(x, (0, 2, 3, 1)).astype(jnp.bfloat16)      # NHWC bf16

    # CnnEncoderBlock(3, 128): conv k4 s2 p1 + BN + LeakyReLU(0.2).
    patches, _, _ = im2col(x, 4, 4, 2, 1)                        # (Bp*196, 48)
    y1 = conv1_matmul(patches, prep["conv1_w"], prep["conv1_b"])  # (Bp*196,128)

    # CnnEncoderBlock(128, 256) with on-chip im2col.  Cheap XLA glue builds a
    # compact space-to-depth layout (no patch duplication in HBM):
    #   (Bp,14,14,128) -> pad -> (Bp,16,18,128) -> (Bp, 32, 9, 128)
    # where dim1 = (row_parity*2 + col_parity)*8 + row_half, dim2 = col_half.
    y1 = y1.reshape(Bp, 14, 14, 128).astype(jnp.float32)
    y1 = jnp.pad(y1, ((0, 0), (1, 1), (1, 3), (0, 0)))           # (Bp,16,18,128)
    x2 = y1.reshape(Bp, 8, 2, 9, 2, 128)
    x2 = jnp.transpose(x2, (0, 2, 4, 1, 3, 5)).reshape(Bp, 32, 9, 128)
    bt = 2 if Bp < 32 else 8
    y2 = conv2_fused(x2, prep["conv2_w"], prep["conv2_b"], bt=bt)  # (Bp*56,256)

    # Flatten per sample in (h, w_pad8, c) order; fc1 rows were pre-permuted.
    x_fc = y2.reshape(Bp, 56 * 256)

    # LinearGeneratorBlock(12544, 256) + nn.Linear(256, latent), fused.
    out = fused_fc_tail(x_fc, prep["fc1_w"], prep["fc1_b"],
                        prep["fc2_w"], prep["fc2_b"], nk=7)
    return out[:B, :latent_size]


# ---------------------------------------------------------------------------
# Pure-JAX bf16-matched reference (numerical sanity check)
# ---------------------------------------------------------------------------
def encoder_reference(params, x_nchw):
    def conv_bn_lrelu(x, w_oihw, bn):
        w_hwio = jnp.transpose(w_oihw, (2, 3, 1, 0)).astype(jnp.bfloat16)
        y = jax.lax.conv_general_dilated(
            x.astype(jnp.bfloat16), w_hwio, window_strides=(2, 2),
            padding=[(1, 1), (1, 1)],
            dimension_numbers=("NHWC", "HWIO", "NHWC"),
            preferred_element_type=jnp.float32)
        s, b = _fold_bn(*bn)
        y = y * s + b
        return jnp.where(y >= 0, y, 0.2 * y).astype(jnp.bfloat16)

    x = jnp.transpose(x_nchw, (0, 2, 3, 1))
    x = conv_bn_lrelu(x, params["conv1_w"], params["bn1"])
    x = conv_bn_lrelu(x, params["conv2_w"], params["bn2"])
    B = x.shape[0]
    x = jnp.transpose(x, (0, 3, 1, 2)).reshape(B, 7 * 7 * 256)  # NCHW flatten
    s3, b3 = _fold_bn(*params["bn3"], lin_bias=params["fc1_b"])
    h = jnp.dot(x.astype(jnp.bfloat16),
                (params["fc1_w"] * s3[None, :]).astype(jnp.bfloat16),
                preferred_element_type=jnp.float32) + b3
    h = jnp.where(h >= 0, h, 0.2 * h)
    out = jnp.dot(h.astype(jnp.bfloat16),
                  params["fc2_w"].astype(jnp.bfloat16),
                  preferred_element_type=jnp.float32) + params["fc2_b"]
    return out


if __name__ == "__main__":
    LATENT = 64
    key = jax.random.PRNGKey(0)
    k_params, k_input = jax.random.split(key)

    params = make_encoder_params(k_params, LATENT)
    prep = prepare_pallas_params(params, LATENT)      # one-time, outside jit

    x = jax.random.normal(k_input, (2, 3, 28, 28), jnp.float32)  # NCHW input

    fwd = jax.jit(encoder_forward, static_argnames=("latent_size",))
    out = fwd(prep, x, latent_size=LATENT)
    out = jax.block_until_ready(out)
    assert out.shape == (2, LATENT), out.shape

    ref = encoder_reference(params, x)
    err = float(jnp.max(jnp.abs(out - ref)))
    assert err < 1e-2, err

    print("KERNEL_OK")
</pallas_src>

<mosaic_0001>
module attributes {stable_mosaic.version = 11 : i64} {
  func.func @_matmul_bias_act_kernel(%arg0: i32, %arg1: memref<784x48xbf16, #tpu.memory_space<vmem>>, %arg2: memref<48x128xbf16, #tpu.memory_space<vmem>>, %arg3: memref<1x128xf32, #tpu.memory_space<vmem>>, %arg4: memref<784x128xbf16, #tpu.memory_space<vmem>>) attributes {dimension_semantics = [#tpu.dimension_semantics<parallel>], iteration_bounds = array<i64: 2>, scalar_prefetch = 0 : i64, scratch_operands = 0 : i64, tpu.core_type = #tpu.core_type<tc>, window_params = [{transform_indices = @transform_0, window_bounds = array<i64: 784, 48>}, {pipeline_mode = #tpu.pipeline_mode<synchronous>, transform_indices = @transform_1, window_bounds = array<i64: 48, 128>}, {pipeline_mode = #tpu.pipeline_mode<synchronous>, transform_indices = @transform_2, window_bounds = array<i64: 1, 128>}, {transform_indices = @transform_3, window_bounds = array<i64: 784, 128>}]} {
    %c0 = arith.constant 0 : index
    %c0_0 = arith.constant 0 : index
    %0 = vector.load %arg1[%c0, %c0_0] : memref<784x48xbf16, #tpu.memory_space<vmem>>, vector<784x48xbf16>
    %c0_1 = arith.constant 0 : index
    %c0_2 = arith.constant 0 : index
    %1 = vector.load %arg2[%c0_1, %c0_2] : memref<48x128xbf16, #tpu.memory_space<vmem>>, vector<48x128xbf16>
    %cst = arith.constant dense<0.000000e+00> : vector<784x128xf32>
    %2 = tpu.matmul %0, %1, %cst {dimension_numbers = #tpu.dot_dimension_numbers<[1], [0], [0], [1], [0, 0, 1, 1], [], []>} : vector<784x48xbf16>, vector<48x128xbf16>, vector<784x128xf32> -> vector<784x128xf32>
    %c0_3 = arith.constant 0 : index
    %c0_4 = arith.constant 0 : index
    %3 = vector.load %arg3[%c0_3, %c0_4] : memref<1x128xf32, #tpu.memory_space<vmem>>, vector<1x128xf32>
    %4 = vector.broadcast %3 : vector<1x128xf32> to vector<784x128xf32>
    %5 = arith.addf %2, %4 : vector<784x128xf32>
    %cst_5 = arith.constant 0.000000e+00 : f32
    %6 = vector.broadcast %cst_5 : f32 to vector<784x128xf32>
    %7 = arith.cmpf oge, %5, %6 : vector<784x128xf32>
    %cst_6 = arith.constant 2.000000e-01 : f32
    %8 = vector.broadcast %cst_6 : f32 to vector<784x128xf32>
    %9 = arith.mulf %8, %5 : vector<784x128xf32>
    %10 = arith.select %7, %5, %9 : vector<784x128xi1>, vector<784x128xf32>
    %11 = arith.truncf %10 : vector<784x128xf32> to vector<784x128xbf16>
    %c0_7 = arith.constant 0 : index
    %c0_8 = arith.constant 0 : index
    %12 = vector.load %arg4[%c0_7, %c0_8] : memref<784x128xbf16, #tpu.memory_space<vmem>>, vector<784x128xbf16>
    tpu.vector_store %arg4[%c0_7, %c0_8], %11 {strides = array<i32>} : memref<784x128xbf16, #tpu.memory_space<vmem>>, vector<784x128xbf16>,
    return
  }
  func.func @transform_0(%arg0: i32) -> (i32, i32) {
    %c0_i32 = arith.constant 0 : i32
    %c0_i32_0 = arith.constant 0 : i32
    return %arg0, %c0_i32 : i32, i32
  }
  func.func @transform_1(%arg0: i32) -> (i32, i32) {
    %c0_i32 = arith.constant 0 : i32
    %c0_i32_0 = arith.constant 0 : i32
    %c0_i32_1 = arith.constant 0 : i32
    return %c0_i32, %c0_i32_0 : i32, i32
  }
  func.func @transform_2(%arg0: i32) -> (i32, i32) {
    %c0_i32 = arith.constant 0 : i32
    %c0_i32_0 = arith.constant 0 : i32
    %c0_i32_1 = arith.constant 0 : i32
    return %c0_i32, %c0_i32_0 : i32, i32
  }
  func.func @transform_3(%arg0: i32) -> (i32, i32) {
    %c0_i32 = arith.constant 0 : i32
    %c0_i32_0 = arith.constant 0 : i32
    return %arg0, %c0_i32 : i32, i32
  }
}

module attributes {stable_mosaic.version = 11 : i64} {
  func.func @_conv2_kernel(%arg0: i32, %arg1: memref<2x32x9x128xf32, #tpu.memory_space<vmem>>, %arg2: memref<16x128x256xbf16, #tpu.memory_space<vmem>>, %arg3: memref<1x256xf32, #tpu.memory_space<vmem>>, %arg4: memref<112x256xbf16, #tpu.memory_space<vmem>>) attributes {dimension_semantics = [#tpu.dimension_semantics<parallel>], iteration_bounds = array<i64: 4>, scalar_prefetch = 0 : i64, scratch_operands = 0 : i64, tpu.core_type = #tpu.core_type<tc>, window_params = [{transform_indices = @transform_0, window_bounds = array<i64: 2, 32, 9, 128>}, {pipeline_mode = #tpu.pipeline_mode<synchronous>, transform_indices = @transform_1, window_bounds = array<i64: 16, 128, 256>}, {pipeline_mode = #tpu.pipeline_mode<synchronous>, transform_indices = @transform_2, window_bounds = array<i64: 1, 256>}, {transform_indices = @transform_3, window_bounds = array<i64: 112, 256>}]} {
    %cst = arith.constant 0.000000e+00 : f32
    %0 = vector.broadcast %cst : f32 to vector<112x256xf32>
    %c0 = arith.constant 0 : index
    %c0_0 = arith.constant 0 : index
    %c0_1 = arith.constant 0 : index
    %c0_2 = arith.constant 0 : index
    %1 = vector.load %arg1[%c0, %c0_0, %c0_1, %c0_2] : memref<2x32x9x128xf32, #tpu.memory_space<vmem>>, vector<2x7x8x128xf32>
    %2 = vector.shape_cast %1 : vector<2x7x8x128xf32> to vector<112x128xf32>
    %3 = arith.truncf %2 : vector<112x128xf32> to vector<112x128xbf16>
    %c0_3 = arith.constant 0 : index
    %c0_4 = arith.constant 0 : index
    %c0_5 = arith.constant 0 : index
    %4 = vector.load %arg2[%c0_3, %c0_4, %c0_5] : memref<16x128x256xbf16, #tpu.memory_space<vmem>>, vector<1x128x256xbf16>
    %5 = vector.shape_cast %4 : vector<1x128x256xbf16> to vector<128x256xbf16>
    %cst_6 = arith.constant dense<0.000000e+00> : vector<112x256xf32>
    %6 = tpu.matmul %3, %5, %cst_6 {dimension_numbers = #tpu.dot_dimension_numbers<[1], [0], [0], [1], [0, 0, 1, 1], [], []>} : vector<112x128xbf16>, vector<128x256xbf16>, vector<112x256xf32> -> vector<112x256xf32>
    %7 = arith.addf %0, %6 : vector<112x256xf32>
    %c0_7 = arith.constant 0 : index
    %c8 = arith.constant 8 : index
    %c0_8 = arith.constant 0 : index
    %c0_9 = arith.constant 0 : index
    %8 = vector.load %arg1[%c0_7, %c8, %c0_8, %c0_9] : memref<2x32x9x128xf32, #tpu.memory_space<vmem>>, vector<2x7x8x128xf32>
    %9 = vector.shape_cast %8 : vector<2x7x8x128xf32> to vector<112x128xf32>
    %10 = arith.truncf %9 : vector<112x128xf32> to vector<112x128xbf16>
    %c1 = arith.constant 1 : index
    %c0_10 = arith.constant 0 : index
    %c0_11 = arith.constant 0 : index
    %11 = vector.load %arg2[%c1, %c0_10, %c0_11] : memref<16x128x256xbf16, #tpu.memory_space<vmem>>, vector<1x128x256xbf16>
    %12 = vector.shape_cast %11 : vector<1x128x256xbf16> to vector<128x256xbf16>
    %cst_12 = arith.constant dense<0.000000e+00> : vector<112x256xf32>
    %13 = tpu.matmul %10, %12, %cst_12 {dimension_numbers = #tpu.dot_dimension_numbers<[1], [0], [0], [1], [0, 0, 1, 1], [], []>} : vector<112x128xbf16>, vector<128x256xbf16>, vector<112x256xf32> -> vector<112x256xf32>
    %14 = arith.addf %7, %13 : vector<112x256xf32>
    %c0_13 = arith.constant 0 : index
    %c0_14 = arith.constant 0 : index
    %c1_15 = arith.constant 1 : index
    %c0_16 = arith.constant 0 : index
    %15 = vector.load %arg1[%c0_13, %c0_14, %c1_15, %c0_16] : memref<2x32x9x128xf32, #tpu.memory_space<vmem>>, vector<2x7x8x128xf32>
    %16 = vector.shape_cast %15 : vector<2x7x8x128xf32> to vector<112x128xf32>
    %17 = arith.truncf %16 : vector<112x128xf32> to vector<112x128xbf16>
    %c2 = arith.constant 2 : index
    %c0_17 = arith.constant 0 : index
    %c0_18 = arith.constant 0 : index
    %18 = vector.load %arg2[%c2, %c0_17, %c0_18] : memref<16x128x256xbf16, #tpu.memory_space<vmem>>, vector<1x128x256xbf16>
    %19 = vector.shape_cast %18 : vector<1x128x256xbf16> to vector<128x256xbf16>
    %cst_19 = arith.constant dense<0.000000e+00> : vector<112x256xf32>
    %20 = tpu.matmul %17, %19, %cst_19 {dimension_numbers = #tpu.dot_dimension_numbers<[1], [0], [0], [1], [0, 0, 1, 1], [], []>} : vector<112x128xbf16>, vector<128x256xbf16>, vector<112x256xf32> -> vector<112x256xf32>
    %21 = arith.addf %14, %20 : vector<112x256xf32>
    %c0_20 = arith.constant 0 : index
    %c8_21 = arith.constant 8 : index
    %c1_22 = arith.constant 1 : index
    %c0_23 = arith.constant 0 : index
    %22 = vector.load %arg1[%c0_20, %c8_21, %c1_22, %c0_23] : memref<2x32x9x128xf32, #tpu.memory_space<vmem>>, vector<2x7x8x128xf32>
    %23 = vector.shape_cast %22 : vector<2x7x8x128xf32> to vector<112x128xf32>
    %24 = arith.truncf %23 : vector<112x128xf32> to vector<112x128xbf16>
    %c3 = arith.constant 3 : index
    %c0_24 = arith.constant 0 : index
    %c0_25 = arith.constant 0 : index
    %25 = vector.load %arg2[%c3, %c0_24, %c0_25] : memref<16x128x256xbf16, #tpu.memory_space<vmem>>, vector<1x128x256xbf16>
    %26 = vector.shape_cast %25 : vector<1x128x256xbf16> to vector<128x256xbf16>
    %cst_26 = arith.constant dense<0.000000e+00> : vector<112x256xf32>
    %27 = tpu.matmul %24, %26, %cst_26 {dimension_numbers = #tpu.dot_dimension_numbers<[1], [0], [0], [1], [0, 0, 1, 1], [], []>} : vector<112x128xbf16>, vector<128x256xbf16>, vector<112x256xf32> -> vector<112x256xf32>
    %28 = arith.addf %21, %27 : vector<112x256xf32>
    %c0_27 = arith.constant 0 : index
    %c16 = arith.constant 16 : index
    %c0_28 = arith.constant 0 : index
    %c0_29 = arith.constant 0 : index
    %29 = vector.load %arg1[%c0_27, %c16, %c0_28, %c0_29] : memref<2x32x9x128xf32, #tpu.memory_space<vmem>>, vector<2x7x8x128xf32>
    %30 = vector.shape_cast %29 : vector<2x7x8x128xf32> to vector<112x128xf32>
    %31 = arith.truncf %30 : vector<112x128xf32> to vector<112x128xbf16>
    %c4 = arith.constant 4 : index
    %c0_30 = arith.constant 0 : index
    %c0_31 = arith.constant 0 : index
    %32 = vector.load %arg2[%c4, %c0_30, %c0_31] : memref<16x128x256xbf16, #tpu.memory_space<vmem>>, vector<1x128x256xbf16>
    %33 = vector.shape_cast %32 : vector<1x128x256xbf16> to vector<128x256xbf16>
    %cst_32 = arith.constant dense<0.000000e+00> : vector<112x256xf32>
    %34 = tpu.matmul %31, %33, %cst_32 {dimension_numbers = #tpu.dot_dimension_numbers<[1], [0], [0], [1], [0, 0, 1, 1], [], []>} : vector<112x128xbf16>, vector<128x256xbf16>, vector<112x256xf32> -> vector<112x256xf32>
    %35 = arith.addf %28, %34 : vector<112x256xf32>
    %c0_33 = arith.constant 0 : index
    %c24 = arith.constant 24 : index
    %c0_34 = arith.constant 0 : index
    %c0_35 = arith.constant 0 : index
    %36 = vector.load %arg1[%c0_33, %c24, %c0_34, %c0_35] : memref<2x32x9x128xf32, #tpu.memory_space<vmem>>, vector<2x7x8x128xf32>
    %37 = vector.shape_cast %36 : vector<2x7x8x128xf32> to vector<112x128xf32>
    %38 = arith.truncf %37 : vector<112x128xf32> to vector<112x128xbf16>
    %c5 = arith.constant 5 : index
    %c0_36 = arith.constant 0 : index
    %c0_37 = arith.constant 0 : index
    %39 = vector.load %arg2[%c5, %c0_36, %c0_37] : memref<16x128x256xbf16, #tpu.memory_space<vmem>>, vector<1x128x256xbf16>
    %40 = vector.shape_cast %39 : vector<1x128x256xbf16> to vector<128x256xbf16>
    %cst_38 = arith.constant dense<0.000000e+00> : vector<112x256xf32>
    %41 = tpu.matmul %38, %40, %cst_38 {dimension_numbers = #tpu.dot_dimension_numbers<[1], [0], [0], [1], [0, 0, 1, 1], [], []>} : vector<112x128xbf16>, vector<128x256xbf16>, vector<112x256xf32> -> vector<112x256xf32>
    %42 = arith.addf %35, %41 : vector<112x256xf32>
    %c0_39 = arith.constant 0 : index
    %c16_40 = arith.constant 16 : index
    %c1_41 = arith.constant 1 : index
    %c0_42 = arith.constant 0 : index
    %43 = vector.load %arg1[%c0_39, %c16_40, %c1_41, %c0_42] : memref<2x32x9x128xf32, #tpu.memory_space<vmem>>, vector<2x7x8x128xf32>
    %44 = vector.shape_cast %43 : vector<2x7x8x128xf32> to vector<112x128xf32>
    %45 = arith.truncf %44 : vector<112x128xf32> to vector<112x128xbf16>
    %c6 = arith.constant 6 : index
    %c0_43 = arith.constant 0 : index
    %c0_44 = arith.constant 0 : index
    %46 = vector.load %arg2[%c6, %c0_43, %c0_44] : memref<16x128x256xbf16, #tpu.memory_space<vmem>>, vector<1x128x256xbf16>
    %47 = vector.shape_cast %46 : vector<1x128x256xbf16> to vector<128x256xbf16>
    %cst_45 = arith.constant dense<0.000000e+00> : vector<112x256xf32>
    %48 = tpu.matmul %45, %47, %cst_45 {dimension_numbers = #tpu.dot_dimension_numbers<[1], [0], [0], [1], [0, 0, 1, 1], [], []>} : vector<112x128xbf16>, vector<128x256xbf16>, vector<112x256xf32> -> vector<112x256xf32>
    %49 = arith.addf %42, %48 : vector<112x256xf32>
    %c0_46 = arith.constant 0 : index
    %c24_47 = arith.constant 24 : index
    %c1_48 = arith.constant 1 : index
    %c0_49 = arith.constant 0 : index
    %50 = vector.load %arg1[%c0_46, %c24_47, %c1_48, %c0_49] : memref<2x32x9x128xf32, #tpu.memory_space<vmem>>, vector<2x7x8x128xf32>
    %51 = vector.shape_cast %50 : vector<2x7x8x128xf32> to vector<112x128xf32>
    %52 = arith.truncf %51 : vector<112x128xf32> to vector<112x128xbf16>
    %c7 = arith.constant 7 : index
    %c0_50 = arith.constant 0 : index
    %c0_51 = arith.constant 0 : index
    %53 = vector.load %arg2[%c7, %c0_50, %c0_51] : memref<16x128x256xbf16, #tpu.memory_space<vmem>>, vector<1x128x256xbf16>
    %54 = vector.shape_cast %53 : vector<1x128x256xbf16> to vector<128x256xbf16>
    %cst_52 = arith.constant dense<0.000000e+00> : vector<112x256xf32>
    %55 = tpu.matmul %52, %54, %cst_52 {dimension_numbers = #tpu.dot_dimension_numbers<[1], [0], [0], [1], [0, 0, 1, 1], [], []>} : vector<112x128xbf16>, vector<128x256xbf16>, vector<112x256xf32> -> vector<112x256xf32>
    %56 = arith.addf %49, %55 : vector<112x256xf32>
    %c0_53 = arith.constant 0 : index
    %c1_54 = arith.constant 1 : index
    %c0_55 = arith.constant 0 : index
    %c0_56 = arith.constant 0 : index
    %57 = vector.load %arg1[%c0_53, %c1_54, %c0_55, %c0_56] : memref<2x32x9x128xf32, #tpu.memory_space<vmem>>, vector<2x7x8x128xf32>
    %58 = vector.shape_cast %57 : vector<2x7x8x128xf32> to vector<112x128xf32>
    %59 = arith.truncf %58 : vector<112x128xf32> to vector<112x128xbf16>
    %c8_57 = arith.constant 8 : index
    %c0_58 = arith.constant 0 : index
    %c0_59 = arith.constant 0 : index
    %60 = vector.load %arg2[%c8_57, %c0_58, %c0_59] : memref<16x128x256xbf16, #tpu.memory_space<vmem>>, vector<1x128x256xbf16>
    %61 = vector.shape_cast %60 : vector<1x128x256xbf16> to vector<128x256xbf16>
    %cst_60 = arith.constant dense<0.000000e+00> : vector<112x256xf32>
    %62 = tpu.matmul %59, %61, %cst_60 {dimension_numbers = #tpu.dot_dimension_numbers<[1], [0], [0], [1], [0, 0, 1, 1], [], []>} : vector<112x128xbf16>, vector<128x256xbf16>, vector<112x256xf32> -> vector<112x256xf32>
    %63 = arith.addf %56, %62 : vector<112x256xf32>
    %c0_61 = arith.constant 0 : index
    %c9 = arith.constant 9 : index
    %c0_62 = arith.constant 0 : index
    %c0_63 = arith.constant 0 : index
    %64 = vector.load %arg1[%c0_61, %c9, %c0_62, %c0_63] : memref<2x32x9x128xf32, #tpu.memory_space<vmem>>, vector<2x7x8x128xf32>
    %65 = vector.shape_cast %64 : vector<2x7x8x128xf32> to vector<112x128xf32>
    %66 = arith.truncf %65 : vector<112x128xf32> to vector<112x128xbf16>
    %c9_64 = arith.constant 9 : index
    %c0_65 = arith.constant 0 : index
    %c0_66 = arith.constant 0 : index
    %67 = vector.load %arg2[%c9_64, %c0_65, %c0_66] : memref<16x128x256xbf16, #tpu.memory_space<vmem>>, vector<1x128x256xbf16>
    %68 = vector.shape_cast %67 : vector<1x128x256xbf16> to vector<128x256xbf16>
    %cst_67 = arith.constant dense<0.000000e+00> : vector<112x256xf32>
    %69 = tpu.matmul %66, %68, %cst_67 {dimension_numbers = #tpu.dot_dimension_numbers<[1], [0], [0], [1], [0, 0, 1, 1], [], []>} : vector<112x128xbf16>, vector<128x256xbf16>, vector<112x256xf32> -> vector<112x256xf32>
    %70 = arith.addf %63, %69 : vector<112x256xf32>
    %c0_68 = arith.constant 0 : index
    %c1_69 = arith.constant 1 : index
    %c1_70 = arith.constant 1 : index
    %c0_71 = arith.constant 0 : index
    %71 = vector.load %arg1[%c0_68, %c1_69, %c1_70, %c0_71] : memref<2x32x9x128xf32, #tpu.memory_space<vmem>>, vector<2x7x8x128xf32>
    %72 = vector.shape_cast %71 : vector<2x7x8x128xf32> to vector<112x128xf32>
    %73 = arith.truncf %72 : vector<112x128xf32> to vector<112x128xbf16>
    %c10 = arith.constant 10 : index
    %c0_72 = arith.constant 0 : index
    %c0_73 = arith.constant 0 : index
    %74 = vector.load %arg2[%c10, %c0_72, %c0_73] : memref<16x128x256xbf16, #tpu.memory_space<vmem>>, vector<1x128x256xbf16>
    %75 = vector.shape_cast %74 : vector<1x128x256xbf16> to vector<128x256xbf16>
    %cst_74 = arith.constant dense<0.000000e+00> : vector<112x256xf32>
    %76 = tpu.matmul %73, %75, %cst_74 {dimension_numbers = #tpu.dot_dimension_numbers<[1], [0], [0], [1], [0, 0, 1, 1], [], []>} : vector<112x128xbf16>, vector<128x256xbf16>, vector<112x256xf32> -> vector<112x256xf32>
    %77 = arith.addf %70, %76 : vector<112x256xf32>
    %c0_75 = arith.constant 0 : index
    %c9_76 = arith.constant 9 : index
    %c1_77 = arith.constant 1 : index
    %c0_78 = arith.constant 0 : index
    %78 = vector.load %arg1[%c0_75, %c9_76, %c1_77, %c0_78] : memref<2x32x9x128xf32, #tpu.memory_space<vmem>>, vector<2x7x8x128xf32>
    %79 = vector.shape_cast %78 : vector<2x7x8x128xf32> to vector<112x128xf32>
    %80 = arith.truncf %79 : vector<112x128xf32> to vector<112x128xbf16>
    %c11 = arith.constant 11 : index
    %c0_79 = arith.constant 0 : index
    %c0_80 = arith.constant 0 : index
    %81 = vector.load %arg2[%c11, %c0_79, %c0_80] : memref<16x128x256xbf16, #tpu.memory_space<vmem>>, vector<1x128x256xbf16>
    %82 = vector.shape_cast %81 : vector<1x128x256xbf16> to vector<128x256xbf16>
    %cst_81 = arith.constant dense<0.000000e+00> : vector<112x256xf32>
    %83 = tpu.matmul %80, %82, %cst_81 {dimension_numbers = #tpu.dot_dimension_numbers<[1], [0], [0], [1], [0, 0, 1, 1], [], []>} : vector<112x128xbf16>, vector<128x256xbf16>, vector<112x256xf32> -> vector<112x256xf32>
    %84 = arith.addf %77, %83 : vector<112x256xf32>
    %c0_82 = arith.constant 0 : index
    %c17 = arith.constant 17 : index
    %c0_83 = arith.constant 0 : index
    %c0_84 = arith.constant 0 : index
    %85 = vector.load %arg1[%c0_82, %c17, %c0_83, %c0_84] : memref<2x32x9x128xf32, #tpu.memory_space<vmem>>, vector<2x7x8x128xf32>
    %86 = vector.shape_cast %85 : vector<2x7x8x128xf32> to vector<112x128xf32>
    %87 = arith.truncf %86 : vector<112x128xf32> to vector<112x128xbf16>
    %c12 = arith.constant 12 : index
    %c0_85 = arith.constant 0 : index
    %c0_86 = arith.constant 0 : index
    %88 = vector.load %arg2[%c12, %c0_85, %c0_86] : memref<16x128x256xbf16, #tpu.memory_space<vmem>>, vector<1x128x256xbf16>
    %89 = vector.shape_cast %88 : vector<1x128x256xbf16> to vector<128x256xbf16>
    %cst_87 = arith.constant dense<0.000000e+00> : vector<112x256xf32>
    %90 = tpu.matmul %87, %89, %cst_87 {dimension_numbers = #tpu.dot_dimension_numbers<[1], [0], [0], [1], [0, 0, 1, 1], [], []>} : vector<112x128xbf16>, vector<128x256xbf16>, vector<112x256xf32> -> vector<112x256xf32>
    %91 = arith.addf %84, %90 : vector<112x256xf32>
    %c0_88 = arith.constant 0 : index
    %c25 = arith.constant 25 : index
    %c0_89 = arith.constant 0 : index
    %c0_90 = arith.constant 0 : index
    %92 = vector.load %arg1[%c0_88, %c25, %c0_89, %c0_90] : memref<2x32x9x128xf32, #tpu.memory_space<vmem>>, vector<2x7x8x128xf32>
    %93 = vector.shape_cast %92 : vector<2x7x8x128xf32> to vector<112x128xf32>
    %94 = arith.truncf %93 : vector<112x128xf32> to vector<112x128xbf16>
    %c13 = arith.constant 13 : index
    %c0_91 = arith.constant 0 : index
    %c0_92 = arith.constant 0 : index
    %95 = vector.load %arg2[%c13, %c0_91, %c0_92] : memref<16x128x256xbf16, #tpu.memory_space<vmem>>, vector<1x128x256xbf16>
    %96 = vector.shape_cast %95 : vector<1x128x256xbf16> to vector<128x256xbf16>
    %cst_93 = arith.constant dense<0.000000e+00> : vector<112x256xf32>
    %97 = tpu.matmul %94, %96, %cst_93 {dimension_numbers = #tpu.dot_dimension_numbers<[1], [0], [0], [1], [0, 0, 1, 1], [], []>} : vector<112x128xbf16>, vector<128x256xbf16>, vector<112x256xf32> -> vector<112x256xf32>
    %98 = arith.addf %91, %97 : vector<112x256xf32>
    %c0_94 = arith.constant 0 : index
    %c17_95 = arith.constant 17 : index
    %c1_96 = arith.constant 1 : index
    %c0_97 = arith.constant 0 : index
    %99 = vector.load %arg1[%c0_94, %c17_95, %c1_96, %c0_97] : memref<2x32x9x128xf32, #tpu.memory_space<vmem>>, vector<2x7x8x128xf32>
    %100 = vector.shape_cast %99 : vector<2x7x8x128xf32> to vector<112x128xf32>
    %101 = arith.truncf %100 : vector<112x128xf32> to vector<112x128xbf16>
    %c14 = arith.constant 14 : index
    %c0_98 = arith.constant 0 : index
    %c0_99 = arith.constant 0 : index
    %102 = vector.load %arg2[%c14, %c0_98, %c0_99] : memref<16x128x256xbf16, #tpu.memory_space<vmem>>, vector<1x128x256xbf16>
    %103 = vector.shape_cast %102 : vector<1x128x256xbf16> to vector<128x256xbf16>
    %cst_100 = arith.constant dense<0.000000e+00> : vector<112x256xf32>
    %104 = tpu.matmul %101, %103, %cst_100 {dimension_numbers = #tpu.dot_dimension_numbers<[1], [0], [0], [1], [0, 0, 1, 1], [], []>} : vector<112x128xbf16>, vector<128x256xbf16>, vector<112x256xf32> -> vector<112x256xf32>
    %105 = arith.addf %98, %104 : vector<112x256xf32>
    %c0_101 = arith.constant 0 : index
    %c25_102 = arith.constant 25 : index
    %c1_103 = arith.constant 1 : index
    %c0_104 = arith.constant 0 : index
    %106 = vector.load %arg1[%c0_101, %c25_102, %c1_103, %c0_104] : memref<2x32x9x128xf32, #tpu.memory_space<vmem>>, vector<2x7x8x128xf32>
    %107 = vector.shape_cast %106 : vector<2x7x8x128xf32> to vector<112x128xf32>
    %108 = arith.truncf %107 : vector<112x128xf32> to vector<112x128xbf16>
    %c15 = arith.constant 15 : index
    %c0_105 = arith.constant 0 : index
    %c0_106 = arith.constant 0 : index
    %109 = vector.load %arg2[%c15, %c0_105, %c0_106] : memref<16x128x256xbf16, #tpu.memory_space<vmem>>, vector<1x128x256xbf16>
    %110 = vector.shape_cast %109 : vector<1x128x256xbf16> to vector<128x256xbf16>
    %cst_107 = arith.constant dense<0.000000e+00> : vector<112x256xf32>
    %111 = tpu.matmul %108, %110, %cst_107 {dimension_numbers = #tpu.dot_dimension_numbers<[1], [0], [0], [1], [0, 0, 1, 1], [], []>} : vector<112x128xbf16>, vector<128x256xbf16>, vector<112x256xf32> -> vector<112x256xf32>
    %112 = arith.addf %105, %111 : vector<112x256xf32>
    %c0_108 = arith.constant 0 : index
    %c0_109 = arith.constant 0 : index
    %113 = vector.load %arg3[%c0_108, %c0_109] : memref<1x256xf32, #tpu.memory_space<vmem>>, vector<1x256xf32>
    %114 = vector.broadcast %113 : vector<1x256xf32> to vector<112x256xf32>
    %115 = arith.addf %112, %114 : vector<112x256xf32>
    %cst_110 = arith.constant 0.000000e+00 : f32
    %116 = vector.broadcast %cst_110 : f32 to vector<112x256xf32>
    %117 = arith.cmpf oge, %115, %116 : vector<112x256xf32>
    %cst_111 = arith.constant 2.000000e-01 : f32
    %118 = vector.broadcast %cst_111 : f32 to vector<112x256xf32>
    %119 = arith.mulf %118, %115 : vector<112x256xf32>
    %120 = arith.select %117, %115, %119 : vector<112x256xi1>, vector<112x256xf32>
    %121 = arith.truncf %120 : vector<112x256xf32> to vector<112x256xbf16>
    %c0_112 = arith.constant 0 : index
    %c0_113 = arith.constant 0 : index
    %122 = vector.load %arg4[%c0_112, %c0_113] : memref<112x256xbf16, #tpu.memory_space<vmem>>, vector<112x256xbf16>
    tpu.vector_store %arg4[%c0_112, %c0_113], %121 {strides = array<i32>} : memref<112x256xbf16, #tpu.memory_space<vmem>>, vector<112x256xbf16>,
    return
  }
  func.func @transform_0(%arg0: i32) -> (i32, i32, i32, i32) {
    %c0_i32 = arith.constant 0 : i32
    %c0_i32_0 = arith.constant 0 : i32
    %c0_i32_1 = arith.constant 0 : i32
    %c0_i32_2 = arith.constant 0 : i32
    return %arg0, %c0_i32, %c0_i32_0, %c0_i32_1 : i32, i32, i32, i32
  }
  func.func @transform_1(%arg0: i32) -> (i32, i32, i32) {
    %c0_i32 = arith.constant 0 : i32
    %c0_i32_0 = arith.constant 0 : i32
    %c0_i32_1 = arith.constant 0 : i32
    %c0_i32_2 = arith.constant 0 : i32
    return %c0_i32, %c0_i32_0, %c0_i32_1 : i32, i32, i32
  }
  func.func @transform_2(%arg0: i32) -> (i32, i32) {
    %c0_i32 = arith.constant 0 : i32
    %c0_i32_0 = arith.constant 0 : i32
    %c0_i32_1 = arith.constant 0 : i32
    return %c0_i32, %c0_i32_0 : i32, i32
  }
  func.func @transform_3(%arg0: i32) -> (i32, i32) {
    %c0_i32 = arith.constant 0 : i32
    %c0_i32_0 = arith.constant 0 : i32
    return %arg0, %c0_i32 : i32, i32
  }
}

module attributes {stable_mosaic.version = 11 : i64} {
  func.func @_fc_tail_kernel(%arg0: i32, %arg1: i32, %arg2: memref<8x2048xbf16, #tpu.memory_space<vmem>>, %arg3: memref<2048x256xbf16, #tpu.memory_space<vmem>>, %arg4: memref<1x256xf32, #tpu.memory_space<vmem>>, %arg5: memref<256x128xbf16, #tpu.memory_space<vmem>>, %arg6: memref<1x128xf32, #tpu.memory_space<vmem>>, %arg7: memref<8x128xf32, #tpu.memory_space<vmem>>, %arg8: memref<8x256xf32, #tpu.memory_space<vmem>>) attributes {dimension_semantics = [#tpu.dimension_semantics<parallel>, #tpu.dimension_semantics<arbitrary>], iteration_bounds = array<i64: 1, 7>, scalar_prefetch = 0 : i64, scratch_operands = 1 : i64, tpu.core_type = #tpu.core_type<tc>, window_params = [{transform_indices = @transform_0, window_bounds = array<i64: 8, 2048>}, {transform_indices = @transform_1, window_bounds = array<i64: 2048, 256>}, {pipeline_mode = #tpu.pipeline_mode<synchronous>, transform_indices = @transform_2, window_bounds = array<i64: 1, 256>}, {pipeline_mode = #tpu.pipeline_mode<synchronous>, transform_indices = @transform_3, window_bounds = array<i64: 256, 128>}, {pipeline_mode = #tpu.pipeline_mode<synchronous>, transform_indices = @transform_4, window_bounds = array<i64: 1, 128>}, {transform_indices = @transform_5, window_bounds = array<i64: 8, 128>}]} {
    %c0_i32 = arith.constant 0 : i32
    %0 = arith.cmpi eq, %arg1, %c0_i32 : i32
    %1 = arith.extui %0 : i1 to i32
    %c0_i32_0 = arith.constant 0 : i32
    %2 = arith.cmpi ne, %1, %c0_i32_0 : i32
    scf.if %2 {
      %cst_9 = arith.constant 0.000000e+00 : f32
      %12 = vector.broadcast %cst_9 : f32 to vector<8x256xf32>
      %c0_10 = arith.constant 0 : index
      %c0_11 = arith.constant 0 : index
      %13 = vector.load %arg8[%c0_10, %c0_11] : memref<8x256xf32, #tpu.memory_space<vmem>>, vector<8x256xf32>
      tpu.vector_store %arg8[%c0_10, %c0_11], %12 {strides = array<i32>} : memref<8x256xf32, #tpu.memory_space<vmem>>, vector<8x256xf32>,
    } else {
    }
    %c0 = arith.constant 0 : index
    %c0_1 = arith.constant 0 : index
    %3 = vector.load %arg8[%c0, %c0_1] : memref<8x256xf32, #tpu.memory_space<vmem>>, vector<8x256xf32>
    %c0_2 = arith.constant 0 : index
    %c0_3 = arith.constant 0 : index
    %4 = vector.load %arg2[%c0_2, %c0_3] : memref<8x2048xbf16, #tpu.memory_space<vmem>>, vector<8x2048xbf16>
    %c0_4 = arith.constant 0 : index
    %c0_5 = arith.constant 0 : index
    %5 = vector.load %arg3[%c0_4, %c0_5] : memref<2048x256xbf16, #tpu.memory_space<vmem>>, vector<2048x256xbf16>
    %cst = arith.constant dense<0.000000e+00> : vector<8x256xf32>
    %6 = tpu.matmul %4, %5, %cst {dimension_numbers = #tpu.dot_dimension_numbers<[1], [0], [0], [1], [0, 0, 1, 1], [], []>} : vector<8x2048xbf16>, vector<2048x256xbf16>, vector<8x256xf32> -> vector<8x256xf32>
    %7 = arith.addf %3, %6 : vector<8x256xf32>
    %c0_6 = arith.constant 0 : index
    %c0_7 = arith.constant 0 : index
    %8 = vector.load %arg8[%c0_6, %c0_7] : memref<8x256xf32, #tpu.memory_space<vmem>>, vector<8x256xf32>
    tpu.vector_store %arg8[%c0_6, %c0_7], %7 {strides = array<i32>} : memref<8x256xf32, #tpu.memory_space<vmem>>, vector<8x256xf32>,
    %c6_i32 = arith.constant 6 : i32
    %9 = arith.cmpi eq, %arg1, %c6_i32 : i32
    %10 = arith.extui %9 : i1 to i32
    %c0_i32_8 = arith.constant 0 : i32
    %11 = arith.cmpi ne, %10, %c0_i32_8 : i32
    scf.if %11 {
      %c0_9 = arith.constant 0 : index
      %c0_10 = arith.constant 0 : index
      %12 = vector.load %arg8[%c0_9, %c0_10] : memref<8x256xf32, #tpu.memory_space<vmem>>, vector<8x256xf32>
      %c0_11 = arith.constant 0 : index
      %c0_12 = arith.constant 0 : index
      %13 = vector.load %arg4[%c0_11, %c0_12] : memref<1x256xf32, #tpu.memory_space<vmem>>, vector<1x256xf32>
      %14 = vector.broadcast %13 : vector<1x256xf32> to vector<8x256xf32>
      %15 = arith.addf %12, %14 : vector<8x256xf32>
      %cst_13 = arith.constant 0.000000e+00 : f32
      %16 = vector.broadcast %cst_13 : f32 to vector<8x256xf32>
      %17 = arith.cmpf oge, %15, %16 : vector<8x256xf32>
      %cst_14 = arith.constant 2.000000e-01 : f32
      %18 = vector.broadcast %cst_14 : f32 to vector<8x256xf32>
      %19 = arith.mulf %18, %15 : vector<8x256xf32>
      %20 = arith.select %17, %15, %19 : vector<8x256xi1>, vector<8x256xf32>
      %21 = arith.truncf %20 : vector<8x256xf32> to vector<8x256xbf16>
      %c0_15 = arith.constant 0 : index
      %c0_16 = arith.constant 0 : index
      %22 = vector.load %arg5[%c0_15, %c0_16] : memref<256x128xbf16, #tpu.memory_space<vmem>>, vector<256x128xbf16>
      %cst_17 = arith.constant dense<0.000000e+00> : vector<8x128xf32>
      %23 = tpu.matmul %21, %22, %cst_17 {dimension_numbers = #tpu.dot_dimension_numbers<[1], [0], [0], [1], [0, 0, 1, 1], [], []>} : vector<8x256xbf16>, vector<256x128xbf16>, vector<8x128xf32> -> vector<8x128xf32>
      %c0_18 = arith.constant 0 : index
      %c0_19 = arith.constant 0 : index
      %24 = vector.load %arg6[%c0_18, %c0_19] : memref<1x128xf32, #tpu.memory_space<vmem>>, vector<1x128xf32>
      %25 = vector.broadcast %24 : vector<1x128xf32> to vector<8x128xf32>
      %26 = arith.addf %23, %25 : vector<8x128xf32>
      %c0_20 = arith.constant 0 : index
      %c0_21 = arith.constant 0 : index
      %27 = vector.load %arg7[%c0_20, %c0_21] : memref<8x128xf32, #tpu.memory_space<vmem>>, vector<8x128xf32>
      tpu.vector_store %arg7[%c0_20, %c0_21], %26 {strides = array<i32>} : memref<8x128xf32, #tpu.memory_space<vmem>>, vector<8x128xf32>,
    } else {
    }
    return
  }
  func.func @transform_0(%arg0: i32, %arg1: i32) -> (i32, i32) {
    %c0_i32 = arith.constant 0 : i32
    return %arg0, %arg1 : i32, i32
  }
  func.func @transform_1(%arg0: i32, %arg1: i32) -> (i32, i32) {
    %c0_i32 = arith.constant 0 : i32
    %c0_i32_0 = arith.constant 0 : i32
    return %arg1, %c0_i32 : i32, i32
  }
  func.func @transform_2(%arg0: i32, %arg1: i32) -> (i32, i32) {
    %c0_i32 = arith.constant 0 : i32
    %c0_i32_0 = arith.constant 0 : i32
    %c0_i32_1 = arith.constant 0 : i32
    return %c0_i32, %c0_i32_0 : i32, i32
  }
  func.func @transform_3(%arg0: i32, %arg1: i32) -> (i32, i32) {
    %c0_i32 = arith.constant 0 : i32
    %c0_i32_0 = arith.constant 0 : i32
    %c0_i32_1 = arith.constant 0 : i32
    return %c0_i32, %c0_i32_0 : i32, i32
  }
  func.func @transform_4(%arg0: i32, %arg1: i32) -> (i32, i32) {
    %c0_i32 = arith.constant 0 : i32
    %c0_i32_0 = arith.constant 0 : i32
    %c0_i32_1 = arith.constant 0 : i32
    return %c0_i32, %c0_i32_0 : i32, i32
  }
  func.func @transform_5(%arg0: i32, %arg1: i32) -> (i32, i32) {
    %c0_i32 = arith.constant 0 : i32
    %c0_i32_0 = arith.constant 0 : i32
    return %arg0, %c0_i32 : i32, i32
  }
}

</mosaic_0001>

<bundles_post_ra>
// kernel: encoder_forward.3
= control target key start
LH: loop header
LB: loop body
LE: loop exit
PB: predicated region body
PF: predicated region fallthrough
CT: control target
= control target key end

     0   :  { %s2152_s12 = smov 0   ;;  %s2444_s0 = inlined_call_operand.vmem [shape: bf16[1568,48], index: 0, kind: input, shape index: {}]   ;;  %s2445_s1 = inlined_call_operand.vmem [shape: bf16[48,128], index: 1, kind: input, shape index: {}]   ;;  %s2446_s2 = inlined_call_operand.vmem [shape: f32[1,128], index: 2, kind: input, shape index: {}]   ;;  %s2447_s3 = inlined_call_operand.vmem [shape: bf16[1568,128], index: 3, kind: output, shape index: {}]  }
   0x1 LB: > { %s1494_s13 = sadd.s32 4294967295, %s2130_s12   ;;  %p1498_p0 = scmp.ge.s32.totalorder %s2130_s12, 1  ;;  %s2130_s12 = sphi %s2152_s12, %s13_s12  }
   0x2   : > { %p138_p1 = scmp.lt.s32.totalorder %s2130_s12, 3 }
   0x4   : > { %p139_p2 = pnand %p1498_p0, %p138_p1 }
   0x5   : > { %s162_s16 = smul.u32 (!%p139_p2), 98, %s1494_s13 }
   0x6   : > { %142 = sbr.rel (%p139_p2) target bundleno = 363 (0x16b), region = 32 }
   0x7   : > { %p163_p3 = scmp.lt.s32.totalorder (!%p139_p2), %s162_s16, 195 }
   0xb   : > { %v1811_v0 = vld [vmem:[%s2445_s1 + $0x10] sm:$0xff]  ;;  %v1810_v1 = vld [vmem:[%s2445_s1 + $0x8] sm:$0xff]  ;;  %s2449_s16 = smov (!%p163_p3, %s162_s16), 195  ;;  %v1809_v2 = vld [vmem:[%s2445_s1] sm:$0xff]  ;;  %vm546_vm0 = vcmask 392192  }
   0xc   : > { %2105 = vmatpush.bf16.msra.mxu1 %v1811_v0  ;;  %2106 = vmatpush.bf16.msra.mxu2 %v1811_v0  ;;  %s1499_s21 = sshll.u32 %s2449_s16, 2  ;;  %v2250_v40 = vld [vmem:[%s2446_s2] ss:$0 sm:$0xff] }
   0xd   : > { %699 = vmatpush.bf16.msra.mxu0 %v1811_v0  ;;  %2107 = vmatpush.bf16.msra.mxu3 %v1811_v0  ;;  %s2177_s24 = scalar_lea.vmem %s2444_s0, %s1499_s21  ;;  %s2267_s29 = scalar_lea.vmem %s2447_s3, %s1499_s21 }
   0xe   : > { %v1772_v3 = vld [vmem:[%s2177_s24 + $0x60] sm:$0xff]  ;;  %v1785_v4 = vld [vmem:[%s2177_s24 + $0xc8] sm:$0xff]  ;;  %v1798_v6 = vld [vmem:[%s2177_s24 + $0x130] sm:$0xff] }
   0xf   : > { %v1760_v5 = vld [vmem:[%s2177_s24] sm:$0xff]  ;;  %v1773_v7 = vld [vmem:[%s2177_s24 + $0x68] sm:$0xff]  ;;  %v1786_v8 = vld [vmem:[%s2177_s24 + $0xd0] sm:$0xff] }
  0x10   : > { %2108 = vmatpush.bf16.msra.mxu1 %v1810_v1  ;;  %2109 = vmatpush.bf16.msra.mxu2 %v1810_v1  ;;  %v1761_v9 = vld [vmem:[%s2177_s24 + $0x8] sm:$0xff]  ;;  %v1799_v10 = vld [vmem:[%s2177_s24 + $0x138] sm:$0xff]  ;;  %v1774_v11 = vld [vmem:[%s2177_s24 + $0x70] sm:$0xff] }
  0x11   : > { %700 = vmatpush.bf16.msra.mxu0 %v1810_v1  ;;  %2110 = vmatpush.bf16.msra.mxu3 %v1810_v1  ;;  %v1787_v12 = vld [vmem:[%s2177_s24 + $0xd8] sm:$0xff]  ;;  %v1762_v13 = vld [vmem:[%s2177_s24 + $0x10] sm:$0xff]  ;;  %v1800_v14 = vld [vmem:[%s2177_s24 + $0x140] sm:$0xff] }
  0x12   : > { %v1775_v15 = vld [vmem:[%s2177_s24 + $0x78] sm:$0xff]  ;;  %v1788_v16 = vld [vmem:[%s2177_s24 + $0xe0] sm:$0xff]  ;;  %v1801_v18 = vld [vmem:[%s2177_s24 + $0x148] sm:$0xff] }
  0x13   : > { %v1763_v17 = vld [vmem:[%s2177_s24 + $0x18] sm:$0xff]  ;;  %v1776_v19 = vld [vmem:[%s2177_s24 + $0x80] sm:$0xff]  ;;  %v1789_v20 = vld [vmem:[%s2177_s24 + $0xe8] sm:$0xff] }
  0x14   : > { %2111 = vmatpush.bf16.msra.mxu1 %v1809_v2  ;;  %2112 = vmatpush.bf16.msra.mxu2 %v1809_v2  ;;  %v1764_v21 = vld [vmem:[%s2177_s24 + $0x20] sm:$0xff]  ;;  %v1802_v22 = vld [vmem:[%s2177_s24 + $0x150] sm:$0xff]  ;;  %v1777_v23 = vld [vmem:[%s2177_s24 + $0x88] sm:$0xff] }
  0x15   : > { %701 = vmatpush.bf16.msra.mxu0 %v1809_v2  ;;  %2113 = vmatpush.bf16.msra.mxu3 %v1809_v2  ;;  %v1790_v24 = vld [vmem:[%s2177_s24 + $0xf0] sm:$0xff]  ;;  %v1765_v25 = vld [vmem:[%s2177_s24 + $0x28] sm:$0xff]  ;;  %v1803_v26 = vld [vmem:[%s2177_s24 + $0x158] sm:$0xff] }
  0x16   : > { %v1778_v27 = vld [vmem:[%s2177_s24 + $0x90] sm:$0xff]  ;;  %v1791_v28 = vld [vmem:[%s2177_s24 + $0xf8] sm:$0xff]  ;;  %v1804_v30 = vld [vmem:[%s2177_s24 + $0x160] sm:$0xff] }
  0x17   : > { %1721 = vmatmul.msk.bf16.vlgmr.msra.gmra.mxu1 %vm546_vm0, %v1772_v3  ;;  %1734 = vmatmul.msk.bf16.vlgmr.msra.gmra.mxu2 %vm546_vm0, %v1785_v4  ;;  %v1766_v29 = vld [vmem:[%s2177_s24 + $0x30] sm:$0xff]  ;;  %v1779_v31 = vld [vmem:[%s2177_s24 + $0x98] sm:$0xff]  ;;  %v1792_v32 = vld [vmem:[%s2177_s24 + $0x100] sm:$0xff] }
  0x18   : > { %1709 = vmatmul.msk.bf16.vlgmr.msra.gmra.mxu0 %vm546_vm0, %v1760_v5  ;;  %1747 = vmatmul.msk.bf16.vlgmr.msra.gmra.mxu3 %vm546_vm0, %v1798_v6  ;;  %v1767_v33 = vld [vmem:[%s2177_s24 + $0x38] sm:$0xff]  ;;  %v1805_v34 = vld [vmem:[%s2177_s24 + $0x168] sm:$0xff]  ;;  %v1780_v35 = vld [vmem:[%s2177_s24 + $0xa0] sm:$0xff] }
  0x19   : > { %v1793_v36 = vld [vmem:[%s2177_s24 + $0x108] sm:$0xff]  ;;  %v1768_v38 = vld [vmem:[%s2177_s24 + $0x40] sm:$0xff]  ;;  %v1806_v39 = vld [vmem:[%s2177_s24 + $0x170] sm:$0xff] }
  0x1a   : > { %v1781_v1 = vld [vmem:[%s2177_s24 + $0xa8] sm:$0xff]  ;;  %v1794_v2 = vld [vmem:[%s2177_s24 + $0x110] sm:$0xff] }
  0x1b   : > { %v1769_v6 = vld [vmem:[%s2177_s24 + $0x48] sm:$0xff] }
  0x27   : > { %1722 = vmatmul.msk.bf16.gmra.mxu1 %vm546_vm0, %v1773_v7  ;;  %1735 = vmatmul.msk.bf16.gmra.mxu2 %vm546_vm0, %v1786_v8  ;;  %v1807_v8 = vld [vmem:[%s2177_s24 + $0x178] sm:$0xff] }
  0x28   : > { %1710 = vmatmul.msk.bf16.gmra.mxu0 %vm546_vm0, %v1761_v9  ;;  %1748 = vmatmul.msk.bf16.gmra.mxu3 %vm546_vm0, %v1799_v10 }
  0x37   : > { %1723 = vmatmul.msk.bf16.gmra.mxu1 %vm546_vm0, %v1774_v11  ;;  %1736 = vmatmul.msk.bf16.gmra.mxu2 %vm546_vm0, %v1787_v12 }
  0x38   : > { %1711 = vmatmul.msk.bf16.gmra.mxu0 %vm546_vm0, %v1762_v13  ;;  %1749 = vmatmul.msk.bf16.gmra.mxu3 %vm546_vm0, %v1800_v14 }
  0x47   : > { %1724 = vmatmul.msk.bf16.gmra.mxu1 %vm546_vm0, %v1775_v15  ;;  %1737 = vmatmul.msk.bf16.gmra.mxu2 %vm546_vm0, %v1788_v16 }
  0x48   : > { %1712 = vmatmul.msk.bf16.gmra.mxu0 %vm546_vm0, %v1763_v17  ;;  %1750 = vmatmul.msk.bf16.gmra.mxu3 %vm546_vm0, %v1801_v18 }
  0x57   : > { %1725 = vmatmul.msk.bf16.gmra.mxu1 %vm546_vm0, %v1776_v19  ;;  %1738 = vmatmul.msk.bf16.gmra.mxu2 %vm546_vm0, %v1789_v20 }
  0x58   : > { %1713 = vmatmul.msk.bf16.gmra.mxu0 %vm546_vm0, %v1764_v21  ;;  %1751 = vmatmul.msk.bf16.gmra.mxu3 %vm546_vm0, %v1802_v22 }
  0x67   : > { %1726 = vmatmul.msk.bf16.gmra.mxu1 %vm546_vm0, %v1777_v23  ;;  %1739 = vmatmul.msk.bf16.gmra.mxu2 %vm546_vm0, %v1790_v24 }
  0x68   : > { %1714 = vmatmul.msk.bf16.gmra.mxu0 %vm546_vm0, %v1765_v25  ;;  %1752 = vmatmul.msk.bf16.gmra.mxu3 %vm546_vm0, %v1803_v26 }
  0x77   : > { %1727 = vmatmul.msk.bf16.gmra.mxu1 %vm546_vm0, %v1778_v27  ;;  %1740 = vmatmul.msk.bf16.gmra.mxu2 %vm546_vm0, %v1791_v28 }
  0x78   : > { %1715 = vmatmul.msk.bf16.gmra.mxu0 %vm546_vm0, %v1766_v29  ;;  %1753 = vmatmul.msk.bf16.gmra.mxu3 %vm546_vm0, %v1804_v30 }
  0x87   : > { %1728 = vmatmul.msk.bf16.gmra.mxu1 %vm546_vm0, %v1779_v31  ;;  %1741 = vmatmul.msk.bf16.gmra.mxu2 %vm546_vm0, %v1792_v32 }
  0x88   : > { %1716 = vmatmul.msk.bf16.gmra.mxu0 %vm546_vm0, %v1767_v33  ;;  %1754 = vmatmul.msk.bf16.gmra.mxu3 %vm546_vm0, %v1805_v34 }
  0x94   : > { %v763_v37 = vpop.f32.mrf.mxu1 }
  0x95   : > { %v703_v41 = vpop.f32.mrf.mxu0  ;;  %v764_v43 = vadd.f32 %v2250_v40, %v763_v37 }
  0x96   : > { %v704_v42 = vadd.f32 %v2250_v40, %v703_v41 }
  0x97   : > { %1729 = vmatmul.msk.bf16.gmra.mxu1 %vm546_vm0, %v1780_v35  ;;  %1742 = vmatmul.msk.bf16.gmra.mxu2 %vm546_vm0, %v1793_v36  ;;  %v1070_v48 = vmul.f32 0.2, %v764_v43  ;;  %vm972_vm2 = vcmp.ge.f32.partialorder %v764_v43, 0.0 }
  0x98   : > { %1717 = vmatmul.msk.bf16.gmra.mxu0 %vm546_vm0, %v1768_v38  ;;  %1755 = vmatmul.msk.bf16.gmra.mxu3 %vm546_vm0, %v1806_v39  ;;  %v1046_v47 = vmul.f32 0.2, %v704_v42  ;;  %vm948_vm1 = vcmp.ge.f32.partialorder %v704_v42, 0.0 }
  0x99   : > { %v1168_v57 = vsel %vm972_vm2, %v764_v43, %v1070_v48  ;;  %v1795_v43 = vld [vmem:[%s2177_s24 + $0x118] sm:$0xff] }
  0x9a   : > { %v828_v44 = vpop.f32.mrf.mxu2  ;;  %v1144_v55 = vsel %vm948_vm1, %v704_v42, %v1046_v47  ;;  %v1782_v42 = vld [vmem:[%s2177_s24 + $0xb0] sm:$0xff] }
  0x9b   : > { %v893_v45 = vpop.f32.mrf.mxu3  ;;  %v829_v53 = vadd.f32 %v2250_v40, %v828_v44  ;;  %v1770_v47 = vld [vmem:[%s2177_s24 + $0x50] sm:$0xff] }
  0x9c   : > { %v765_v46 = vpop.f32.mrf.mxu1  ;;  %v894_v52 = vadd.f32 %v2250_v40, %v893_v45 }
  0x9d   : > { %v766_v49 = vadd.f32 %v2250_v40, %v765_v46  ;;  %v705_v50 = vpop.f32.mrf.mxu0  ;;  %v1096_v63 = vmul.f32 0.2, %v829_v53  ;;  %vm998_vm6 = vcmp.ge.f32.partialorder %v829_v53, 0.0 }
  0x9e   : > { %v706_v51 = vadd.f32 %v2250_v40, %v705_v50  ;;  %v1122_v62 = vmul.f32 0.2, %v894_v52  ;;  %vm1024_vm5 = vcmp.ge.f32.partialorder %v894_v52, 0.0 }
  0x9f   : > { %vm973_vm3 = vcmp.ge.f32.partialorder %v766_v49, 0.0  ;;  %v1071_v54 = vmul.f32 0.2, %v766_v49  ;;  %v1194_v13 = vsel %vm998_vm6, %v829_v53, %v1096_v63 }
  0xa0   : > { %vm949_vm4 = vcmp.ge.f32.partialorder %v706_v51, 0.0  ;;  %v1047_v56 = vmul.f32 0.2, %v706_v51  ;;  %v1220_v11 = vsel %vm1024_vm5, %v894_v52, %v1122_v62 }
  0xa1   : > { %v1169_v58 = vsel %vm973_vm3, %v766_v49, %v1071_v54  ;;  %v1808_v49 = vld [vmem:[%s2177_s24 + $0x180] sm:$0xff] }
  0xa2   : > { %v1875_v59 = vpack.c.bf16 %v1169_v58, %v1168_v57  ;;  %v830_v60 = vpop.f32.mrf.mxu2  ;;  %v1145_v61 = vsel %vm949_vm4, %v706_v51, %v1047_v56 }
  0xa3   : > { %v831_v0 = vadd.f32 %v2250_v40, %v830_v60  ;;  %v1815_v3 = vpack.c.bf16 %v1145_v61, %v1144_v55  ;;  %v895_v4 = vpop.f32.mrf.mxu3 }
  0xa4   : > { %2068 = vst [vmem:[%s2267_s29 + $0x60] sm:$0xff] %v1875_v59   ;;  %v768_v5 = vpop.f32.mrf.mxu1  ;;  %v896_v7 = vadd.f32 %v2250_v40, %v895_v4 }
  0xa5   : > { %vm999_vm7 = vcmp.ge.f32.partialorder %v831_v0, 0.0  ;;  %v1097_v9 = vmul.f32 0.2, %v831_v0  ;;  %1816 = vst [vmem:[%s2267_s29] sm:$0xff] %v1815_v3   ;;  %v708_v10 = vpop.f32.mrf.mxu0  ;;  %v769_v18 = vadd.f32 %v2250_v40, %v768_v5 }
  0xa6   : > { %vm1025_vm8 = vcmp.ge.f32.partialorder %v896_v7, 0.0  ;;  %v1123_v12 = vmul.f32 0.2, %v896_v7  ;;  %v709_v16 = vadd.f32 %v2250_v40, %v708_v10 }
  0xa7   : > { %v1195_v14 = vsel %vm999_vm7, %v831_v0, %v1097_v9  ;;  %1730 = vmatmul.msk.bf16.gmra.mxu1 %vm546_vm0, %v1781_v1  ;;  %1743 = vmatmul.msk.bf16.gmra.mxu2 %vm546_vm0, %v1794_v2  ;;  %v1072_v24 = vmul.f32 0.2, %v769_v18  ;;  %vm974_vm10 = vcmp.ge.f32.partialorder %v769_v18, 0.0 }
  0xa8   : > { %v1940_v15 = vpack.c.bf16 %v1195_v14, %v1194_v13  ;;  %1718 = vmatmul.msk.bf16.gmra.mxu0 %vm546_vm0, %v1769_v6  ;;  %v1221_v17 = vsel %vm1025_vm8, %v896_v7, %v1123_v12  ;;  %1756 = vmatmul.msk.bf16.gmra.mxu3 %vm546_vm0, %v1807_v8  ;;  %v1048_v23 = vmul.f32 0.2, %v709_v16  ;;  %vm950_vm9 = vcmp.ge.f32.partialorder %v709_v16, 0.0 }
  0xa9   : > { %v2005_v19 = vpack.c.bf16 %v1221_v17, %v1220_v11  ;;  %v1170_v33 = vsel %vm974_vm10, %v769_v18, %v1072_v24  ;;  %v1783_v18 = vld [vmem:[%s2177_s24 + $0xb8] sm:$0xff] }
  0xaa   : > { %2081 = vst [vmem:[%s2267_s29 + $0xc8] sm:$0xff] %v1940_v15   ;;  %v833_v20 = vpop.f32.mrf.mxu2  ;;  %v1146_v31 = vsel %vm950_vm9, %v709_v16, %v1048_v23  ;;  %v1771_v23 = vld [vmem:[%s2177_s24 + $0x58] sm:$0xff] }
  0xab   : > { %2094 = vst [vmem:[%s2267_s29 + $0x130] sm:$0xff] %v2005_v19   ;;  %v898_v21 = vpop.f32.mrf.mxu3  ;;  %v834_v29 = vadd.f32 %v2250_v40, %v833_v20  ;;  %v1796_v19 = vld [vmem:[%s2177_s24 + $0x120] sm:$0xff] }
  0xac   : > { %v770_v22 = vpop.f32.mrf.mxu1  ;;  %v899_v28 = vadd.f32 %v2250_v40, %v898_v21 }
  0xad   : > { %v771_v25 = vadd.f32 %v2250_v40, %v770_v22  ;;  %v710_v26 = vpop.f32.mrf.mxu0  ;;  %v1098_v39 = vmul.f32 0.2, %v834_v29  ;;  %vm1000_vm14 = vcmp.ge.f32.partialorder %v834_v29, 0.0 }
  0xae   : > { %v711_v27 = vadd.f32 %v2250_v40, %v710_v26  ;;  %v1124_v38 = vmul.f32 0.2, %v899_v28  ;;  %vm1026_vm13 = vcmp.ge.f32.partialorder %v899_v28, 0.0 }
  0xaf   : > { %vm975_vm11 = vcmp.ge.f32.partialorder %v771_v25, 0.0  ;;  %v1073_v30 = vmul.f32 0.2, %v771_v25  ;;  %v1196_v54 = vsel %vm1000_vm14, %v834_v29, %v1098_v39 }
  0xb0   : > { %vm951_vm12 = vcmp.ge.f32.partialorder %v711_v27, 0.0  ;;  %v1049_v32 = vmul.f32 0.2, %v711_v27  ;;  %v1222_v52 = vsel %vm1026_vm13, %v899_v28, %v1124_v38 }
  0xb1   : > { %v1171_v34 = vsel %vm975_vm11, %v771_v25, %v1073_v30 }
  0xb2   : > { %v1880_v35 = vpack.c.bf16 %v1171_v34, %v1170_v33  ;;  %v835_v36 = vpop.f32.mrf.mxu2  ;;  %v1147_v37 = vsel %vm951_vm12, %v711_v27, %v1049_v32 }
  0xb3   : > { %v836_v41 = vadd.f32 %v2250_v40, %v835_v36  ;;  %v1820_v44 = vpack.c.bf16 %v1147_v37, %v1146_v31  ;;  %v900_v45 = vpop.f32.mrf.mxu3 }
  0xb4   : > { %2069 = vst [vmem:[%s2267_s29 + $0x68] sm:$0xff] %v1880_v35   ;;  %v773_v46 = vpop.f32.mrf.mxu1  ;;  %v901_v48 = vadd.f32 %v2250_v40, %v900_v45 }
  0xb5   : > { %vm1001_vm15 = vcmp.ge.f32.partialorder %v836_v41, 0.0  ;;  %v1099_v50 = vmul.f32 0.2, %v836_v41  ;;  %2057 = vst [vmem:[%s2267_s29 + $0x8] sm:$0xff] %v1820_v44   ;;  %v713_v51 = vpop.f32.mrf.mxu0  ;;  %v774_v59 = vadd.f32 %v2250_v40, %v773_v46 }
  0xb6   : > { %vm1027_vm1 = vcmp.ge.f32.partialorder %v901_v48, 0.0  ;;  %v1125_v53 = vmul.f32 0.2, %v901_v48  ;;  %v714_v57 = vadd.f32 %v2250_v40, %v713_v51 }
  0xb7   : > { %v1197_v55 = vsel %vm1001_vm15, %v836_v41, %v1099_v50  ;;  %1731 = vmatmul.msk.bf16.gmra.mxu1 %vm546_vm0, %v1782_v42  ;;  %1744 = vmatmul.msk.bf16.gmra.mxu2 %vm546_vm0, %v1795_v43  ;;  %v1074_v1 = vmul.f32 0.2, %v774_v59  ;;  %vm976_vm3 = vcmp.ge.f32.partialorder %v774_v59, 0.0 }
  0xb8   : > { %v1945_v56 = vpack.c.bf16 %v1197_v55, %v1196_v54  ;;  %1719 = vmatmul.msk.bf16.gmra.mxu0 %vm546_vm0, %v1770_v47  ;;  %v1223_v58 = vsel %vm1027_vm1, %v901_v48, %v1125_v53  ;;  %1757 = vmatmul.msk.bf16.gmra.mxu3 %vm546_vm0, %v1808_v49  ;;  %v1050_v0 = vmul.f32 0.2, %v714_v57  ;;  %vm952_vm2 = vcmp.ge.f32.partialorder %v714_v57, 0.0 }
  0xb9   : > { %v2010_v60 = vpack.c.bf16 %v1223_v58, %v1222_v52  ;;  %v1172_v10 = vsel %vm976_vm3, %v774_v59, %v1074_v1  ;;  %v1784_v58 = vld [vmem:[%s2177_s24 + $0xc0] sm:$0xff]  ;;  %v1797_v59 = vld [vmem:[%s2177_s24 + $0x128] sm:$0xff] }
  0xba   : > { %2082 = vst [vmem:[%s2267_s29 + $0xd0] sm:$0xff] %v1945_v56   ;;  %v838_v61 = vpop.f32.mrf.mxu2  ;;  %v1148_v8 = vsel %vm952_vm2, %v714_v57, %v1050_v0 }
  0xbb   : > { %2095 = vst [vmem:[%s2267_s29 + $0x138] sm:$0xff] %v2010_v60   ;;  %v903_v62 = vpop.f32.mrf.mxu3  ;;  %v839_v6 = vadd.f32 %v2250_v40, %v838_v61 }
  0xbc   : > { %v775_v63 = vpop.f32.mrf.mxu1  ;;  %v904_v5 = vadd.f32 %v2250_v40, %v903_v62 }
  0xbd   : > { %v776_v2 = vadd.f32 %v2250_v40, %v775_v63  ;;  %v715_v3 = vpop.f32.mrf.mxu0  ;;  %v1100_v16 = vmul.f32 0.2, %v839_v6  ;;  %vm1002_vm7 = vcmp.ge.f32.partialorder %v839_v6, 0.0 }
  0xbe   : > { %v716_v4 = vadd.f32 %v2250_v40, %v715_v3  ;;  %v1126_v15 = vmul.f32 0.2, %v904_v5  ;;  %vm1028_vm6 = vcmp.ge.f32.partialorder %v904_v5, 0.0 }
  0xbf   : > { %vm977_vm4 = vcmp.ge.f32.partialorder %v776_v2, 0.0  ;;  %v1075_v7 = vmul.f32 0.2, %v776_v2  ;;  %v1198_v29 = vsel %vm1002_vm7, %v839_v6, %v1100_v16 }
  0xc0   : > { %vm953_vm5 = vcmp.ge.f32.partialorder %v716_v4, 0.0  ;;  %v1051_v9 = vmul.f32 0.2, %v716_v4  ;;  %v1224_v27 = vsel %vm1028_vm6, %v904_v5, %v1126_v15 }
  0xc1   : > { %v1173_v11 = vsel %vm977_vm4, %v776_v2, %v1075_v7 }
  0xc2   : > { %v1885_v12 = vpack.c.bf16 %v1173_v11, %v1172_v10  ;;  %v840_v13 = vpop.f32.mrf.mxu2  ;;  %v1149_v14 = vsel %vm953_vm5, %v716_v4, %v1051_v9 }
  0xc3   : > { %v841_v17 = vadd.f32 %v2250_v40, %v840_v13  ;;  %v1825_v20 = vpack.c.bf16 %v1149_v14, %v1148_v8  ;;  %v905_v21 = vpop.f32.mrf.mxu3 }
  0xc4   : > { %2070 = vst [vmem:[%s2267_s29 + $0x70] sm:$0xff] %v1885_v12   ;;  %v778_v22 = vpop.f32.mrf.mxu1  ;;  %v906_v24 = vadd.f32 %v2250_v40, %v905_v21 }
  0xc5   : > { %vm1003_vm8 = vcmp.ge.f32.partialorder %v841_v17, 0.0  ;;  %v1101_v25 = vmul.f32 0.2, %v841_v17  ;;  %2058 = vst [vmem:[%s2267_s29 + $0x10] sm:$0xff] %v1825_v20   ;;  %v718_v26 = vpop.f32.mrf.mxu0  ;;  %v779_v34 = vadd.f32 %v2250_v40, %v778_v22 }
  0xc6   : > { %vm1029_vm9 = vcmp.ge.f32.partialorder %v906_v24, 0.0  ;;  %v1127_v28 = vmul.f32 0.2, %v906_v24  ;;  %v719_v32 = vadd.f32 %v2250_v40, %v718_v26 }
  0xc7   : > { %v1199_v30 = vsel %vm1003_vm8, %v841_v17, %v1101_v25  ;;  %1732 = vmatmul.msk.bf16.gmra.mxu1 %vm546_vm0, %v1783_v18  ;;  %1745 = vmatmul.msk.bf16.gmra.mxu2 %vm546_vm0, %v1796_v19  ;;  %v1076_v41 = vmul.f32 0.2, %v779_v34  ;;  %vm978_vm11 = vcmp.ge.f32.partialorder %v779_v34, 0.0 }
  0xc8   : > { %v1950_v31 = vpack.c.bf16 %v1199_v30, %v1198_v29  ;;  %1720 = vmatmul.msk.bf16.gmra.mxu0 %vm546_vm0, %v1771_v23  ;;  %v1225_v33 = vsel %vm1029_vm9, %v906_v24, %v1127_v28  ;;  %v1052_v39 = vmul.f32 0.2, %v719_v32  ;;  %vm954_vm10 = vcmp.ge.f32.partialorder %v719_v32, 0.0 }
  0xc9   : > { %v2015_v35 = vpack.c.bf16 %v1225_v33, %v1224_v27  ;;  %v1174_v50 = vsel %vm978_vm11, %v779_v34, %v1076_v41 }
  0xca   : > { %2083 = vst [vmem:[%s2267_s29 + $0xd8] sm:$0xff] %v1950_v31   ;;  %v843_v36 = vpop.f32.mrf.mxu2  ;;  %v1150_v48 = vsel %vm954_vm10, %v719_v32, %v1052_v39 }
  0xcb   : > { %2096 = vst [vmem:[%s2267_s29 + $0x140] sm:$0xff] %v2015_v35   ;;  %v908_v37 = vpop.f32.mrf.mxu3  ;;  %v844_v46 = vadd.f32 %v2250_v40, %v843_v36 }
  0xcc   : > { %v780_v38 = vpop.f32.mrf.mxu1  ;;  %v909_v45 = vadd.f32 %v2250_v40, %v908_v37 }
  0xcd   : > { %v781_v42 = vadd.f32 %v2250_v40, %v780_v38  ;;  %v720_v43 = vpop.f32.mrf.mxu0  ;;  %v1102_v56 = vmul.f32 0.2, %v844_v46  ;;  %vm1004_vm15 = vcmp.ge.f32.partialorder %v844_v46, 0.0 }
  0xce   : > { %v721_v44 = vadd.f32 %v2250_v40, %v720_v43  ;;  %v1128_v55 = vmul.f32 0.2, %v909_v45  ;;  %vm1030_vm14 = vcmp.ge.f32.partialorder %v909_v45, 0.0 }
  0xcf   : > { %vm979_vm12 = vcmp.ge.f32.partialorder %v781_v42, 0.0  ;;  %v1077_v47 = vmul.f32 0.2, %v781_v42  ;;  %v1200_v4 = vsel %vm1004_vm15, %v844_v46, %v1102_v56 }
  0xd0   : > { %vm955_vm13 = vcmp.ge.f32.partialorder %v721_v44, 0.0  ;;  %v1053_v49 = vmul.f32 0.2, %v721_v44  ;;  %v1226_v2 = vsel %vm1030_vm14, %v909_v45, %v1128_v55 }
  0xd1   : > { %v1175_v51 = vsel %vm979_vm12, %v781_v42, %v1077_v47 }
  0xd2   : > { %v1890_v52 = vpack.c.bf16 %v1175_v51, %v1174_v50  ;;  %v845_v53 = vpop.f32.mrf.mxu2  ;;  %v1151_v54 = vsel %vm955_vm13, %v721_v44, %v1053_v49 }
  0xd3   : > { %v846_v57 = vadd.f32 %v2250_v40, %v845_v53  ;;  %v1830_v60 = vpack.c.bf16 %v1151_v54, %v1150_v48  ;;  %v910_v61 = vpop.f32.mrf.mxu3 }
  0xd4   : > { %2071 = vst [vmem:[%s2267_s29 + $0x78] sm:$0xff] %v1890_v52   ;;  %v783_v62 = vpop.f32.mrf.mxu1  ;;  %v911_v63 = vadd.f32 %v2250_v40, %v910_v61 }
  0xd5   : > { %vm1005_vm1 = vcmp.ge.f32.partialorder %v846_v57, 0.0  ;;  %v1103_v0 = vmul.f32 0.2, %v846_v57  ;;  %2059 = vst [vmem:[%s2267_s29 + $0x18] sm:$0xff] %v1830_v60   ;;  %v723_v1 = vpop.f32.mrf.mxu0  ;;  %v784_v9 = vadd.f32 %v2250_v40, %v783_v62 }
  0xd6   : > { %vm1031_vm2 = vcmp.ge.f32.partialorder %v911_v63, 0.0  ;;  %v1129_v3 = vmul.f32 0.2, %v911_v63  ;;  %v724_v7 = vadd.f32 %v2250_v40, %v723_v1 }
  0xd7   : > { %v1201_v5 = vsel %vm1005_vm1, %v846_v57, %v1103_v0  ;;  %1733 = vmatmul.msk.bf16.gmra.mxu1 %vm546_vm0, %v1784_v58  ;;  %1746 = vmatmul.msk.bf16.gmra.mxu2 %vm546_vm0, %v1797_v59  ;;  %v1078_v15 = vmul.f32 0.2, %v784_v9  ;;  %vm980_vm4 = vcmp.ge.f32.partialorder %v784_v9, 0.0 }
  0xd8   : > { %v1955_v6 = vpack.c.bf16 %v1201_v5, %v1200_v4  ;;  %v1227_v8 = vsel %vm1031_vm2, %v911_v63, %v1129_v3  ;;  %v1054_v14 = vmul.f32 0.2, %v724_v7  ;;  %vm956_vm3 = vcmp.ge.f32.partialorder %v724_v7, 0.0 }
  0xd9   : > { %v2020_v10 = vpack.c.bf16 %v1227_v8, %v1226_v2  ;;  %v1176_v24 = vsel %vm980_vm4, %v784_v9, %v1078_v15 }
  0xda   : > { %2084 = vst [vmem:[%s2267_s29 + $0xe0] sm:$0xff] %v1955_v6   ;;  %v848_v11 = vpop.f32.mrf.mxu2  ;;  %v1152_v22 = vsel %vm956_vm3, %v724_v7, %v1054_v14 }
  0xdb   : > { %2097 = vst [vmem:[%s2267_s29 + $0x148] sm:$0xff] %v2020_v10   ;;  %v913_v12 = vpop.f32.mrf.mxu3  ;;  %v849_v20 = vadd.f32 %v2250_v40, %v848_v11 }
  0xdc   : > { %v785_v13 = vpop.f32.mrf.mxu1  ;;  %v914_v19 = vadd.f32 %v2250_v40, %v913_v12 }
  0xdd   : > { %v786_v16 = vadd.f32 %v2250_v40, %v785_v13  ;;  %v725_v17 = vpop.f32.mrf.mxu0  ;;  %v1104_v30 = vmul.f32 0.2, %v849_v20  ;;  %vm1006_vm7 = vcmp.ge.f32.partialorder %v849_v20, 0.0 }
  0xde   : > { %v726_v18 = vadd.f32 %v2250_v40, %v725_v17  ;;  %v1130_v29 = vmul.f32 0.2, %v914_v19  ;;  %vm1032_vm6 = vcmp.ge.f32.partialorder %v914_v19, 0.0 }
  0xdf   : > { %vm981_vm0 = vcmp.ge.f32.partialorder %v786_v16, 0.0  ;;  %v1079_v21 = vmul.f32 0.2, %v786_v16  ;;  %v1202_v41 = vsel %vm1006_vm7, %v849_v20, %v1104_v30 }
  0xe0   : > { %vm957_vm5 = vcmp.ge.f32.partialorder %v726_v18, 0.0  ;;  %v1055_v23 = vmul.f32 0.2, %v726_v18  ;;  %v1228_v38 = vsel %vm1032_vm6, %v914_v19, %v1130_v29 }
  0xe1   : > { %v1177_v25 = vsel %vm981_vm0, %v786_v16, %v1079_v21 }
  0xe2   : > { %v1895_v26 = vpack.c.bf16 %v1177_v25, %v1176_v24  ;;  %v850_v27 = vpop.f32.mrf.mxu2  ;;  %v1153_v28 = vsel %vm957_vm5, %v726_v18, %v1055_v23 }
  0xe3   : > { %v851_v31 = vadd.f32 %v2250_v40, %v850_v27  ;;  %v1835_v32 = vpack.c.bf16 %v1153_v28, %v1152_v22  ;;  %v915_v33 = vpop.f32.mrf.mxu3 }
  0xe4   : > { %2072 = vst [vmem:[%s2267_s29 + $0x80] sm:$0xff] %v1895_v26   ;;  %v788_v34 = vpop.f32.mrf.mxu1  ;;  %v916_v35 = vadd.f32 %v2250_v40, %v915_v33 }
  0xe5   : > { %vm1007_vm8 = vcmp.ge.f32.partialorder %v851_v31, 0.0  ;;  %v1105_v36 = vmul.f32 0.2, %v851_v31  ;;  %2060 = vst [vmem:[%s2267_s29 + $0x20] sm:$0xff] %v1835_v32   ;;  %v728_v37 = vpop.f32.mrf.mxu0  ;;  %v789_v46 = vadd.f32 %v2250_v40, %v788_v34 }
  0xe6   : > { %vm1033_vm9 = vcmp.ge.f32.partialorder %v916_v35, 0.0  ;;  %v1131_v39 = vmul.f32 0.2, %v916_v35  ;;  %v729_v44 = vadd.f32 %v2250_v40, %v728_v37 }
  0xe7   : > { %v1203_v42 = vsel %vm1007_vm8, %v851_v31, %v1105_v36  ;;  %v1080_v52 = vmul.f32 0.2, %v789_v46  ;;  %vm982_vm11 = vcmp.ge.f32.partialorder %v789_v46, 0.0 }
  0xe8   : > { %v1960_v43 = vpack.c.bf16 %v1203_v42, %v1202_v41  ;;  %v1229_v45 = vsel %vm1033_vm9, %v916_v35, %v1131_v39  ;;  %v1056_v51 = vmul.f32 0.2, %v729_v44  ;;  %vm958_vm10 = vcmp.ge.f32.partialorder %v729_v44, 0.0 }
  0xe9   : > { %v2025_v47 = vpack.c.bf16 %v1229_v45, %v1228_v38  ;;  %v1178_v61 = vsel %vm982_vm11, %v789_v46, %v1080_v52 }
  0xea   : > { %2085 = vst [vmem:[%s2267_s29 + $0xe8] sm:$0xff] %v1960_v43   ;;  %v853_v48 = vpop.f32.mrf.mxu2  ;;  %v1154_v59 = vsel %vm958_vm10, %v729_v44, %v1056_v51 }
  0xeb   : > { %2098 = vst [vmem:[%s2267_s29 + $0x150] sm:$0xff] %v2025_v47   ;;  %v918_v49 = vpop.f32.mrf.mxu3  ;;  %v854_v57 = vadd.f32 %v2250_v40, %v853_v48 }
  0xec   : > { %v790_v50 = vpop.f32.mrf.mxu1  ;;  %v919_v56 = vadd.f32 %v2250_v40, %v918_v49 }
  0xed   : > { %v791_v53 = vadd.f32 %v2250_v40, %v790_v50  ;;  %v730_v54 = vpop.f32.mrf.mxu0  ;;  %v1106_v3 = vmul.f32 0.2, %v854_v57  ;;  %vm1008_vm15 = vcmp.ge.f32.partialorder %v854_v57, 0.0 }
  0xee   : > { %v731_v55 = vadd.f32 %v2250_v40, %v730_v54  ;;  %v1132_v2 = vmul.f32 0.2, %v919_v56  ;;  %vm1034_vm14 = vcmp.ge.f32.partialorder %v919_v56, 0.0 }
  0xef   : > { %vm983_vm12 = vcmp.ge.f32.partialorder %v791_v53, 0.0  ;;  %v1081_v58 = vmul.f32 0.2, %v791_v53  ;;  %v1204_v13 = vsel %vm1008_vm15, %v854_v57, %v1106_v3 }
  0xf0   : > { %vm959_vm13 = vcmp.ge.f32.partialorder %v731_v55, 0.0  ;;  %v1057_v60 = vmul.f32 0.2, %v731_v55  ;;  %v1230_v11 = vsel %vm1034_vm14, %v919_v56, %v1132_v2 }
  0xf1   : > { %v1179_v62 = vsel %vm983_vm12, %v791_v53, %v1081_v58 }
  0xf2   : > { %v1900_v63 = vpack.c.bf16 %v1179_v62, %v1178_v61  ;;  %v855_v0 = vpop.f32.mrf.mxu2  ;;  %v1155_v1 = vsel %vm959_vm13, %v731_v55, %v1057_v60 }
  0xf3   : > { %v856_v4 = vadd.f32 %v2250_v40, %v855_v0  ;;  %v1840_v5 = vpack.c.bf16 %v1155_v1, %v1154_v59  ;;  %v920_v6 = vpop.f32.mrf.mxu3 }
  0xf4   : > { %2073 = vst [vmem:[%s2267_s29 + $0x88] sm:$0xff] %v1900_v63   ;;  %v793_v7 = vpop.f32.mrf.mxu1  ;;  %v921_v8 = vadd.f32 %v2250_v40, %v920_v6 }
  0xf5   : > { %vm1009_vm1 = vcmp.ge.f32.partialorder %v856_v4, 0.0  ;;  %v1107_v9 = vmul.f32 0.2, %v856_v4  ;;  %2061 = vst [vmem:[%s2267_s29 + $0x28] sm:$0xff] %v1840_v5   ;;  %v733_v10 = vpop.f32.mrf.mxu0  ;;  %v794_v18 = vadd.f32 %v2250_v40, %v793_v7 }
  0xf6   : > { %vm1035_vm2 = vcmp.ge.f32.partialorder %v921_v8, 0.0  ;;  %v1133_v12 = vmul.f32 0.2, %v921_v8  ;;  %v734_v16 = vadd.f32 %v2250_v40, %v733_v10 }
  0xf7   : > { %v1205_v14 = vsel %vm1009_vm1, %v856_v4, %v1107_v9  ;;  %v1082_v24 = vmul.f32 0.2, %v794_v18  ;;  %vm984_vm4 = vcmp.ge.f32.partialorder %v794_v18, 0.0 }
  0xf8   : > { %v1965_v15 = vpack.c.bf16 %v1205_v14, %v1204_v13  ;;  %v1231_v17 = vsel %vm1035_vm2, %v921_v8, %v1133_v12  ;;  %v1058_v23 = vmul.f32 0.2, %v734_v16  ;;  %vm960_vm3 = vcmp.ge.f32.partialorder %v734_v16, 0.0 }
  0xf9   : > { %v2030_v19 = vpack.c.bf16 %v1231_v17, %v1230_v11  ;;  %v1180_v33 = vsel %vm984_vm4, %v794_v18, %v1082_v24 }
  0xfa   : > { %2086 = vst [vmem:[%s2267_s29 + $0xf0] sm:$0xff] %v1965_v15   ;;  %v858_v20 = vpop.f32.mrf.mxu2  ;;  %v1156_v31 = vsel %vm960_vm3, %v734_v16, %v1058_v23 }
  0xfb   : > { %2099 = vst [vmem:[%s2267_s29 + $0x158] sm:$0xff] %v2030_v19   ;;  %v923_v21 = vpop.f32.mrf.mxu3  ;;  %v859_v29 = vadd.f32 %v2250_v40, %v858_v20 }
  0xfc   : > { %v795_v22 = vpop.f32.mrf.mxu1  ;;  %v924_v28 = vadd.f32 %v2250_v40, %v923_v21 }
  0xfd   : > { %v796_v25 = vadd.f32 %v2250_v40, %v795_v22  ;;  %v735_v26 = vpop.f32.mrf.mxu0  ;;  %v1108_v39 = vmul.f32 0.2, %v859_v29  ;;  %vm1010_vm7 = vcmp.ge.f32.partialorder %v859_v29, 0.0 }
  0xfe   : > { %v736_v27 = vadd.f32 %v2250_v40, %v735_v26  ;;  %v1134_v38 = vmul.f32 0.2, %v924_v28  ;;  %vm1036_vm6 = vcmp.ge.f32.partialorder %v924_v28, 0.0 }
  0xff   : > { %vm985_vm0 = vcmp.ge.f32.partialorder %v796_v25, 0.0  ;;  %v1083_v30 = vmul.f32 0.2, %v796_v25  ;;  %v1206_v50 = vsel %vm1010_vm7, %v859_v29, %v1108_v39 }
 0x100   : > { %vm961_vm5 = vcmp.ge.f32.partialorder %v736_v27, 0.0  ;;  %v1059_v32 = vmul.f32 0.2, %v736_v27  ;;  %v1232_v48 = vsel %vm1036_vm6, %v924_v28, %v1134_v38 }
 0x101   : > { %v1181_v34 = vsel %vm985_vm0, %v796_v25, %v1083_v30 }
 0x102   : > { %v1905_v35 = vpack.c.bf16 %v1181_v34, %v1180_v33  ;;  %v860_v36 = vpop.f32.mrf.mxu2  ;;  %v1157_v37 = vsel %vm961_vm5, %v736_v27, %v1059_v32 }
 0x103   : > { %v861_v41 = vadd.f32 %v2250_v40, %v860_v36  ;;  %v1845_v42 = vpack.c.bf16 %v1157_v37, %v1156_v31  ;;  %v925_v43 = vpop.f32.mrf.mxu3 }
 0x104   : > { %2074 = vst [vmem:[%s2267_s29 + $0x90] sm:$0xff] %v1905_v35   ;;  %v798_v44 = vpop.f32.mrf.mxu1  ;;  %v926_v45 = vadd.f32 %v2250_v40, %v925_v43 }
 0x105   : > { %vm1011_vm8 = vcmp.ge.f32.partialorder %v861_v41, 0.0  ;;  %v1109_v46 = vmul.f32 0.2, %v861_v41  ;;  %2062 = vst [vmem:[%s2267_s29 + $0x30] sm:$0xff] %v1845_v42   ;;  %v738_v47 = vpop.f32.mrf.mxu0  ;;  %v799_v55 = vadd.f32 %v2250_v40, %v798_v44 }
 0x106   : > { %vm1037_vm9 = vcmp.ge.f32.partialorder %v926_v45, 0.0  ;;  %v1135_v49 = vmul.f32 0.2, %v926_v45  ;;  %v739_v53 = vadd.f32 %v2250_v40, %v738_v47 }
 0x107   : > { %v1207_v51 = vsel %vm1011_vm8, %v861_v41, %v1109_v46  ;;  %v1084_v61 = vmul.f32 0.2, %v799_v55  ;;  %vm986_vm11 = vcmp.ge.f32.partialorder %v799_v55, 0.0 }
 0x108   : > { %v1970_v52 = vpack.c.bf16 %v1207_v51, %v1206_v50  ;;  %v1233_v54 = vsel %vm1037_vm9, %v926_v45, %v1135_v49  ;;  %v1060_v60 = vmul.f32 0.2, %v739_v53  ;;  %vm962_vm10 = vcmp.ge.f32.partialorder %v739_v53, 0.0 }
 0x109   : > { %v2035_v56 = vpack.c.bf16 %v1233_v54, %v1232_v48  ;;  %v1182_v6 = vsel %vm986_vm11, %v799_v55, %v1084_v61 }
 0x10a   : > { %2087 = vst [vmem:[%s2267_s29 + $0xf8] sm:$0xff] %v1970_v52   ;;  %v863_v57 = vpop.f32.mrf.mxu2  ;;  %v1158_v4 = vsel %vm962_vm10, %v739_v53, %v1060_v60 }
 0x10b   : > { %2100 = vst [vmem:[%s2267_s29 + $0x160] sm:$0xff] %v2035_v56   ;;  %v928_v58 = vpop.f32.mrf.mxu3  ;;  %v864_v2 = vadd.f32 %v2250_v40, %v863_v57 }
 0x10c   : > { %v800_v59 = vpop.f32.mrf.mxu1  ;;  %v929_v1 = vadd.f32 %v2250_v40, %v928_v58 }
 0x10d   : > { %v801_v62 = vadd.f32 %v2250_v40, %v800_v59  ;;  %v740_v63 = vpop.f32.mrf.mxu0  ;;  %v1110_v12 = vmul.f32 0.2, %v864_v2  ;;  %vm1012_vm15 = vcmp.ge.f32.partialorder %v864_v2, 0.0 }
 0x10e   : > { %v741_v0 = vadd.f32 %v2250_v40, %v740_v63  ;;  %v1136_v11 = vmul.f32 0.2, %v929_v1  ;;  %vm1038_vm14 = vcmp.ge.f32.partialorder %v929_v1, 0.0 }
 0x10f   : > { %vm987_vm12 = vcmp.ge.f32.partialorder %v801_v62, 0.0  ;;  %v1085_v3 = vmul.f32 0.2, %v801_v62  ;;  %v1208_v22 = vsel %vm1012_vm15, %v864_v2, %v1110_v12 }
 0x110   : > { %vm963_vm13 = vcmp.ge.f32.partialorder %v741_v0, 0.0  ;;  %v1061_v5 = vmul.f32 0.2, %v741_v0  ;;  %v1234_v20 = vsel %vm1038_vm14, %v929_v1, %v1136_v11 }
 0x111   : > { %v1183_v7 = vsel %vm987_vm12, %v801_v62, %v1085_v3 }
 0x112   : > { %v1910_v8 = vpack.c.bf16 %v1183_v7, %v1182_v6  ;;  %v865_v9 = vpop.f32.mrf.mxu2  ;;  %v1159_v10 = vsel %vm963_vm13, %v741_v0, %v1061_v5 }
 0x113   : > { %v866_v13 = vadd.f32 %v2250_v40, %v865_v9  ;;  %v1850_v14 = vpack.c.bf16 %v1159_v10, %v1158_v4  ;;  %v930_v15 = vpop.f32.mrf.mxu3 }
 0x114   : > { %2075 = vst [vmem:[%s2267_s29 + $0x98] sm:$0xff] %v1910_v8   ;;  %v803_v16 = vpop.f32.mrf.mxu1  ;;  %v931_v17 = vadd.f32 %v2250_v40, %v930_v15 }
 0x115   : > { %vm1013_vm1 = vcmp.ge.f32.partialorder %v866_v13, 0.0  ;;  %v1111_v18 = vmul.f32 0.2, %v866_v13  ;;  %2063 = vst [vmem:[%s2267_s29 + $0x38] sm:$0xff] %v1850_v14   ;;  %v743_v19 = vpop.f32.mrf.mxu0  ;;  %v804_v27 = vadd.f32 %v2250_v40, %v803_v16 }
 0x116   : > { %vm1039_vm2 = vcmp.ge.f32.partialorder %v931_v17, 0.0  ;;  %v1137_v21 = vmul.f32 0.2, %v931_v17  ;;  %v744_v25 = vadd.f32 %v2250_v40, %v743_v19 }
 0x117   : > { %v1209_v23 = vsel %vm1013_vm1, %v866_v13, %v1111_v18  ;;  %v1086_v33 = vmul.f32 0.2, %v804_v27  ;;  %vm988_vm4 = vcmp.ge.f32.partialorder %v804_v27, 0.0 }
 0x118   : > { %v1975_v24 = vpack.c.bf16 %v1209_v23, %v1208_v22  ;;  %v1235_v26 = vsel %vm1039_vm2, %v931_v17, %v1137_v21  ;;  %v1062_v32 = vmul.f32 0.2, %v744_v25  ;;  %vm964_vm3 = vcmp.ge.f32.partialorder %v744_v25, 0.0 }
 0x119   : > { %v2040_v28 = vpack.c.bf16 %v1235_v26, %v1234_v20  ;;  %v1184_v43 = vsel %vm988_vm4, %v804_v27, %v1086_v33 }
 0x11a   : > { %2088 = vst [vmem:[%s2267_s29 + $0x100] sm:$0xff] %v1975_v24   ;;  %v868_v29 = vpop.f32.mrf.mxu2  ;;  %v1160_v41 = vsel %vm964_vm3, %v744_v25, %v1062_v32 }
 0x11b   : > { %2101 = vst [vmem:[%s2267_s29 + $0x168] sm:$0xff] %v2040_v28   ;;  %v933_v30 = vpop.f32.mrf.mxu3  ;;  %v869_v38 = vadd.f32 %v2250_v40, %v868_v29 }
 0x11c   : > { %v805_v31 = vpop.f32.mrf.mxu1  ;;  %v934_v37 = vadd.f32 %v2250_v40, %v933_v30 }
 0x11d   : > { %v806_v34 = vadd.f32 %v2250_v40, %v805_v31  ;;  %v745_v35 = vpop.f32.mrf.mxu0  ;;  %v1112_v49 = vmul.f32 0.2, %v869_v38  ;;  %vm1014_vm7 = vcmp.ge.f32.partialorder %v869_v38, 0.0 }
 0x11e   : > { %v746_v36 = vadd.f32 %v2250_v40, %v745_v35  ;;  %v1138_v48 = vmul.f32 0.2, %v934_v37  ;;  %vm1040_vm6 = vcmp.ge.f32.partialorder %v934_v37, 0.0 }
 0x11f   : > { %vm989_vm0 = vcmp.ge.f32.partialorder %v806_v34, 0.0  ;;  %v1087_v39 = vmul.f32 0.2, %v806_v34  ;;  %v1210_v59 = vsel %vm1014_vm7, %v869_v38, %v1112_v49 }
 0x120   : > { %vm965_vm5 = vcmp.ge.f32.partialorder %v746_v36, 0.0  ;;  %v1063_v42 = vmul.f32 0.2, %v746_v36  ;;  %v1236_v57 = vsel %vm1040_vm6, %v934_v37, %v1138_v48 }
 0x121   : > { %v1185_v44 = vsel %vm989_vm0, %v806_v34, %v1087_v39 }
 0x122   : > { %v1915_v45 = vpack.c.bf16 %v1185_v44, %v1184_v43  ;;  %v870_v46 = vpop.f32.mrf.mxu2  ;;  %v1161_v47 = vsel %vm965_vm5, %v746_v36, %v1063_v42  ;;  %v2414_v44 = vld [vmem:[%s2446_s2] ss:$0 sm:$0xff] }
 0x123   : > { %v871_v50 = vadd.f32 %v2250_v40, %v870_v46  ;;  %v1855_v51 = vpack.c.bf16 %v1161_v47, %v1160_v41  ;;  %v935_v52 = vpop.f32.mrf.mxu3 }
 0x124   : > { %2076 = vst [vmem:[%s2267_s29 + $0xa0] sm:$0xff] %v1915_v45   ;;  %v808_v53 = vpop.f32.mrf.mxu1  ;;  %v936_v54 = vadd.f32 %v2250_v40, %v935_v52 }
 0x125   : > { %vm1015_vm8 = vcmp.ge.f32.partialorder %v871_v50, 0.0  ;;  %v1113_v55 = vmul.f32 0.2, %v871_v50  ;;  %2064 = vst [vmem:[%s2267_s29 + $0x40] sm:$0xff] %v1855_v51   ;;  %v748_v56 = vpop.f32.mrf.mxu0  ;;  %v809_v0 = vadd.f32 %v2250_v40, %v808_v53 }
 0x126   : > { %vm1041_vm9 = vcmp.ge.f32.partialorder %v936_v54, 0.0  ;;  %v1139_v58 = vmul.f32 0.2, %v936_v54  ;;  %v749_v62 = vadd.f32 %v2250_v40, %v748_v56 }
 0x127   : > { %v1211_v60 = vsel %vm1015_vm8, %v871_v50, %v1113_v55  ;;  %v1088_v6 = vmul.f32 0.2, %v809_v0  ;;  %vm990_vm11 = vcmp.ge.f32.partialorder %v809_v0, 0.0 }
 0x128   : > { %v1980_v61 = vpack.c.bf16 %v1211_v60, %v1210_v59  ;;  %v1237_v63 = vsel %vm1041_vm9, %v936_v54, %v1139_v58  ;;  %v1064_v5 = vmul.f32 0.2, %v749_v62  ;;  %vm966_vm10 = vcmp.ge.f32.partialorder %v749_v62, 0.0 }
 0x129   : > { %v2045_v1 = vpack.c.bf16 %v1237_v63, %v1236_v57  ;;  %v1186_v15 = vsel %vm990_vm11, %v809_v0, %v1088_v6 }
 0x12a   : > { %2089 = vst [vmem:[%s2267_s29 + $0x108] sm:$0xff] %v1980_v61   ;;  %v873_v2 = vpop.f32.mrf.mxu2  ;;  %v1162_v13 = vsel %vm966_vm10, %v749_v62, %v1064_v5 }
 0x12b   : > { %2102 = vst [vmem:[%s2267_s29 + $0x170] sm:$0xff] %v2045_v1   ;;  %v938_v3 = vpop.f32.mrf.mxu3  ;;  %v874_v11 = vadd.f32 %v2250_v40, %v873_v2 }
 0x12c   : > { %v810_v4 = vpop.f32.mrf.mxu1  ;;  %v939_v10 = vadd.f32 %v2250_v40, %v938_v3 }
 0x12d   : > { %v811_v7 = vadd.f32 %v2250_v40, %v810_v4  ;;  %v750_v8 = vpop.f32.mrf.mxu0  ;;  %v1114_v21 = vmul.f32 0.2, %v874_v11  ;;  %vm1016_vm15 = vcmp.ge.f32.partialorder %v874_v11, 0.0 }
 0x12e   : > { %v751_v9 = vadd.f32 %v2250_v40, %v750_v8  ;;  %v1140_v20 = vmul.f32 0.2, %v939_v10  ;;  %vm1042_vm14 = vcmp.ge.f32.partialorder %v939_v10, 0.0 }
 0x12f   : > { %vm991_vm12 = vcmp.ge.f32.partialorder %v811_v7, 0.0  ;;  %v1089_v12 = vmul.f32 0.2, %v811_v7  ;;  %v1212_v31 = vsel %vm1016_vm15, %v874_v11, %v1114_v21 }
 0x130   : > { %vm967_vm13 = vcmp.ge.f32.partialorder %v751_v9, 0.0  ;;  %v1065_v14 = vmul.f32 0.2, %v751_v9  ;;  %v1238_v29 = vsel %vm1042_vm14, %v939_v10, %v1140_v20 }
 0x131   : > { %v1187_v16 = vsel %vm991_vm12, %v811_v7, %v1089_v12 }
 0x132   : > { %v1920_v17 = vpack.c.bf16 %v1187_v16, %v1186_v15  ;;  %v875_v18 = vpop.f32.mrf.mxu2  ;;  %v1163_v19 = vsel %vm967_vm13, %v751_v9, %v1065_v14 }
 0x133   : > { %v876_v22 = vadd.f32 %v2250_v40, %v875_v18  ;;  %v1860_v23 = vpack.c.bf16 %v1163_v19, %v1162_v13  ;;  %v940_v24 = vpop.f32.mrf.mxu3 }
 0x134   : > { %2077 = vst [vmem:[%s2267_s29 + $0xa8] sm:$0xff] %v1920_v17   ;;  %v813_v25 = vpop.f32.mrf.mxu1  ;;  %v941_v26 = vadd.f32 %v2250_v40, %v940_v24 }
 0x135   : > { %vm1017_vm1 = vcmp.ge.f32.partialorder %v876_v22, 0.0  ;;  %v1115_v27 = vmul.f32 0.2, %v876_v22  ;;  %2065 = vst [vmem:[%s2267_s29 + $0x48] sm:$0xff] %v1860_v23   ;;  %v753_v28 = vpop.f32.mrf.mxu0  ;;  %v814_v36 = vadd.f32 %v2250_v40, %v813_v25 }
 0x136   : > { %vm1043_vm2 = vcmp.ge.f32.partialorder %v941_v26, 0.0  ;;  %v1141_v30 = vmul.f32 0.2, %v941_v26  ;;  %v754_v34 = vadd.f32 %v2250_v40, %v753_v28 }
 0x137   : > { %v1213_v32 = vsel %vm1017_vm1, %v876_v22, %v1115_v27  ;;  %v1090_v43 = vmul.f32 0.2, %v814_v36  ;;  %vm992_vm4 = vcmp.ge.f32.partialorder %v814_v36, 0.0 }
 0x138   : > { %v1985_v33 = vpack.c.bf16 %v1213_v32, %v1212_v31  ;;  %v1239_v35 = vsel %vm1043_vm2, %v941_v26, %v1141_v30  ;;  %v1066_v42 = vmul.f32 0.2, %v754_v34  ;;  %vm968_vm3 = vcmp.ge.f32.partialorder %v754_v34, 0.0 }
 0x139   : > { %v2050_v37 = vpack.c.bf16 %v1239_v35, %v1238_v29  ;;  %v1188_v52 = vsel %vm992_vm4, %v814_v36, %v1090_v43 }
 0x13a   : > { %2090 = vst [vmem:[%s2267_s29 + $0x110] sm:$0xff] %v1985_v33   ;;  %v878_v38 = vpop.f32.mrf.mxu2  ;;  %v1164_v50 = vsel %vm968_vm3, %v754_v34, %v1066_v42 }
 0x13b   : > { %2103 = vst [vmem:[%s2267_s29 + $0x178] sm:$0xff] %v2050_v37   ;;  %v943_v39 = vpop.f32.mrf.mxu3  ;;  %v879_v48 = vadd.f32 %v2414_v44, %v878_v38 }
 0x13c   : > { %v815_v41 = vpop.f32.mrf.mxu1  ;;  %v944_v47 = vadd.f32 %v2414_v44, %v943_v39 }
 0x13d   : > { %v816_v45 = vadd.f32 %v2414_v44, %v815_v41  ;;  %v755_v46 = vpop.f32.mrf.mxu0  ;;  %v1116_v58 = vmul.f32 0.2, %v879_v48  ;;  %vm1018_vm7 = vcmp.ge.f32.partialorder %v879_v48, 0.0 }
 0x13e   : > { %v756_v40 = vadd.f32 %v2414_v44, %v755_v46  ;;  %v1142_v57 = vmul.f32 0.2, %v944_v47  ;;  %vm1044_vm6 = vcmp.ge.f32.partialorder %v944_v47, 0.0 }
 0x13f   : > { %vm993_vm0 = vcmp.ge.f32.partialorder %v816_v45, 0.0  ;;  %v1091_v49 = vmul.f32 0.2, %v816_v45  ;;  %v1214_v4 = vsel %vm1018_vm7, %v879_v48, %v1116_v58 }
 0x140   : > { %vm969_vm5 = vcmp.ge.f32.partialorder %v756_v40, 0.0  ;;  %v1067_v51 = vmul.f32 0.2, %v756_v40  ;;  %v1240_v2 = vsel %vm1044_vm6, %v944_v47, %v1142_v57 }
 0x141   : > { %v1189_v53 = vsel %vm993_vm0, %v816_v45, %v1091_v49 }
 0x142   : > { %v1925_v54 = vpack.c.bf16 %v1189_v53, %v1188_v52  ;;  %v880_v55 = vpop.f32.mrf.mxu2  ;;  %v1165_v56 = vsel %vm969_vm5, %v756_v40, %v1067_v51 }
 0x143   : > { %v881_v59 = vadd.f32 %v2414_v44, %v880_v55  ;;  %v1865_v60 = vpack.c.bf16 %v1165_v56, %v1164_v50  ;;  %v945_v61 = vpop.f32.mrf.mxu3 }
 0x144   : > { %2078 = vst [vmem:[%s2267_s29 + $0xb0] sm:$0xff] %v1925_v54   ;;  %v818_v62 = vpop.f32.mrf.mxu1  ;;  %v946_v63 = vadd.f32 %v2414_v44, %v945_v61 }
 0x145   : > { %vm1019_vm8 = vcmp.ge.f32.partialorder %v881_v59, 0.0  ;;  %v1117_v0 = vmul.f32 0.2, %v881_v59  ;;  %2066 = vst [vmem:[%s2267_s29 + $0x50] sm:$0xff] %v1865_v60   ;;  %v758_v1 = vpop.f32.mrf.mxu0  ;;  %v819_v9 = vadd.f32 %v2414_v44, %v818_v62 }
 0x146   : > { %vm1045_vm9 = vcmp.ge.f32.partialorder %v946_v63, 0.0  ;;  %v1143_v3 = vmul.f32 0.2, %v946_v63  ;;  %v759_v7 = vadd.f32 %v2414_v44, %v758_v1 }
 0x147   : > { %v1215_v5 = vsel %vm1019_vm8, %v881_v59, %v1117_v0  ;;  %v1092_v14 = vmul.f32 0.2, %v819_v9  ;;  %vm994_vm11 = vcmp.ge.f32.partialorder %v819_v9, 0.0 }
 0x148   : > { %v1990_v6 = vpack.c.bf16 %v1215_v5, %v1214_v4  ;;  %v1241_v8 = vsel %vm1045_vm9, %v946_v63, %v1143_v3  ;;  %v1068_v13 = vmul.f32 0.2, %v759_v7  ;;  %vm970_vm10 = vcmp.ge.f32.partialorder %v759_v7, 0.0 }
 0x149   : > { %v2055_v10 = vpack.c.bf16 %v1241_v8, %v1240_v2  ;;  %v1190_v22 = vsel %vm994_vm11, %v819_v9, %v1092_v14 }
 0x14a   : > { %2091 = vst [vmem:[%s2267_s29 + $0x118] sm:$0xff] %v1990_v6   ;;  %v883_v11 = vpop.f32.mrf.mxu2  ;;  %v1166_v20 = vsel %vm970_vm10, %v759_v7, %v1068_v13 }
 0x14b   : > { %2104 = vst [vmem:[%s2267_s29 + $0x180] sm:$0xff] %v2055_v10   ;;  %v884_v18 = vadd.f32 %v2414_v44, %v883_v11 }
 0x14c   : > { %v820_v12 = vpop.f32.mrf.mxu1 }
 0x14d   : > { %v821_v15 = vadd.f32 %v2414_v44, %v820_v12  ;;  %v760_v16 = vpop.f32.mrf.mxu0  ;;  %v1118_v27 = vmul.f32 0.2, %v884_v18  ;;  %vm1020_vm14 = vcmp.ge.f32.partialorder %v884_v18, 0.0 }
 0x14e   : > { %v761_v17 = vadd.f32 %v2414_v44, %v760_v16 }
 0x14f   : > { %vm995_vm12 = vcmp.ge.f32.partialorder %v821_v15, 0.0  ;;  %v1093_v19 = vmul.f32 0.2, %v821_v15  ;;  %v1216_v32 = vsel %vm1020_vm14, %v884_v18, %v1118_v27 }
 0x150   : > { %vm971_vm13 = vcmp.ge.f32.partialorder %v761_v17, 0.0  ;;  %v1069_v21 = vmul.f32 0.2, %v761_v17 }
 0x151   : > { %v1191_v23 = vsel %vm995_vm12, %v821_v15, %v1093_v19 }
 0x152   : > { %v1930_v24 = vpack.c.bf16 %v1191_v23, %v1190_v22  ;;  %v885_v25 = vpop.f32.mrf.mxu2  ;;  %v1167_v26 = vsel %vm971_vm13, %v761_v17, %v1069_v21 }
 0x153   : > { %v886_v28 = vadd.f32 %v2414_v44, %v885_v25  ;;  %v1870_v29 = vpack.c.bf16 %v1167_v26, %v1166_v20 }
 0x154   : > { %2079 = vst [vmem:[%s2267_s29 + $0xb8] sm:$0xff] %v1930_v24   ;;  %v823_v30 = vpop.f32.mrf.mxu1 }
 0x155   : > { %vm1021_vm15 = vcmp.ge.f32.partialorder %v886_v28, 0.0  ;;  %v1119_v31 = vmul.f32 0.2, %v886_v28  ;;  %2067 = vst [vmem:[%s2267_s29 + $0x58] sm:$0xff] %v1870_v29   ;;  %v824_v35 = vadd.f32 %v2414_v44, %v823_v30 }
 0x157   : > { %v1217_v33 = vsel %vm1021_vm15, %v886_v28, %v1119_v31  ;;  %v1094_v38 = vmul.f32 0.2, %v824_v35  ;;  %vm996_vm1 = vcmp.ge.f32.partialorder %v824_v35, 0.0 }
 0x158   : > { %v1995_v34 = vpack.c.bf16 %v1217_v33, %v1216_v32 }
 0x159   : > { %v1192_v43 = vsel %vm996_vm1, %v824_v35, %v1094_v38 }
 0x15a   : > { %2092 = vst [vmem:[%s2267_s29 + $0x120] sm:$0xff] %v1995_v34   ;;  %v888_v36 = vpop.f32.mrf.mxu2 }
 0x15b   : > { %v889_v41 = vadd.f32 %v2414_v44, %v888_v36 }
 0x15c   : > { %v825_v37 = vpop.f32.mrf.mxu1 }
 0x15d   : > { %v826_v39 = vadd.f32 %v2414_v44, %v825_v37  ;;  %v1120_v47 = vmul.f32 0.2, %v889_v41  ;;  %vm1022_vm3 = vcmp.ge.f32.partialorder %v889_v41, 0.0 }
 0x15f   : > { %vm997_vm2 = vcmp.ge.f32.partialorder %v826_v39, 0.0  ;;  %v1095_v42 = vmul.f32 0.2, %v826_v39  ;;  %v1218_v50 = vsel %vm1022_vm3, %v889_v41, %v1120_v47 }
 0x161   : > { %v1193_v45 = vsel %vm997_vm2, %v826_v39, %v1095_v42 }
 0x162   : > { %v1935_v46 = vpack.c.bf16 %v1193_v45, %v1192_v43  ;;  %v890_v40 = vpop.f32.mrf.mxu2 }
 0x163   : > { %v891_v48 = vadd.f32 %v2414_v44, %v890_v40 }
 0x164   : > { %2080 = vst [vmem:[%s2267_s29 + $0xc0] sm:$0xff] %v1935_v46  }
 0x165   : > { %vm1023_vm4 = vcmp.ge.f32.partialorder %v891_v48, 0.0  ;;  %v1121_v49 = vmul.f32 0.2, %v891_v48 }
 0x167   : > { %v1219_v51 = vsel %vm1023_vm4, %v891_v48, %v1121_v49 }
 0x168   : > { %v2000_v52 = vpack.c.bf16 %v1219_v51, %v1218_v50 }
 0x16a   : > { %2093 = vst [vmem:[%s2267_s29 + $0x128] sm:$0xff] %v2000_v52  }
 0x16b PF: > { %s13_s12 = sadd.s32 1, %s2130_s12  }
 0x16c   : > { %p10_p4 = scmp.ge.s32.totalorder %s13_s12, 4  }
 0x16e   :  { %12 = sbr.rel (!%p10_p4) target bundleno = 1 (0x1), region = 62 }

// kernel: encoder_forward.4
= control target key start
LH: loop header
LB: loop body
LE: loop exit
PB: predicated region body
PF: predicated region fallthrough
CT: control target
= control target key end

     0   :  { %s5843_s12 = smov 0   ;;  %s8265_s0 = inlined_call_operand.vmem [shape: f32[8,32,9,128], index: 0, kind: input, shape index: {}]   ;;  %s8266_s1 = inlined_call_operand.vmem [shape: bf16[16,128,256], index: 1, kind: input, shape index: {}]   ;;  %s8267_s2 = inlined_call_operand.vmem [shape: f32[1,256], index: 2, kind: input, shape index: {}]   ;;  %s8268_s3 = inlined_call_operand.vmem [shape: bf16[448,256], index: 3, kind: output, shape index: {}]  }
   0x1 LB: > { %s4077_s13 = sadd.s32 4294967295, %s5821_s12   ;;  %p4081_p0 = scmp.ge.s32.totalorder %s5821_s12, 1  ;;  %s5821_s12 = sphi %s5843_s12, %s13_s12  }
   0x2   : > { %p139_p1 = scmp.lt.s32.totalorder %s5821_s12, 5 }
   0x4   : > { %p140_p2 = pnand %p4081_p0, %p139_p1 }
   0x5   : > { %s4082_s22 = sshll.u32 (!%p140_p2), %s4077_s13, 1 }
   0x6   : > { %143 = sbr.rel (%p140_p2) target bundleno = 1077 (0x435), region = 32  ;;  %p166_p3 = scmp.lt.s32.totalorder (!%p140_p2), %s4082_s22, 7 }
   0xb   : > { %v4175_v0 = vld [vmem:[%s8266_s1 + $0xf0] sm:$0xf]  ;;  %v5582_v1 = vld [vmem:[%s8266_s1 + $0xf4] sm:$0xf0]  ;;  %v5581_v2 = vld [vmem:[%s8266_s1 + $0xf4] sm:$0xf] }
   0xc   : > { %v4176_v3 = vor.u32 %v5582_v1, %v4175_v0  ;;  %v4177_v4 = vld [vmem:[%s8266_s1 + $0xf8] sm:$0xf0]  ;;  %v4239_v5 = vld [vmem:[%s8266_s1 + $0x70] sm:$0xf]  ;;  %v5566_v6 = vld [vmem:[%s8266_s1 + $0x74] sm:$0xf0] }
   0xd   : > { %v4180_v7 = vor.u32 %v5581_v2, %v4177_v4  ;;  %v4240_v8 = vor.u32 %v5566_v6, %v4239_v5  ;;  %v5565_v9 = vld [vmem:[%s8266_s1 + $0x74] sm:$0xf]  ;;  %v4241_v10 = vld [vmem:[%s8266_s1 + $0x78] sm:$0xf0]  ;;  %v4167_v11 = vld [vmem:[%s8266_s1 + $0xe0] sm:$0xf] }
   0xe   : > { %335 = vmatpush.bf16.msra.mxu0 %v4176_v3  ;;  %v4244_v12 = vor.u32 %v5565_v9, %v4241_v10  ;;  %v5580_v13 = vld [vmem:[%s8266_s1 + $0xe4] sm:$0xf0]  ;;  %v5579_v14 = vld [vmem:[%s8266_s1 + $0xe4] sm:$0xf]  ;;  %v4169_v15 = vld [vmem:[%s8266_s1 + $0xe8] sm:$0xf0] }
   0xf   : > { %379 = vmatpush.bf16.msra.mxu1 %v4180_v7  ;;  %503 = vmatpush.bf16.msra.mxu2 %v4240_v8  ;;  %v4168_v16 = vor.u32 %v5580_v13, %v4167_v11  ;;  %v4172_v17 = vor.u32 %v5579_v14, %v4169_v15  ;;  %v4231_v18 = vld [vmem:[%s8266_s1 + $0x60] sm:$0xf]  ;;  %v5564_v19 = vld [vmem:[%s8266_s1 + $0x64] sm:$0xf0]  ;;  %v5563_v20 = vld [vmem:[%s8266_s1 + $0x64] sm:$0xf] }
  0x10   : > { %547 = vmatpush.bf16.msra.mxu3 %v4244_v12  ;;  %v4232_v21 = vor.u32 %v5564_v19, %v4231_v18  ;;  %v4233_v22 = vld [vmem:[%s8266_s1 + $0x68] sm:$0xf0]  ;;  %v4159_v23 = vld [vmem:[%s8266_s1 + $0xd0] sm:$0xf]  ;;  %v5578_v24 = vld [vmem:[%s8266_s1 + $0xd4] sm:$0xf0] }
  0x11   : > { %v4236_v25 = vor.u32 %v5563_v20, %v4233_v22  ;;  %v5577_v26 = vld [vmem:[%s8266_s1 + $0xd4] sm:$0xf]  ;;  %v4161_v27 = vld [vmem:[%s8266_s1 + $0xd8] sm:$0xf0]  ;;  %v4223_v28 = vld [vmem:[%s8266_s1 + $0x50] sm:$0xf]  ;;  %v4160_v29 = vor.u32 %v5578_v24, %v4159_v23 }
  0x12   : > { %336 = vmatpush.bf16.msra.mxu0 %v4168_v16  ;;  %v5562_v30 = vld [vmem:[%s8266_s1 + $0x54] sm:$0xf0]  ;;  %v5561_v31 = vld [vmem:[%s8266_s1 + $0x54] sm:$0xf]  ;;  %v4225_v32 = vld [vmem:[%s8266_s1 + $0x58] sm:$0xf0]  ;;  %v4164_v33 = vor.u32 %v5577_v26, %v4161_v27 }
  0x13   : > { %380 = vmatpush.bf16.msra.mxu1 %v4172_v17  ;;  %504 = vmatpush.bf16.msra.mxu2 %v4232_v21  ;;  %v4224_v34 = vor.u32 %v5562_v30, %v4223_v28  ;;  %v4151_v35 = vld [vmem:[%s8266_s1 + $0xc0] sm:$0xf]  ;;  %v5576_v36 = vld [vmem:[%s8266_s1 + $0xc4] sm:$0xf0]  ;;  %v5575_v37 = vld [vmem:[%s8266_s1 + $0xc4] sm:$0xf]  ;;  %v4228_v38 = vor.u32 %v5561_v31, %v4225_v32 }
  0x14   : > { %548 = vmatpush.bf16.msra.mxu3 %v4236_v25  ;;  %v4153_v39 = vld [vmem:[%s8266_s1 + $0xc8] sm:$0xf0]  ;;  %v4215_v40 = vld [vmem:[%s8266_s1 + $0x40] sm:$0xf]  ;;  %v5560_v41 = vld [vmem:[%s8266_s1 + $0x44] sm:$0xf0]  ;;  %v4152_v44 = vor.u32 %v5576_v36, %v4151_v35 }
  0x15   : > { %v5559_v42 = vld [vmem:[%s8266_s1 + $0x44] sm:$0xf]  ;;  %v4217_v43 = vld [vmem:[%s8266_s1 + $0x48] sm:$0xf0]  ;;  %v4156_v45 = vor.u32 %v5575_v37, %v4153_v39  ;;  %v4216_v46 = vor.u32 %v5560_v41, %v4215_v40  ;;  %v4143_v47 = vld [vmem:[%s8266_s1 + $0xb0] sm:$0xf] }
  0x16   : > { %337 = vmatpush.bf16.msra.mxu0 %v4160_v29  ;;  %v5574_v48 = vld [vmem:[%s8266_s1 + $0xb4] sm:$0xf0]  ;;  %v5573_v49 = vld [vmem:[%s8266_s1 + $0xb4] sm:$0xf]  ;;  %v4220_v50 = vor.u32 %v5559_v42, %v4217_v43  ;;  %v4145_v51 = vld [vmem:[%s8266_s1 + $0xb8] sm:$0xf0] }
  0x17   : > { %381 = vmatpush.bf16.msra.mxu1 %v4164_v33  ;;  %505 = vmatpush.bf16.msra.mxu2 %v4224_v34  ;;  %v4207_v52 = vld [vmem:[%s8266_s1 + $0x30] sm:$0xf]  ;;  %v5558_v53 = vld [vmem:[%s8266_s1 + $0x34] sm:$0xf0]  ;;  %v5557_v54 = vld [vmem:[%s8266_s1 + $0x34] sm:$0xf]  ;;  %v4144_v56 = vor.u32 %v5574_v48, %v4143_v47  ;;  %v4148_v57 = vor.u32 %v5573_v49, %v4145_v51 }
  0x18   : > { %549 = vmatpush.bf16.msra.mxu3 %v4228_v38  ;;  %v4209_v55 = vld [vmem:[%s8266_s1 + $0x38] sm:$0xf0]  ;;  %v4208_v58 = vor.u32 %v5558_v53, %v4207_v52  ;;  %v4135_v59 = vld [vmem:[%s8266_s1 + $0xa0] sm:$0xf]  ;;  %v5572_v60 = vld [vmem:[%s8266_s1 + $0xa4] sm:$0xf0] }
  0x19   : > { %v5571_v61 = vld [vmem:[%s8266_s1 + $0xa4] sm:$0xf]  ;;  %v4212_v62 = vor.u32 %v5557_v54, %v4209_v55  ;;  %v4137_v63 = vld [vmem:[%s8266_s1 + $0xa8] sm:$0xf0]  ;;  %v4199_v0 = vld [vmem:[%s8266_s1 + $0x20] sm:$0xf]  ;;  %v4136_v4 = vor.u32 %v5572_v60, %v4135_v59 }
  0x1a   : > { %338 = vmatpush.bf16.msra.mxu0 %v4152_v44  ;;  %v5556_v1 = vld [vmem:[%s8266_s1 + $0x24] sm:$0xf0]  ;;  %v5555_v2 = vld [vmem:[%s8266_s1 + $0x24] sm:$0xf]  ;;  %v4201_v3 = vld [vmem:[%s8266_s1 + $0x28] sm:$0xf0]  ;;  %v4140_v6 = vor.u32 %v5571_v61, %v4137_v63 }
  0x1b   : > { %382 = vmatpush.bf16.msra.mxu1 %v4156_v45  ;;  %506 = vmatpush.bf16.msra.mxu2 %v4216_v46  ;;  %v4127_v5 = vld [vmem:[%s8266_s1 + $0x90] sm:$0xf]  ;;  %v4200_v7 = vor.u32 %v5556_v1, %v4199_v0  ;;  %v5570_v8 = vld [vmem:[%s8266_s1 + $0x94] sm:$0xf0]  ;;  %v5569_v9 = vld [vmem:[%s8266_s1 + $0x94] sm:$0xf]  ;;  %v4204_v11 = vor.u32 %v5555_v2, %v4201_v3 }
  0x1c   : > { %550 = vmatpush.bf16.msra.mxu3 %v4220_v50  ;;  %v4129_v10 = vld [vmem:[%s8266_s1 + $0x98] sm:$0xf0]  ;;  %v4191_v12 = vld [vmem:[%s8266_s1 + $0x10] sm:$0xf]  ;;  %v5554_v13 = vld [vmem:[%s8266_s1 + $0x14] sm:$0xf0]  ;;  %v4128_v16 = vor.u32 %v5570_v8, %v4127_v5 }
  0x1d   : > { %v5553_v14 = vld [vmem:[%s8266_s1 + $0x14] sm:$0xf]  ;;  %v4193_v15 = vld [vmem:[%s8266_s1 + $0x18] sm:$0xf0]  ;;  %v4119_v17 = vld [vmem:[%s8266_s1 + $0x80] sm:$0xf]  ;;  %v4132_v20 = vor.u32 %v5569_v9, %v4129_v10  ;;  %v4192_v21 = vor.u32 %v5554_v13, %v4191_v12 }
  0x1e   : > { %339 = vmatpush.bf16.msra.mxu0 %v4144_v56  ;;  %v5568_v18 = vld [vmem:[%s8266_s1 + $0x84] sm:$0xf0]  ;;  %v5567_v19 = vld [vmem:[%s8266_s1 + $0x84] sm:$0xf]  ;;  %v4121_v22 = vld [vmem:[%s8266_s1 + $0x88] sm:$0xf0]  ;;  %v4196_v24 = vor.u32 %v5553_v14, %v4193_v15 }
  0x1f   : > { %383 = vmatpush.bf16.msra.mxu1 %v4148_v57  ;;  %507 = vmatpush.bf16.msra.mxu2 %v4208_v58  ;;  %v4183_v23 = vld [vmem:[%s8266_s1] sm:$0xf]  ;;  %s8270_s22 = smov (!%p166_p3, %s4082_s22), 7  ;;  %v5552_v25 = vld [vmem:[%s8266_s1 + $0x4] sm:$0xf0]  ;;  %v4120_v30 = vor.u32 %v5568_v18, %v4119_v17  ;;  %v4124_v34 = vor.u32 %v5567_v19, %v4121_v22 }
  0x20   : > { %551 = vmatpush.bf16.msra.mxu3 %v4212_v62  ;;  %v5551_v26 = vld [vmem:[%s8266_s1 + $0x4] sm:$0xf]  ;;  %v4185_v27 = vld [vmem:[%s8266_s1 + $0x8] sm:$0xf0]  ;;  %s5549_s18 = sshll.u32 %s8270_s22, 9  ;;  %v4184_v35 = vor.u32 %v5552_v25, %v4183_v23 }
  0x21   : > { %v4413_v28 = vld [vmem:[%s8266_s1 + $0x1f0] sm:$0xf]  ;;  %v5614_v29 = vld [vmem:[%s8266_s1 + $0x1f4] sm:$0xf0]  ;;  %s6054_s26 = scalar_lea.vmem %s8265_s0, %s5549_s18  ;;  %v5613_v31 = vld [vmem:[%s8266_s1 + $0x1f4] sm:$0xf]  ;;  %v4188_v39 = vor.u32 %v5551_v26, %v4185_v27 }
  0x22   : > { %340 = vmatpush.bf16.msra.mxu0 %v4136_v4  ;;  %v4415_v32 = vld [vmem:[%s8266_s1 + $0x1f8] sm:$0xf0]  ;;  %v4319_v33 = vld [vmem:[%s8266_s1 + $0x170] sm:$0xf]  ;;  %v4087_v36 = vld [vmem:[%s6054_s26 + $0x80] sm:$0xff]  ;;  %v4414_v41 = vor.u32 %v5614_v29, %v4413_v28 }
  0x23   : > { %384 = vmatpush.bf16.msra.mxu1 %v4140_v6  ;;  %508 = vmatpush.bf16.msra.mxu2 %v4200_v7  ;;  %v4088_v37 = vld [vmem:[%s6054_s26 + $0x90] sm:$0xff]  ;;  %v179_v38 = vld [vmem:[%s6054_s26] sm:$0xff]  ;;  %v5598_v42 = vld [vmem:[%s8266_s1 + $0x174] sm:$0xf0]  ;;  %v4418_v45 = vor.u32 %v5613_v31, %v4415_v32 }
  0x24   : > { %552 = vmatpush.bf16.msra.mxu3 %v4204_v11  ;;  %v180_v40 = vld [vmem:[%s6054_s26 + $0x10] sm:$0xff]  ;;  %v231_v44 = vpack.c.bf16 %v4088_v37, %v4087_v36  ;;  %v4321_v46 = vld [vmem:[%s8266_s1 + $0x178] sm:$0xf0]  ;;  %v4405_v47 = vld [vmem:[%s8266_s1 + $0x1e0] sm:$0xf]  ;;  %v4320_v52 = vor.u32 %v5598_v42, %v4319_v33 }
  0x25   : > { %v5597_v43 = vld [vmem:[%s8266_s1 + $0x174] sm:$0xf]  ;;  %v5612_v48 = vld [vmem:[%s8266_s1 + $0x1e4] sm:$0xf0]  ;;  %v193_v49 = vpack.c.bf16 %v180_v40, %v179_v38  ;;  %v5611_v50 = vld [vmem:[%s8266_s1 + $0x1e4] sm:$0xf] }
  0x26   : > { %341 = vmatpush.bf16.msra.mxu0 %v4128_v16  ;;  %v4407_v51 = vld [vmem:[%s8266_s1 + $0x1e8] sm:$0xf0]  ;;  %v4324_v53 = vor.u32 %v5597_v43, %v4321_v46  ;;  %v4406_v54 = vor.u32 %v5612_v48, %v4405_v47  ;;  %v4311_v55 = vld [vmem:[%s8266_s1 + $0x160] sm:$0xf]  ;;  %v5596_v56 = vld [vmem:[%s8266_s1 + $0x164] sm:$0xf0] }
  0x27   : > { %385 = vmatpush.bf16.msra.mxu1 %v4132_v20  ;;  %509 = vmatpush.bf16.msra.mxu2 %v4192_v21  ;;  %v5595_v57 = vld [vmem:[%s8266_s1 + $0x164] sm:$0xf]  ;;  %v4410_v58 = vor.u32 %v5611_v50, %v4407_v51  ;;  %v4313_v59 = vld [vmem:[%s8266_s1 + $0x168] sm:$0xf0]  ;;  %v4397_v60 = vld [vmem:[%s8266_s1 + $0x1d0] sm:$0xf]  ;;  %v4312_v0 = vor.u32 %v5596_v56, %v4311_v55 }
  0x28   : > { %553 = vmatpush.bf16.msra.mxu3 %v4196_v24  ;;  %v5610_v61 = vld [vmem:[%s8266_s1 + $0x1d4] sm:$0xf0]  ;;  %v5609_v62 = vld [vmem:[%s8266_s1 + $0x1d4] sm:$0xf]  ;;  %v4399_v63 = vld [vmem:[%s8266_s1 + $0x1d8] sm:$0xf0]  ;;  %v4316_v1 = vor.u32 %v5595_v57, %v4313_v59 }
  0x29   : > { %v4398_v2 = vor.u32 %v5610_v61, %v4397_v60  ;;  %v4303_v3 = vld [vmem:[%s8266_s1 + $0x150] sm:$0xf]  ;;  %v5594_v4 = vld [vmem:[%s8266_s1 + $0x154] sm:$0xf0]  ;;  %v5593_v5 = vld [vmem:[%s8266_s1 + $0x154] sm:$0xf]  ;;  %v4402_v6 = vor.u32 %v5609_v62, %v4399_v63 }
  0x2a   : > { %342 = vmatpush.bf16.msra.mxu0 %v4120_v30  ;;  %v4305_v7 = vld [vmem:[%s8266_s1 + $0x158] sm:$0xf0]  ;;  %v4389_v8 = vld [vmem:[%s8266_s1 + $0x1c0] sm:$0xf]  ;;  %v5608_v9 = vld [vmem:[%s8266_s1 + $0x1c4] sm:$0xf0]  ;;  %v4304_v12 = vor.u32 %v5594_v4, %v4303_v3 }
  0x2b   : > { %386 = vmatpush.bf16.msra.mxu1 %v4124_v34  ;;  %510 = vmatpush.bf16.msra.mxu2 %v4184_v35  ;;  %v5607_v10 = vld [vmem:[%s8266_s1 + $0x1c4] sm:$0xf]  ;;  %v4391_v11 = vld [vmem:[%s8266_s1 + $0x1c8] sm:$0xf0]  ;;  %v4308_v13 = vor.u32 %v5593_v5, %v4305_v7  ;;  %v4390_v14 = vor.u32 %v5608_v9, %v4389_v8  ;;  %v4295_v15 = vld [vmem:[%s8266_s1 + $0x140] sm:$0xf] }
  0x2c   : > { %554 = vmatpush.bf16.msra.mxu3 %v4188_v39  ;;  %v5592_v16 = vld [vmem:[%s8266_s1 + $0x144] sm:$0xf0]  ;;  %v4394_v17 = vor.u32 %v5607_v10, %v4391_v11  ;;  %v5591_v18 = vld [vmem:[%s8266_s1 + $0x144] sm:$0xf]  ;;  %v4297_v19 = vld [vmem:[%s8266_s1 + $0x148] sm:$0xf0] }
  0x2d   : > { %343 = vmatmul.bf16.vlgmr.msra.gmra.mxu0 %v231_v44  ;;  %v4089_v20 = vld [vmem:[%s6054_s26 + $0xa0] sm:$0xff]  ;;  %v4090_v21 = vld [vmem:[%s6054_s26 + $0xb0] sm:$0xff]  ;;  %v4296_v24 = vor.u32 %v5592_v16, %v4295_v15  ;;  %v4300_v25 = vor.u32 %v5591_v18, %v4297_v19  ;;  %v5606_v29 = vld [vmem:[%s8266_s1 + $0x1b4] sm:$0xf0] }
  0x2e   : > { %387 = vmatmul.bf16.vlgmr.msra.gmra.mxu1 %v231_v44  ;;  %511 = vmatmul.bf16.vlgmr.msra.gmra.mxu2 %v193_v49  ;;  %v181_v22 = vld [vmem:[%s6054_s26 + $0x20] sm:$0xff]  ;;  %v182_v23 = vld [vmem:[%s6054_s26 + $0x30] sm:$0xff]  ;;  %v232_v26 = vpack.c.bf16 %v4090_v21, %v4089_v20  ;;  %v4383_v32 = vld [vmem:[%s8266_s1 + $0x1b8] sm:$0xf0] }
  0x2f   : > { %943 = vmatpush.bf16.msrb.mxu2 %v4414_v41  ;;  %555 = vmatmul.bf16.vlgmr.msra.gmra.mxu3 %v193_v49  ;;  %v194_v27 = vpack.c.bf16 %v182_v23, %v181_v22  ;;  %v4381_v28 = vld [vmem:[%s8266_s1 + $0x1b0] sm:$0xf]  ;;  %v5605_v30 = vld [vmem:[%s8266_s1 + $0x1b4] sm:$0xf]  ;;  %v5590_v34 = vld [vmem:[%s8266_s1 + $0x134] sm:$0xf0] }
  0x30   : > { %987 = vmatpush.bf16.msrb.mxu3 %v4418_v45  ;;  %709 = vmatpush.bf16.msrb.mxu0 %v4320_v52  ;;  %v4382_v31 = vor.u32 %v5606_v29, %v4381_v28  ;;  %v4287_v33 = vld [vmem:[%s8266_s1 + $0x130] sm:$0xf]  ;;  %v4386_v35 = vor.u32 %v5605_v30, %v4383_v32  ;;  %v5589_v37 = vld [vmem:[%s8266_s1 + $0x134] sm:$0xf]  ;;  %v4289_v38 = vld [vmem:[%s8266_s1 + $0x138] sm:$0xf0] }
  0x31   : > { %753 = vmatpush.bf16.msrb.mxu1 %v4324_v53  ;;  %v4288_v36 = vor.u32 %v5590_v34, %v4287_v33  ;;  %v4292_v39 = vor.u32 %v5589_v37, %v4289_v38  ;;  %v4091_v40 = vld [vmem:[%s6054_s26 + $0xc0] sm:$0xff]  ;;  %v4092_v41 = vld [vmem:[%s6054_s26 + $0xd0] sm:$0xff]  ;;  %v5604_v47 = vld [vmem:[%s8266_s1 + $0x1a4] sm:$0xf0] }
  0x32   : > { %v183_v42 = vld [vmem:[%s6054_s26 + $0x40] sm:$0xff]  ;;  %v184_v43 = vld [vmem:[%s6054_s26 + $0x50] sm:$0xff]  ;;  %v233_v44 = vpack.c.bf16 %v4092_v41, %v4091_v40  ;;  %v4375_v50 = vld [vmem:[%s8266_s1 + $0x1a8] sm:$0xf0] }
  0x33   : > { %944 = vmatpush.bf16.msrb.mxu2 %v4406_v54  ;;  %v195_v45 = vpack.c.bf16 %v184_v43, %v183_v42  ;;  %v4373_v46 = vld [vmem:[%s8266_s1 + $0x1a0] sm:$0xf]  ;;  %v5603_v48 = vld [vmem:[%s8266_s1 + $0x1a4] sm:$0xf]  ;;  %v5588_v52 = vld [vmem:[%s8266_s1 + $0x124] sm:$0xf0] }
  0x34   : > { %988 = vmatpush.bf16.msrb.mxu3 %v4410_v58  ;;  %710 = vmatpush.bf16.msrb.mxu0 %v4312_v0  ;;  %v4374_v49 = vor.u32 %v5604_v47, %v4373_v46  ;;  %v4279_v51 = vld [vmem:[%s8266_s1 + $0x120] sm:$0xf]  ;;  %v4378_v53 = vor.u32 %v5603_v48, %v4375_v50  ;;  %v5587_v55 = vld [vmem:[%s8266_s1 + $0x124] sm:$0xf]  ;;  %v4281_v56 = vld [vmem:[%s8266_s1 + $0x128] sm:$0xf0] }
  0x35   : > { %754 = vmatpush.bf16.msrb.mxu1 %v4316_v1  ;;  %v4280_v54 = vor.u32 %v5588_v52, %v4279_v51  ;;  %v4284_v57 = vor.u32 %v5587_v55, %v4281_v56  ;;  %v4093_v58 = vld [vmem:[%s6054_s26 + $0xe0] sm:$0xff]  ;;  %v4365_v0 = vld [vmem:[%s8266_s1 + $0x190] sm:$0xf]  ;;  %v5602_v1 = vld [vmem:[%s8266_s1 + $0x194] sm:$0xf0] }
  0x36   : > { %v4094_v59 = vld [vmem:[%s6054_s26 + $0x280] sm:$0xff]  ;;  %v4366_v3 = vor.u32 %v5602_v1, %v4365_v0  ;;  %v4367_v4 = vld [vmem:[%s8266_s1 + $0x198] sm:$0xf0]  ;;  %v4271_v5 = vld [vmem:[%s8266_s1 + $0x110] sm:$0xf] }
  0x37   : > { %945 = vmatpush.bf16.msrb.mxu2 %v4398_v2  ;;  %v185_v60 = vld [vmem:[%s6054_s26 + $0x60] sm:$0xff]  ;;  %v234_v62 = vpack.c.bf16 %v4094_v59, %v4093_v58  ;;  %v5601_v2 = vld [vmem:[%s8266_s1 + $0x194] sm:$0xf]  ;;  %v4273_v10 = vld [vmem:[%s8266_s1 + $0x118] sm:$0xf0] }
  0x38   : > { %989 = vmatpush.bf16.msrb.mxu3 %v4402_v6  ;;  %711 = vmatpush.bf16.msrb.mxu0 %v4304_v12  ;;  %v186_v61 = vld [vmem:[%s6054_s26 + $0x200] sm:$0xff]  ;;  %v5586_v6 = vld [vmem:[%s8266_s1 + $0x114] sm:$0xf0]  ;;  %v4370_v7 = vor.u32 %v5601_v2, %v4367_v4  ;;  %v5585_v9 = vld [vmem:[%s8266_s1 + $0x114] sm:$0xf] }
  0x39   : > { %755 = vmatpush.bf16.msrb.mxu1 %v4308_v13  ;;  %v196_v63 = vpack.c.bf16 %v186_v61, %v185_v60  ;;  %v4272_v8 = vor.u32 %v5586_v6, %v4271_v5  ;;  %v4276_v11 = vor.u32 %v5585_v9, %v4273_v10  ;;  %v4095_v12 = vld [vmem:[%s6054_s26 + $0x290] sm:$0xff]  ;;  %v4096_v13 = vld [vmem:[%s6054_s26 + $0x2a0] sm:$0xff]  ;;  %v5600_v19 = vld [vmem:[%s8266_s1 + $0x184] sm:$0xf0] }
  0x3a   : > { %v188_v15 = vld [vmem:[%s6054_s26 + $0x220] sm:$0xff]  ;;  %v235_v16 = vpack.c.bf16 %v4096_v13, %v4095_v12  ;;  %v4359_v22 = vld [vmem:[%s8266_s1 + $0x188] sm:$0xf0]  ;;  %v4097_v30 = vld [vmem:[%s6054_s26 + $0x2b0] sm:$0xff] }
  0x3b   : > { %946 = vmatpush.bf16.msrb.mxu2 %v4390_v14  ;;  %v187_v14 = vld [vmem:[%s6054_s26 + $0x210] sm:$0xff]  ;;  %v4357_v18 = vld [vmem:[%s8266_s1 + $0x180] sm:$0xf]  ;;  %v5599_v20 = vld [vmem:[%s8266_s1 + $0x184] sm:$0xf] }
  0x3c   : > { %990 = vmatpush.bf16.msrb.mxu3 %v4394_v17  ;;  %712 = vmatpush.bf16.msrb.mxu0 %v4296_v24  ;;  %v197_v17 = vpack.c.bf16 %v188_v15, %v187_v14  ;;  %v4358_v21 = vor.u32 %v5600_v19, %v4357_v18  ;;  %v4263_v23 = vld [vmem:[%s8266_s1 + $0x100] sm:$0xf]  ;;  %v5584_v24 = vld [vmem:[%s8266_s1 + $0x104] sm:$0xf0]  ;;  %v4265_v28 = vld [vmem:[%s8266_s1 + $0x108] sm:$0xf0] }
  0x3d   : > { %756 = vmatpush.bf16.msrb.mxu1 %v4300_v25  ;;  %348 = vmatmul.bf16.gmra.mxu0 %v232_v26  ;;  %v4362_v25 = vor.u32 %v5599_v20, %v4359_v22  ;;  %v189_v32 = vld [vmem:[%s6054_s26 + $0x230] sm:$0xff]  ;;  %v190_v33 = vld [vmem:[%s6054_s26 + $0x240] sm:$0xff]  ;;  %v5646_v37 = vld [vmem:[%s8266_s1 + $0x2f4] sm:$0xf0] }
  0x3e   : > { %392 = vmatmul.bf16.gmra.mxu1 %v232_v26  ;;  %516 = vmatmul.bf16.gmra.mxu2 %v194_v27  ;;  %v4264_v26 = vor.u32 %v5584_v24, %v4263_v23  ;;  %v5645_v38 = vld [vmem:[%s8266_s1 + $0x2f4] sm:$0xf]  ;;  %v4603_v40 = vld [vmem:[%s8266_s1 + $0x2f8] sm:$0xf0]  ;;  %v4507_v41 = vld [vmem:[%s8266_s1 + $0x270] sm:$0xf] }
  0x3f   : > { %560 = vmatmul.bf16.gmra.mxu3 %v194_v27  ;;  %947 = vmatpush.bf16.msrb.mxu2 %v4382_v31  ;;  %v5583_v27 = vld [vmem:[%s8266_s1 + $0x104] sm:$0xf]  ;;  %v5630_v42 = vld [vmem:[%s8266_s1 + $0x274] sm:$0xf0]  ;;  %v4606_v43 = vor.u32 %v5645_v38, %v4603_v40  ;;  %v4509_v46 = vld [vmem:[%s8266_s1 + $0x278] sm:$0xf0] }
  0x40   : > { %991 = vmatpush.bf16.msrb.mxu3 %v4386_v35  ;;  %713 = vmatpush.bf16.msrb.mxu0 %v4288_v36  ;;  %v4268_v29 = vor.u32 %v5583_v27, %v4265_v28  ;;  %v4098_v31 = vld [vmem:[%s6054_s26 + $0x2c0] sm:$0xff]  ;;  %v198_v35 = vpack.c.bf16 %v190_v33, %v189_v32  ;;  %v4601_v36 = vld [vmem:[%s8266_s1 + $0x2f0] sm:$0xf]  ;;  %v5644_v55 = vld [vmem:[%s8266_s1 + $0x2e4] sm:$0xf0] }
  0x41   : > { %757 = vmatpush.bf16.msrb.mxu1 %v4292_v39  ;;  %v236_v34 = vpack.c.bf16 %v4098_v31, %v4097_v30  ;;  %v4602_v39 = vor.u32 %v5646_v37, %v4601_v36  ;;  %v4099_v48 = vld [vmem:[%s6054_s26 + $0x2d0] sm:$0xff]  ;;  %v192_v51 = vld [vmem:[%s6054_s26 + $0x260] sm:$0xff]  ;;  %v4595_v58 = vld [vmem:[%s8266_s1 + $0x2e8] sm:$0xf0] }
  0x42   : > { %v191_v50 = vld [vmem:[%s6054_s26 + $0x250] sm:$0xff]  ;;  %v5643_v56 = vld [vmem:[%s8266_s1 + $0x2e4] sm:$0xf]  ;;  %v4499_v60 = vld [vmem:[%s8266_s1 + $0x260] sm:$0xf] }
  0x43   : > { %948 = vmatpush.bf16.msrb.mxu2 %v4374_v49  ;;  %v4100_v49 = vld [vmem:[%s6054_s26 + $0x2e0] sm:$0xff]  ;;  %v4598_v59 = vor.u32 %v5643_v56, %v4595_v58  ;;  %v5628_v61 = vld [vmem:[%s8266_s1 + $0x264] sm:$0xf0]  ;;  %v4501_v0 = vld [vmem:[%s8266_s1 + $0x268] sm:$0xf0] }
  0x44   : > { %992 = vmatpush.bf16.msrb.mxu3 %v4378_v53  ;;  %714 = vmatpush.bf16.msrb.mxu0 %v4280_v54  ;;  %v237_v52 = vpack.c.bf16 %v4100_v49, %v4099_v48  ;;  %v199_v53 = vpack.c.bf16 %v192_v51, %v191_v50  ;;  %v4593_v54 = vld [vmem:[%s8266_s1 + $0x2e0] sm:$0xf]  ;;  %v4326_v5 = vld [vmem:[%s6054_s26 + $0x91] sm:$0xff]  ;;  %v4587_v12 = vld [vmem:[%s8266_s1 + $0x2d8] sm:$0xf0] }
  0x45   : > { %758 = vmatpush.bf16.msrb.mxu1 %v4284_v57  ;;  %v4594_v57 = vor.u32 %v5644_v55, %v4593_v54  ;;  %v591_v2 = vld [vmem:[%s6054_s26 + $0x1] sm:$0xff]  ;;  %v5642_v9 = vld [vmem:[%s8266_s1 + $0x2d4] sm:$0xf0]  ;;  %v5641_v10 = vld [vmem:[%s8266_s1 + $0x2d4] sm:$0xf] }
  0x46   : > { %v4325_v4 = vld [vmem:[%s6054_s26 + $0x81] sm:$0xff]  ;;  %v4590_v13 = vor.u32 %v5641_v10, %v4587_v12  ;;  %v4491_v14 = vld [vmem:[%s8266_s1 + $0x250] sm:$0xf]  ;;  %v5626_v15 = vld [vmem:[%s8266_s1 + $0x254] sm:$0xf0] }
  0x47   : > { %949 = vmatpush.bf16.msrb.mxu2 %v4366_v3  ;;  %v592_v3 = vld [vmem:[%s6054_s26 + $0x11] sm:$0xff]  ;;  %v4493_v18 = vld [vmem:[%s8266_s1 + $0x258] sm:$0xf0]  ;;  %v4577_v20 = vld [vmem:[%s8266_s1 + $0x2c0] sm:$0xf] }
  0x48   : > { %993 = vmatpush.bf16.msrb.mxu3 %v4370_v7  ;;  %715 = vmatpush.bf16.msrb.mxu0 %v4272_v8  ;;  %v605_v6 = vpack.c.bf16 %v592_v3, %v591_v2  ;;  %v839_v7 = vpack.c.bf16 %v4326_v5, %v4325_v4  ;;  %v4585_v8 = vld [vmem:[%s8266_s1 + $0x2d0] sm:$0xf]  ;;  %v5639_v22 = vld [vmem:[%s8266_s1 + $0x2c4] sm:$0xf]  ;;  %v4579_v24 = vld [vmem:[%s8266_s1 + $0x2c8] sm:$0xf0] }
  0x49   : > { %759 = vmatpush.bf16.msrb.mxu1 %v4276_v11  ;;  %v4586_v11 = vor.u32 %v5642_v9, %v4585_v8  ;;  %v594_v27 = vld [vmem:[%s6054_s26 + $0x31] sm:$0xff]  ;;  %v4327_v28 = vld [vmem:[%s6054_s26 + $0xa1] sm:$0xff]  ;;  %v4485_v38 = vld [vmem:[%s8266_s1 + $0x248] sm:$0xf0] }
  0x4a   : > { %v5623_v36 = vld [vmem:[%s8266_s1 + $0x244] sm:$0xf]  ;;  %v5637_v48 = vld [vmem:[%s8266_s1 + $0x2b4] sm:$0xf]  ;;  %v4571_v50 = vld [vmem:[%s8266_s1 + $0x2b8] sm:$0xf0] }
  0x4b   : > { %950 = vmatpush.bf16.msrb.mxu2 %v4358_v21  ;;  %v5640_v21 = vld [vmem:[%s8266_s1 + $0x2c4] sm:$0xf0]  ;;  %v4574_v51 = vor.u32 %v5637_v48, %v4571_v50  ;;  %v4330_v55 = vld [vmem:[%s6054_s26 + $0xd1] sm:$0xff]  ;;  %v4477_v4 = vld [vmem:[%s8266_s1 + $0x238] sm:$0xf0] }
  0x4c   : > { %994 = vmatpush.bf16.msrb.mxu3 %v4362_v25  ;;  %716 = vmatpush.bf16.msrb.mxu0 %v4264_v26  ;;  %v4578_v23 = vor.u32 %v5640_v21, %v4577_v20  ;;  %v4582_v25 = vor.u32 %v5639_v22, %v4579_v24  ;;  %v593_v26 = vld [vmem:[%s6054_s26 + $0x21] sm:$0xff]  ;;  %v5621_v2 = vld [vmem:[%s8266_s1 + $0x234] sm:$0xf]  ;;  %v4469_v22 = vld [vmem:[%s8266_s1 + $0x228] sm:$0xf0] }
  0x4d   : > { %353 = vmatmul.bf16.gmra.mxu0 %v233_v44  ;;  %760 = vmatpush.bf16.msrb.mxu1 %v4268_v29  ;;  %v4328_v29 = vld [vmem:[%s6054_s26 + $0xb1] sm:$0xff]  ;;  %v606_v30 = vpack.c.bf16 %v594_v27, %v593_v26  ;;  %v4329_v54 = vld [vmem:[%s6054_s26 + $0xc1] sm:$0xff]  ;;  %v4480_v5 = vor.u32 %v5621_v2, %v4477_v4  ;;  %v4555_v48 = vld [vmem:[%s8266_s1 + $0x298] sm:$0xf0] }
  0x4e   : > { %397 = vmatmul.bf16.gmra.mxu1 %v233_v44  ;;  %521 = vmatmul.bf16.gmra.mxu2 %v195_v45  ;;  %v4508_v44 = vor.u32 %v5630_v42, %v4507_v41  ;;  %v840_v32 = vpack.c.bf16 %v4328_v29, %v4327_v28  ;;  %v4561_v12 = vld [vmem:[%s8266_s1 + $0x2a0] sm:$0xf]  ;;  %v5619_v21 = vld [vmem:[%s8266_s1 + $0x224] sm:$0xf]  ;;  %v5618_v50 = vld [vmem:[%s8266_s1 + $0x214] sm:$0xf0] }
  0x4f   : > { %565 = vmatmul.bf16.gmra.mxu3 %v195_v45  ;;  %v5629_v45 = vld [vmem:[%s8266_s1 + $0x274] sm:$0xf]  ;;  %1413 = vmatpush.bf16.msra.mxu2 %v4602_v39  ;;  %v4488_v39 = vor.u32 %v5623_v36, %v4485_v38  ;;  %v598_v24 = vld [vmem:[%s6054_s26 + $0x201] sm:$0xff] }
  0x50   : > { %v4512_v47 = vor.u32 %v5629_v45, %v4509_v46  ;;  %1457 = vmatpush.bf16.msra.mxu3 %v4606_v43  ;;  %1178 = vmatpush.bf16.msra.mxu0 %v4508_v44  ;;  %v4569_v46 = vld [vmem:[%s8266_s1 + $0x2b0] sm:$0xf]  ;;  %v4331_v26 = vld [vmem:[%s6054_s26 + $0xe1] sm:$0xff] }
  0x51   : > { %v4332_v27 = vld [vmem:[%s6054_s26 + $0x281] sm:$0xff] }
  0x52   : > { %1222 = vmatpush.bf16.msra.mxu1 %v4512_v47  ;;  %v5638_v47 = vld [vmem:[%s8266_s1 + $0x2b4] sm:$0xf0] }
  0x53   : > { %1414 = vmatpush.bf16.msra.mxu2 %v4594_v57  ;;  %v4570_v49 = vor.u32 %v5638_v47, %v4569_v46  ;;  %v5633_v46 = vld [vmem:[%s8266_s1 + $0x294] sm:$0xf] }
  0x54   : > { %1458 = vmatpush.bf16.msra.mxu3 %v4598_v59 }
  0x57   : > { %1415 = vmatpush.bf16.msra.mxu2 %v4586_v11 }
  0x58   : > { %1459 = vmatpush.bf16.msra.mxu3 %v4590_v13  ;;  %v5636_v13 = vld [vmem:[%s8266_s1 + $0x2a4] sm:$0xf0] }
  0x5b   : > { %1416 = vmatpush.bf16.msra.mxu2 %v4578_v23  ;;  %v597_v23 = vld [vmem:[%s6054_s26 + $0x61] sm:$0xff] }
  0x5c   : > { %1460 = vmatpush.bf16.msra.mxu3 %v4582_v25  ;;  %v4472_v25 = vor.u32 %v5619_v21, %v4469_v22  ;;  %v608_v29 = vpack.c.bf16 %v598_v24, %v597_v23  ;;  %v5616_v21 = vld [vmem:[%s8266_s1 + $0x204] sm:$0xf0]  ;;  %v5615_v22 = vld [vmem:[%s8266_s1 + $0x204] sm:$0xf]  ;;  %v4453_v24 = vld [vmem:[%s8266_s1 + $0x208] sm:$0xf0] }
  0x5d   : > { %358 = vmatmul.bf16.gmra.mxu0 %v234_v62 }
  0x5e   : > { %402 = vmatmul.bf16.gmra.mxu1 %v234_v62  ;;  %526 = vmatmul.bf16.gmra.mxu2 %v196_v63  ;;  %v5627_v62 = vld [vmem:[%s8266_s1 + $0x264] sm:$0xf] }
  0x5f   : > { %570 = vmatmul.bf16.gmra.mxu3 %v196_v63  ;;  %v4500_v63 = vor.u32 %v5628_v61, %v4499_v60  ;;  %v4504_v1 = vor.u32 %v5627_v62, %v4501_v0  ;;  %1417 = vmatpush.bf16.msra.mxu2 %v4570_v49  ;;  %v841_v61 = vpack.c.bf16 %v4330_v55, %v4329_v54  ;;  %v4475_v0 = vld [vmem:[%s8266_s1 + $0x230] sm:$0xf]  ;;  %v4461_v54 = vld [vmem:[%s8266_s1 + $0x218] sm:$0xf0] }
  0x60   : > { %1461 = vmatpush.bf16.msra.mxu3 %v4574_v51  ;;  %v4459_v49 = vld [vmem:[%s8266_s1 + $0x210] sm:$0xf]  ;;  %v4558_v51 = vor.u32 %v5633_v46, %v4555_v48  ;;  %v5677_v46 = vld [vmem:[%s8266_s1 + $0x3f4] sm:$0xf]  ;;  %v4791_v48 = vld [vmem:[%s8266_s1 + $0x3f8] sm:$0xf0] }
  0x61   : > { %1179 = vmatpush.bf16.msra.mxu0 %v4500_v63  ;;  %1223 = vmatpush.bf16.msra.mxu1 %v4504_v1  ;;  %v5622_v1 = vld [vmem:[%s8266_s1 + $0x234] sm:$0xf0] }
  0x62   : > { %v4476_v3 = vor.u32 %v5622_v1, %v4475_v0  ;;  %v599_v55 = vld [vmem:[%s6054_s26 + $0x211] sm:$0xff] }
  0x6d   : > { %363 = vmatmul.bf16.gmra.mxu0 %v235_v16 }
  0x6e   : > { %407 = vmatmul.bf16.gmra.mxu1 %v235_v16  ;;  %531 = vmatmul.bf16.gmra.mxu2 %v197_v17  ;;  %v5625_v16 = vld [vmem:[%s8266_s1 + $0x254] sm:$0xf] }
  0x6f   : > { %575 = vmatmul.bf16.gmra.mxu3 %v197_v17  ;;  %v4492_v17 = vor.u32 %v5626_v15, %v4491_v14  ;;  %v4496_v19 = vor.u32 %v5625_v16, %v4493_v18  ;;  %v5635_v14 = vld [vmem:[%s8266_s1 + $0x2a4] sm:$0xf]  ;;  %v4562_v15 = vor.u32 %v5636_v13, %v4561_v12  ;;  %v4563_v16 = vld [vmem:[%s8266_s1 + $0x2a8] sm:$0xf0]  ;;  %v5620_v18 = vld [vmem:[%s8266_s1 + $0x224] sm:$0xf0] }
  0x70   : > { %v4547_v12 = vld [vmem:[%s8266_s1 + $0x288] sm:$0xf0] }
  0x71   : > { %1180 = vmatpush.bf16.msra.mxu0 %v4492_v17  ;;  %1224 = vmatpush.bf16.msra.mxu1 %v4496_v19  ;;  %v4467_v17 = vld [vmem:[%s8266_s1 + $0x220] sm:$0xf]  ;;  %v4566_v19 = vor.u32 %v5635_v14, %v4563_v16 }
  0x72   : > { %v4468_v20 = vor.u32 %v5620_v18, %v4467_v17  ;;  %1418 = vmatpush.bf16.msra.mxu2 %v4562_v15 }
  0x73   : > { %1462 = vmatpush.bf16.msra.mxu3 %v4566_v19 }
  0x75   : > { %1225 = vmatpush.bf16.msra.mxu1 %v4488_v39 }
  0x77   : > { %1463 = vmatpush.bf16.msra.mxu3 %v4558_v51 }
  0x79   : > { %1226 = vmatpush.bf16.msra.mxu1 %v4480_v5 }
  0x7d   : > { %368 = vmatmul.bf16.gmra.mxu0 %v236_v34  ;;  %1227 = vmatpush.bf16.msra.mxu1 %v4472_v25  ;;  %v4456_v25 = vor.u32 %v5615_v22, %v4453_v24  ;;  %v4783_v22 = vld [vmem:[%s8266_s1 + $0x3e8] sm:$0xf0]  ;;  %v4687_v24 = vld [vmem:[%s8266_s1 + $0x360] sm:$0xf] }
  0x7e   : > { %412 = vmatmul.bf16.gmra.mxu1 %v236_v34  ;;  %536 = vmatmul.bf16.gmra.mxu2 %v198_v35  ;;  %v4483_v34 = vld [vmem:[%s8266_s1 + $0x240] sm:$0xf] }
  0x7f   : > { %580 = vmatmul.bf16.gmra.mxu3 %v198_v35  ;;  %v5624_v35 = vld [vmem:[%s8266_s1 + $0x244] sm:$0xf0] }
  0x80   : > { %v4484_v37 = vor.u32 %v5624_v35, %v4483_v34 }
  0x82   : > { %1181 = vmatpush.bf16.msra.mxu0 %v4484_v37 }
  0x86   : > { %1182 = vmatpush.bf16.msra.mxu0 %v4476_v3 }
  0x8a   : > { %1183 = vmatpush.bf16.msra.mxu0 %v4468_v20  ;;  %v4451_v20 = vld [vmem:[%s8266_s1 + $0x200] sm:$0xf] }
  0x8b   : > { %v4452_v23 = vor.u32 %v5616_v21, %v4451_v20  ;;  %v5675_v20 = vld [vmem:[%s8266_s1 + $0x3e4] sm:$0xf] }
  0x8d   : > { %373 = vmatmul.bf16.gmra.mxu0 %v237_v52 }
  0x8e   : > { %417 = vmatmul.bf16.gmra.mxu1 %v237_v52  ;;  %541 = vmatmul.bf16.gmra.mxu2 %v199_v53  ;;  %v595_v52 = vld [vmem:[%s6054_s26 + $0x41] sm:$0xff] }
  0x8f   : > { %585 = vmatmul.bf16.gmra.mxu3 %v199_v53  ;;  %v596_v53 = vld [vmem:[%s6054_s26 + $0x51] sm:$0xff] }
  0x90   : > { %v607_v57 = vpack.c.bf16 %v596_v53, %v595_v52  ;;  %v4460_v52 = vor.u32 %v5618_v50, %v4459_v49  ;;  %v5617_v53 = vld [vmem:[%s8266_s1 + $0x214] sm:$0xf]  ;;  %v4794_v50 = vor.u32 %v5677_v46, %v4791_v48  ;;  %v4513_v46 = vld [vmem:[%s6054_s26 + $0x180] sm:$0xff] }
  0x92   : > { %1184 = vmatpush.bf16.msra.mxu0 %v4460_v52 }
  0x96   : > { %1185 = vmatpush.bf16.msra.mxu0 %v4452_v23  ;;  %v4786_v23 = vor.u32 %v5675_v20, %v4783_v22  ;;  %v4765_v22 = vld [vmem:[%s8266_s1 + $0x3c0] sm:$0xf] }
  0x9d   : > { %717 = vmatmul.bf16.vlgmr.msrb.gmra.mxu0 %v605_v6 }
  0x9e   : > { %761 = vmatmul.bf16.vlgmr.msrb.gmra.mxu1 %v605_v6  ;;  %951 = vmatmul.bf16.vlgmr.msrb.gmra.mxu2 %v839_v7 }
  0x9f   : > { %995 = vmatmul.bf16.vlgmr.msrb.gmra.mxu3 %v839_v7 }
  0xaa   : > { %v344_v31 = vpop.f32.mrf.mxu0 }
  0xab   : > { %v388_v33 = vpop.f32.mrf.mxu1 }
  0xad   : > { %722 = vmatmul.bf16.gmra.mxu0 %v606_v30 }
  0xae   : > { %766 = vmatmul.bf16.gmra.mxu1 %v606_v30  ;;  %956 = vmatmul.bf16.gmra.mxu2 %v840_v32 }
  0xaf   : > { %1000 = vmatmul.bf16.gmra.mxu3 %v840_v32 }
  0xb1   : > { %v512_v40 = vpop.f32.mrf.mxu2 }
  0xb2   : > { %v6374_v41 = vadd.f32 %v512_v40, %v344_v31  ;;  %v556_v42 = vpop.f32.mrf.mxu3  ;;  %v346_v43 = vpop.f32.mrf.mxu0 }
  0xb3   : > { %v6376_v44 = vadd.f32 %v556_v42, %v388_v33  ;;  %v390_v45 = vpop.f32.mrf.mxu1  ;;  %v842_v33 = vpack.c.bf16 %v4332_v27, %v4331_v26  ;;  %v601_v26 = vld [vmem:[%s6054_s26 + $0x231] sm:$0xff]  ;;  %v602_v27 = vld [vmem:[%s6054_s26 + $0x241] sm:$0xff] }
  0xb9   : > { %v514_v56 = vpop.f32.mrf.mxu2 }
  0xba   : > { %v6394_v58 = vadd.f32 %v514_v56, %v346_v43  ;;  %v558_v59 = vpop.f32.mrf.mxu3  ;;  %v349_v60 = vpop.f32.mrf.mxu0  ;;  %v4553_v43 = vld [vmem:[%s8266_s1 + $0x290] sm:$0xf]  ;;  %v600_v56 = vld [vmem:[%s6054_s26 + $0x221] sm:$0xff] }
  0xbb   : > { %v6396_v62 = vadd.f32 %v558_v59, %v390_v45  ;;  %v393_v63 = vpop.f32.mrf.mxu1  ;;  %v5634_v45 = vld [vmem:[%s8266_s1 + $0x294] sm:$0xf0] }
  0xbc   : > { %v4554_v47 = vor.u32 %v5634_v45, %v4553_v43  ;;  %v4333_v59 = vld [vmem:[%s6054_s26 + $0x291] sm:$0xff] }
  0xbd   : > { %727 = vmatmul.bf16.gmra.mxu0 %v607_v57  ;;  %v4789_v43 = vld [vmem:[%s8266_s1 + $0x3f0] sm:$0xf]  ;;  %v5678_v45 = vld [vmem:[%s8266_s1 + $0x3f4] sm:$0xf0] }
  0xbe   : > { %771 = vmatmul.bf16.gmra.mxu1 %v607_v57  ;;  %961 = vmatmul.bf16.gmra.mxu2 %v841_v61  ;;  %v4464_v57 = vor.u32 %v5617_v53, %v4461_v54 }
  0xbf   : > { %1005 = vmatmul.bf16.gmra.mxu3 %v841_v61  ;;  %1419 = vmatpush.bf16.msra.mxu2 %v4554_v47  ;;  %v4790_v47 = vor.u32 %v5678_v45, %v4789_v43  ;;  %v4419_v43 = vld [vmem:[%s6054_s26 + $0x100] sm:$0xff]  ;;  %v4420_v45 = vld [vmem:[%s6054_s26 + $0x110] sm:$0xff] }
  0xc0   : > { %1228 = vmatpush.bf16.msra.mxu1 %v4464_v57  ;;  %v5662_v57 = vld [vmem:[%s8266_s1 + $0x374] sm:$0xf0] }
  0xc1   : > { %v517_v6 = vpop.f32.mrf.mxu2 }
  0xc2   : > { %v6410_v7 = vadd.f32 %v517_v6, %v349_v60  ;;  %v561_v8 = vpop.f32.mrf.mxu3  ;;  %v351_v9 = vpop.f32.mrf.mxu0  ;;  %v4334_v60 = vld [vmem:[%s6054_s26 + $0x2a1] sm:$0xff] }
  0xc3   : > { %v6412_v10 = vadd.f32 %v561_v8, %v393_v63  ;;  %v395_v11 = vpop.f32.mrf.mxu1  ;;  %v609_v63 = vpack.c.bf16 %v600_v56, %v599_v55  ;;  %v843_v3 = vpack.c.bf16 %v4334_v60, %v4333_v59  ;;  %v4545_v6 = vld [vmem:[%s8266_s1 + $0x280] sm:$0xf]  ;;  %v5632_v8 = vld [vmem:[%s8266_s1 + $0x284] sm:$0xf0]  ;;  %v4695_v56 = vld [vmem:[%s8266_s1 + $0x370] sm:$0xf] }
  0xc4   : > { %1229 = vmatpush.bf16.msra.mxu1 %v4456_v25  ;;  %v5661_v59 = vld [vmem:[%s8266_s1 + $0x374] sm:$0xf]  ;;  %v4696_v60 = vor.u32 %v5662_v57, %v4695_v56  ;;  %v5660_v25 = vld [vmem:[%s8266_s1 + $0x364] sm:$0xf0] }
  0xc6   : > { %1647 = vmatpush.bf16.msrb.mxu0 %v4696_v60  ;;  %v5674_v60 = vld [vmem:[%s8266_s1 + $0x3d4] sm:$0xf0] }
  0xc9   : > { %v519_v28 = vpop.f32.mrf.mxu2 }
  0xca   : > { %v6442_v30 = vadd.f32 %v519_v28, %v351_v9  ;;  %v563_v31 = vpop.f32.mrf.mxu3  ;;  %v354_v32 = vpop.f32.mrf.mxu0  ;;  %v5631_v9 = vld [vmem:[%s8266_s1 + $0x284] sm:$0xf]  ;;  %v4335_v28 = vld [vmem:[%s6054_s26 + $0x2b1] sm:$0xff] }
  0xcb   : > { %v6444_v34 = vadd.f32 %v563_v31, %v395_v11  ;;  %v398_v35 = vpop.f32.mrf.mxu1  ;;  %v4546_v11 = vor.u32 %v5632_v8, %v4545_v6  ;;  %v4550_v14 = vor.u32 %v5631_v9, %v4547_v12 }
  0xcd   : > { %732 = vmatmul.bf16.gmra.mxu0 %v608_v29  ;;  %1420 = vmatpush.bf16.msra.mxu2 %v4546_v11 }
  0xce   : > { %776 = vmatmul.bf16.gmra.mxu1 %v608_v29  ;;  %966 = vmatmul.bf16.gmra.mxu2 %v842_v33  ;;  %v4336_v29 = vld [vmem:[%s6054_s26 + $0x2c1] sm:$0xff] }
  0xcf   : > { %1010 = vmatmul.bf16.gmra.mxu3 %v842_v33 }
  0xd0   : > { %1464 = vmatpush.bf16.msra.mxu3 %v4550_v14 }
  0xd1   : > { %v522_v36 = vpop.f32.mrf.mxu2  ;;  %1881 = vmatpush.bf16.msrb.mxu2 %v4790_v47  ;;  %v4514_v47 = vld [vmem:[%s6054_s26 + $0x190] sm:$0xff] }
  0xd2   : > { %v6446_v37 = vadd.f32 %v522_v36, %v354_v32  ;;  %v566_v38 = vpop.f32.mrf.mxu3  ;;  %v356_v39 = vpop.f32.mrf.mxu0  ;;  %v610_v32 = vpack.c.bf16 %v602_v27, %v601_v26  ;;  %v5659_v26 = vld [vmem:[%s8266_s1 + $0x364] sm:$0xf]  ;;  %v4688_v27 = vor.u32 %v5660_v25, %v4687_v24 }
  0xd3   : > { %v6448_v40 = vadd.f32 %v566_v38, %v398_v35  ;;  %v400_v42 = vpop.f32.mrf.mxu1  ;;  %v844_v38 = vpack.c.bf16 %v4336_v29, %v4335_v28  ;;  %v4689_v28 = vld [vmem:[%s8266_s1 + $0x368] sm:$0xf0]  ;;  %v5671_v24 = vld [vmem:[%s8266_s1 + $0x3c4] sm:$0xf] }
  0xd4   : > { %1925 = vmatpush.bf16.msrb.mxu3 %v4794_v50  ;;  %1648 = vmatpush.bf16.msrb.mxu0 %v4688_v27  ;;  %v4421_v27 = vld [vmem:[%s6054_s26 + $0x120] sm:$0xff] }
  0xd8   : > { %1926 = vmatpush.bf16.msrb.mxu3 %v4786_v23  ;;  %v5672_v23 = vld [vmem:[%s8266_s1 + $0x3c4] sm:$0xf0] }
  0xd9   : > { %v524_v61 = vpop.f32.mrf.mxu2  ;;  %v4766_v25 = vor.u32 %v5672_v23, %v4765_v22  ;;  %v4517_v22 = vld [vmem:[%s6054_s26 + $0x1c0] sm:$0xff]  ;;  %v4518_v23 = vld [vmem:[%s6054_s26 + $0x1d0] sm:$0xff] }
  0xda   : > { %v6478_v0 = vadd.f32 %v524_v61, %v356_v39  ;;  %v568_v1 = vpop.f32.mrf.mxu3  ;;  %v359_v2 = vpop.f32.mrf.mxu0  ;;  %v4697_v61 = vld [vmem:[%s8266_s1 + $0x378] sm:$0xf0] }
  0xdb   : > { %v6480_v4 = vadd.f32 %v568_v1, %v400_v42  ;;  %v403_v5 = vpop.f32.mrf.mxu1  ;;  %v603_v1 = vld [vmem:[%s6054_s26 + $0x251] sm:$0xff] }
  0xdd   : > { %737 = vmatmul.bf16.gmra.mxu0 %v609_v63 }
  0xde   : > { %781 = vmatmul.bf16.gmra.mxu1 %v609_v63  ;;  %971 = vmatmul.bf16.gmra.mxu2 %v843_v3  ;;  %v4700_v63 = vor.u32 %v5661_v59, %v4697_v61  ;;  %v4773_v59 = vld [vmem:[%s8266_s1 + $0x3d0] sm:$0xf]  ;;  %v5673_v61 = vld [vmem:[%s8266_s1 + $0x3d4] sm:$0xf] }
  0xdf   : > { %1015 = vmatmul.bf16.gmra.mxu3 %v843_v3  ;;  %v4337_v3 = vld [vmem:[%s6054_s26 + $0x2d1] sm:$0xff] }
  0xe0   : > { %1691 = vmatpush.bf16.msrb.mxu1 %v4700_v63  ;;  %v4774_v63 = vor.u32 %v5674_v60, %v4773_v59  ;;  %v5655_v59 = vld [vmem:[%s8266_s1 + $0x344] sm:$0xf] }
  0xe1   : > { %v527_v13 = vpop.f32.mrf.mxu2 }
  0xe2   : > { %v6494_v15 = vadd.f32 %v527_v13, %v359_v2  ;;  %v571_v16 = vpop.f32.mrf.mxu3  ;;  %v361_v17 = vpop.f32.mrf.mxu0  ;;  %v604_v2 = vld [vmem:[%s6054_s26 + $0x261] sm:$0xff] }
  0xe3   : > { %v6496_v18 = vadd.f32 %v571_v16, %v403_v5  ;;  %v405_v19 = vpop.f32.mrf.mxu1  ;;  %v4338_v5 = vld [vmem:[%s6054_s26 + $0x2e1] sm:$0xff]  ;;  %v611_v8 = vpack.c.bf16 %v604_v2, %v603_v1  ;;  %v4775_v1 = vld [vmem:[%s8266_s1 + $0x3d8] sm:$0xf0] }
  0xe4   : > { %v845_v13 = vpack.c.bf16 %v4338_v5, %v4337_v3  ;;  %v4778_v2 = vor.u32 %v5673_v61, %v4775_v1  ;;  %v4679_v3 = vld [vmem:[%s8266_s1 + $0x350] sm:$0xf]  ;;  %v5658_v5 = vld [vmem:[%s8266_s1 + $0x354] sm:$0xf0] }
  0xe6   : > { %1927 = vmatpush.bf16.msrb.mxu3 %v4778_v2 }
  0xe9   : > { %v529_v31 = vpop.f32.mrf.mxu2 }
  0xea   : > { %v6514_v33 = vadd.f32 %v529_v31, %v361_v17  ;;  %v573_v35 = vpop.f32.mrf.mxu3  ;;  %v364_v36 = vpop.f32.mrf.mxu0  ;;  %v4781_v17 = vld [vmem:[%s8266_s1 + $0x3e0] sm:$0xf]  ;;  %v4692_v31 = vor.u32 %v5659_v26, %v4689_v28  ;;  %v4767_v26 = vld [vmem:[%s8266_s1 + $0x3c8] sm:$0xf0]  ;;  %v4422_v28 = vld [vmem:[%s6054_s26 + $0x130] sm:$0xff] }
  0xeb   : > { %v6516_v39 = vadd.f32 %v573_v35, %v405_v19  ;;  %v408_v42 = vpop.f32.mrf.mxu1  ;;  %v5676_v19 = vld [vmem:[%s8266_s1 + $0x3e4] sm:$0xf0] }
  0xec   : > { %v4782_v21 = vor.u32 %v5676_v19, %v4781_v17  ;;  %1692 = vmatpush.bf16.msrb.mxu1 %v4692_v31  ;;  %v4515_v31 = vld [vmem:[%s6054_s26 + $0x1a0] sm:$0xff] }
  0xed   : > { %742 = vmatmul.bf16.gmra.mxu0 %v610_v32 }
  0xee   : > { %786 = vmatmul.bf16.gmra.mxu1 %v610_v32  ;;  %976 = vmatmul.bf16.gmra.mxu2 %v844_v38 }
  0xef   : > { %1020 = vmatmul.bf16.gmra.mxu3 %v844_v38  ;;  %1882 = vmatpush.bf16.msrb.mxu2 %v4782_v21 }
  0xf1   : > { %v532_v49 = vpop.f32.mrf.mxu2 }
  0xf2   : > { %v6530_v51 = vadd.f32 %v532_v49, %v364_v36  ;;  %v576_v52 = vpop.f32.mrf.mxu3  ;;  %v366_v53 = vpop.f32.mrf.mxu0  ;;  %v1074_v49 = vpack.c.bf16 %v4420_v45, %v4419_v43 }
  0xf3   : > { %v6532_v54 = vadd.f32 %v576_v52, %v408_v42  ;;  %v410_v55 = vpop.f32.mrf.mxu1  ;;  %1883 = vmatpush.bf16.msrb.mxu2 %v4774_v63 }
  0xf7   : > { %1884 = vmatpush.bf16.msrb.mxu2 %v4766_v25 }
  0xf9   : > { %v534_v6 = vpop.f32.mrf.mxu2 }
  0xfa   : > { %v6550_v9 = vadd.f32 %v534_v6, %v366_v53  ;;  %v578_v11 = vpop.f32.mrf.mxu3  ;;  %v369_v12 = vpop.f32.mrf.mxu0  ;;  %v5657_v6 = vld [vmem:[%s8266_s1 + $0x354] sm:$0xf] }
  0xfb   : > { %v6552_v14 = vadd.f32 %v578_v11, %v410_v55  ;;  %v413_v16 = vpop.f32.mrf.mxu1  ;;  %v1309_v55 = vpack.c.bf16 %v4514_v47, %v4513_v46  ;;  %v4681_v11 = vld [vmem:[%s8266_s1 + $0x358] sm:$0xf0] }
  0xfd   : > { %747 = vmatmul.bf16.gmra.mxu0 %v611_v8 }
  0xfe   : > { %791 = vmatmul.bf16.gmra.mxu1 %v611_v8  ;;  %981 = vmatmul.bf16.gmra.mxu2 %v845_v13  ;;  %v4680_v8 = vor.u32 %v5658_v5, %v4679_v3 }
  0xff   : > { %1025 = vmatmul.bf16.gmra.mxu3 %v845_v13  ;;  %v4684_v13 = vor.u32 %v5657_v6, %v4681_v11  ;;  %v4757_v11 = vld [vmem:[%s8266_s1 + $0x3b0] sm:$0xf] }
 0x100   : > { %1649 = vmatpush.bf16.msrb.mxu0 %v4680_v8 }
 0x101   : > { %v537_v29 = vpop.f32.mrf.mxu2  ;;  %1693 = vmatpush.bf16.msrb.mxu1 %v4684_v13  ;;  %v5669_v13 = vld [vmem:[%s8266_s1 + $0x3b4] sm:$0xf] }
 0x102   : > { %v6578_v32 = vadd.f32 %v537_v29, %v369_v12  ;;  %v581_v35 = vpop.f32.mrf.mxu3  ;;  %v371_v36 = vpop.f32.mrf.mxu0  ;;  %v4770_v29 = vor.u32 %v5671_v24, %v4767_v26 }
 0x103   : > { %v6580_v38 = vadd.f32 %v581_v35, %v413_v16  ;;  %v415_v42 = vpop.f32.mrf.mxu1  ;;  %v4516_v35 = vld [vmem:[%s6054_s26 + $0x1b0] sm:$0xff] }
 0x104   : > { %1928 = vmatpush.bf16.msrb.mxu3 %v4770_v29  ;;  %v1310_v47 = vpack.c.bf16 %v4516_v35, %v4515_v31  ;;  %v1311_v29 = vpack.c.bf16 %v4518_v23, %v4517_v22 }
 0x109   : > { %v539_v48 = vpop.f32.mrf.mxu2 }
 0x10a   : > { %v6586_v50 = vadd.f32 %v539_v48, %v371_v36  ;;  %v583_v52 = vpop.f32.mrf.mxu3  ;;  %v374_v53 = vpop.f32.mrf.mxu0 }
 0x10b   : > { %v6588_v56 = vadd.f32 %v583_v52, %v415_v42  ;;  %v418_v57 = vpop.f32.mrf.mxu1  ;;  %v1075_v42 = vpack.c.bf16 %v4422_v28, %v4421_v27 }
 0x10d   : > { %1186 = vmatmul.bf16.vlgmr.msra.gmra.mxu0 %v1074_v49 }
 0x10e   : > { %1230 = vmatmul.bf16.vlgmr.msra.gmra.mxu1 %v1074_v49  ;;  %1421 = vmatmul.bf16.vlgmr.msra.gmra.mxu2 %v1309_v55 }
 0x10f   : > { %1465 = vmatmul.bf16.vlgmr.msra.gmra.mxu3 %v1309_v55  ;;  %v4671_v55 = vld [vmem:[%s8266_s1 + $0x340] sm:$0xf] }
 0x111   : > { %v542_v12 = vpop.f32.mrf.mxu2 }
 0x112   : > { %v6614_v16 = vadd.f32 %v542_v12, %v374_v53  ;;  %v586_v17 = vpop.f32.mrf.mxu3  ;;  %v376_v19 = vpop.f32.mrf.mxu0  ;;  %v5670_v12 = vld [vmem:[%s8266_s1 + $0x3b4] sm:$0xf0] }
 0x113   : > { %v6616_v20 = vadd.f32 %v586_v17, %v418_v57  ;;  %v420_v21 = vpop.f32.mrf.mxu1  ;;  %v5656_v57 = vld [vmem:[%s8266_s1 + $0x344] sm:$0xf0]  ;;  %v4758_v17 = vor.u32 %v5670_v12, %v4757_v11  ;;  %v4426_v11 = vld [vmem:[%s6054_s26 + $0x300] sm:$0xff] }
 0x114   : > { %v4672_v60 = vor.u32 %v5656_v57, %v4671_v55 }
 0x115   : > { %1885 = vmatpush.bf16.msrb.mxu2 %v4758_v17  ;;  %v5651_v17 = vld [vmem:[%s8266_s1 + $0x324] sm:$0xf] }
 0x116   : > { %1650 = vmatpush.bf16.msrb.mxu0 %v4672_v60 }
 0x119   : > { %v544_v36 = vpop.f32.mrf.mxu2 }
 0x11a   : > { %v6634_v43 = vadd.f32 %v544_v36, %v376_v19  ;;  %v588_v45 = vpop.f32.mrf.mxu3  ;;  %v718_v46 = vpop.f32.mrf.mxu0  ;;  %v4423_v19 = vld [vmem:[%s6054_s26 + $0x140] sm:$0xff] }
 0x11b   : > { %v6636_v48 = vadd.f32 %v588_v45, %v420_v21  ;;  %v797_v49 = vadd.f32 %v718_v46, %v6374_v41  ;;  %v762_v52 = vpop.f32.mrf.mxu1  ;;  %v4673_v41 = vld [vmem:[%s8266_s1 + $0x348] sm:$0xf0]  ;;  %v4424_v21 = vld [vmem:[%s6054_s26 + $0x150] sm:$0xff]  ;;  %v5654_v45 = vld [vmem:[%s8266_s1 + $0x334] sm:$0xf0] }
 0x11c   : > { %v798_v53 = vadd.f32 %v762_v52, %v6376_v44  ;;  %v4676_v44 = vor.u32 %v5655_v59, %v4673_v41  ;;  %v1076_v25 = vpack.c.bf16 %v4424_v21, %v4423_v19  ;;  %v5653_v46 = vld [vmem:[%s8266_s1 + $0x334] sm:$0xf]  ;;  %v4519_v19 = vld [vmem:[%s6054_s26 + $0x1e0] sm:$0xff] }
 0x11d   : > { %1191 = vmatmul.bf16.gmra.mxu0 %v1075_v42  ;;  %v4520_v21 = vld [vmem:[%s6054_s26 + $0x380] sm:$0xff] }
 0x11e   : > { %1235 = vmatmul.bf16.gmra.mxu1 %v1075_v42  ;;  %1426 = vmatmul.bf16.gmra.mxu2 %v1310_v47  ;;  %v4663_v42 = vld [vmem:[%s8266_s1 + $0x330] sm:$0xf] }
 0x11f   : > { %1470 = vmatmul.bf16.gmra.mxu3 %v1310_v47  ;;  %1694 = vmatpush.bf16.msrb.mxu1 %v4676_v44 }
 0x121   : > { %v952_v61 = vpop.f32.mrf.mxu2 }
 0x122   : > { %v6652_v63 = vadd.f32 %v952_v61, %v797_v49  ;;  %v996_v1 = vpop.f32.mrf.mxu3  ;;  %v720_v2 = vpop.f32.mrf.mxu0  ;;  %v4664_v49 = vor.u32 %v5654_v45, %v4663_v42  ;;  %v4425_v61 = vld [vmem:[%s6054_s26 + $0x160] sm:$0xff] }
 0x123   : > { %v6654_v3 = vadd.f32 %v996_v1, %v798_v53  ;;  %v799_v5 = vadd.f32 %v720_v2, %v6394_v58  ;;  %v764_v6 = vpop.f32.mrf.mxu1  ;;  %v4759_v58 = vld [vmem:[%s8266_s1 + $0x3b8] sm:$0xf0]  ;;  %v4749_v1 = vld [vmem:[%s8266_s1 + $0x3a0] sm:$0xf]  ;;  %v5668_v2 = vld [vmem:[%s8266_s1 + $0x3a4] sm:$0xf0]  ;;  %v1077_v23 = vpack.c.bf16 %v4426_v11, %v4425_v61 }
 0x124   : > { %v800_v8 = vadd.f32 %v764_v6, %v6396_v62  ;;  %v4762_v62 = vor.u32 %v5669_v13, %v4759_v58  ;;  %1651 = vmatpush.bf16.msrb.mxu0 %v4664_v49  ;;  %v4750_v6 = vor.u32 %v5668_v2, %v4749_v1  ;;  %v4657_v58 = vld [vmem:[%s8266_s1 + $0x328] sm:$0xf0]  ;;  %v5649_v2 = vld [vmem:[%s8266_s1 + $0x314] sm:$0xf] }
 0x126   : > { %1929 = vmatpush.bf16.msrb.mxu3 %v4762_v62  ;;  %1886 = vmatpush.bf16.msrb.mxu2 %v4750_v6  ;;  %v4660_v62 = vor.u32 %v5651_v17, %v4657_v58  ;;  %v4428_v6 = vld [vmem:[%s6054_s26 + $0x320] sm:$0xff] }
 0x129   : > { %v954_v24 = vpop.f32.mrf.mxu2 }
 0x12a   : > { %v6674_v26 = vadd.f32 %v954_v24, %v799_v5  ;;  %v998_v27 = vpop.f32.mrf.mxu3  ;;  %v723_v28 = vpop.f32.mrf.mxu0  ;;  %v5667_v5 = vld [vmem:[%s8266_s1 + $0x3a4] sm:$0xf] }
 0x12b   : > { %v6676_v31 = vadd.f32 %v998_v27, %v800_v8  ;;  %v801_v35 = vadd.f32 %v723_v28, %v6410_v7  ;;  %v767_v36 = vpop.f32.mrf.mxu1  ;;  %v4665_v7 = vld [vmem:[%s8266_s1 + $0x338] sm:$0xf0]  ;;  %v5652_v8 = vld [vmem:[%s8266_s1 + $0x324] sm:$0xf0]  ;;  %v1312_v28 = vpack.c.bf16 %v4520_v21, %v4519_v19 }
 0x12c   : > { %v802_v47 = vadd.f32 %v767_v36, %v6412_v10  ;;  %v4668_v52 = vor.u32 %v5653_v46, %v4665_v7 }
 0x12d   : > { %1196 = vmatmul.bf16.gmra.mxu0 %v1076_v25 }
 0x12e   : > { %1240 = vmatmul.bf16.gmra.mxu1 %v1076_v25  ;;  %1431 = vmatmul.bf16.gmra.mxu2 %v1311_v29 }
 0x12f   : > { %1475 = vmatmul.bf16.gmra.mxu3 %v1311_v29  ;;  %1695 = vmatpush.bf16.msrb.mxu1 %v4668_v52 }
 0x131   : > { %v957_v53 = vpop.f32.mrf.mxu2 }
 0x132   : > { %v6692_v55 = vadd.f32 %v957_v53, %v801_v35  ;;  %v1001_v57 = vpop.f32.mrf.mxu3  ;;  %v725_v59 = vpop.f32.mrf.mxu0 }
 0x133   : > { %v6694_v10 = vadd.f32 %v1001_v57, %v802_v47  ;;  %v803_v60 = vadd.f32 %v725_v59, %v6442_v30  ;;  %v769_v41 = vpop.f32.mrf.mxu1  ;;  %v4751_v30 = vld [vmem:[%s8266_s1 + $0x3a8] sm:$0xf0]  ;;  %1696 = vmatpush.bf16.msrb.mxu1 %v4660_v62  ;;  %v5665_v57 = vld [vmem:[%s8266_s1 + $0x394] sm:$0xf] }
 0x134   : > { %v804_v44 = vadd.f32 %v769_v41, %v6444_v34  ;;  %v4655_v34 = vld [vmem:[%s8266_s1 + $0x320] sm:$0xf]  ;;  %v4754_v12 = vor.u32 %v5667_v5, %v4751_v30  ;;  %v4647_v41 = vld [vmem:[%s8266_s1 + $0x310] sm:$0xf] }
 0x135   : > { %v4656_v13 = vor.u32 %v5652_v8, %v4655_v34  ;;  %v4427_v5 = vld [vmem:[%s6054_s26 + $0x310] sm:$0xff]  ;;  %v4522_v8 = vld [vmem:[%s6054_s26 + $0x3a0] sm:$0xff] }
 0x136   : > { %1930 = vmatpush.bf16.msrb.mxu3 %v4754_v12  ;;  %v4521_v34 = vld [vmem:[%s6054_s26 + $0x390] sm:$0xff]  ;;  %v1078_v12 = vpack.c.bf16 %v4428_v6, %v4427_v5 }
 0x137   : > { %1652 = vmatpush.bf16.msrb.mxu0 %v4656_v13  ;;  %v1313_v19 = vpack.c.bf16 %v4522_v8, %v4521_v34 }
 0x139   : > { %v959_v22 = vpop.f32.mrf.mxu2 }
 0x13a   : > { %v6726_v24 = vadd.f32 %v959_v22, %v803_v60  ;;  %v1003_v25 = vpop.f32.mrf.mxu3  ;;  %v728_v27 = vpop.f32.mrf.mxu0 }
 0x13b   : > { %v6728_v29 = vadd.f32 %v1003_v25, %v804_v44  ;;  %v805_v35 = vadd.f32 %v728_v27, %v6446_v37  ;;  %v772_v36 = vpop.f32.mrf.mxu1  ;;  %v4741_v37 = vld [vmem:[%s8266_s1 + $0x390] sm:$0xf]  ;;  %v5650_v44 = vld [vmem:[%s8266_s1 + $0x314] sm:$0xf0]  ;;  %v4733_v25 = vld [vmem:[%s8266_s1 + $0x380] sm:$0xf] }
 0x13c   : > { %v806_v42 = vadd.f32 %v772_v36, %v6448_v40  ;;  %v5666_v40 = vld [vmem:[%s8266_s1 + $0x394] sm:$0xf0]  ;;  %v4648_v1 = vor.u32 %v5650_v44, %v4647_v41  ;;  %v5664_v27 = vld [vmem:[%s8266_s1 + $0x384] sm:$0xf0]  ;;  %v4430_v41 = vld [vmem:[%s6054_s26 + $0x340] sm:$0xff] }
 0x13d   : > { %1201 = vmatmul.bf16.gmra.mxu0 %v1077_v23  ;;  %v4742_v60 = vor.u32 %v5666_v40, %v4741_v37  ;;  %v4639_v40 = vld [vmem:[%s8266_s1 + $0x300] sm:$0xf]  ;;  %v4523_v44 = vld [vmem:[%s6054_s26 + $0x3b0] sm:$0xff] }
 0x13e   : > { %1245 = vmatmul.bf16.gmra.mxu1 %v1077_v23  ;;  %1436 = vmatmul.bf16.gmra.mxu2 %v1312_v28 }
 0x13f   : > { %1480 = vmatmul.bf16.gmra.mxu3 %v1312_v28  ;;  %1887 = vmatpush.bf16.msrb.mxu2 %v4742_v60  ;;  %v5663_v28 = vld [vmem:[%s8266_s1 + $0x384] sm:$0xf] }
 0x140   : > { %1653 = vmatpush.bf16.msrb.mxu0 %v4648_v1 }
 0x141   : > { %v962_v45 = vpop.f32.mrf.mxu2 }
 0x142   : > { %v6732_v46 = vadd.f32 %v962_v45, %v805_v35  ;;  %v1006_v47 = vpop.f32.mrf.mxu3  ;;  %v730_v49 = vpop.f32.mrf.mxu0 }
 0x143   : > { %v6734_v7 = vadd.f32 %v1006_v47, %v806_v42  ;;  %v807_v52 = vadd.f32 %v730_v49, %v6478_v0  ;;  %v774_v53 = vpop.f32.mrf.mxu1  ;;  %v4743_v0 = vld [vmem:[%s8266_s1 + $0x398] sm:$0xf0] }
 0x144   : > { %v808_v59 = vadd.f32 %v774_v53, %v6480_v4  ;;  %v4746_v61 = vor.u32 %v5665_v57, %v4743_v0  ;;  %v4649_v4 = vld [vmem:[%s8266_s1 + $0x318] sm:$0xf0]  ;;  %v5648_v57 = vld [vmem:[%s8266_s1 + $0x304] sm:$0xf0]  ;;  %v4429_v0 = vld [vmem:[%s6054_s26 + $0x330] sm:$0xff] }
 0x145   : > { %v4652_v30 = vor.u32 %v5649_v2, %v4649_v4  ;;  %v4640_v60 = vor.u32 %v5648_v57, %v4639_v40  ;;  %v1079_v2 = vpack.c.bf16 %v4430_v41, %v4429_v0  ;;  %v4432_v40 = vld [vmem:[%s6054_s26 + $0x360] sm:$0xff]  ;;  %v4525_v57 = vld [vmem:[%s6054_s26 + $0x3d0] sm:$0xff] }
 0x146   : > { %1931 = vmatpush.bf16.msrb.mxu3 %v4746_v61  ;;  %v4524_v61 = vld [vmem:[%s6054_s26 + $0x3c0] sm:$0xff] }
 0x147   : > { %1697 = vmatpush.bf16.msrb.mxu1 %v4652_v30  ;;  %1654 = vmatpush.bf16.msrb.mxu0 %v4640_v60  ;;  %v1314_v30 = vpack.c.bf16 %v4524_v61, %v4523_v44 }
 0x149   : > { %v964_v11 = vpop.f32.mrf.mxu2 }
 0x14a   : > { %v6766_v13 = vadd.f32 %v964_v11, %v807_v52  ;;  %v1008_v17 = vpop.f32.mrf.mxu3  ;;  %v733_v58 = vpop.f32.mrf.mxu0 }
 0x14b   : > { %v6768_v21 = vadd.f32 %v1008_v17, %v808_v59  ;;  %v809_v62 = vadd.f32 %v733_v58, %v6494_v15  ;;  %v777_v22 = vpop.f32.mrf.mxu1  ;;  %v4734_v15 = vor.u32 %v5664_v27, %v4733_v25  ;;  %v5647_v59 = vld [vmem:[%s8266_s1 + $0x304] sm:$0xf]  ;;  %v4977_v17 = vld [vmem:[%s8266_s1 + $0x4f0] sm:$0xf]  ;;  %v5710_v58 = vld [vmem:[%s8266_s1 + $0x4f4] sm:$0xf0] }
 0x14c   : > { %v810_v23 = vadd.f32 %v777_v22, %v6496_v18  ;;  %v4735_v18 = vld [vmem:[%s8266_s1 + $0x388] sm:$0xf0] }
 0x14d   : > { %1206 = vmatmul.bf16.gmra.mxu0 %v1078_v12  ;;  %v4738_v36 = vor.u32 %v5663_v28, %v4735_v18  ;;  %1888 = vmatpush.bf16.msrb.mxu2 %v4734_v15 }
 0x14e   : > { %1250 = vmatmul.bf16.gmra.mxu1 %v1078_v12  ;;  %1441 = vmatmul.bf16.gmra.mxu2 %v1313_v19 }
 0x14f   : > { %1485 = vmatmul.bf16.gmra.mxu3 %v1313_v19  ;;  %v5709_v19 = vld [vmem:[%s8266_s1 + $0x4f4] sm:$0xf] }
 0x150   : > { %1932 = vmatpush.bf16.msrb.mxu3 %v4738_v36  ;;  %v5694_v36 = vld [vmem:[%s8266_s1 + $0x474] sm:$0xf0] }
 0x151   : > { %v967_v35 = vpop.f32.mrf.mxu2 }
 0x152   : > { %v6784_v42 = vadd.f32 %v967_v35, %v809_v62  ;;  %v1011_v45 = vpop.f32.mrf.mxu3  ;;  %v735_v47 = vpop.f32.mrf.mxu0  ;;  %v4883_v35 = vld [vmem:[%s8266_s1 + $0x470] sm:$0xf] }
 0x153   : > { %v6786_v49 = vadd.f32 %v1011_v45, %v810_v23  ;;  %v811_v52 = vadd.f32 %v735_v47, %v6514_v33  ;;  %v779_v53 = vpop.f32.mrf.mxu1  ;;  %v4641_v33 = vld [vmem:[%s8266_s1 + $0x308] sm:$0xf0]  ;;  %v5693_v45 = vld [vmem:[%s8266_s1 + $0x474] sm:$0xf] }
 0x154   : > { %v812_v37 = vadd.f32 %v779_v53, %v6516_v39  ;;  %v4644_v39 = vor.u32 %v5647_v59, %v4641_v33  ;;  %v4526_v59 = vld [vmem:[%s6054_s26 + $0x3e0] sm:$0xff] }
 0x155   : > { %v1315_v44 = vpack.c.bf16 %v4526_v59, %v4525_v57 }
 0x156   : > { %1698 = vmatpush.bf16.msrb.mxu1 %v4644_v39 }
 0x159   : > { %v969_v1 = vpop.f32.mrf.mxu2 }
 0x15a   : > { %v6806_v4 = vadd.f32 %v969_v1, %v811_v52  ;;  %v1013_v5 = vpop.f32.mrf.mxu3  ;;  %v738_v6 = vpop.f32.mrf.mxu0  ;;  %v4884_v52 = vor.u32 %v5694_v36, %v4883_v35  ;;  %v4607_v36 = vld [vmem:[%s6054_s26 + $0x101] sm:$0xff] }
 0x15b   : > { %v6808_v34 = vadd.f32 %v1013_v5, %v812_v37  ;;  %v813_v8 = vadd.f32 %v738_v6, %v6530_v51  ;;  %v782_v11 = vpop.f32.mrf.mxu1  ;;  %v4978_v51 = vor.u32 %v5710_v58, %v4977_v17  ;;  %v4431_v37 = vld [vmem:[%s6054_s26 + $0x350] sm:$0xff]  ;;  %v4969_v5 = vld [vmem:[%s8266_s1 + $0x4e0] sm:$0xf]  ;;  %v5708_v6 = vld [vmem:[%s8266_s1 + $0x4e4] sm:$0xf0] }
 0x15c   : > { %v814_v12 = vadd.f32 %v782_v11, %v6532_v54  ;;  %v4979_v54 = vld [vmem:[%s8266_s1 + $0x4f8] sm:$0xf0]  ;;  %2116 = vmatpush.bf16.msra.mxu0 %v4884_v52  ;;  %v1080_v33 = vpack.c.bf16 %v4432_v40, %v4431_v37  ;;  %v4875_v11 = vld [vmem:[%s8266_s1 + $0x460] sm:$0xf]  ;;  %v5691_v17 = vld [vmem:[%s8266_s1 + $0x464] sm:$0xf] }
 0x15d   : > { %1211 = vmatmul.bf16.gmra.mxu0 %v1079_v2  ;;  %v4982_v22 = vor.u32 %v5709_v19, %v4979_v54  ;;  %2351 = vmatpush.bf16.msra.mxu2 %v4978_v51  ;;  %v4877_v19 = vld [vmem:[%s8266_s1 + $0x468] sm:$0xf0]  ;;  %v4702_v52 = vld [vmem:[%s6054_s26 + $0x191] sm:$0xff] }
 0x15e   : > { %1255 = vmatmul.bf16.gmra.mxu1 %v1079_v2  ;;  %1446 = vmatmul.bf16.gmra.mxu2 %v1314_v30  ;;  %v4880_v54 = vor.u32 %v5691_v17, %v4877_v19 }
 0x15f   : > { %1490 = vmatmul.bf16.gmra.mxu3 %v1314_v30  ;;  %v5707_v30 = vld [vmem:[%s8266_s1 + $0x4e4] sm:$0xf] }
 0x160   : > { %2395 = vmatpush.bf16.msra.mxu3 %v4982_v22 }
 0x161   : > { %v972_v62 = vpop.f32.mrf.mxu2 }
 0x162   : > { %v6824_v23 = vadd.f32 %v972_v62, %v813_v8  ;;  %v1016_v25 = vpop.f32.mrf.mxu3  ;;  %v740_v27 = vpop.f32.mrf.mxu0  ;;  %v4970_v8 = vor.u32 %v5708_v6, %v4969_v5  ;;  %v5690_v5 = vld [vmem:[%s8266_s1 + $0x454] sm:$0xf0] }
 0x163   : > { %v6826_v28 = vadd.f32 %v1016_v25, %v814_v12  ;;  %v815_v15 = vadd.f32 %v740_v27, %v6550_v9  ;;  %v784_v18 = vpop.f32.mrf.mxu1  ;;  %v4885_v9 = vld [vmem:[%s8266_s1 + $0x478] sm:$0xf0]  ;;  %v5692_v12 = vld [vmem:[%s8266_s1 + $0x464] sm:$0xf0] }
 0x164   : > { %v816_v47 = vadd.f32 %v784_v18, %v6552_v14  ;;  %v4888_v53 = vor.u32 %v5693_v45, %v4885_v9  ;;  %2352 = vmatpush.bf16.msra.mxu2 %v4970_v8  ;;  %v4876_v58 = vor.u32 %v5692_v12, %v4875_v11  ;;  %v4608_v45 = vld [vmem:[%s6054_s26 + $0x111] sm:$0xff] }
 0x166   : > { %2160 = vmatpush.bf16.msra.mxu1 %v4888_v53  ;;  %2117 = vmatpush.bf16.msra.mxu0 %v4876_v58  ;;  %v1543_v53 = vpack.c.bf16 %v4608_v45, %v4607_v36  ;;  %v4703_v36 = vld [vmem:[%s6054_s26 + $0x1a1] sm:$0xff]  ;;  %v4704_v45 = vld [vmem:[%s6054_s26 + $0x1b1] sm:$0xff] }
 0x169   : > { %v974_v60 = vpop.f32.mrf.mxu2 }
 0x16a   : > { %v6846_v0 = vadd.f32 %v974_v60, %v815_v15  ;;  %v1018_v41 = vpop.f32.mrf.mxu3  ;;  %v743_v39 = vpop.f32.mrf.mxu0  ;;  %2161 = vmatpush.bf16.msra.mxu1 %v4880_v54  ;;  %v4953_v54 = vld [vmem:[%s8266_s1 + $0x4c0] sm:$0xf] }
 0x16b   : > { %v6848_v14 = vadd.f32 %v1018_v41, %v816_v47  ;;  %v817_v61 = vadd.f32 %v743_v39, %v6578_v32  ;;  %v787_v1 = vpop.f32.mrf.mxu1  ;;  %v4971_v32 = vld [vmem:[%s8266_s1 + $0x4e8] sm:$0xf0]  ;;  %v4701_v47 = vld [vmem:[%s6054_s26 + $0x181] sm:$0xff]  ;;  %v5706_v41 = vld [vmem:[%s8266_s1 + $0x4d4] sm:$0xf0] }
 0x16c   : > { %v818_v2 = vadd.f32 %v787_v1, %v6580_v38  ;;  %v4974_v38 = vor.u32 %v5707_v30, %v4971_v32  ;;  %v1777_v59 = vpack.c.bf16 %v4702_v52, %v4701_v47  ;;  %v5705_v39 = vld [vmem:[%s8266_s1 + $0x4d4] sm:$0xf]  ;;  %v4869_v30 = vld [vmem:[%s8266_s1 + $0x458] sm:$0xf0] }
 0x16d   : > { %1216 = vmatmul.bf16.gmra.mxu0 %v1080_v33 }
 0x16e   : > { %1260 = vmatmul.bf16.gmra.mxu1 %v1080_v33  ;;  %1451 = vmatmul.bf16.gmra.mxu2 %v1315_v44 }
 0x16f   : > { %1495 = vmatmul.bf16.gmra.mxu3 %v1315_v44 }
 0x170   : > { %2396 = vmatpush.bf16.msra.mxu3 %v4974_v38 }
 0x171   : > { %v977_v51 = vpop.f32.mrf.mxu2 }
 0x172   : > { %v6876_v62 = vadd.f32 %v977_v51, %v817_v61  ;;  %v1021_v22 = vpop.f32.mrf.mxu3  ;;  %v745_v25 = vpop.f32.mrf.mxu0 }
 0x173   : > { %v6878_v27 = vadd.f32 %v1021_v22, %v818_v2  ;;  %v819_v15 = vadd.f32 %v745_v25, %v6586_v50  ;;  %v789_v18 = vpop.f32.mrf.mxu1  ;;  %v4867_v2 = vld [vmem:[%s8266_s1 + $0x450] sm:$0xf]  ;;  %v5704_v22 = vld [vmem:[%s8266_s1 + $0x4c4] sm:$0xf0]  ;;  %v5703_v25 = vld [vmem:[%s8266_s1 + $0x4c4] sm:$0xf] }
 0x174   : > { %v820_v35 = vadd.f32 %v789_v18, %v6588_v56  ;;  %v4961_v56 = vld [vmem:[%s8266_s1 + $0x4d0] sm:$0xf]  ;;  %v4868_v6 = vor.u32 %v5690_v5, %v4867_v2  ;;  %v4609_v18 = vld [vmem:[%s6054_s26 + $0x121] sm:$0xff] }
 0x175   : > { %v4962_v61 = vor.u32 %v5706_v41, %v4961_v56  ;;  %v4859_v41 = vld [vmem:[%s8266_s1 + $0x440] sm:$0xf] }
 0x176   : > { %2118 = vmatpush.bf16.msra.mxu0 %v4868_v6 }
 0x177   : > { %2353 = vmatpush.bf16.msra.mxu2 %v4962_v61 }
 0x179   : > { %v979_v9 = vpop.f32.mrf.mxu2 }
 0x17a   : > { %v6886_v37 = vadd.f32 %v979_v9, %v819_v15  ;;  %v1023_v40 = vpop.f32.mrf.mxu3  ;;  %v748_v57 = vpop.f32.mrf.mxu0  ;;  %v4954_v15 = vor.u32 %v5704_v22, %v4953_v54  ;;  %v4705_v54 = vld [vmem:[%s6054_s26 + $0x1c1] sm:$0xff]  ;;  %v4706_v22 = vld [vmem:[%s6054_s26 + $0x1d1] sm:$0xff] }
 0x17b   : > { %v6888_v60 = vadd.f32 %v1023_v40, %v820_v35  ;;  %v821_v33 = vadd.f32 %v748_v57, %v6614_v16  ;;  %v792_v50 = vpop.f32.mrf.mxu1  ;;  %v4963_v16 = vld [vmem:[%s8266_s1 + $0x4d8] sm:$0xf0]  ;;  %v4610_v35 = vld [vmem:[%s6054_s26 + $0x131] sm:$0xff]  ;;  %v1778_v57 = vpack.c.bf16 %v4704_v45, %v4703_v36 }
 0x17c   : > { %v822_v44 = vadd.f32 %v792_v50, %v6616_v20  ;;  %v4966_v1 = vor.u32 %v5705_v39, %v4963_v16  ;;  %v5689_v20 = vld [vmem:[%s8266_s1 + $0x454] sm:$0xf]  ;;  %2354 = vmatpush.bf16.msra.mxu2 %v4954_v15  ;;  %v1544_v52 = vpack.c.bf16 %v4610_v35, %v4609_v18  ;;  %v5688_v39 = vld [vmem:[%s8266_s1 + $0x444] sm:$0xf0] }
 0x17d   : > { %1655 = vmatmul.bf16.vlgmr.msrb.gmra.mxu0 %v1543_v53  ;;  %v4872_v32 = vor.u32 %v5689_v20, %v4869_v30  ;;  %v4860_v61 = vor.u32 %v5688_v39, %v4859_v41 }
 0x17e   : > { %1699 = vmatmul.bf16.vlgmr.msrb.gmra.mxu1 %v1543_v53  ;;  %1889 = vmatmul.bf16.vlgmr.msrb.gmra.mxu2 %v1777_v59 }
 0x17f   : > { %1933 = vmatmul.bf16.vlgmr.msrb.gmra.mxu3 %v1777_v59  ;;  %2162 = vmatpush.bf16.msra.mxu1 %v4872_v32  ;;  %v4945_v32 = vld [vmem:[%s8266_s1 + $0x4b0] sm:$0xf] }
 0x180   : > { %2397 = vmatpush.bf16.msra.mxu3 %v4966_v1  ;;  %2119 = vmatpush.bf16.msra.mxu0 %v4860_v61 }
 0x181   : > { %v982_v8 = vpop.f32.mrf.mxu2 }
 0x182   : > { %v6916_v38 = vadd.f32 %v982_v8, %v821_v33  ;;  %v1026_v11 = vpop.f32.mrf.mxu3  ;;  %v750_v12 = vpop.f32.mrf.mxu0 }
 0x183   : > { %v6918_v17 = vadd.f32 %v1026_v11, %v822_v44  ;;  %v823_v58 = vadd.f32 %v750_v12, %v6634_v43  ;;  %v794_v19 = vpop.f32.mrf.mxu1  ;;  %v4955_v43 = vld [vmem:[%s8266_s1 + $0x4c8] sm:$0xf0]  ;;  %v5687_v44 = vld [vmem:[%s8266_s1 + $0x444] sm:$0xf]  ;;  %v5702_v11 = vld [vmem:[%s8266_s1 + $0x4b4] sm:$0xf0] }
 0x184   : > { %v824_v51 = vadd.f32 %v794_v19, %v6636_v48  ;;  %v4958_v48 = vor.u32 %v5703_v25, %v4955_v43  ;;  %v5701_v12 = vld [vmem:[%s8266_s1 + $0x4b4] sm:$0xf]  ;;  %v4611_v19 = vld [vmem:[%s6054_s26 + $0x141] sm:$0xff] }
 0x186   : > { %2398 = vmatpush.bf16.msra.mxu3 %v4958_v48  ;;  %v1779_v48 = vpack.c.bf16 %v4706_v22, %v4705_v54 }
 0x189   : > { %v984_v47 = vpop.f32.mrf.mxu2 }
 0x18a   : > { %v6938_v9 = vadd.f32 %v984_v47, %v823_v58  ;;  %v1028_v53 = vpop.f32.mrf.mxu3  ;;  %v1187_v40 = vpop.f32.mrf.mxu0  ;;  %v4946_v58 = vor.u32 %v5702_v11, %v4945_v32  ;;  %v4614_v32 = vld [vmem:[%s6054_s26 + $0x301] sm:$0xff] }
 0x18b   : > { %v6940_v59 = vadd.f32 %v1028_v53, %v824_v51  ;;  %v1266_v33 = vadd.f32 %v1187_v40, %v6652_v63  ;;  %v1231_v50 = vpop.f32.mrf.mxu1  ;;  %v4861_v63 = vld [vmem:[%s8266_s1 + $0x448] sm:$0xf0]  ;;  %v4612_v51 = vld [vmem:[%s6054_s26 + $0x151] sm:$0xff] }
 0x18c   : > { %v1267_v56 = vadd.f32 %v1231_v50, %v6654_v3  ;;  %v4864_v3 = vor.u32 %v5687_v44, %v4861_v63  ;;  %2355 = vmatpush.bf16.msra.mxu2 %v4946_v58  ;;  %v1545_v15 = vpack.c.bf16 %v4612_v51, %v4611_v19  ;;  %v5686_v53 = vld [vmem:[%s8266_s1 + $0x434] sm:$0xf0]  ;;  %v5685_v40 = vld [vmem:[%s8266_s1 + $0x434] sm:$0xf]  ;;  %v5683_v58 = vld [vmem:[%s8266_s1 + $0x424] sm:$0xf] }
 0x18d   : > { %1660 = vmatmul.bf16.gmra.mxu0 %v1544_v52  ;;  %v4707_v19 = vld [vmem:[%s6054_s26 + $0x1e1] sm:$0xff] }
 0x18e   : > { %1704 = vmatmul.bf16.gmra.mxu1 %v1544_v52  ;;  %1894 = vmatmul.bf16.gmra.mxu2 %v1778_v57  ;;  %v4851_v52 = vld [vmem:[%s8266_s1 + $0x430] sm:$0xf]  ;;  %v4708_v51 = vld [vmem:[%s6054_s26 + $0x381] sm:$0xff] }
 0x18f   : > { %1938 = vmatmul.bf16.gmra.mxu3 %v1778_v57  ;;  %2163 = vmatpush.bf16.msra.mxu1 %v4864_v3 }
 0x191   : > { %v1422_v16 = vpop.f32.mrf.mxu2 }
 0x192   : > { %v6956_v1 = vadd.f32 %v1422_v16, %v1266_v33  ;;  %v1466_v2 = vpop.f32.mrf.mxu3  ;;  %v1189_v5 = vpop.f32.mrf.mxu0  ;;  %v4852_v33 = vor.u32 %v5686_v53, %v4851_v52  ;;  %v4613_v16 = vld [vmem:[%s6054_s26 + $0x161] sm:$0xff] }
 0x193   : > { %v6958_v20 = vadd.f32 %v1466_v2, %v1267_v56  ;;  %v1268_v6 = vadd.f32 %v1189_v5, %v6674_v26  ;;  %v1233_v30 = vpop.f32.mrf.mxu1  ;;  %v4947_v26 = vld [vmem:[%s8266_s1 + $0x4b8] sm:$0xf0]  ;;  %v4937_v2 = vld [vmem:[%s8266_s1 + $0x4a0] sm:$0xf]  ;;  %v5700_v5 = vld [vmem:[%s8266_s1 + $0x4a4] sm:$0xf0]  ;;  %v1546_v22 = vpack.c.bf16 %v4614_v32, %v4613_v16 }
 0x194   : > { %v1269_v8 = vadd.f32 %v1233_v30, %v6676_v31  ;;  %v4950_v31 = vor.u32 %v5701_v12, %v4947_v26  ;;  %2120 = vmatpush.bf16.msra.mxu0 %v4852_v33  ;;  %v4938_v30 = vor.u32 %v5700_v5, %v4937_v2  ;;  %v4845_v26 = vld [vmem:[%s8266_s1 + $0x428] sm:$0xf0]  ;;  %v5681_v5 = vld [vmem:[%s8266_s1 + $0x414] sm:$0xf] }
 0x196   : > { %2399 = vmatpush.bf16.msra.mxu3 %v4950_v31  ;;  %2356 = vmatpush.bf16.msra.mxu2 %v4938_v30  ;;  %v4848_v31 = vor.u32 %v5683_v58, %v4845_v26  ;;  %v4616_v30 = vld [vmem:[%s6054_s26 + $0x321] sm:$0xff] }
 0x199   : > { %v1424_v25 = vpop.f32.mrf.mxu2 }
 0x19a   : > { %v6978_v43 = vadd.f32 %v1424_v25, %v1268_v6  ;;  %v1468_v18 = vpop.f32.mrf.mxu3  ;;  %v1192_v35 = vpop.f32.mrf.mxu0  ;;  %v5699_v6 = vld [vmem:[%s8266_s1 + $0x4a4] sm:$0xf] }
 0x19b   : > { %v6980_v36 = vadd.f32 %v1468_v18, %v1269_v8  ;;  %v1270_v45 = vadd.f32 %v1192_v35, %v6692_v55  ;;  %v1236_v47 = vpop.f32.mrf.mxu1  ;;  %v4853_v55 = vld [vmem:[%s8266_s1 + $0x438] sm:$0xf0]  ;;  %v5684_v8 = vld [vmem:[%s8266_s1 + $0x424] sm:$0xf0]  ;;  %v1780_v35 = vpack.c.bf16 %v4708_v51, %v4707_v19 }
 0x19c   : > { %v1271_v57 = vadd.f32 %v1236_v47, %v6694_v10  ;;  %v4856_v50 = vor.u32 %v5685_v40, %v4853_v55 }
 0x19d   : > { %1665 = vmatmul.bf16.gmra.mxu0 %v1545_v15 }
 0x19e   : > { %1709 = vmatmul.bf16.gmra.mxu1 %v1545_v15  ;;  %1899 = vmatmul.bf16.gmra.mxu2 %v1779_v48 }
 0x19f   : > { %1943 = vmatmul.bf16.gmra.mxu3 %v1779_v48  ;;  %2164 = vmatpush.bf16.msra.mxu1 %v4856_v50 }
 0x1a1   : > { %v1427_v56 = vpop.f32.mrf.mxu2 }
 0x1a2   : > { %v6996_v41 = vadd.f32 %v1427_v56, %v1270_v45  ;;  %v1471_v39 = vpop.f32.mrf.mxu3  ;;  %v1194_v44 = vpop.f32.mrf.mxu0 }
 0x1a3   : > { %v6998_v10 = vadd.f32 %v1471_v39, %v1271_v57  ;;  %v1272_v61 = vadd.f32 %v1194_v44, %v6726_v24  ;;  %v1238_v63 = vpop.f32.mrf.mxu1  ;;  %v4939_v24 = vld [vmem:[%s8266_s1 + $0x4a8] sm:$0xf0]  ;;  %2165 = vmatpush.bf16.msra.mxu1 %v4848_v31  ;;  %v5697_v39 = vld [vmem:[%s8266_s1 + $0x494] sm:$0xf] }
 0x1a4   : > { %v1273_v3 = vadd.f32 %v1238_v63, %v6728_v29  ;;  %v4843_v29 = vld [vmem:[%s8266_s1 + $0x420] sm:$0xf]  ;;  %v4942_v11 = vor.u32 %v5699_v6, %v4939_v24  ;;  %v4835_v63 = vld [vmem:[%s8266_s1 + $0x410] sm:$0xf] }
 0x1a5   : > { %v4844_v12 = vor.u32 %v5684_v8, %v4843_v29  ;;  %v4615_v6 = vld [vmem:[%s6054_s26 + $0x311] sm:$0xff]  ;;  %v4710_v8 = vld [vmem:[%s6054_s26 + $0x3a1] sm:$0xff] }
 0x1a6   : > { %2400 = vmatpush.bf16.msra.mxu3 %v4942_v11  ;;  %v4709_v29 = vld [vmem:[%s6054_s26 + $0x391] sm:$0xff]  ;;  %v1547_v11 = vpack.c.bf16 %v4616_v30, %v4615_v6 }
 0x1a7   : > { %2121 = vmatpush.bf16.msra.mxu0 %v4844_v12  ;;  %v1781_v19 = vpack.c.bf16 %v4710_v8, %v4709_v29 }
 0x1a9   : > { %v1429_v54 = vpop.f32.mrf.mxu2 }
 0x1aa   : > { %v7030_v25 = vadd.f32 %v1429_v54, %v1272_v61  ;;  %v1473_v15 = vpop.f32.mrf.mxu3  ;;  %v1197_v18 = vpop.f32.mrf.mxu0 }
 0x1ab   : > { %v7032_v48 = vadd.f32 %v1473_v15, %v1273_v3  ;;  %v1274_v45 = vadd.f32 %v1197_v18, %v6732_v46  ;;  %v1241_v47 = vpop.f32.mrf.mxu1  ;;  %v4929_v46 = vld [vmem:[%s8266_s1 + $0x490] sm:$0xf]  ;;  %v5682_v3 = vld [vmem:[%s8266_s1 + $0x414] sm:$0xf0]  ;;  %v4921_v15 = vld [vmem:[%s8266_s1 + $0x480] sm:$0xf] }
 0x1ac   : > { %v1275_v52 = vadd.f32 %v1241_v47, %v6734_v7  ;;  %v5698_v7 = vld [vmem:[%s8266_s1 + $0x494] sm:$0xf0]  ;;  %v4836_v2 = vor.u32 %v5682_v3, %v4835_v63  ;;  %v5696_v18 = vld [vmem:[%s8266_s1 + $0x484] sm:$0xf0] }
 0x1ad   : > { %1670 = vmatmul.bf16.gmra.mxu0 %v1546_v22  ;;  %v4930_v61 = vor.u32 %v5698_v7, %v4929_v46  ;;  %v4827_v7 = vld [vmem:[%s8266_s1 + $0x400] sm:$0xf]  ;;  %v4711_v3 = vld [vmem:[%s6054_s26 + $0x3b1] sm:$0xff] }
 0x1ae   : > { %1714 = vmatmul.bf16.gmra.mxu1 %v1546_v22  ;;  %1904 = vmatmul.bf16.gmra.mxu2 %v1780_v35  ;;  %v4618_v63 = vld [vmem:[%s6054_s26 + $0x341] sm:$0xff] }
 0x1af   : > { %1948 = vmatmul.bf16.gmra.mxu3 %v1780_v35  ;;  %2357 = vmatpush.bf16.msra.mxu2 %v4930_v61  ;;  %v5695_v35 = vld [vmem:[%s8266_s1 + $0x484] sm:$0xf] }
 0x1b0   : > { %2122 = vmatpush.bf16.msra.mxu0 %v4836_v2 }
 0x1b1   : > { %v1432_v53 = vpop.f32.mrf.mxu2 }
 0x1b2   : > { %v7036_v40 = vadd.f32 %v1432_v53, %v1274_v45  ;;  %v1476_v57 = vpop.f32.mrf.mxu3  ;;  %v1199_v33 = vpop.f32.mrf.mxu0 }
 0x1b3   : > { %v7038_v55 = vadd.f32 %v1476_v57, %v1275_v52  ;;  %v1276_v50 = vadd.f32 %v1199_v33, %v6766_v13  ;;  %v1243_v56 = vpop.f32.mrf.mxu1  ;;  %v4931_v13 = vld [vmem:[%s8266_s1 + $0x498] sm:$0xf0] }
 0x1b4   : > { %v1277_v44 = vadd.f32 %v1243_v56, %v6768_v21  ;;  %v4934_v16 = vor.u32 %v5697_v39, %v4931_v13  ;;  %v4837_v21 = vld [vmem:[%s8266_s1 + $0x418] sm:$0xf0]  ;;  %v5680_v39 = vld [vmem:[%s8266_s1 + $0x404] sm:$0xf0]  ;;  %v4617_v13 = vld [vmem:[%s6054_s26 + $0x331] sm:$0xff] }
 0x1b5   : > { %v4840_v24 = vor.u32 %v5681_v5, %v4837_v21  ;;  %v4828_v61 = vor.u32 %v5680_v39, %v4827_v7  ;;  %v1548_v5 = vpack.c.bf16 %v4618_v63, %v4617_v13  ;;  %v4620_v7 = vld [vmem:[%s6054_s26 + $0x361] sm:$0xff]  ;;  %v4713_v39 = vld [vmem:[%s6054_s26 + $0x3d1] sm:$0xff] }
 0x1b6   : > { %2401 = vmatpush.bf16.msra.mxu3 %v4934_v16  ;;  %v4712_v16 = vld [vmem:[%s6054_s26 + $0x3c1] sm:$0xff] }
 0x1b7   : > { %2166 = vmatpush.bf16.msra.mxu1 %v4840_v24  ;;  %2123 = vmatpush.bf16.msra.mxu0 %v4828_v61  ;;  %v1782_v24 = vpack.c.bf16 %v4712_v16, %v4711_v3 }
 0x1b9   : > { %v1434_v32 = vpop.f32.mrf.mxu2 }
 0x1ba   : > { %v7070_v12 = vadd.f32 %v1434_v32, %v1276_v50  ;;  %v1478_v58 = vpop.f32.mrf.mxu3  ;;  %v1202_v26 = vpop.f32.mrf.mxu0 }
 0x1bb   : > { %v7072_v51 = vadd.f32 %v1478_v58, %v1277_v44  ;;  %v1278_v31 = vadd.f32 %v1202_v26, %v6784_v42  ;;  %v1246_v54 = vpop.f32.mrf.mxu1  ;;  %v4922_v42 = vor.u32 %v5696_v18, %v4921_v15  ;;  %v5679_v44 = vld [vmem:[%s8266_s1 + $0x404] sm:$0xf]  ;;  %v5165_v58 = vld [vmem:[%s8266_s1 + $0x5f0] sm:$0xf]  ;;  %v5742_v26 = vld [vmem:[%s8266_s1 + $0x5f4] sm:$0xf0] }
 0x1bc   : > { %v1279_v22 = vadd.f32 %v1246_v54, %v6786_v49  ;;  %v4923_v49 = vld [vmem:[%s8266_s1 + $0x488] sm:$0xf0] }
 0x1bd   : > { %1675 = vmatmul.bf16.gmra.mxu0 %v1547_v11  ;;  %v4926_v47 = vor.u32 %v5695_v35, %v4923_v49  ;;  %2358 = vmatpush.bf16.msra.mxu2 %v4922_v42 }
 0x1be   : > { %1719 = vmatmul.bf16.gmra.mxu1 %v1547_v11  ;;  %1909 = vmatmul.bf16.gmra.mxu2 %v1781_v19 }
 0x1bf   : > { %1953 = vmatmul.bf16.gmra.mxu3 %v1781_v19  ;;  %v5741_v19 = vld [vmem:[%s8266_s1 + $0x5f4] sm:$0xf] }
 0x1c0   : > { %2402 = vmatpush.bf16.msra.mxu3 %v4926_v47  ;;  %v5726_v47 = vld [vmem:[%s8266_s1 + $0x574] sm:$0xf0] }
 0x1c1   : > { %v1437_v45 = vpop.f32.mrf.mxu2 }
 0x1c2   : > { %v7088_v52 = vadd.f32 %v1437_v45, %v1278_v31  ;;  %v1481_v53 = vpop.f32.mrf.mxu3  ;;  %v1204_v57 = vpop.f32.mrf.mxu0  ;;  %v5071_v45 = vld [vmem:[%s8266_s1 + $0x570] sm:$0xf] }
 0x1c3   : > { %v7090_v33 = vadd.f32 %v1481_v53, %v1279_v22  ;;  %v1280_v50 = vadd.f32 %v1204_v57, %v6806_v4  ;;  %v1248_v56 = vpop.f32.mrf.mxu1  ;;  %v4829_v4 = vld [vmem:[%s8266_s1 + $0x408] sm:$0xf0]  ;;  %v5725_v53 = vld [vmem:[%s8266_s1 + $0x574] sm:$0xf] }
 0x1c4   : > { %v1281_v46 = vadd.f32 %v1248_v56, %v6808_v34  ;;  %v4832_v34 = vor.u32 %v5679_v44, %v4829_v4  ;;  %v4714_v44 = vld [vmem:[%s6054_s26 + $0x3e1] sm:$0xff] }
 0x1c5   : > { %v1783_v3 = vpack.c.bf16 %v4714_v44, %v4713_v39 }
 0x1c6   : > { %2167 = vmatpush.bf16.msra.mxu1 %v4832_v34 }
 0x1c9   : > { %v1439_v2 = vpop.f32.mrf.mxu2 }
 0x1ca   : > { %v7110_v21 = vadd.f32 %v1439_v2, %v1280_v50  ;;  %v1483_v6 = vpop.f32.mrf.mxu3  ;;  %v1207_v30 = vpop.f32.mrf.mxu0  ;;  %v5072_v50 = vor.u32 %v5726_v47, %v5071_v45  ;;  %v4795_v47 = vld [vmem:[%s6054_s26 + $0x10] sm:$0xff] }
 0x1cb   : > { %v7112_v29 = vadd.f32 %v1483_v6, %v1281_v46  ;;  %v1282_v8 = vadd.f32 %v1207_v30, %v6824_v23  ;;  %v1251_v32 = vpop.f32.mrf.mxu1  ;;  %v5166_v23 = vor.u32 %v5742_v26, %v5165_v58  ;;  %v4619_v46 = vld [vmem:[%s6054_s26 + $0x351] sm:$0xff]  ;;  %v5157_v6 = vld [vmem:[%s8266_s1 + $0x5e0] sm:$0xf]  ;;  %v5740_v30 = vld [vmem:[%s8266_s1 + $0x5e4] sm:$0xf0] }
 0x1cc   : > { %v1283_v11 = vadd.f32 %v1251_v32, %v6826_v28  ;;  %v5167_v28 = vld [vmem:[%s8266_s1 + $0x5f8] sm:$0xf0]  ;;  %2585 = vmatpush.bf16.msrb.mxu0 %v5072_v50  ;;  %v1549_v4 = vpack.c.bf16 %v4620_v7, %v4619_v46  ;;  %v5063_v32 = vld [vmem:[%s8266_s1 + $0x560] sm:$0xf]  ;;  %v5723_v58 = vld [vmem:[%s8266_s1 + $0x564] sm:$0xf] }
 0x1cd   : > { %1680 = vmatmul.bf16.gmra.mxu0 %v1548_v5  ;;  %v5170_v54 = vor.u32 %v5741_v19, %v5167_v28  ;;  %2819 = vmatpush.bf16.msrb.mxu2 %v5166_v23  ;;  %v5065_v19 = vld [vmem:[%s8266_s1 + $0x568] sm:$0xf0]  ;;  %v4890_v50 = vld [vmem:[%s6054_s26 + $0xa0] sm:$0xff] }
 0x1ce   : > { %1724 = vmatmul.bf16.gmra.mxu1 %v1548_v5  ;;  %1914 = vmatmul.bf16.gmra.mxu2 %v1782_v24  ;;  %v5068_v28 = vor.u32 %v5723_v58, %v5065_v19 }
 0x1cf   : > { %1958 = vmatmul.bf16.gmra.mxu3 %v1782_v24  ;;  %v5739_v24 = vld [vmem:[%s8266_s1 + $0x5e4] sm:$0xf] }
 0x1d0   : > { %2863 = vmatpush.bf16.msrb.mxu3 %v5170_v54 }
 0x1d1   : > { %v1442_v31 = vpop.f32.mrf.mxu2 }
 0x1d2   : > { %v7128_v22 = vadd.f32 %v1442_v31, %v1282_v8  ;;  %v1486_v15 = vpop.f32.mrf.mxu3  ;;  %v1209_v18 = vpop.f32.mrf.mxu0  ;;  %v5158_v8 = vor.u32 %v5740_v30, %v5157_v6  ;;  %v5722_v6 = vld [vmem:[%s8266_s1 + $0x554] sm:$0xf0] }
 0x1d3   : > { %v7130_v35 = vadd.f32 %v1486_v15, %v1283_v11  ;;  %v1284_v42 = vadd.f32 %v1209_v18, %v6846_v0  ;;  %v1253_v49 = vpop.f32.mrf.mxu1  ;;  %v5073_v0 = vld [vmem:[%s8266_s1 + $0x578] sm:$0xf0]  ;;  %v5724_v11 = vld [vmem:[%s8266_s1 + $0x564] sm:$0xf0] }
 0x1d4   : > { %v1285_v57 = vadd.f32 %v1253_v49, %v6848_v14  ;;  %v5076_v56 = vor.u32 %v5725_v53, %v5073_v0  ;;  %2820 = vmatpush.bf16.msrb.mxu2 %v5158_v8  ;;  %v5064_v26 = vor.u32 %v5724_v11, %v5063_v32  ;;  %v4796_v53 = vld [vmem:[%s6054_s26 + $0x20] sm:$0xff] }
 0x1d6   : > { %2629 = vmatpush.bf16.msrb.mxu1 %v5076_v56  ;;  %2586 = vmatpush.bf16.msrb.mxu0 %v5064_v26  ;;  %v2012_v56 = vpack.c.bf16 %v4796_v53, %v4795_v47  ;;  %v4891_v47 = vld [vmem:[%s6054_s26 + $0xb0] sm:$0xff]  ;;  %v4892_v53 = vld [vmem:[%s6054_s26 + $0xc0] sm:$0xff] }
 0x1d9   : > { %v1444_v61 = vpop.f32.mrf.mxu2 }
 0x1da   : > { %v7150_v13 = vadd.f32 %v1444_v61, %v1284_v42  ;;  %v1488_v63 = vpop.f32.mrf.mxu3  ;;  %v1212_v34 = vpop.f32.mrf.mxu0  ;;  %2630 = vmatpush.bf16.msrb.mxu1 %v5068_v28  ;;  %v5141_v28 = vld [vmem:[%s8266_s1 + $0x5c0] sm:$0xf] }
 0x1db   : > { %v7152_v14 = vadd.f32 %v1488_v63, %v1285_v57  ;;  %v1286_v16 = vadd.f32 %v1212_v34, %v6876_v62  ;;  %v1256_v2 = vpop.f32.mrf.mxu1  ;;  %v5159_v62 = vld [vmem:[%s8266_s1 + $0x5e8] sm:$0xf0]  ;;  %v4889_v57 = vld [vmem:[%s6054_s26 + $0x90] sm:$0xff]  ;;  %v5738_v63 = vld [vmem:[%s8266_s1 + $0x5d4] sm:$0xf0] }
 0x1dc   : > { %v1287_v5 = vadd.f32 %v1256_v2, %v6878_v27  ;;  %v5162_v27 = vor.u32 %v5739_v24, %v5159_v62  ;;  %v2247_v44 = vpack.c.bf16 %v4890_v50, %v4889_v57  ;;  %v5737_v34 = vld [vmem:[%s8266_s1 + $0x5d4] sm:$0xf]  ;;  %v5057_v24 = vld [vmem:[%s8266_s1 + $0x558] sm:$0xf0] }
 0x1dd   : > { %1685 = vmatmul.bf16.gmra.mxu0 %v1549_v4 }
 0x1de   : > { %1729 = vmatmul.bf16.gmra.mxu1 %v1549_v4  ;;  %1919 = vmatmul.bf16.gmra.mxu2 %v1783_v3 }
 0x1df   : > { %1963 = vmatmul.bf16.gmra.mxu3 %v1783_v3 }
 0x1e0   : > { %2864 = vmatpush.bf16.msrb.mxu3 %v5162_v27 }
 0x1e1   : > { %v1447_v23 = vpop.f32.mrf.mxu2 }
 0x1e2   : > { %v7180_v31 = vadd.f32 %v1447_v23, %v1286_v16  ;;  %v1491_v54 = vpop.f32.mrf.mxu3  ;;  %v1214_v15 = vpop.f32.mrf.mxu0 }
 0x1e3   : > { %v7182_v18 = vadd.f32 %v1491_v54, %v1287_v5  ;;  %v1288_v42 = vadd.f32 %v1214_v15, %v6886_v37  ;;  %v1258_v49 = vpop.f32.mrf.mxu1  ;;  %v5055_v5 = vld [vmem:[%s8266_s1 + $0x550] sm:$0xf]  ;;  %v5736_v54 = vld [vmem:[%s8266_s1 + $0x5c4] sm:$0xf0]  ;;  %v5735_v15 = vld [vmem:[%s8266_s1 + $0x5c4] sm:$0xf] }
 0x1e4   : > { %v1289_v45 = vadd.f32 %v1258_v49, %v6888_v60  ;;  %v5149_v60 = vld [vmem:[%s8266_s1 + $0x5d0] sm:$0xf]  ;;  %v5056_v30 = vor.u32 %v5722_v6, %v5055_v5 }
 0x1e5   : > { %v5150_v16 = vor.u32 %v5738_v63, %v5149_v60  ;;  %v4797_v49 = vld [vmem:[%s6054_s26 + $0x30] sm:$0xff]  ;;  %v5047_v63 = vld [vmem:[%s8266_s1 + $0x540] sm:$0xf] }
 0x1e6   : > { %2587 = vmatpush.bf16.msrb.mxu0 %v5056_v30 }
 0x1e7   : > { %2821 = vmatpush.bf16.msrb.mxu2 %v5150_v16 }
 0x1e9   : > { %v1449_v0 = vpop.f32.mrf.mxu2 }
 0x1ea   : > { %v7190_v46 = vadd.f32 %v1449_v0, %v1288_v42  ;;  %v1493_v7 = vpop.f32.mrf.mxu3  ;;  %v1217_v39 = vpop.f32.mrf.mxu0  ;;  %v5142_v42 = vor.u32 %v5736_v54, %v5141_v28  ;;  %v4893_v28 = vld [vmem:[%s6054_s26 + $0xd0] sm:$0xff]  ;;  %v4894_v54 = vld [vmem:[%s6054_s26 + $0xe0] sm:$0xff] }
 0x1eb   : > { %v7192_v61 = vadd.f32 %v1493_v7, %v1289_v45  ;;  %v1290_v4 = vadd.f32 %v1217_v39, %v6916_v38  ;;  %v1261_v37 = vpop.f32.mrf.mxu1  ;;  %v5151_v38 = vld [vmem:[%s8266_s1 + $0x5d8] sm:$0xf0]  ;;  %v4798_v45 = vld [vmem:[%s6054_s26 + $0x40] sm:$0xff]  ;;  %v2248_v39 = vpack.c.bf16 %v4892_v53, %v4891_v47 }
 0x1ec   : > { %v1291_v3 = vadd.f32 %v1261_v37, %v6918_v17  ;;  %v5154_v2 = vor.u32 %v5737_v34, %v5151_v38  ;;  %v5721_v17 = vld [vmem:[%s8266_s1 + $0x554] sm:$0xf]  ;;  %2822 = vmatpush.bf16.msrb.mxu2 %v5142_v42  ;;  %v2013_v50 = vpack.c.bf16 %v4798_v45, %v4797_v49  ;;  %v5720_v34 = vld [vmem:[%s8266_s1 + $0x544] sm:$0xf0] }
 0x1ed   : > { %2124 = vmatmul.bf16.vlgmr.msra.gmra.mxu0 %v2012_v56  ;;  %v5060_v62 = vor.u32 %v5721_v17, %v5057_v24  ;;  %v5048_v16 = vor.u32 %v5720_v34, %v5047_v63 }
 0x1ee   : > { %2168 = vmatmul.bf16.vlgmr.msra.gmra.mxu1 %v2012_v56  ;;  %2359 = vmatmul.bf16.vlgmr.msra.gmra.mxu2 %v2247_v44 }
 0x1ef   : > { %2403 = vmatmul.bf16.vlgmr.msra.gmra.mxu3 %v2247_v44  ;;  %2631 = vmatpush.bf16.msrb.mxu1 %v5060_v62  ;;  %v5133_v62 = vld [vmem:[%s8266_s1 + $0x5b0] sm:$0xf] }
 0x1f0   : > { %2865 = vmatpush.bf16.msrb.mxu3 %v5154_v2  ;;  %2588 = vmatpush.bf16.msrb.mxu0 %v5048_v16 }
 0x1f1   : > { %v1452_v8 = vpop.f32.mrf.mxu2 }
 0x1f2   : > { %v7220_v27 = vadd.f32 %v1452_v8, %v1290_v4  ;;  %v1496_v32 = vpop.f32.mrf.mxu3  ;;  %v1219_v11 = vpop.f32.mrf.mxu0 }
 0x1f3   : > { %v7222_v58 = vadd.f32 %v1496_v32, %v1291_v3  ;;  %v1292_v26 = vadd.f32 %v1219_v11, %v6938_v9  ;;  %v1263_v19 = vpop.f32.mrf.mxu1  ;;  %v5143_v9 = vld [vmem:[%s8266_s1 + $0x5c8] sm:$0xf0]  ;;  %v5719_v3 = vld [vmem:[%s8266_s1 + $0x544] sm:$0xf]  ;;  %v5734_v32 = vld [vmem:[%s8266_s1 + $0x5b4] sm:$0xf0] }
 0x1f4   : > { %v1293_v23 = vadd.f32 %v1263_v19, %v6940_v59  ;;  %v5146_v59 = vor.u32 %v5735_v15, %v5143_v9  ;;  %v5733_v11 = vld [vmem:[%s8266_s1 + $0x5b4] sm:$0xf] }
 0x1f5   : > { %v4799_v19 = vld [vmem:[%s6054_s26 + $0x50] sm:$0xff] }
 0x1f6   : > { %2866 = vmatpush.bf16.msrb.mxu3 %v5146_v59  ;;  %v2249_v59 = vpack.c.bf16 %v4894_v54, %v4893_v28 }
 0x1f9   : > { %v1454_v57 = vpop.f32.mrf.mxu2 }
 0x1fa   : > { %v7242_v0 = vadd.f32 %v1454_v57, %v1292_v26  ;;  %v1498_v56 = vpop.f32.mrf.mxu3  ;;  %v1656_v7 = vpop.f32.mrf.mxu0  ;;  %v5134_v26 = vor.u32 %v5734_v32, %v5133_v62  ;;  %v4802_v62 = vld [vmem:[%s6054_s26 + $0x210] sm:$0xff] }
 0x1fb   : > { %v7244_v44 = vadd.f32 %v1498_v56, %v1293_v23  ;;  %v1735_v4 = vadd.f32 %v1656_v7, %v6956_v1  ;;  %v1700_v37 = vpop.f32.mrf.mxu1  ;;  %v5049_v1 = vld [vmem:[%s8266_s1 + $0x548] sm:$0xf0]  ;;  %v4800_v23 = vld [vmem:[%s6054_s26 + $0x60] sm:$0xff]  ;;  %v5718_v56 = vld [vmem:[%s8266_s1 + $0x534] sm:$0xf0] }
 0x1fc   : > { %v1736_v60 = vadd.f32 %v1700_v37, %v6958_v20  ;;  %v5052_v20 = vor.u32 %v5719_v3, %v5049_v1  ;;  %2823 = vmatpush.bf16.msrb.mxu2 %v5134_v26  ;;  %v2014_v42 = vpack.c.bf16 %v4800_v23, %v4799_v19  ;;  %v5717_v7 = vld [vmem:[%s8266_s1 + $0x534] sm:$0xf]  ;;  %v5715_v26 = vld [vmem:[%s8266_s1 + $0x524] sm:$0xf] }
 0x1fd   : > { %2129 = vmatmul.bf16.gmra.mxu0 %v2013_v50  ;;  %v4895_v19 = vld [vmem:[%s6054_s26 + $0xf0] sm:$0xff] }
 0x1fe   : > { %2173 = vmatmul.bf16.gmra.mxu1 %v2013_v50  ;;  %2364 = vmatmul.bf16.gmra.mxu2 %v2248_v39  ;;  %v5039_v50 = vld [vmem:[%s8266_s1 + $0x530] sm:$0xf] }
 0x1ff   : > { %2408 = vmatmul.bf16.gmra.mxu3 %v2248_v39  ;;  %2632 = vmatpush.bf16.msrb.mxu1 %v5052_v20  ;;  %v4896_v23 = vld [vmem:[%s6054_s26 + $0x290] sm:$0xff] }
 0x201   : > { %v1890_v38 = vpop.f32.mrf.mxu2 }
 0x202   : > { %v7260_v2 = vadd.f32 %v1890_v38, %v1735_v4  ;;  %v1934_v5 = vpop.f32.mrf.mxu3  ;;  %v1658_v6 = vpop.f32.mrf.mxu0  ;;  %v5040_v4 = vor.u32 %v5718_v56, %v5039_v50  ;;  %v4801_v38 = vld [vmem:[%s6054_s26 + $0x70] sm:$0xff] }
 0x203   : > { %v7262_v17 = vadd.f32 %v1934_v5, %v1736_v60  ;;  %v1737_v30 = vadd.f32 %v1658_v6, %v6978_v43  ;;  %v1702_v24 = vpop.f32.mrf.mxu1  ;;  %v5135_v43 = vld [vmem:[%s8266_s1 + $0x5b8] sm:$0xf0]  ;;  %v5125_v5 = vld [vmem:[%s8266_s1 + $0x5a0] sm:$0xf]  ;;  %v5732_v6 = vld [vmem:[%s8266_s1 + $0x5a4] sm:$0xf0]  ;;  %v2015_v54 = vpack.c.bf16 %v4802_v62, %v4801_v38 }
 0x204   : > { %v1738_v8 = vadd.f32 %v1702_v24, %v6980_v36  ;;  %v5138_v36 = vor.u32 %v5733_v11, %v5135_v43  ;;  %2589 = vmatpush.bf16.msrb.mxu0 %v5040_v4  ;;  %v5126_v24 = vor.u32 %v5732_v6, %v5125_v5  ;;  %v5033_v43 = vld [vmem:[%s8266_s1 + $0x528] sm:$0xf0]  ;;  %v5713_v6 = vld [vmem:[%s8266_s1 + $0x514] sm:$0xf] }
 0x206   : > { %2867 = vmatpush.bf16.msrb.mxu3 %v5138_v36  ;;  %2824 = vmatpush.bf16.msrb.mxu2 %v5126_v24  ;;  %v5036_v36 = vor.u32 %v5715_v26, %v5033_v43  ;;  %v4804_v24 = vld [vmem:[%s6054_s26 + $0x230] sm:$0xff] }
 0x209   : > { %v1892_v15 = vpop.f32.mrf.mxu2 }
 0x20a   : > { %v7282_v9 = vadd.f32 %v1892_v15, %v1737_v30  ;;  %v1936_v49 = vpop.f32.mrf.mxu3  ;;  %v1661_v45 = vpop.f32.mrf.mxu0  ;;  %v5731_v30 = vld [vmem:[%s8266_s1 + $0x5a4] sm:$0xf] }
 0x20b   : > { %v7284_v47 = vadd.f32 %v1936_v49, %v1738_v8  ;;  %v1739_v53 = vadd.f32 %v1661_v45, %v6996_v41  ;;  %v1705_v57 = vpop.f32.mrf.mxu1  ;;  %v5041_v41 = vld [vmem:[%s8266_s1 + $0x538] sm:$0xf0]  ;;  %v5716_v8 = vld [vmem:[%s8266_s1 + $0x524] sm:$0xf0]  ;;  %v2250_v45 = vpack.c.bf16 %v4896_v23, %v4895_v19 }
 0x20c   : > { %v1740_v39 = vadd.f32 %v1705_v57, %v6998_v10  ;;  %v5044_v37 = vor.u32 %v5717_v7, %v5041_v41 }
 0x20d   : > { %2134 = vmatmul.bf16.gmra.mxu0 %v2014_v42 }
 0x20e   : > { %2178 = vmatmul.bf16.gmra.mxu1 %v2014_v42  ;;  %2369 = vmatmul.bf16.gmra.mxu2 %v2249_v59 }
 0x20f   : > { %2413 = vmatmul.bf16.gmra.mxu3 %v2249_v59  ;;  %2633 = vmatpush.bf16.msrb.mxu1 %v5044_v37 }
 0x211   : > { %v1895_v60 = vpop.f32.mrf.mxu2 }
 0x212   : > { %v7300_v63 = vadd.f32 %v1895_v60, %v1739_v53  ;;  %v1939_v34 = vpop.f32.mrf.mxu3  ;;  %v1663_v3 = vpop.f32.mrf.mxu0 }
 0x213   : > { %v7302_v10 = vadd.f32 %v1939_v34, %v1740_v39  ;;  %v1741_v16 = vadd.f32 %v1663_v3, %v7030_v25  ;;  %v1707_v1 = vpop.f32.mrf.mxu1  ;;  %v5127_v25 = vld [vmem:[%s8266_s1 + $0x5a8] sm:$0xf0]  ;;  %2634 = vmatpush.bf16.msrb.mxu1 %v5036_v36  ;;  %v5729_v34 = vld [vmem:[%s8266_s1 + $0x594] sm:$0xf] }
 0x214   : > { %v1742_v20 = vadd.f32 %v1707_v1, %v7032_v48  ;;  %v5031_v48 = vld [vmem:[%s8266_s1 + $0x520] sm:$0xf]  ;;  %v5130_v32 = vor.u32 %v5731_v30, %v5127_v25  ;;  %v5023_v1 = vld [vmem:[%s8266_s1 + $0x510] sm:$0xf] }
 0x215   : > { %v5032_v11 = vor.u32 %v5716_v8, %v5031_v48  ;;  %v4803_v30 = vld [vmem:[%s6054_s26 + $0x220] sm:$0xff]  ;;  %v4898_v8 = vld [vmem:[%s6054_s26 + $0x2b0] sm:$0xff] }
 0x216   : > { %2868 = vmatpush.bf16.msrb.mxu3 %v5130_v32  ;;  %v4897_v48 = vld [vmem:[%s6054_s26 + $0x2a0] sm:$0xff]  ;;  %v2016_v32 = vpack.c.bf16 %v4804_v24, %v4803_v30 }
 0x217   : > { %2590 = vmatpush.bf16.msrb.mxu0 %v5032_v11  ;;  %v2251_v19 = vpack.c.bf16 %v4898_v8, %v4897_v48 }
 0x219   : > { %v1897_v28 = vpop.f32.mrf.mxu2 }
 0x21a   : > { %v7334_v15 = vadd.f32 %v1897_v28, %v1741_v16  ;;  %v1941_v42 = vpop.f32.mrf.mxu3  ;;  %v1666_v49 = vpop.f32.mrf.mxu0 }
 0x21b   : > { %v7336_v59 = vadd.f32 %v1941_v42, %v1742_v20  ;;  %v1743_v53 = vadd.f32 %v1666_v49, %v7036_v40  ;;  %v1710_v57 = vpop.f32.mrf.mxu1  ;;  %v5117_v40 = vld [vmem:[%s8266_s1 + $0x590] sm:$0xf]  ;;  %v5714_v20 = vld [vmem:[%s8266_s1 + $0x514] sm:$0xf0]  ;;  %v5109_v42 = vld [vmem:[%s8266_s1 + $0x580] sm:$0xf] }
 0x21c   : > { %v1744_v50 = vadd.f32 %v1710_v57, %v7038_v55  ;;  %v5730_v55 = vld [vmem:[%s8266_s1 + $0x594] sm:$0xf0]  ;;  %v5024_v5 = vor.u32 %v5714_v20, %v5023_v1  ;;  %v5728_v49 = vld [vmem:[%s8266_s1 + $0x584] sm:$0xf0]  ;;  %v4806_v1 = vld [vmem:[%s6054_s26 + $0x250] sm:$0xff] }
 0x21d   : > { %2139 = vmatmul.bf16.gmra.mxu0 %v2015_v54  ;;  %v5118_v16 = vor.u32 %v5730_v55, %v5117_v40  ;;  %v5015_v55 = vld [vmem:[%s8266_s1 + $0x500] sm:$0xf] }
 0x21e   : > { %2183 = vmatmul.bf16.gmra.mxu1 %v2015_v54  ;;  %2374 = vmatmul.bf16.gmra.mxu2 %v2250_v45  ;;  %v4899_v20 = vld [vmem:[%s6054_s26 + $0x2c0] sm:$0xff] }
 0x21f   : > { %2418 = vmatmul.bf16.gmra.mxu3 %v2250_v45  ;;  %2825 = vmatpush.bf16.msrb.mxu2 %v5118_v16  ;;  %v5727_v45 = vld [vmem:[%s8266_s1 + $0x584] sm:$0xf] }
 0x220   : > { %2591 = vmatpush.bf16.msrb.mxu0 %v5024_v5 }
 0x221   : > { %v1900_v56 = vpop.f32.mrf.mxu2 }
 0x222   : > { %v7340_v7 = vadd.f32 %v1900_v56, %v1743_v53  ;;  %v1944_v39 = vpop.f32.mrf.mxu3  ;;  %v1668_v4 = vpop.f32.mrf.mxu0 }
 0x223   : > { %v7342_v41 = vadd.f32 %v1944_v39, %v1744_v50  ;;  %v1745_v37 = vadd.f32 %v1668_v4, %v7070_v12  ;;  %v1712_v60 = vpop.f32.mrf.mxu1  ;;  %v5119_v12 = vld [vmem:[%s8266_s1 + $0x598] sm:$0xf0] }
 0x224   : > { %v1746_v3 = vadd.f32 %v1712_v60, %v7072_v51  ;;  %v5122_v38 = vor.u32 %v5729_v34, %v5119_v12  ;;  %v5025_v51 = vld [vmem:[%s8266_s1 + $0x518] sm:$0xf0]  ;;  %v5712_v34 = vld [vmem:[%s8266_s1 + $0x504] sm:$0xf0]  ;;  %v4805_v12 = vld [vmem:[%s6054_s26 + $0x240] sm:$0xff] }
 0x225   : > { %v5028_v25 = vor.u32 %v5713_v6, %v5025_v51  ;;  %v5016_v16 = vor.u32 %v5712_v34, %v5015_v55  ;;  %v2017_v6 = vpack.c.bf16 %v4806_v1, %v4805_v12  ;;  %v4808_v55 = vld [vmem:[%s6054_s26 + $0x270] sm:$0xff]  ;;  %v4901_v34 = vld [vmem:[%s6054_s26 + $0x2e0] sm:$0xff] }
 0x226   : > { %2869 = vmatpush.bf16.msrb.mxu3 %v5122_v38  ;;  %v4900_v38 = vld [vmem:[%s6054_s26 + $0x2d0] sm:$0xff] }
 0x227   : > { %2635 = vmatpush.bf16.msrb.mxu1 %v5028_v25  ;;  %2592 = vmatpush.bf16.msrb.mxu0 %v5016_v16  ;;  %v2252_v25 = vpack.c.bf16 %v4900_v38, %v4899_v20 }
 0x229   : > { %v1902_v62 = vpop.f32.mrf.mxu2 }
 0x22a   : > { %v7374_v11 = vadd.f32 %v1902_v62, %v1745_v37  ;;  %v1946_v26 = vpop.f32.mrf.mxu3  ;;  %v1671_v43 = vpop.f32.mrf.mxu0 }
 0x22b   : > { %v7376_v23 = vadd.f32 %v1946_v26, %v1746_v3  ;;  %v1747_v36 = vadd.f32 %v1671_v43, %v7088_v52  ;;  %v1715_v28 = vpop.f32.mrf.mxu1  ;;  %v5110_v52 = vor.u32 %v5728_v49, %v5109_v42  ;;  %v5711_v3 = vld [vmem:[%s8266_s1 + $0x504] sm:$0xf]  ;;  %v5353_v26 = vld [vmem:[%s8266_s1 + $0x6f0] sm:$0xf]  ;;  %v5774_v43 = vld [vmem:[%s8266_s1 + $0x6f4] sm:$0xf0] }
 0x22c   : > { %v1748_v54 = vadd.f32 %v1715_v28, %v7090_v33  ;;  %v5111_v33 = vld [vmem:[%s8266_s1 + $0x588] sm:$0xf0] }
 0x22d   : > { %2144 = vmatmul.bf16.gmra.mxu0 %v2016_v32  ;;  %v5114_v57 = vor.u32 %v5727_v45, %v5111_v33  ;;  %2826 = vmatpush.bf16.msrb.mxu2 %v5110_v52 }
 0x22e   : > { %2188 = vmatmul.bf16.gmra.mxu1 %v2016_v32  ;;  %2379 = vmatmul.bf16.gmra.mxu2 %v2251_v19 }
 0x22f   : > { %2423 = vmatmul.bf16.gmra.mxu3 %v2251_v19  ;;  %v5773_v19 = vld [vmem:[%s8266_s1 + $0x6f4] sm:$0xf] }
 0x230   : > { %2870 = vmatpush.bf16.msrb.mxu3 %v5114_v57  ;;  %v5758_v57 = vld [vmem:[%s8266_s1 + $0x674] sm:$0xf0] }
 0x231   : > { %v1905_v53 = vpop.f32.mrf.mxu2 }
 0x232   : > { %v7392_v50 = vadd.f32 %v1905_v53, %v1747_v36  ;;  %v1949_v56 = vpop.f32.mrf.mxu3  ;;  %v1673_v39 = vpop.f32.mrf.mxu0  ;;  %v5259_v53 = vld [vmem:[%s8266_s1 + $0x670] sm:$0xf] }
 0x233   : > { %v7394_v4 = vadd.f32 %v1949_v56, %v1748_v54  ;;  %v1749_v37 = vadd.f32 %v1673_v39, %v7110_v21  ;;  %v1717_v60 = vpop.f32.mrf.mxu1  ;;  %v5017_v21 = vld [vmem:[%s8266_s1 + $0x508] sm:$0xf0]  ;;  %v5757_v56 = vld [vmem:[%s8266_s1 + $0x674] sm:$0xf] }
 0x234   : > { %v1750_v40 = vadd.f32 %v1717_v60, %v7112_v29  ;;  %v5020_v29 = vor.u32 %v5711_v3, %v5017_v21  ;;  %v4902_v3 = vld [vmem:[%s6054_s26 + $0x2f0] sm:$0xff] }
 0x235   : > { %v2253_v20 = vpack.c.bf16 %v4902_v3, %v4901_v34 }
 0x236   : > { %2636 = vmatpush.bf16.msrb.mxu1 %v5020_v29 }
 0x239   : > { %v1907_v5 = vpop.f32.mrf.mxu2 }
 0x23a   : > { %v7414_v51 = vadd.f32 %v1907_v5, %v1749_v37  ;;  %v1951_v30 = vpop.f32.mrf.mxu3  ;;  %v1676_v24 = vpop.f32.mrf.mxu0  ;;  %v5260_v37 = vor.u32 %v5758_v57, %v5259_v53  ;;  %v4983_v57 = vld [vmem:[%s6054_s26 + $0x11] sm:$0xff] }
 0x23b   : > { %v7416_v48 = vadd.f32 %v1951_v30, %v1750_v40  ;;  %v1751_v8 = vadd.f32 %v1676_v24, %v7128_v22  ;;  %v1720_v62 = vpop.f32.mrf.mxu1  ;;  %v5354_v22 = vor.u32 %v5774_v43, %v5353_v26  ;;  %v4807_v40 = vld [vmem:[%s6054_s26 + $0x260] sm:$0xff]  ;;  %v5772_v24 = vld [vmem:[%s8266_s1 + $0x6e4] sm:$0xf0] }
 0x23c   : > { %v1752_v32 = vadd.f32 %v1720_v62, %v7130_v35  ;;  %v5355_v35 = vld [vmem:[%s8266_s1 + $0x6f8] sm:$0xf0]  ;;  %3054 = vmatpush.bf16.msra.mxu0 %v5260_v37  ;;  %v2018_v21 = vpack.c.bf16 %v4808_v55, %v4807_v40  ;;  %v5345_v30 = vld [vmem:[%s8266_s1 + $0x6e0] sm:$0xf]  ;;  %v5755_v26 = vld [vmem:[%s8266_s1 + $0x664] sm:$0xf] }
 0x23d   : > { %2149 = vmatmul.bf16.gmra.mxu0 %v2017_v6  ;;  %v5358_v28 = vor.u32 %v5773_v19, %v5355_v35  ;;  %3289 = vmatpush.bf16.msra.mxu2 %v5354_v22  ;;  %v5251_v62 = vld [vmem:[%s8266_s1 + $0x660] sm:$0xf]  ;;  %v5253_v19 = vld [vmem:[%s8266_s1 + $0x668] sm:$0xf0] }
 0x23e   : > { %2193 = vmatmul.bf16.gmra.mxu1 %v2017_v6  ;;  %2384 = vmatmul.bf16.gmra.mxu2 %v2252_v25  ;;  %v5256_v35 = vor.u32 %v5755_v26, %v5253_v19  ;;  %v5078_v37 = vld [vmem:[%s6054_s26 + $0xa1] sm:$0xff] }
 0x23f   : > { %2428 = vmatmul.bf16.gmra.mxu3 %v2252_v25  ;;  %v5771_v25 = vld [vmem:[%s8266_s1 + $0x6e4] sm:$0xf] }
 0x240   : > { %3333 = vmatpush.bf16.msra.mxu3 %v5358_v28 }
 0x241   : > { %v1910_v36 = vpop.f32.mrf.mxu2 }
 0x242   : > { %v7432_v54 = vadd.f32 %v1910_v36, %v1751_v8  ;;  %v1954_v42 = vpop.f32.mrf.mxu3  ;;  %v1678_v49 = vpop.f32.mrf.mxu0  ;;  %v5346_v8 = vor.u32 %v5772_v24, %v5345_v30  ;;  %v5754_v30 = vld [vmem:[%s8266_s1 + $0x654] sm:$0xf0] }
 0x243   : > { %v7434_v45 = vadd.f32 %v1954_v42, %v1752_v32  ;;  %v1753_v52 = vadd.f32 %v1678_v49, %v7150_v13  ;;  %v1722_v33 = vpop.f32.mrf.mxu1  ;;  %v5261_v13 = vld [vmem:[%s8266_s1 + $0x678] sm:$0xf0]  ;;  %v5756_v32 = vld [vmem:[%s8266_s1 + $0x664] sm:$0xf0] }
 0x244   : > { %v1754_v39 = vadd.f32 %v1722_v33, %v7152_v14  ;;  %v5264_v60 = vor.u32 %v5757_v56, %v5261_v13  ;;  %3290 = vmatpush.bf16.msra.mxu2 %v5346_v8  ;;  %v5252_v43 = vor.u32 %v5756_v32, %v5251_v62  ;;  %v4984_v56 = vld [vmem:[%s6054_s26 + $0x21] sm:$0xff] }
 0x246   : > { %3098 = vmatpush.bf16.msra.mxu1 %v5264_v60  ;;  %3055 = vmatpush.bf16.msra.mxu0 %v5252_v43  ;;  %v2481_v60 = vpack.c.bf16 %v4984_v56, %v4983_v57  ;;  %v5079_v57 = vld [vmem:[%s6054_s26 + $0xb1] sm:$0xff]  ;;  %v5080_v56 = vld [vmem:[%s6054_s26 + $0xc1] sm:$0xff] }
 0x249   : > { %v1912_v16 = vpop.f32.mrf.mxu2 }
 0x24a   : > { %v7454_v12 = vadd.f32 %v1912_v16, %v1753_v52  ;;  %v1956_v1 = vpop.f32.mrf.mxu3  ;;  %v1681_v29 = vpop.f32.mrf.mxu0  ;;  %3099 = vmatpush.bf16.msra.mxu1 %v5256_v35  ;;  %v5329_v35 = vld [vmem:[%s8266_s1 + $0x6c0] sm:$0xf] }
 0x24b   : > { %v7456_v14 = vadd.f32 %v1956_v1, %v1754_v39  ;;  %v1755_v38 = vadd.f32 %v1681_v29, %v7180_v31  ;;  %v1725_v5 = vpop.f32.mrf.mxu1  ;;  %v5347_v31 = vld [vmem:[%s8266_s1 + $0x6e8] sm:$0xf0]  ;;  %v5077_v39 = vld [vmem:[%s6054_s26 + $0x91] sm:$0xff] }
 0x24c   : > { %v1756_v6 = vadd.f32 %v1725_v5, %v7182_v18  ;;  %v5350_v18 = vor.u32 %v5771_v25, %v5347_v31  ;;  %v2715_v3 = vpack.c.bf16 %v5078_v37, %v5077_v39  ;;  %v5770_v1 = vld [vmem:[%s8266_s1 + $0x6d4] sm:$0xf0]  ;;  %v5769_v29 = vld [vmem:[%s8266_s1 + $0x6d4] sm:$0xf]  ;;  %v5245_v25 = vld [vmem:[%s8266_s1 + $0x658] sm:$0xf0] }
 0x24d   : > { %2154 = vmatmul.bf16.gmra.mxu0 %v2018_v21 }
 0x24e   : > { %2198 = vmatmul.bf16.gmra.mxu1 %v2018_v21  ;;  %2389 = vmatmul.bf16.gmra.mxu2 %v2253_v20 }
 0x24f   : > { %2433 = vmatmul.bf16.gmra.mxu3 %v2253_v20 }
 0x250   : > { %3334 = vmatpush.bf16.msra.mxu3 %v5350_v18 }
 0x251   : > { %v1915_v22 = vpop.f32.mrf.mxu2 }
 0x252   : > { %v7484_v36 = vadd.f32 %v1915_v22, %v1755_v38  ;;  %v1959_v28 = vpop.f32.mrf.mxu3  ;;  %v1683_v42 = vpop.f32.mrf.mxu0 }
 0x253   : > { %v7486_v49 = vadd.f32 %v1959_v28, %v1756_v6  ;;  %v1757_v52 = vadd.f32 %v1683_v42, %v7190_v46  ;;  %v1727_v33 = vpop.f32.mrf.mxu1  ;;  %v5243_v6 = vld [vmem:[%s8266_s1 + $0x650] sm:$0xf]  ;;  %v5768_v28 = vld [vmem:[%s8266_s1 + $0x6c4] sm:$0xf0]  ;;  %v5767_v42 = vld [vmem:[%s8266_s1 + $0x6c4] sm:$0xf] }
 0x254   : > { %v1758_v53 = vadd.f32 %v1727_v33, %v7192_v61  ;;  %v5337_v61 = vld [vmem:[%s8266_s1 + $0x6d0] sm:$0xf]  ;;  %v5244_v24 = vor.u32 %v5754_v30, %v5243_v6 }
 0x255   : > { %v5338_v38 = vor.u32 %v5770_v1, %v5337_v61  ;;  %v4985_v33 = vld [vmem:[%s6054_s26 + $0x31] sm:$0xff]  ;;  %v5235_v1 = vld [vmem:[%s8266_s1 + $0x640] sm:$0xf] }
 0x256   : > { %3056 = vmatpush.bf16.msra.mxu0 %v5244_v24 }
 0x257   : > { %3291 = vmatpush.bf16.msra.mxu2 %v5338_v38 }
 0x259   : > { %v1917_v13 = vpop.f32.mrf.mxu2 }
 0x25a   : > { %v7494_v40 = vadd.f32 %v1917_v13, %v1757_v52  ;;  %v1961_v55 = vpop.f32.mrf.mxu3  ;;  %v1686_v34 = vpop.f32.mrf.mxu0  ;;  %v5330_v52 = vor.u32 %v5768_v28, %v5329_v35  ;;  %v5081_v35 = vld [vmem:[%s6054_s26 + $0xd1] sm:$0xff]  ;;  %v5082_v28 = vld [vmem:[%s6054_s26 + $0xe1] sm:$0xff] }
 0x25b   : > { %v7496_v16 = vadd.f32 %v1961_v55, %v1758_v53  ;;  %v1759_v21 = vadd.f32 %v1686_v34, %v7220_v27  ;;  %v1730_v46 = vpop.f32.mrf.mxu1  ;;  %v5339_v27 = vld [vmem:[%s8266_s1 + $0x6d8] sm:$0xf0]  ;;  %v4986_v53 = vld [vmem:[%s6054_s26 + $0x41] sm:$0xff]  ;;  %v2716_v34 = vpack.c.bf16 %v5080_v56, %v5079_v57 }
 0x25c   : > { %v1760_v20 = vadd.f32 %v1730_v46, %v7222_v58  ;;  %v5342_v5 = vor.u32 %v5769_v29, %v5339_v27  ;;  %v5753_v58 = vld [vmem:[%s8266_s1 + $0x654] sm:$0xf]  ;;  %3292 = vmatpush.bf16.msra.mxu2 %v5330_v52  ;;  %v2482_v37 = vpack.c.bf16 %v4986_v53, %v4985_v33  ;;  %v5752_v29 = vld [vmem:[%s8266_s1 + $0x644] sm:$0xf0] }
 0x25d   : > { %2593 = vmatmul.bf16.vlgmr.msrb.gmra.mxu0 %v2481_v60  ;;  %v5248_v31 = vor.u32 %v5753_v58, %v5245_v25  ;;  %v5236_v38 = vor.u32 %v5752_v29, %v5235_v1 }
 0x25e   : > { %2637 = vmatmul.bf16.vlgmr.msrb.gmra.mxu1 %v2481_v60  ;;  %2827 = vmatmul.bf16.vlgmr.msrb.gmra.mxu2 %v2715_v3 }
 0x25f   : > { %2871 = vmatmul.bf16.vlgmr.msrb.gmra.mxu3 %v2715_v3  ;;  %3100 = vmatpush.bf16.msra.mxu1 %v5248_v31  ;;  %v5321_v31 = vld [vmem:[%s8266_s1 + $0x6b0] sm:$0xf] }
 0x260   : > { %3335 = vmatpush.bf16.msra.mxu3 %v5342_v5  ;;  %3057 = vmatpush.bf16.msra.mxu0 %v5236_v38 }
 0x261   : > { %v1920_v8 = vpop.f32.mrf.mxu2 }
 0x262   : > { %v7524_v18 = vadd.f32 %v1920_v8, %v1759_v21  ;;  %v1964_v62 = vpop.f32.mrf.mxu3  ;;  %v1688_v32 = vpop.f32.mrf.mxu0 }
 0x263   : > { %v7526_v26 = vadd.f32 %v1964_v62, %v1760_v20  ;;  %v1761_v43 = vadd.f32 %v1688_v32, %v7242_v0  ;;  %v1732_v19 = vpop.f32.mrf.mxu1  ;;  %v5331_v0 = vld [vmem:[%s8266_s1 + $0x6c8] sm:$0xf0]  ;;  %v5751_v20 = vld [vmem:[%s8266_s1 + $0x644] sm:$0xf]  ;;  %v5766_v62 = vld [vmem:[%s8266_s1 + $0x6b4] sm:$0xf0] }
 0x264   : > { %v1762_v22 = vadd.f32 %v1732_v19, %v7244_v44  ;;  %v5334_v44 = vor.u32 %v5767_v42, %v5331_v0  ;;  %v5765_v32 = vld [vmem:[%s8266_s1 + $0x6b4] sm:$0xf] }
 0x265   : > { %v4987_v19 = vld [vmem:[%s6054_s26 + $0x51] sm:$0xff] }
 0x266   : > { %3336 = vmatpush.bf16.msra.mxu3 %v5334_v44  ;;  %v2717_v44 = vpack.c.bf16 %v5082_v28, %v5081_v35 }
 0x269   : > { %v1922_v39 = vpop.f32.mrf.mxu2 }
 0x26a   : > { %v7546_v13 = vadd.f32 %v1922_v39, %v1761_v43  ;;  %v1966_v60 = vpop.f32.mrf.mxu3  ;;  %v2125_v55 = vpop.f32.mrf.mxu0  ;;  %v5322_v43 = vor.u32 %v5766_v62, %v5321_v31  ;;  %v4990_v31 = vld [vmem:[%s6054_s26 + $0x211] sm:$0xff] }
 0x26b   : > { %v7548_v3 = vadd.f32 %v1966_v60, %v1762_v22  ;;  %v2204_v21 = vadd.f32 %v2125_v55, %v7260_v2  ;;  %v2169_v46 = vpop.f32.mrf.mxu1  ;;  %v5237_v2 = vld [vmem:[%s8266_s1 + $0x648] sm:$0xf0]  ;;  %v4988_v22 = vld [vmem:[%s6054_s26 + $0x61] sm:$0xff]  ;;  %v5750_v60 = vld [vmem:[%s8266_s1 + $0x634] sm:$0xf0] }
 0x26c   : > { %v2205_v61 = vadd.f32 %v2169_v46, %v7262_v17  ;;  %v5240_v17 = vor.u32 %v5751_v20, %v5237_v2  ;;  %3293 = vmatpush.bf16.msra.mxu2 %v5322_v43  ;;  %v2483_v52 = vpack.c.bf16 %v4988_v22, %v4987_v19  ;;  %v5749_v55 = vld [vmem:[%s8266_s1 + $0x634] sm:$0xf]  ;;  %v5747_v43 = vld [vmem:[%s8266_s1 + $0x624] sm:$0xf] }
 0x26d   : > { %2598 = vmatmul.bf16.gmra.mxu0 %v2482_v37  ;;  %v5083_v19 = vld [vmem:[%s6054_s26 + $0xf1] sm:$0xff] }
 0x26e   : > { %2642 = vmatmul.bf16.gmra.mxu1 %v2482_v37  ;;  %2832 = vmatmul.bf16.gmra.mxu2 %v2716_v34  ;;  %v5227_v37 = vld [vmem:[%s8266_s1 + $0x630] sm:$0xf] }
 0x26f   : > { %2876 = vmatmul.bf16.gmra.mxu3 %v2716_v34  ;;  %3101 = vmatpush.bf16.msra.mxu1 %v5240_v17  ;;  %v5084_v22 = vld [vmem:[%s6054_s26 + $0x291] sm:$0xff] }
 0x271   : > { %v2360_v27 = vpop.f32.mrf.mxu2 }
 0x272   : > { %v7564_v5 = vadd.f32 %v2360_v27, %v2204_v21  ;;  %v2404_v6 = vpop.f32.mrf.mxu3  ;;  %v2127_v30 = vpop.f32.mrf.mxu0  ;;  %v5228_v21 = vor.u32 %v5750_v60, %v5227_v37  ;;  %v4989_v27 = vld [vmem:[%s6054_s26 + $0x71] sm:$0xff] }
 0x273   : > { %v7566_v58 = vadd.f32 %v2404_v6, %v2205_v61  ;;  %v2206_v24 = vadd.f32 %v2127_v30, %v7282_v9  ;;  %v2171_v25 = vpop.f32.mrf.mxu1  ;;  %v5323_v9 = vld [vmem:[%s8266_s1 + $0x6b8] sm:$0xf0]  ;;  %v5313_v6 = vld [vmem:[%s8266_s1 + $0x6a0] sm:$0xf]  ;;  %v5764_v30 = vld [vmem:[%s8266_s1 + $0x6a4] sm:$0xf0]  ;;  %v2484_v28 = vpack.c.bf16 %v4990_v31, %v4989_v27 }
 0x274   : > { %v2207_v8 = vadd.f32 %v2171_v25, %v7284_v47  ;;  %v5326_v47 = vor.u32 %v5765_v32, %v5323_v9  ;;  %3058 = vmatpush.bf16.msra.mxu0 %v5228_v21  ;;  %v5314_v25 = vor.u32 %v5764_v30, %v5313_v6  ;;  %v5221_v9 = vld [vmem:[%s8266_s1 + $0x628] sm:$0xf0]  ;;  %v5745_v30 = vld [vmem:[%s8266_s1 + $0x614] sm:$0xf] }
 0x276   : > { %3337 = vmatpush.bf16.msra.mxu3 %v5326_v47  ;;  %3294 = vmatpush.bf16.msra.mxu2 %v5314_v25  ;;  %v5224_v47 = vor.u32 %v5747_v43, %v5221_v9  ;;  %v4992_v25 = vld [vmem:[%s6054_s26 + $0x231] sm:$0xff] }
 0x279   : > { %v2362_v42 = vpop.f32.mrf.mxu2 }
 0x27a   : > { %v7586_v0 = vadd.f32 %v2362_v42, %v2206_v24  ;;  %v2406_v33 = vpop.f32.mrf.mxu3  ;;  %v2130_v53 = vpop.f32.mrf.mxu0  ;;  %v5763_v24 = vld [vmem:[%s8266_s1 + $0x6a4] sm:$0xf] }
 0x27b   : > { %v7588_v57 = vadd.f32 %v2406_v33, %v2207_v8  ;;  %v2208_v56 = vadd.f32 %v2130_v53, %v7300_v63  ;;  %v2174_v39 = vpop.f32.mrf.mxu1  ;;  %v5229_v63 = vld [vmem:[%s8266_s1 + $0x638] sm:$0xf0]  ;;  %v5748_v8 = vld [vmem:[%s8266_s1 + $0x624] sm:$0xf0]  ;;  %v2718_v53 = vpack.c.bf16 %v5084_v22, %v5083_v19 }
 0x27c   : > { %v2209_v34 = vadd.f32 %v2174_v39, %v7302_v10  ;;  %v5232_v46 = vor.u32 %v5749_v55, %v5229_v63 }
 0x27d   : > { %2603 = vmatmul.bf16.gmra.mxu0 %v2483_v52 }
 0x27e   : > { %2647 = vmatmul.bf16.gmra.mxu1 %v2483_v52  ;;  %2837 = vmatmul.bf16.gmra.mxu2 %v2717_v44 }
 0x27f   : > { %2881 = vmatmul.bf16.gmra.mxu3 %v2717_v44  ;;  %3102 = vmatpush.bf16.msra.mxu1 %v5232_v46 }
 0x281   : > { %v2365_v61 = vpop.f32.mrf.mxu2 }
 0x282   : > { %v7604_v1 = vadd.f32 %v2365_v61, %v2208_v56  ;;  %v2409_v29 = vpop.f32.mrf.mxu3  ;;  %v2132_v20 = vpop.f32.mrf.mxu0 }
 0x283   : > { %v7606_v10 = vadd.f32 %v2409_v29, %v2209_v34  ;;  %v2210_v38 = vadd.f32 %v2132_v20, %v7334_v15  ;;  %v2176_v2 = vpop.f32.mrf.mxu1  ;;  %v5315_v15 = vld [vmem:[%s8266_s1 + $0x6a8] sm:$0xf0]  ;;  %3103 = vmatpush.bf16.msra.mxu1 %v5224_v47  ;;  %v5761_v29 = vld [vmem:[%s8266_s1 + $0x694] sm:$0xf] }
 0x284   : > { %v2211_v17 = vadd.f32 %v2176_v2, %v7336_v59  ;;  %v5219_v59 = vld [vmem:[%s8266_s1 + $0x620] sm:$0xf]  ;;  %v5318_v62 = vor.u32 %v5763_v24, %v5315_v15  ;;  %v5211_v2 = vld [vmem:[%s8266_s1 + $0x610] sm:$0xf] }
 0x285   : > { %v5220_v32 = vor.u32 %v5748_v8, %v5219_v59  ;;  %v4991_v24 = vld [vmem:[%s6054_s26 + $0x221] sm:$0xff]  ;;  %v5086_v8 = vld [vmem:[%s6054_s26 + $0x2b1] sm:$0xff] }
 0x286   : > { %3338 = vmatpush.bf16.msra.mxu3 %v5318_v62  ;;  %v5085_v59 = vld [vmem:[%s6054_s26 + $0x2a1] sm:$0xff]  ;;  %v2485_v62 = vpack.c.bf16 %v4992_v25, %v4991_v24 }
 0x287   : > { %3059 = vmatpush.bf16.msra.mxu0 %v5220_v32  ;;  %v2719_v19 = vpack.c.bf16 %v5086_v8, %v5085_v59 }
 0x289   : > { %v2367_v35 = vpop.f32.mrf.mxu2 }
 0x28a   : > { %v7638_v42 = vadd.f32 %v2367_v35, %v2210_v38  ;;  %v2411_v52 = vpop.f32.mrf.mxu3  ;;  %v2135_v33 = vpop.f32.mrf.mxu0 }
 0x28b   : > { %v7640_v44 = vadd.f32 %v2411_v52, %v2211_v17  ;;  %v2212_v56 = vadd.f32 %v2135_v33, %v7340_v7  ;;  %v2179_v39 = vpop.f32.mrf.mxu1  ;;  %v5305_v7 = vld [vmem:[%s8266_s1 + $0x690] sm:$0xf]  ;;  %v5746_v17 = vld [vmem:[%s8266_s1 + $0x614] sm:$0xf0]  ;;  %v5297_v52 = vld [vmem:[%s8266_s1 + $0x680] sm:$0xf] }
 0x28c   : > { %v2213_v37 = vadd.f32 %v2179_v39, %v7342_v41  ;;  %v5762_v41 = vld [vmem:[%s8266_s1 + $0x694] sm:$0xf0]  ;;  %v5212_v6 = vor.u32 %v5746_v17, %v5211_v2  ;;  %v5760_v33 = vld [vmem:[%s8266_s1 + $0x684] sm:$0xf0] }
 0x28d   : > { %2608 = vmatmul.bf16.gmra.mxu0 %v2484_v28  ;;  %v5306_v38 = vor.u32 %v5762_v41, %v5305_v7  ;;  %v5203_v41 = vld [vmem:[%s8266_s1 + $0x600] sm:$0xf]  ;;  %v4994_v2 = vld [vmem:[%s6054_s26 + $0x251] sm:$0xff] }
 0x28e   : > { %2652 = vmatmul.bf16.gmra.mxu1 %v2484_v28  ;;  %2842 = vmatmul.bf16.gmra.mxu2 %v2718_v53  ;;  %v5087_v17 = vld [vmem:[%s6054_s26 + $0x2c1] sm:$0xff] }
 0x28f   : > { %2886 = vmatmul.bf16.gmra.mxu3 %v2718_v53  ;;  %3295 = vmatpush.bf16.msra.mxu2 %v5306_v38  ;;  %v5759_v53 = vld [vmem:[%s8266_s1 + $0x684] sm:$0xf] }
 0x290   : > { %3060 = vmatpush.bf16.msra.mxu0 %v5212_v6 }
 0x291   : > { %v2370_v60 = vpop.f32.mrf.mxu2 }
 0x292   : > { %v7644_v55 = vadd.f32 %v2370_v60, %v2212_v56  ;;  %v2414_v34 = vpop.f32.mrf.mxu3  ;;  %v2137_v21 = vpop.f32.mrf.mxu0 }
 0x293   : > { %v7646_v63 = vadd.f32 %v2414_v34, %v2213_v37  ;;  %v2214_v46 = vadd.f32 %v2137_v21, %v7374_v11  ;;  %v2181_v61 = vpop.f32.mrf.mxu1  ;;  %v5307_v11 = vld [vmem:[%s8266_s1 + $0x698] sm:$0xf0] }
 0x294   : > { %v2215_v20 = vadd.f32 %v2181_v61, %v7376_v23  ;;  %v5310_v27 = vor.u32 %v5761_v29, %v5307_v11  ;;  %v5213_v23 = vld [vmem:[%s8266_s1 + $0x618] sm:$0xf0]  ;;  %v5744_v29 = vld [vmem:[%s8266_s1 + $0x604] sm:$0xf0] }
 0x295   : > { %v5216_v15 = vor.u32 %v5745_v30, %v5213_v23  ;;  %v5204_v38 = vor.u32 %v5744_v29, %v5203_v41  ;;  %v4993_v11 = vld [vmem:[%s6054_s26 + $0x241] sm:$0xff]  ;;  %v4996_v41 = vld [vmem:[%s6054_s26 + $0x271] sm:$0xff] }
 0x296   : > { %3339 = vmatpush.bf16.msra.mxu3 %v5310_v27  ;;  %v5088_v27 = vld [vmem:[%s6054_s26 + $0x2d1] sm:$0xff]  ;;  %v2486_v30 = vpack.c.bf16 %v4994_v2, %v4993_v11  ;;  %v5089_v29 = vld [vmem:[%s6054_s26 + $0x2e1] sm:$0xff] }
 0x297   : > { %3104 = vmatpush.bf16.msra.mxu1 %v5216_v15  ;;  %3061 = vmatpush.bf16.msra.mxu0 %v5204_v38  ;;  %v2720_v15 = vpack.c.bf16 %v5088_v27, %v5087_v17 }
 0x299   : > { %v2372_v31 = vpop.f32.mrf.mxu2 }
 0x29a   : > { %v7678_v32 = vadd.f32 %v2372_v31, %v2214_v46  ;;  %v2416_v43 = vpop.f32.mrf.mxu3  ;;  %v2140_v9 = vpop.f32.mrf.mxu0 }
 0x29b   : > { %v7680_v22 = vadd.f32 %v2416_v43, %v2215_v20  ;;  %v2216_v47 = vadd.f32 %v2140_v9, %v7392_v50  ;;  %v2184_v35 = vpop.f32.mrf.mxu1  ;;  %v5298_v50 = vor.u32 %v5760_v33, %v5297_v52  ;;  %v5743_v20 = vld [vmem:[%s8266_s1 + $0x604] sm:$0xf]  ;;  %v5541_v43 = vld [vmem:[%s8266_s1 + $0x7f0] sm:$0xf]  ;;  %v5806_v9 = vld [vmem:[%s8266_s1 + $0x7f4] sm:$0xf0] }
 0x29c   : > { %v2217_v28 = vadd.f32 %v2184_v35, %v7394_v4  ;;  %v5299_v4 = vld [vmem:[%s8266_s1 + $0x688] sm:$0xf0] }
 0x29d   : > { %2613 = vmatmul.bf16.gmra.mxu0 %v2485_v62  ;;  %v5302_v39 = vor.u32 %v5759_v53, %v5299_v4  ;;  %3296 = vmatpush.bf16.msra.mxu2 %v5298_v50 }
 0x29e   : > { %2657 = vmatmul.bf16.gmra.mxu1 %v2485_v62  ;;  %2847 = vmatmul.bf16.gmra.mxu2 %v2719_v19 }
 0x29f   : > { %2891 = vmatmul.bf16.gmra.mxu3 %v2719_v19  ;;  %v5805_v19 = vld [vmem:[%s8266_s1 + $0x7f4] sm:$0xf] }
 0x2a0   : > { %3340 = vmatpush.bf16.msra.mxu3 %v5302_v39  ;;  %v5790_v39 = vld [vmem:[%s8266_s1 + $0x774] sm:$0xf0] }
 0x2a1   : > { %v2375_v56 = vpop.f32.mrf.mxu2 }
 0x2a2   : > { %v7696_v37 = vadd.f32 %v2375_v56, %v2216_v47  ;;  %v2419_v60 = vpop.f32.mrf.mxu3  ;;  %v2142_v34 = vpop.f32.mrf.mxu0  ;;  %v5447_v56 = vld [vmem:[%s8266_s1 + $0x770] sm:$0xf] }
 0x2a3   : > { %v7698_v21 = vadd.f32 %v2419_v60, %v2217_v28  ;;  %v2218_v46 = vadd.f32 %v2142_v34, %v7414_v51  ;;  %v2186_v61 = vpop.f32.mrf.mxu1  ;;  %v5205_v51 = vld [vmem:[%s8266_s1 + $0x608] sm:$0xf0]  ;;  %v5789_v60 = vld [vmem:[%s8266_s1 + $0x774] sm:$0xf] }
 0x2a4   : > { %v2219_v7 = vadd.f32 %v2186_v61, %v7416_v48  ;;  %v5208_v48 = vor.u32 %v5743_v20, %v5205_v51  ;;  %v5090_v20 = vld [vmem:[%s6054_s26 + $0x2f1] sm:$0xff] }
 0x2a5   : > { %v2721_v17 = vpack.c.bf16 %v5090_v20, %v5089_v29 }
 0x2a6   : > { %3105 = vmatpush.bf16.msra.mxu1 %v5208_v48 }
 0x2a9   : > { %v2377_v6 = vpop.f32.mrf.mxu2 }
 0x2aa   : > { %v7718_v23 = vadd.f32 %v2377_v6, %v2218_v46  ;;  %v2421_v24 = vpop.f32.mrf.mxu3  ;;  %v2145_v25 = vpop.f32.mrf.mxu0  ;;  %v5448_v46 = vor.u32 %v5790_v39, %v5447_v56  ;;  %v5171_v39 = vld [vmem:[%s6054_s26 + $0x110] sm:$0xff] }
 0x2ab   : > { %v7720_v59 = vadd.f32 %v2421_v24, %v2219_v7  ;;  %v2220_v8 = vadd.f32 %v2145_v25, %v7432_v54  ;;  %v2189_v31 = vpop.f32.mrf.mxu1  ;;  %v5542_v54 = vor.u32 %v5806_v9, %v5541_v43  ;;  %v4995_v7 = vld [vmem:[%s6054_s26 + $0x261] sm:$0xff] }
 0x2ac   : > { %v2221_v62 = vadd.f32 %v2189_v31, %v7434_v45  ;;  %v5543_v45 = vld [vmem:[%s8266_s1 + $0x7f8] sm:$0xf0]  ;;  %3523 = vmatpush.bf16.msrb.mxu0 %v5448_v46  ;;  %v2487_v51 = vpack.c.bf16 %v4996_v41, %v4995_v7  ;;  %v5533_v24 = vld [vmem:[%s8266_s1 + $0x7e0] sm:$0xf]  ;;  %v5804_v25 = vld [vmem:[%s8266_s1 + $0x7e4] sm:$0xf0] }
 0x2ad   : > { %2618 = vmatmul.bf16.gmra.mxu0 %v2486_v30  ;;  %v5546_v35 = vor.u32 %v5805_v19, %v5543_v45  ;;  %3757 = vmatpush.bf16.msrb.mxu2 %v5542_v54  ;;  %v5439_v31 = vld [vmem:[%s8266_s1 + $0x760] sm:$0xf]  ;;  %v5787_v43 = vld [vmem:[%s8266_s1 + $0x764] sm:$0xf]  ;;  %v5441_v19 = vld [vmem:[%s8266_s1 + $0x768] sm:$0xf0] }
 0x2ae   : > { %2662 = vmatmul.bf16.gmra.mxu1 %v2486_v30  ;;  %2852 = vmatmul.bf16.gmra.mxu2 %v2720_v15  ;;  %v5444_v45 = vor.u32 %v5787_v43, %v5441_v19  ;;  %v5266_v46 = vld [vmem:[%s6054_s26 + $0x1a0] sm:$0xff] }
 0x2af   : > { %2896 = vmatmul.bf16.gmra.mxu3 %v2720_v15  ;;  %v5803_v15 = vld [vmem:[%s8266_s1 + $0x7e4] sm:$0xf] }
 0x2b0   : > { %3801 = vmatpush.bf16.msrb.mxu3 %v5546_v35 }
 0x2b1   : > { %v2380_v47 = vpop.f32.mrf.mxu2 }
 0x2b2   : > { %v7736_v28 = vadd.f32 %v2380_v47, %v2220_v8  ;;  %v2424_v52 = vpop.f32.mrf.mxu3  ;;  %v2147_v33 = vpop.f32.mrf.mxu0  ;;  %v5534_v8 = vor.u32 %v5804_v25, %v5533_v24  ;;  %v5786_v24 = vld [vmem:[%s8266_s1 + $0x754] sm:$0xf0] }
 0x2b3   : > { %v7738_v53 = vadd.f32 %v2424_v52, %v2221_v62  ;;  %v2222_v50 = vadd.f32 %v2147_v33, %v7454_v12  ;;  %v2191_v4 = vpop.f32.mrf.mxu1  ;;  %v5449_v12 = vld [vmem:[%s8266_s1 + $0x778] sm:$0xf0]  ;;  %v5788_v62 = vld [vmem:[%s8266_s1 + $0x764] sm:$0xf0] }
 0x2b4   : > { %v2223_v34 = vadd.f32 %v2191_v4, %v7456_v14  ;;  %v5452_v61 = vor.u32 %v5789_v60, %v5449_v12  ;;  %3758 = vmatpush.bf16.msrb.mxu2 %v5534_v8  ;;  %v5440_v9 = vor.u32 %v5788_v62, %v5439_v31  ;;  %v5172_v60 = vld [vmem:[%s6054_s26 + $0x120] sm:$0xff] }
 0x2b6   : > { %3567 = vmatpush.bf16.msrb.mxu1 %v5452_v61  ;;  %3524 = vmatpush.bf16.msrb.mxu0 %v5440_v9  ;;  %v2950_v61 = vpack.c.bf16 %v5172_v60, %v5171_v39  ;;  %v5267_v39 = vld [vmem:[%s6054_s26 + $0x1b0] sm:$0xff]  ;;  %v5268_v60 = vld [vmem:[%s6054_s26 + $0x1c0] sm:$0xff] }
 0x2b9   : > { %v2382_v38 = vpop.f32.mrf.mxu2 }
 0x2ba   : > { %v7758_v11 = vadd.f32 %v2382_v38, %v2222_v50  ;;  %v2426_v2 = vpop.f32.mrf.mxu3  ;;  %v2150_v48 = vpop.f32.mrf.mxu0  ;;  %3568 = vmatpush.bf16.msrb.mxu1 %v5444_v45  ;;  %v5517_v45 = vld [vmem:[%s8266_s1 + $0x7c0] sm:$0xf] }
 0x2bb   : > { %v7760_v14 = vadd.f32 %v2426_v2, %v2223_v34  ;;  %v2224_v27 = vadd.f32 %v2150_v48, %v7484_v36  ;;  %v2194_v6 = vpop.f32.mrf.mxu1  ;;  %v5535_v36 = vld [vmem:[%s8266_s1 + $0x7e8] sm:$0xf0]  ;;  %v5265_v34 = vld [vmem:[%s6054_s26 + $0x190] sm:$0xff]  ;;  %v5802_v2 = vld [vmem:[%s8266_s1 + $0x7d4] sm:$0xf0] }
 0x2bc   : > { %v2225_v30 = vadd.f32 %v2194_v6, %v7486_v49  ;;  %v5538_v49 = vor.u32 %v5803_v15, %v5535_v36  ;;  %v3185_v20 = vpack.c.bf16 %v5266_v46, %v5265_v34  ;;  %v5801_v48 = vld [vmem:[%s8266_s1 + $0x7d4] sm:$0xf]  ;;  %v5433_v15 = vld [vmem:[%s8266_s1 + $0x758] sm:$0xf0] }
 0x2bd   : > { %2623 = vmatmul.bf16.gmra.mxu0 %v2487_v51 }
 0x2be   : > { %2667 = vmatmul.bf16.gmra.mxu1 %v2487_v51  ;;  %2857 = vmatmul.bf16.gmra.mxu2 %v2721_v17 }
 0x2bf   : > { %2901 = vmatmul.bf16.gmra.mxu3 %v2721_v17 }
 0x2c0   : > { %3802 = vmatpush.bf16.msrb.mxu3 %v5538_v49 }
 0x2c1   : > { %v2385_v54 = vpop.f32.mrf.mxu2 }
 0x2c2   : > { %v7788_v47 = vadd.f32 %v2385_v54, %v2224_v27  ;;  %v2429_v35 = vpop.f32.mrf.mxu3  ;;  %v2152_v52 = vpop.f32.mrf.mxu0 }
 0x2c3   : > { %v7790_v33 = vadd.f32 %v2429_v35, %v2225_v30  ;;  %v2226_v50 = vadd.f32 %v2152_v52, %v7494_v40  ;;  %v2196_v4 = vpop.f32.mrf.mxu1  ;;  %v5431_v30 = vld [vmem:[%s8266_s1 + $0x750] sm:$0xf]  ;;  %v5800_v35 = vld [vmem:[%s8266_s1 + $0x7c4] sm:$0xf0]  ;;  %v5799_v52 = vld [vmem:[%s8266_s1 + $0x7c4] sm:$0xf] }
 0x2c4   : > { %v2227_v56 = vadd.f32 %v2196_v4, %v7496_v16  ;;  %v5525_v16 = vld [vmem:[%s8266_s1 + $0x7d0] sm:$0xf]  ;;  %v5432_v25 = vor.u32 %v5786_v24, %v5431_v30 }
 0x2c5   : > { %v5526_v27 = vor.u32 %v5802_v2, %v5525_v16  ;;  %v5173_v4 = vld [vmem:[%s6054_s26 + $0x130] sm:$0xff]  ;;  %v5423_v2 = vld [vmem:[%s8266_s1 + $0x740] sm:$0xf] }
 0x2c6   : > { %3525 = vmatpush.bf16.msrb.mxu0 %v5432_v25 }
 0x2c7   : > { %3759 = vmatpush.bf16.msrb.mxu2 %v5526_v27 }
 0x2c9   : > { %v2387_v12 = vpop.f32.mrf.mxu2 }
 0x2ca   : > { %v7798_v7 = vadd.f32 %v2387_v12, %v2226_v50  ;;  %v2431_v41 = vpop.f32.mrf.mxu3  ;;  %v2155_v29 = vpop.f32.mrf.mxu0  ;;  %v5518_v50 = vor.u32 %v5800_v35, %v5517_v45  ;;  %v5269_v45 = vld [vmem:[%s6054_s26 + $0x1d0] sm:$0xff]  ;;  %v5270_v35 = vld [vmem:[%s6054_s26 + $0x1e0] sm:$0xff] }
 0x2cb   : > { %v7800_v38 = vadd.f32 %v2431_v41, %v2227_v56  ;;  %v2228_v51 = vadd.f32 %v2155_v29, %v7524_v18  ;;  %v2199_v40 = vpop.f32.mrf.mxu1  ;;  %v5527_v18 = vld [vmem:[%s8266_s1 + $0x7d8] sm:$0xf0]  ;;  %v5174_v56 = vld [vmem:[%s6054_s26 + $0x140] sm:$0xff]  ;;  %v3186_v29 = vpack.c.bf16 %v5268_v60, %v5267_v39 }
 0x2cc   : > { %v2229_v17 = vadd.f32 %v2199_v40, %v7526_v26  ;;  %v5530_v6 = vor.u32 %v5801_v48, %v5527_v18  ;;  %v5785_v26 = vld [vmem:[%s8266_s1 + $0x754] sm:$0xf]  ;;  %3760 = vmatpush.bf16.msrb.mxu2 %v5518_v50  ;;  %v2951_v46 = vpack.c.bf16 %v5174_v56, %v5173_v4  ;;  %v5784_v48 = vld [vmem:[%s8266_s1 + $0x744] sm:$0xf0] }
 0x2cd   : > { %3062 = vmatmul.bf16.vlgmr.msra.gmra.mxu0 %v2950_v61  ;;  %v5436_v36 = vor.u32 %v5785_v26, %v5433_v15  ;;  %v5424_v27 = vor.u32 %v5784_v48, %v5423_v2 }
 0x2ce   : > { %3106 = vmatmul.bf16.vlgmr.msra.gmra.mxu1 %v2950_v61  ;;  %3297 = vmatmul.bf16.vlgmr.msra.gmra.mxu2 %v3185_v20 }
 0x2cf   : > { %3341 = vmatmul.bf16.vlgmr.msra.gmra.mxu3 %v3185_v20  ;;  %3569 = vmatpush.bf16.msrb.mxu1 %v5436_v36  ;;  %v5509_v36 = vld [vmem:[%s8266_s1 + $0x7b0] sm:$0xf] }
 0x2d0   : > { %3803 = vmatpush.bf16.msrb.mxu3 %v5530_v6  ;;  %3526 = vmatpush.bf16.msrb.mxu0 %v5424_v27 }
 0x2d1   : > { %v2390_v8 = vpop.f32.mrf.mxu2 }
 0x2d2   : > { %v7828_v49 = vadd.f32 %v2390_v8, %v2228_v51  ;;  %v2434_v31 = vpop.f32.mrf.mxu3  ;;  %v2157_v62 = vpop.f32.mrf.mxu0 }
 0x2d3   : > { %v7830_v43 = vadd.f32 %v2434_v31, %v2229_v17  ;;  %v2230_v9 = vadd.f32 %v2157_v62, %v7546_v13  ;;  %v2201_v19 = vpop.f32.mrf.mxu1  ;;  %v5519_v13 = vld [vmem:[%s8266_s1 + $0x7c8] sm:$0xf0]  ;;  %v5783_v17 = vld [vmem:[%s8266_s1 + $0x744] sm:$0xf]  ;;  %v5798_v31 = vld [vmem:[%s8266_s1 + $0x7b4] sm:$0xf0] }
 0x2d4   : > { %v2231_v54 = vadd.f32 %v2201_v19, %v7548_v3  ;;  %v5522_v3 = vor.u32 %v5799_v52, %v5519_v13  ;;  %v5797_v62 = vld [vmem:[%s8266_s1 + $0x7b4] sm:$0xf] }
 0x2d5   : > { %v5175_v19 = vld [vmem:[%s6054_s26 + $0x150] sm:$0xff] }
 0x2d6   : > { %3804 = vmatpush.bf16.msrb.mxu3 %v5522_v3  ;;  %v3187_v3 = vpack.c.bf16 %v5270_v35, %v5269_v45 }
 0x2d9   : > { %v2392_v34 = vpop.f32.mrf.mxu2 }
 0x2da   : > { %v7850_v12 = vadd.f32 %v2392_v34, %v2230_v9  ;;  %v2436_v61 = vpop.f32.mrf.mxu3  ;;  %v2594_v41 = vpop.f32.mrf.mxu0  ;;  %v5510_v9 = vor.u32 %v5798_v31, %v5509_v36  ;;  %v5178_v36 = vld [vmem:[%s6054_s26 + $0x310] sm:$0xff] }
 0x2db   : > { %v7852_v20 = vadd.f32 %v2436_v61, %v2231_v54  ;;  %v2673_v51 = vadd.f32 %v2594_v41, %v7564_v5  ;;  %v2638_v40 = vpop.f32.mrf.mxu1  ;;  %v5425_v5 = vld [vmem:[%s8266_s1 + $0x748] sm:$0xf0]  ;;  %v5176_v54 = vld [vmem:[%s6054_s26 + $0x160] sm:$0xff]  ;;  %v5782_v61 = vld [vmem:[%s8266_s1 + $0x734] sm:$0xf0] }
 0x2dc   : > { %v2674_v16 = vadd.f32 %v2638_v40, %v7566_v58  ;;  %v5428_v58 = vor.u32 %v5783_v17, %v5425_v5  ;;  %3761 = vmatpush.bf16.msrb.mxu2 %v5510_v9  ;;  %v2952_v50 = vpack.c.bf16 %v5176_v54, %v5175_v19  ;;  %v5781_v41 = vld [vmem:[%s8266_s1 + $0x734] sm:$0xf]  ;;  %v5779_v9 = vld [vmem:[%s8266_s1 + $0x724] sm:$0xf] }
 0x2dd   : > { %3067 = vmatmul.bf16.gmra.mxu0 %v2951_v46  ;;  %v5271_v19 = vld [vmem:[%s6054_s26 + $0x1f0] sm:$0xff] }
 0x2de   : > { %3111 = vmatmul.bf16.gmra.mxu1 %v2951_v46  ;;  %3302 = vmatmul.bf16.gmra.mxu2 %v3186_v29  ;;  %v5415_v46 = vld [vmem:[%s8266_s1 + $0x730] sm:$0xf] }
 0x2df   : > { %3346 = vmatmul.bf16.gmra.mxu3 %v3186_v29  ;;  %3570 = vmatpush.bf16.msrb.mxu1 %v5428_v58  ;;  %v5272_v54 = vld [vmem:[%s6054_s26 + $0x390] sm:$0xff] }
 0x2e1   : > { %v2828_v18 = vpop.f32.mrf.mxu2 }
 0x2e2   : > { %v7868_v6 = vadd.f32 %v2828_v18, %v2673_v51  ;;  %v2872_v30 = vpop.f32.mrf.mxu3  ;;  %v2596_v24 = vpop.f32.mrf.mxu0  ;;  %v5416_v51 = vor.u32 %v5782_v61, %v5415_v46  ;;  %v5177_v18 = vld [vmem:[%s6054_s26 + $0x170] sm:$0xff] }
 0x2e3   : > { %v7870_v26 = vadd.f32 %v2872_v30, %v2674_v16  ;;  %v2675_v25 = vadd.f32 %v2596_v24, %v7586_v0  ;;  %v2640_v15 = vpop.f32.mrf.mxu1  ;;  %v5511_v0 = vld [vmem:[%s8266_s1 + $0x7b8] sm:$0xf0]  ;;  %v5501_v30 = vld [vmem:[%s8266_s1 + $0x7a0] sm:$0xf]  ;;  %v5796_v24 = vld [vmem:[%s8266_s1 + $0x7a4] sm:$0xf0]  ;;  %v2953_v35 = vpack.c.bf16 %v5178_v36, %v5177_v18 }
 0x2e4   : > { %v2676_v8 = vadd.f32 %v2640_v15, %v7588_v57  ;;  %v5514_v57 = vor.u32 %v5797_v62, %v5511_v0  ;;  %3527 = vmatpush.bf16.msrb.mxu0 %v5416_v51  ;;  %v5502_v15 = vor.u32 %v5796_v24, %v5501_v30  ;;  %v5409_v0 = vld [vmem:[%s8266_s1 + $0x728] sm:$0xf0]  ;;  %v5777_v24 = vld [vmem:[%s8266_s1 + $0x714] sm:$0xf] }
 0x2e6   : > { %3805 = vmatpush.bf16.msrb.mxu3 %v5514_v57  ;;  %3762 = vmatpush.bf16.msrb.mxu2 %v5502_v15  ;;  %v5412_v57 = vor.u32 %v5779_v9, %v5409_v0  ;;  %v5180_v15 = vld [vmem:[%s6054_s26 + $0x330] sm:$0xff] }
 0x2e9   : > { %v2830_v52 = vpop.f32.mrf.mxu2 }
 0x2ea   : > { %v7890_v13 = vadd.f32 %v2830_v52, %v2675_v25  ;;  %v2874_v4 = vpop.f32.mrf.mxu3  ;;  %v2599_v56 = vpop.f32.mrf.mxu0  ;;  %v5795_v25 = vld [vmem:[%s8266_s1 + $0x7a4] sm:$0xf] }
 0x2eb   : > { %v7892_v39 = vadd.f32 %v2874_v4, %v2676_v8  ;;  %v2677_v60 = vadd.f32 %v2599_v56, %v7604_v1  ;;  %v2643_v34 = vpop.f32.mrf.mxu1  ;;  %v5417_v1 = vld [vmem:[%s8266_s1 + $0x738] sm:$0xf0]  ;;  %v5780_v8 = vld [vmem:[%s8266_s1 + $0x724] sm:$0xf0]  ;;  %v3188_v56 = vpack.c.bf16 %v5272_v54, %v5271_v19 }
 0x2ec   : > { %v2678_v29 = vadd.f32 %v2643_v34, %v7606_v10  ;;  %v5420_v40 = vor.u32 %v5781_v41, %v5417_v1 }
 0x2ed   : > { %3072 = vmatmul.bf16.gmra.mxu0 %v2952_v50 }
 0x2ee   : > { %3116 = vmatmul.bf16.gmra.mxu1 %v2952_v50  ;;  %3307 = vmatmul.bf16.gmra.mxu2 %v3187_v3 }
 0x2ef   : > { %3351 = vmatmul.bf16.gmra.mxu3 %v3187_v3  ;;  %3571 = vmatpush.bf16.msrb.mxu1 %v5420_v40 }
 0x2f1   : > { %v2833_v16 = vpop.f32.mrf.mxu2 }
 0x2f2   : > { %v7908_v2 = vadd.f32 %v2833_v16, %v2677_v60  ;;  %v2877_v48 = vpop.f32.mrf.mxu3  ;;  %v2601_v17 = vpop.f32.mrf.mxu0 }
 0x2f3   : > { %v7910_v10 = vadd.f32 %v2877_v48, %v2678_v29  ;;  %v2679_v27 = vadd.f32 %v2601_v17, %v7638_v42  ;;  %v2645_v5 = vpop.f32.mrf.mxu1  ;;  %v5503_v42 = vld [vmem:[%s8266_s1 + $0x7a8] sm:$0xf0]  ;;  %3572 = vmatpush.bf16.msrb.mxu1 %v5412_v57  ;;  %v5793_v48 = vld [vmem:[%s8266_s1 + $0x794] sm:$0xf] }
 0x2f4   : > { %v2680_v58 = vadd.f32 %v2645_v5, %v7640_v44  ;;  %v5407_v44 = vld [vmem:[%s8266_s1 + $0x720] sm:$0xf]  ;;  %v5506_v31 = vor.u32 %v5795_v25, %v5503_v42  ;;  %v5399_v5 = vld [vmem:[%s8266_s1 + $0x710] sm:$0xf] }
 0x2f5   : > { %v5408_v62 = vor.u32 %v5780_v8, %v5407_v44  ;;  %v5179_v25 = vld [vmem:[%s6054_s26 + $0x320] sm:$0xff]  ;;  %v5274_v8 = vld [vmem:[%s6054_s26 + $0x3b0] sm:$0xff] }
 0x2f6   : > { %3806 = vmatpush.bf16.msrb.mxu3 %v5506_v31  ;;  %v5273_v44 = vld [vmem:[%s6054_s26 + $0x3a0] sm:$0xff]  ;;  %v2954_v31 = vpack.c.bf16 %v5180_v15, %v5179_v25 }
 0x2f7   : > { %3528 = vmatpush.bf16.msrb.mxu0 %v5408_v62  ;;  %v3189_v19 = vpack.c.bf16 %v5274_v8, %v5273_v44 }
 0x2f9   : > { %v2835_v45 = vpop.f32.mrf.mxu2 }
 0x2fa   : > { %v7942_v52 = vadd.f32 %v2835_v45, %v2679_v27  ;;  %v2879_v50 = vpop.f32.mrf.mxu3  ;;  %v2604_v4 = vpop.f32.mrf.mxu0 }
 0x2fb   : > { %v7944_v3 = vadd.f32 %v2879_v50, %v2680_v58  ;;  %v2681_v60 = vadd.f32 %v2604_v4, %v7644_v55  ;;  %v2648_v34 = vpop.f32.mrf.mxu1  ;;  %v5493_v55 = vld [vmem:[%s8266_s1 + $0x790] sm:$0xf]  ;;  %v5778_v58 = vld [vmem:[%s8266_s1 + $0x714] sm:$0xf0]  ;;  %v5485_v50 = vld [vmem:[%s8266_s1 + $0x780] sm:$0xf] }
 0x2fc   : > { %v2682_v46 = vadd.f32 %v2648_v34, %v7646_v63  ;;  %v5794_v63 = vld [vmem:[%s8266_s1 + $0x794] sm:$0xf0]  ;;  %v5400_v30 = vor.u32 %v5778_v58, %v5399_v5  ;;  %v5792_v4 = vld [vmem:[%s8266_s1 + $0x784] sm:$0xf0]  ;;  %v5182_v5 = vld [vmem:[%s6054_s26 + $0x350] sm:$0xff] }
 0x2fd   : > { %3077 = vmatmul.bf16.gmra.mxu0 %v2953_v35  ;;  %v5494_v27 = vor.u32 %v5794_v63, %v5493_v55  ;;  %v5391_v63 = vld [vmem:[%s8266_s1 + $0x700] sm:$0xf] }
 0x2fe   : > { %3121 = vmatmul.bf16.gmra.mxu1 %v2953_v35  ;;  %3312 = vmatmul.bf16.gmra.mxu2 %v3188_v56  ;;  %v5275_v58 = vld [vmem:[%s6054_s26 + $0x3c0] sm:$0xff] }
 0x2ff   : > { %3356 = vmatmul.bf16.gmra.mxu3 %v3188_v56  ;;  %3763 = vmatpush.bf16.msrb.mxu2 %v5494_v27  ;;  %v5791_v56 = vld [vmem:[%s8266_s1 + $0x784] sm:$0xf] }
 0x300   : > { %3529 = vmatpush.bf16.msrb.mxu0 %v5400_v30 }
 0x301   : > { %v2838_v61 = vpop.f32.mrf.mxu2 }
 0x302   : > { %v7948_v41 = vadd.f32 %v2838_v61, %v2681_v60  ;;  %v2882_v29 = vpop.f32.mrf.mxu3  ;;  %v2606_v51 = vpop.f32.mrf.mxu0 }
 0x303   : > { %v7950_v1 = vadd.f32 %v2882_v29, %v2682_v46  ;;  %v2683_v40 = vadd.f32 %v2606_v51, %v7678_v32  ;;  %v2650_v16 = vpop.f32.mrf.mxu1  ;;  %v5495_v32 = vld [vmem:[%s8266_s1 + $0x798] sm:$0xf0] }
 0x304   : > { %v2684_v17 = vadd.f32 %v2650_v16, %v7680_v22  ;;  %v5498_v18 = vor.u32 %v5793_v48, %v5495_v32  ;;  %v5401_v22 = vld [vmem:[%s8266_s1 + $0x718] sm:$0xf0]  ;;  %v5776_v48 = vld [vmem:[%s8266_s1 + $0x704] sm:$0xf0]  ;;  %v5181_v32 = vld [vmem:[%s6054_s26 + $0x340] sm:$0xff] }
 0x305   : > { %v5404_v42 = vor.u32 %v5777_v24, %v5401_v22  ;;  %v5392_v27 = vor.u32 %v5776_v48, %v5391_v63  ;;  %v2955_v24 = vpack.c.bf16 %v5182_v5, %v5181_v32 }
 0x306   : > { %3807 = vmatpush.bf16.msrb.mxu3 %v5498_v18  ;;  %v5276_v18 = vld [vmem:[%s6054_s26 + $0x3d0] sm:$0xff] }
 0x307   : > { %3573 = vmatpush.bf16.msrb.mxu1 %v5404_v42  ;;  %3530 = vmatpush.bf16.msrb.mxu0 %v5392_v27  ;;  %v3190_v42 = vpack.c.bf16 %v5276_v18, %v5275_v58  ;;  %v5360_v58 = vld [vmem:[%s6054_s26 + $0x121] sm:$0xff] }
 0x308   : > { %v5454_v18 = vld [vmem:[%s6054_s26 + $0x1a1] sm:$0xff] }
 0x309   : > { %v2840_v36 = vpop.f32.mrf.mxu2 }
 0x30a   : > { %v7982_v62 = vadd.f32 %v2840_v36, %v2683_v40  ;;  %v2884_v9 = vpop.f32.mrf.mxu3  ;;  %v2609_v0 = vpop.f32.mrf.mxu0 }
 0x30b   : > { %v7984_v54 = vadd.f32 %v2884_v9, %v2684_v17  ;;  %v2685_v57 = vadd.f32 %v2609_v0, %v7696_v37  ;;  %v2653_v45 = vpop.f32.mrf.mxu1  ;;  %v5486_v37 = vor.u32 %v5792_v4, %v5485_v50  ;;  %v5775_v17 = vld [vmem:[%s8266_s1 + $0x704] sm:$0xf] }
 0x30c   : > { %v2686_v35 = vadd.f32 %v2653_v45, %v7698_v21  ;;  %v5487_v21 = vld [vmem:[%s8266_s1 + $0x788] sm:$0xf0]  ;;  %v5183_v4 = vld [vmem:[%s6054_s26 + $0x360] sm:$0xff] }
 0x30d   : > { %3082 = vmatmul.bf16.gmra.mxu0 %v2954_v31  ;;  %v5490_v34 = vor.u32 %v5791_v56, %v5487_v21  ;;  %3764 = vmatpush.bf16.msrb.mxu2 %v5486_v37  ;;  %v5184_v56 = vld [vmem:[%s6054_s26 + $0x370] sm:$0xff] }
 0x30e   : > { %3126 = vmatmul.bf16.gmra.mxu1 %v2954_v31  ;;  %3317 = vmatmul.bf16.gmra.mxu2 %v3189_v19  ;;  %v5278_v37 = vld [vmem:[%s6054_s26 + $0x3f0] sm:$0xff] }
 0x30f   : > { %3361 = vmatmul.bf16.gmra.mxu3 %v3189_v19 }
 0x310   : > { %3808 = vmatpush.bf16.msrb.mxu3 %v5490_v34 }
 0x311   : > { %v2843_v60 = vpop.f32.mrf.mxu2 }
 0x312   : > { %v8000_v46 = vadd.f32 %v2843_v60, %v2685_v57  ;;  %v2887_v61 = vpop.f32.mrf.mxu3  ;;  %v2611_v29 = vpop.f32.mrf.mxu0  ;;  %v2956_v60 = vpack.c.bf16 %v5184_v56, %v5183_v4  ;;  %v5361_v56 = vld [vmem:[%s6054_s26 + $0x131] sm:$0xff] }
 0x313   : > { %v8002_v51 = vadd.f32 %v2887_v61, %v2686_v35  ;;  %v2687_v40 = vadd.f32 %v2611_v29, %v7718_v23  ;;  %v2655_v16 = vpop.f32.mrf.mxu1  ;;  %v5393_v23 = vld [vmem:[%s8266_s1 + $0x708] sm:$0xf0] }
 0x314   : > { %v2688_v55 = vadd.f32 %v2655_v16, %v7720_v59  ;;  %v5396_v59 = vor.u32 %v5775_v17, %v5393_v23 }
 0x316   : > { %3574 = vmatpush.bf16.msrb.mxu1 %v5396_v59  ;;  %v5359_v59 = vld [vmem:[%s6054_s26 + $0x111] sm:$0xff] }
 0x319   : > { %v2845_v30 = vpop.f32.mrf.mxu2 }
 0x31a   : > { %v8022_v22 = vadd.f32 %v2845_v30, %v2687_v40  ;;  %v2889_v25 = vpop.f32.mrf.mxu3  ;;  %v2614_v15 = vpop.f32.mrf.mxu0 }
 0x31b   : > { %v8024_v44 = vadd.f32 %v2889_v25, %v2688_v55  ;;  %v2689_v8 = vadd.f32 %v2614_v15, %v7736_v28  ;;  %v2658_v36 = vpop.f32.mrf.mxu1 }
 0x31c   : > { %v2690_v31 = vadd.f32 %v2658_v36, %v7738_v53  ;;  %v5277_v53 = vld [vmem:[%s6054_s26 + $0x3e0] sm:$0xff] }
 0x31d   : > { %3087 = vmatmul.bf16.gmra.mxu0 %v2955_v24  ;;  %v3191_v40 = vpack.c.bf16 %v5278_v37, %v5277_v53  ;;  %v5362_v53 = vld [vmem:[%s6054_s26 + $0x141] sm:$0xff] }
 0x31e   : > { %3131 = vmatmul.bf16.gmra.mxu1 %v2955_v24  ;;  %3322 = vmatmul.bf16.gmra.mxu2 %v3190_v42  ;;  %v3419_v24 = vpack.c.bf16 %v5360_v58, %v5359_v59  ;;  %v5456_v37 = vld [vmem:[%s6054_s26 + $0x1c1] sm:$0xff]  ;;  %v5363_v58 = vld [vmem:[%s6054_s26 + $0x151] sm:$0xff] }
 0x31f   : > { %3366 = vmatmul.bf16.gmra.mxu3 %v3190_v42 }
 0x321   : > { %v2848_v9 = vpop.f32.mrf.mxu2 }
 0x322   : > { %v8028_v0 = vadd.f32 %v2848_v9, %v2689_v8  ;;  %v2892_v19 = vpop.f32.mrf.mxu3  ;;  %v2616_v57 = vpop.f32.mrf.mxu0 }
 0x323   : > { %v8030_v45 = vadd.f32 %v2892_v19, %v2690_v31  ;;  %v2691_v35 = vadd.f32 %v2616_v57, %v7758_v11  ;;  %v2660_v28 = vpop.f32.mrf.mxu1 }
 0x324   : > { %v2692_v50 = vadd.f32 %v2660_v28, %v7760_v14 }
 0x329   : > { %v2850_v21 = vpop.f32.mrf.mxu2 }
 0x32a   : > { %v8038_v34 = vadd.f32 %v2850_v21, %v2691_v35  ;;  %v2894_v61 = vpop.f32.mrf.mxu3  ;;  %v2619_v29 = vpop.f32.mrf.mxu0 }
 0x32b   : > { %v8040_v16 = vadd.f32 %v2894_v61, %v2692_v50  ;;  %v2693_v55 = vadd.f32 %v2619_v29, %v7788_v47  ;;  %v2663_v11 = vpop.f32.mrf.mxu1 }
 0x32c   : > { %v2694_v14 = vadd.f32 %v2663_v11, %v7790_v33  ;;  %v5453_v33 = vld [vmem:[%s6054_s26 + $0x191] sm:$0xff] }
 0x32d   : > { %3092 = vmatmul.bf16.gmra.mxu0 %v2956_v60  ;;  %v3653_v8 = vpack.c.bf16 %v5454_v18, %v5453_v33  ;;  %v5364_v33 = vld [vmem:[%s6054_s26 + $0x161] sm:$0xff] }
 0x32e   : > { %3136 = vmatmul.bf16.gmra.mxu1 %v2956_v60  ;;  %3327 = vmatmul.bf16.gmra.mxu2 %v3191_v40  ;;  %v3420_v60 = vpack.c.bf16 %v5362_v53, %v5361_v56  ;;  %v5458_v18 = vld [vmem:[%s6054_s26 + $0x1e1] sm:$0xff]  ;;  %v5365_v53 = vld [vmem:[%s6054_s26 + $0x171] sm:$0xff] }
 0x32f   : > { %3371 = vmatmul.bf16.gmra.mxu3 %v3191_v40 }
 0x331   : > { %v2853_v63 = vpop.f32.mrf.mxu2 }
 0x332   : > { %v8044_v48 = vadd.f32 %v2853_v63, %v2693_v55  ;;  %v2897_v17 = vpop.f32.mrf.mxu3  ;;  %v2621_v27 = vpop.f32.mrf.mxu0 }
 0x333   : > { %v8046_v23 = vadd.f32 %v2897_v17, %v2694_v14  ;;  %v2695_v32 = vadd.f32 %v2621_v27, %v7798_v7  ;;  %v2665_v47 = vpop.f32.mrf.mxu1 }
 0x334   : > { %v2696_v5 = vadd.f32 %v2665_v47, %v7800_v38 }
 0x339   : > { %v2855_v30 = vpop.f32.mrf.mxu2 }
 0x33a   : > { %v8054_v25 = vadd.f32 %v2855_v30, %v2695_v32  ;;  %v2899_v15 = vpop.f32.mrf.mxu3  ;;  %v2624_v42 = vpop.f32.mrf.mxu0 }
 0x33b   : > { %v8056_v36 = vadd.f32 %v2899_v15, %v2696_v5  ;;  %v2697_v31 = vadd.f32 %v2624_v42, %v7828_v49  ;;  %v2668_v7 = vpop.f32.mrf.mxu1 }
 0x33c   : > { %v2698_v38 = vadd.f32 %v2668_v7, %v7830_v43  ;;  %v5455_v43 = vld [vmem:[%s6054_s26 + $0x1b1] sm:$0xff] }
 0x33d   : > { %3531 = vmatmul.bf16.vlgmr.msrb.gmra.mxu0 %v3419_v24  ;;  %v3654_v55 = vpack.c.bf16 %v5456_v37, %v5455_v43  ;;  %v5366_v43 = vld [vmem:[%s6054_s26 + $0x311] sm:$0xff] }
 0x33e   : > { %3575 = vmatmul.bf16.vlgmr.msrb.gmra.mxu1 %v3419_v24  ;;  %3765 = vmatmul.bf16.vlgmr.msrb.gmra.mxu2 %v3653_v8  ;;  %v3421_v24 = vpack.c.bf16 %v5364_v33, %v5363_v58  ;;  %v5460_v37 = vld [vmem:[%s6054_s26 + $0x391] sm:$0xff]  ;;  %v5367_v33 = vld [vmem:[%s6054_s26 + $0x321] sm:$0xff] }
 0x33f   : > { %3809 = vmatmul.bf16.vlgmr.msrb.gmra.mxu3 %v3653_v8 }
 0x341   : > { %v2858_v9 = vpop.f32.mrf.mxu2 }
 0x342   : > { %v8060_v19 = vadd.f32 %v2858_v9, %v2697_v31  ;;  %v2902_v57 = vpop.f32.mrf.mxu3  ;;  %v2626_v35 = vpop.f32.mrf.mxu0 }
 0x343   : > { %v8062_v28 = vadd.f32 %v2902_v57, %v2698_v38  ;;  %v2699_v50 = vadd.f32 %v2626_v35, %v7850_v12  ;;  %v2670_v49 = vpop.f32.mrf.mxu1 }
 0x344   : > { %v2700_v4 = vadd.f32 %v2670_v49, %v7852_v20 }
 0x349   : > { %v2860_v21 = vpop.f32.mrf.mxu2 }
 0x34a   : > { %v8070_v61 = vadd.f32 %v2860_v21, %v2699_v50  ;;  %v2904_v29 = vpop.f32.mrf.mxu3  ;;  %v3063_v40 = vpop.f32.mrf.mxu0 }
 0x34b   : > { %v8072_v11 = vadd.f32 %v2904_v29, %v2700_v4  ;;  %v3142_v14 = vadd.f32 %v3063_v40, %v7868_v6  ;;  %v3107_v12 = vpop.f32.mrf.mxu1 }
 0x34c   : > { %v3143_v20 = vadd.f32 %v3107_v12, %v7870_v26  ;;  %v5457_v26 = vld [vmem:[%s6054_s26 + $0x1d1] sm:$0xff] }
 0x34d   : > { %3536 = vmatmul.bf16.gmra.mxu0 %v3420_v60  ;;  %v3655_v31 = vpack.c.bf16 %v5458_v18, %v5457_v26  ;;  %v5368_v26 = vld [vmem:[%s6054_s26 + $0x331] sm:$0xff] }
 0x34e   : > { %3580 = vmatmul.bf16.gmra.mxu1 %v3420_v60  ;;  %3770 = vmatmul.bf16.gmra.mxu2 %v3654_v55  ;;  %v3422_v60 = vpack.c.bf16 %v5366_v43, %v5365_v53  ;;  %v5462_v18 = vld [vmem:[%s6054_s26 + $0x3b1] sm:$0xff]  ;;  %v5369_v43 = vld [vmem:[%s6054_s26 + $0x341] sm:$0xff] }
 0x34f   : > { %3814 = vmatmul.bf16.gmra.mxu3 %v3654_v55 }
 0x351   : > { %v3298_v63 = vpop.f32.mrf.mxu2 }
 0x352   : > { %v8076_v17 = vadd.f32 %v3298_v63, %v3142_v14  ;;  %v3342_v27 = vpop.f32.mrf.mxu3  ;;  %v3065_v32 = vpop.f32.mrf.mxu0 }
 0x353   : > { %v8078_v47 = vadd.f32 %v3342_v27, %v3143_v20  ;;  %v3144_v5 = vadd.f32 %v3065_v32, %v7890_v13  ;;  %v3109_v6 = vpop.f32.mrf.mxu1 }
 0x354   : > { %v3145_v59 = vadd.f32 %v3109_v6, %v7892_v39 }
 0x359   : > { %v3300_v30 = vpop.f32.mrf.mxu2 }
 0x35a   : > { %v8086_v15 = vadd.f32 %v3300_v30, %v3144_v5  ;;  %v3344_v42 = vpop.f32.mrf.mxu3  ;;  %v3068_v8 = vpop.f32.mrf.mxu0 }
 0x35b   : > { %v8088_v7 = vadd.f32 %v3344_v42, %v3145_v59  ;;  %v3146_v38 = vadd.f32 %v3068_v8, %v7908_v2  ;;  %v3112_v13 = vpop.f32.mrf.mxu1 }
 0x35c   : > { %v3147_v39 = vadd.f32 %v3112_v13, %v7910_v10  ;;  %v5459_v10 = vld [vmem:[%s6054_s26 + $0x1f1] sm:$0xff] }
 0x35d   : > { %3541 = vmatmul.bf16.gmra.mxu0 %v3421_v24  ;;  %v3656_v14 = vpack.c.bf16 %v5460_v37, %v5459_v10  ;;  %v5370_v10 = vld [vmem:[%s6054_s26 + $0x351] sm:$0xff] }
 0x35e   : > { %3585 = vmatmul.bf16.gmra.mxu1 %v3421_v24  ;;  %3775 = vmatmul.bf16.gmra.mxu2 %v3655_v31  ;;  %v3423_v24 = vpack.c.bf16 %v5368_v26, %v5367_v33  ;;  %v5464_v37 = vld [vmem:[%s6054_s26 + $0x3d1] sm:$0xff]  ;;  %v5371_v26 = vld [vmem:[%s6054_s26 + $0x361] sm:$0xff] }
 0x35f   : > { %3819 = vmatmul.bf16.gmra.mxu3 %v3655_v31 }
 0x361   : > { %v3303_v9 = vpop.f32.mrf.mxu2 }
 0x362   : > { %v8092_v57 = vadd.f32 %v3303_v9, %v3146_v38  ;;  %v3347_v35 = vpop.f32.mrf.mxu3  ;;  %v3070_v50 = vpop.f32.mrf.mxu0 }
 0x363   : > { %v8094_v49 = vadd.f32 %v3347_v35, %v3147_v39  ;;  %v3148_v4 = vadd.f32 %v3070_v50, %v7942_v52  ;;  %v3114_v2 = vpop.f32.mrf.mxu1 }
 0x364   : > { %v3149_v56 = vadd.f32 %v3114_v2, %v7944_v3 }
 0x369   : > { %v3305_v21 = vpop.f32.mrf.mxu2 }
 0x36a   : > { %v8102_v29 = vadd.f32 %v3305_v21, %v3148_v4  ;;  %v3349_v40 = vpop.f32.mrf.mxu3  ;;  %v3073_v55 = vpop.f32.mrf.mxu0 }
 0x36b   : > { %v8104_v12 = vadd.f32 %v3349_v40, %v3149_v56  ;;  %v3150_v20 = vadd.f32 %v3073_v55, %v7948_v41  ;;  %v3117_v52 = vpop.f32.mrf.mxu1 }
 0x36c   : > { %v3151_v3 = vadd.f32 %v3117_v52, %v7950_v1  ;;  %v5461_v1 = vld [vmem:[%s6054_s26 + $0x3a1] sm:$0xff] }
 0x36d   : > { %3546 = vmatmul.bf16.gmra.mxu0 %v3422_v60  ;;  %v3657_v38 = vpack.c.bf16 %v5462_v18, %v5461_v1  ;;  %v5372_v1 = vld [vmem:[%s6054_s26 + $0x371] sm:$0xff] }
 0x36e   : > { %3590 = vmatmul.bf16.gmra.mxu1 %v3422_v60  ;;  %3780 = vmatmul.bf16.gmra.mxu2 %v3656_v14  ;;  %v3424_v60 = vpack.c.bf16 %v5370_v10, %v5369_v43  ;;  %v5466_v18 = vld [vmem:[%s6054_s26 + $0x3f1] sm:$0xff] }
 0x36f   : > { %3824 = vmatmul.bf16.gmra.mxu3 %v3656_v14 }
 0x371   : > { %v3308_v63 = vpop.f32.mrf.mxu2 }
 0x372   : > { %v8108_v27 = vadd.f32 %v3308_v63, %v3150_v20  ;;  %v3352_v32 = vpop.f32.mrf.mxu3  ;;  %v3075_v5 = vpop.f32.mrf.mxu0 }
 0x373   : > { %v8110_v6 = vadd.f32 %v3352_v32, %v3151_v3  ;;  %v3152_v59 = vadd.f32 %v3075_v5, %v7982_v62  ;;  %v3119_v41 = vpop.f32.mrf.mxu1 }
 0x374   : > { %v3153_v58 = vadd.f32 %v3119_v41, %v7984_v54 }
 0x379   : > { %v3310_v30 = vpop.f32.mrf.mxu2 }
 0x37a   : > { %v8118_v42 = vadd.f32 %v3310_v30, %v3152_v59  ;;  %v3354_v8 = vpop.f32.mrf.mxu3  ;;  %v3078_v31 = vpop.f32.mrf.mxu0 }
 0x37b   : > { %v8120_v13 = vadd.f32 %v3354_v8, %v3153_v58  ;;  %v3154_v39 = vadd.f32 %v3078_v31, %v8000_v46  ;;  %v3122_v62 = vpop.f32.mrf.mxu1 }
 0x37c   : > { %v3155_v54 = vadd.f32 %v3122_v62, %v8002_v51  ;;  %v5463_v51 = vld [vmem:[%s6054_s26 + $0x3c1] sm:$0xff] }
 0x37d   : > { %3551 = vmatmul.bf16.gmra.mxu0 %v3423_v24  ;;  %v3658_v20 = vpack.c.bf16 %v5464_v37, %v5463_v51 }
 0x37e   : > { %3595 = vmatmul.bf16.gmra.mxu1 %v3423_v24  ;;  %3785 = vmatmul.bf16.gmra.mxu2 %v3657_v38  ;;  %v3425_v24 = vpack.c.bf16 %v5372_v1, %v5371_v26  ;;  %v3873_v26 = vld [vmem:[%s8267_s2] sm:$0x3] }
 0x37f   : > { %3829 = vmatmul.bf16.gmra.mxu3 %v3657_v38  ;;  %v8184_v1 = vperm.slane %v3873_v26, 0 }
 0x381   : > { %v3313_v9 = vpop.f32.mrf.mxu2 }
 0x382   : > { %v8124_v35 = vadd.f32 %v3313_v9, %v3154_v39  ;;  %v3357_v50 = vpop.f32.mrf.mxu3  ;;  %v3080_v4 = vpop.f32.mrf.mxu0 }
 0x383   : > { %v8126_v2 = vadd.f32 %v3357_v50, %v3155_v54  ;;  %v3156_v56 = vadd.f32 %v3080_v4, %v8022_v22  ;;  %v3124_v46 = vpop.f32.mrf.mxu1 }
 0x384   : > { %v3157_v53 = vadd.f32 %v3124_v46, %v8024_v44 }
 0x389   : > { %v3315_v21 = vpop.f32.mrf.mxu2 }
 0x38a   : > { %v8134_v40 = vadd.f32 %v3315_v21, %v3156_v56  ;;  %v3359_v55 = vpop.f32.mrf.mxu3  ;;  %v3083_v14 = vpop.f32.mrf.mxu0 }
 0x38b   : > { %v8136_v52 = vadd.f32 %v3359_v55, %v3157_v53  ;;  %v3158_v3 = vadd.f32 %v3083_v14, %v8028_v0  ;;  %v3127_v22 = vpop.f32.mrf.mxu1 }
 0x38c   : > { %v3159_v44 = vadd.f32 %v3127_v22, %v8030_v45  ;;  %v5465_v45 = vld [vmem:[%s6054_s26 + $0x3e1] sm:$0xff]  ;;  %s172_s26 = smul.u32 14, %s4077_s13 }
 0x38d   : > { %3556 = vmatmul.bf16.gmra.mxu0 %v3424_v60  ;;  %v3659_v39 = vpack.c.bf16 %v5466_v18, %v5465_v45  ;;  %v8187_v18 = vperm.slane %v3873_v26, 1 }
 0x38e   : > { %3600 = vmatmul.bf16.gmra.mxu1 %v3424_v60  ;;  %3790 = vmatmul.bf16.gmra.mxu2 %v3658_v20  ;;  %p173_p4 = scmp.lt.s32.totalorder %s172_s26, 55 }
 0x38f   : > { %3834 = vmatmul.bf16.gmra.mxu3 %v3658_v20 }
 0x390   : > { %s8272_s26 = smov (!%p173_p4, %s172_s26), 55 }
 0x391   : > { %v3318_v63 = vpop.f32.mrf.mxu2  ;;  %s5550_s13 = sshll.u32 %s8272_s26, 3 }
 0x392   : > { %v8140_v32 = vadd.f32 %v3318_v63, %v3158_v3  ;;  %v3362_v5 = vpop.f32.mrf.mxu3  ;;  %v3085_v59 = vpop.f32.mrf.mxu0  ;;  %s8195_s7 = scalar_lea.vmem %s8268_s3, %s5550_s13 }
 0x393   : > { %v8142_v41 = vadd.f32 %v3362_v5, %v3159_v44  ;;  %v3160_v58 = vadd.f32 %v3085_v59, %v8038_v34  ;;  %v3129_v0 = vpop.f32.mrf.mxu1 }
 0x394   : > { %v3161_v33 = vadd.f32 %v3129_v0, %v8040_v16 }
 0x399   : > { %v3320_v30 = vpop.f32.mrf.mxu2 }
 0x39a   : > { %v8150_v8 = vadd.f32 %v3320_v30, %v3160_v58  ;;  %v3364_v31 = vpop.f32.mrf.mxu3  ;;  %v3088_v38 = vpop.f32.mrf.mxu0 }
 0x39b   : > { %v8152_v62 = vadd.f32 %v3364_v31, %v3161_v33  ;;  %v3162_v54 = vadd.f32 %v3088_v38, %v8044_v48  ;;  %v3132_v9 = vpop.f32.mrf.mxu1 }
 0x39c   : > { %v3163_v34 = vadd.f32 %v3132_v9, %v8046_v23 }
 0x39d   : > { %3561 = vmatmul.bf16.gmra.mxu0 %v3425_v24 }
 0x39e   : > { %3605 = vmatmul.bf16.gmra.mxu1 %v3425_v24  ;;  %3795 = vmatmul.bf16.gmra.mxu2 %v3659_v39 }
 0x39f   : > { %3839 = vmatmul.bf16.gmra.mxu3 %v3659_v39 }
 0x3a1   : > { %v3323_v16 = vpop.f32.mrf.mxu2 }
 0x3a2   : > { %v8156_v50 = vadd.f32 %v3323_v16, %v3162_v54  ;;  %v3367_v4 = vpop.f32.mrf.mxu3  ;;  %v3090_v56 = vpop.f32.mrf.mxu0 }
 0x3a3   : > { %v8158_v46 = vadd.f32 %v3367_v4, %v3163_v34  ;;  %v3164_v53 = vadd.f32 %v3090_v56, %v8054_v25  ;;  %v3134_v43 = vpop.f32.mrf.mxu1 }
 0x3a4   : > { %v3165_v10 = vadd.f32 %v3134_v43, %v8056_v36 }
 0x3a9   : > { %v3325_v48 = vpop.f32.mrf.mxu2 }
 0x3aa   : > { %v8162_v51 = vadd.f32 %v3325_v48, %v3164_v53  ;;  %v3369_v23 = vpop.f32.mrf.mxu3  ;;  %v3093_v37 = vpop.f32.mrf.mxu0 }
 0x3ab   : > { %v8164_v21 = vadd.f32 %v3369_v23, %v3165_v10  ;;  %v3166_v60 = vadd.f32 %v3093_v37, %v8060_v19  ;;  %v3137_v55 = vpop.f32.mrf.mxu1 }
 0x3ac   : > { %v3167_v14 = vadd.f32 %v3137_v55, %v8062_v28 }
 0x3b1   : > { %v3328_v20 = vpop.f32.mrf.mxu2 }
 0x3b2   : > { %v8168_v3 = vadd.f32 %v3328_v20, %v3166_v60  ;;  %v3372_v25 = vpop.f32.mrf.mxu3  ;;  %v3095_v22 = vpop.f32.mrf.mxu0 }
 0x3b3   : > { %v8170_v44 = vadd.f32 %v3372_v25, %v3167_v14  ;;  %v3168_v36 = vadd.f32 %v3095_v22, %v8070_v61  ;;  %v3139_v63 = vpop.f32.mrf.mxu1 }
 0x3b4   : > { %v3169_v5 = vadd.f32 %v3139_v63, %v8072_v11 }
 0x3b9   : > { %v3330_v59 = vpop.f32.mrf.mxu2 }
 0x3ba   : > { %v8174_v58 = vadd.f32 %v3330_v59, %v3168_v36  ;;  %v3374_v0 = vpop.f32.mrf.mxu3  ;;  %v3532_v19 = vpop.f32.mrf.mxu0 }
 0x3bb   : > { %v8178_v28 = vadd.f32 %v3374_v0, %v3169_v5  ;;  %v3576_v33 = vpop.f32.mrf.mxu1  ;;  %v3611_v61 = vadd.f32 %v3532_v19, %v8076_v17 }
 0x3bc   : > { %v3612_v11 = vadd.f32 %v3576_v33, %v8078_v47 }
 0x3c1   : > { %v3766_v45 = vpop.f32.mrf.mxu2 }
 0x3c2   : > { %v3845_v30 = vadd.f32 %v3766_v45, %v3611_v61  ;;  %v3810_v24 = vpop.f32.mrf.mxu3  ;;  %v3534_v31 = vpop.f32.mrf.mxu0 }
 0x3c3   : > { %v3846_v38 = vadd.f32 %v3810_v24, %v3612_v11  ;;  %v3578_v39 = vpop.f32.mrf.mxu1  ;;  %v3613_v47 = vadd.f32 %v3534_v31, %v8086_v15 }
 0x3c4   : > { %v3879_v54 = vadd.f32 %v8184_v1, %v3845_v30  ;;  %v3614_v56 = vadd.f32 %v3578_v39, %v8088_v7 }
 0x3c5   : > { %v3880_v9 = vadd.f32 %v8187_v18, %v3846_v38 }
 0x3c6   : > { %vm3907_vm0 = vcmp.ge.f32.partialorder %v3879_v54, 0.0  ;;  %v3935_v34 = vmul.f32 0.2, %v3879_v54 }
 0x3c7   : > { %vm3908_vm1 = vcmp.ge.f32.partialorder %v3880_v9, 0.0  ;;  %v3936_v17 = vmul.f32 0.2, %v3880_v9 }
 0x3c8   : > { %v3963_v16 = vsel %vm3907_vm0, %v3879_v54, %v3935_v34 }
 0x3c9   : > { %v3964_v4 = vsel %vm3908_vm1, %v3880_v9, %v3936_v17  ;;  %v3768_v53 = vpop.f32.mrf.mxu2 }
 0x3ca   : > { %v3991_v43 = vpack.c.bf16 %v3964_v4, %v3963_v16  ;;  %v3847_v10 = vadd.f32 %v3768_v53, %v3613_v47  ;;  %v3812_v48 = vpop.f32.mrf.mxu3  ;;  %v3537_v23 = vpop.f32.mrf.mxu0 }
 0x3cb   : > { %v3848_v37 = vadd.f32 %v3812_v48, %v3614_v56  ;;  %v3581_v60 = vpop.f32.mrf.mxu1  ;;  %v3615_v7 = vadd.f32 %v3537_v23, %v8092_v57 }
 0x3cc   : > { %4005 = vst [vmem:[%s8195_s7] sm:$0xff] %v3991_v43  ;;  %v3881_v55 = vadd.f32 %v8184_v1, %v3847_v10  ;;  %v3616_v36 = vadd.f32 %v3581_v60, %v8094_v49 }
 0x3cd   : > { %v3882_v15 = vadd.f32 %v8187_v18, %v3848_v37 }
 0x3ce   : > { %vm3909_vm2 = vcmp.ge.f32.partialorder %v3881_v55, 0.0  ;;  %v3937_v14 = vmul.f32 0.2, %v3881_v55 }
 0x3cf   : > { %vm3910_vm3 = vcmp.ge.f32.partialorder %v3882_v15, 0.0  ;;  %v3938_v20 = vmul.f32 0.2, %v3882_v15 }
 0x3d0   : > { %v3965_v25 = vsel %vm3909_vm2, %v3881_v55, %v3937_v14 }
 0x3d1   : > { %v3966_v22 = vsel %vm3910_vm3, %v3882_v15, %v3938_v20  ;;  %v3771_v63 = vpop.f32.mrf.mxu2 }
 0x3d2   : > { %v3992_v5 = vpack.c.bf16 %v3966_v22, %v3965_v25  ;;  %v3849_v59 = vadd.f32 %v3771_v63, %v3615_v7  ;;  %v3815_v0 = vpop.f32.mrf.mxu3  ;;  %v3539_v19 = vpop.f32.mrf.mxu0 }
 0x3d3   : > { %v3850_v33 = vadd.f32 %v3815_v0, %v3616_v36  ;;  %v3583_v26 = vpop.f32.mrf.mxu1  ;;  %v3617_v49 = vadd.f32 %v3539_v19, %v8102_v29 }
 0x3d4   : > { %4006 = vst [vmem:[%s8195_s7 + $0x8] sm:$0xff] %v3992_v5  ;;  %v3883_v61 = vadd.f32 %v8184_v1, %v3849_v59  ;;  %v3618_v31 = vadd.f32 %v3583_v26, %v8104_v12 }
 0x3d5   : > { %v3884_v11 = vadd.f32 %v8187_v18, %v3850_v33 }
 0x3d6   : > { %vm3911_vm4 = vcmp.ge.f32.partialorder %v3883_v61, 0.0  ;;  %v3939_v45 = vmul.f32 0.2, %v3883_v61 }
 0x3d7   : > { %vm3912_vm5 = vcmp.ge.f32.partialorder %v3884_v11, 0.0  ;;  %v3940_v57 = vmul.f32 0.2, %v3884_v11 }
 0x3d8   : > { %v3967_v30 = vsel %vm3911_vm4, %v3883_v61, %v3939_v45 }
 0x3d9   : > { %v3968_v24 = vsel %vm3912_vm5, %v3884_v11, %v3940_v57  ;;  %v3773_v38 = vpop.f32.mrf.mxu2 }
 0x3da   : > { %v3993_v39 = vpack.c.bf16 %v3968_v24, %v3967_v30  ;;  %v3851_v54 = vadd.f32 %v3773_v38, %v3617_v49  ;;  %v3817_v9 = vpop.f32.mrf.mxu3  ;;  %v3542_v34 = vpop.f32.mrf.mxu0 }
 0x3db   : > { %v3852_v17 = vadd.f32 %v3817_v9, %v3618_v31  ;;  %v3586_v16 = vpop.f32.mrf.mxu1  ;;  %v3619_v12 = vadd.f32 %v3542_v34, %v8108_v27 }
 0x3dc   : > { %4007 = vst [vmem:[%s8195_s7 + $0x10] sm:$0xff] %v3993_v39  ;;  %v3885_v47 = vadd.f32 %v8184_v1, %v3851_v54  ;;  %v3620_v10 = vadd.f32 %v3586_v16, %v8110_v6 }
 0x3dd   : > { %v3886_v4 = vadd.f32 %v8187_v18, %v3852_v17 }
 0x3de   : > { %vm3913_vm6 = vcmp.ge.f32.partialorder %v3885_v47, 0.0  ;;  %v3941_v56 = vmul.f32 0.2, %v3885_v47 }
 0x3df   : > { %vm3914_vm7 = vcmp.ge.f32.partialorder %v3886_v4, 0.0  ;;  %v3942_v29 = vmul.f32 0.2, %v3886_v4 }
 0x3e0   : > { %v3969_v53 = vsel %vm3913_vm6, %v3885_v47, %v3941_v56 }
 0x3e1   : > { %v3970_v43 = vsel %vm3914_vm7, %v3886_v4, %v3942_v29  ;;  %v3776_v48 = vpop.f32.mrf.mxu2 }
 0x3e2   : > { %v3994_v23 = vpack.c.bf16 %v3970_v43, %v3969_v53  ;;  %v3853_v37 = vadd.f32 %v3776_v48, %v3619_v12  ;;  %v3820_v60 = vpop.f32.mrf.mxu3  ;;  %v3544_v55 = vpop.f32.mrf.mxu0 }
 0x3e3   : > { %v3854_v15 = vadd.f32 %v3820_v60, %v3620_v10  ;;  %v3588_v14 = vpop.f32.mrf.mxu1  ;;  %v3621_v6 = vadd.f32 %v3544_v55, %v8118_v42 }
 0x3e4   : > { %4008 = vst [vmem:[%s8195_s7 + $0x18] sm:$0xff] %v3994_v23  ;;  %v3887_v20 = vadd.f32 %v8184_v1, %v3853_v37  ;;  %v3622_v63 = vadd.f32 %v3588_v14, %v8120_v13 }
 0x3e5   : > { %v3888_v25 = vadd.f32 %v8187_v18, %v3854_v15 }
 0x3e6   : > { %vm3915_vm8 = vcmp.ge.f32.partialorder %v3887_v20, 0.0  ;;  %v3943_v7 = vmul.f32 0.2, %v3887_v20 }
 0x3e7   : > { %vm3916_vm9 = vcmp.ge.f32.partialorder %v3888_v25, 0.0  ;;  %v3944_v27 = vmul.f32 0.2, %v3888_v25 }
 0x3e8   : > { %v3971_v22 = vsel %vm3915_vm8, %v3887_v20, %v3943_v7 }
 0x3e9   : > { %v3972_v36 = vsel %vm3916_vm9, %v3888_v25, %v3944_v27  ;;  %v3778_v5 = vpop.f32.mrf.mxu2 }
 0x3ea   : > { %v3995_v59 = vpack.c.bf16 %v3972_v36, %v3971_v22  ;;  %v3855_v0 = vadd.f32 %v3778_v5, %v3621_v6  ;;  %v3822_v19 = vpop.f32.mrf.mxu3  ;;  %v3547_v33 = vpop.f32.mrf.mxu0 }
 0x3eb   : > { %v3856_v26 = vadd.f32 %v3822_v19, %v3622_v63  ;;  %v3591_v61 = vpop.f32.mrf.mxu1  ;;  %v3623_v13 = vadd.f32 %v3547_v33, %v8124_v35 }
 0x3ec   : > { %4009 = vst [vmem:[%s8195_s7 + $0x20] sm:$0xff] %v3995_v59  ;;  %v3889_v11 = vadd.f32 %v8184_v1, %v3855_v0  ;;  %v3624_v24 = vadd.f32 %v3591_v61, %v8126_v2 }
 0x3ed   : > { %v3890_v45 = vadd.f32 %v8187_v18, %v3856_v26 }
 0x3ee   : > { %vm3917_vm10 = vcmp.ge.f32.partialorder %v3889_v11, 0.0  ;;  %v3945_v57 = vmul.f32 0.2, %v3889_v11 }
 0x3ef   : > { %vm3918_vm11 = vcmp.ge.f32.partialorder %v3890_v45, 0.0  ;;  %v3946_v42 = vmul.f32 0.2, %v3890_v45 }
 0x3f0   : > { %v3973_v30 = vsel %vm3917_vm10, %v3889_v11, %v3945_v57 }
 0x3f1   : > { %v3974_v49 = vsel %vm3918_vm11, %v3890_v45, %v3946_v42  ;;  %v3781_v31 = vpop.f32.mrf.mxu2 }
 0x3f2   : > { %v3996_v38 = vpack.c.bf16 %v3974_v49, %v3973_v30  ;;  %v3857_v39 = vadd.f32 %v3781_v31, %v3623_v13  ;;  %v3825_v54 = vpop.f32.mrf.mxu3  ;;  %v3549_v9 = vpop.f32.mrf.mxu0 }
 0x3f3   : > { %v3858_v34 = vadd.f32 %v3825_v54, %v3624_v24  ;;  %v3593_v17 = vpop.f32.mrf.mxu1  ;;  %v3625_v2 = vadd.f32 %v3549_v9, %v8134_v40 }
 0x3f4   : > { %4010 = vst [vmem:[%s8195_s7 + $0x28] sm:$0xff] %v3996_v38  ;;  %v3891_v16 = vadd.f32 %v8184_v1, %v3857_v39  ;;  %v3626_v53 = vadd.f32 %v3593_v17, %v8136_v52 }
 0x3f5   : > { %v3892_v47 = vadd.f32 %v8187_v18, %v3858_v34 }
 0x3f6   : > { %vm3919_vm12 = vcmp.ge.f32.partialorder %v3891_v16, 0.0  ;;  %v3947_v4 = vmul.f32 0.2, %v3891_v16 }
 0x3f7   : > { %vm3920_vm13 = vcmp.ge.f32.partialorder %v3892_v47, 0.0  ;;  %v3948_v35 = vmul.f32 0.2, %v3892_v47 }
 0x3f8   : > { %v3975_v56 = vsel %vm3919_vm12, %v3891_v16, %v3947_v4 }
 0x3f9   : > { %v3976_v29 = vsel %vm3920_vm13, %v3892_v47, %v3948_v35  ;;  %v3783_v12 = vpop.f32.mrf.mxu2 }
 0x3fa   : > { %v3997_v43 = vpack.c.bf16 %v3976_v29, %v3975_v56  ;;  %v3859_v10 = vadd.f32 %v3783_v12, %v3625_v2  ;;  %v3827_v48 = vpop.f32.mrf.mxu3  ;;  %v3552_v23 = vpop.f32.mrf.mxu0 }
 0x3fb   : > { %v3860_v37 = vadd.f32 %v3827_v48, %v3626_v53  ;;  %v3596_v60 = vpop.f32.mrf.mxu1  ;;  %v3627_v52 = vadd.f32 %v3552_v23, %v8140_v32 }
 0x3fc   : > { %4011 = vst [vmem:[%s8195_s7 + $0x30] sm:$0xff] %v3997_v43  ;;  %v3893_v55 = vadd.f32 %v8184_v1, %v3859_v10  ;;  %v3628_v7 = vadd.f32 %v3596_v60, %v8142_v41 }
 0x3fd   : > { %v3894_v15 = vadd.f32 %v8187_v18, %v3860_v37 }
 0x3fe   : > { %vm3921_vm14 = vcmp.ge.f32.partialorder %v3893_v55, 0.0  ;;  %v3949_v14 = vmul.f32 0.2, %v3893_v55 }
 0x3ff   : > { %vm3922_vm15 = vcmp.ge.f32.partialorder %v3894_v15, 0.0  ;;  %v3950_v40 = vmul.f32 0.2, %v3894_v15 }
 0x400   : > { %v3977_v20 = vsel %vm3921_vm14, %v3893_v55, %v3949_v14 }
 0x401   : > { %v3978_v25 = vsel %vm3922_vm15, %v3894_v15, %v3950_v40  ;;  %v3786_v27 = vpop.f32.mrf.mxu2 }
 0x402   : > { %v3998_v22 = vpack.c.bf16 %v3978_v25, %v3977_v20  ;;  %v3861_v6 = vadd.f32 %v3786_v27, %v3627_v52  ;;  %v3830_v36 = vpop.f32.mrf.mxu3  ;;  %v3554_v63 = vpop.f32.mrf.mxu0 }
 0x403   : > { %v3862_v5 = vadd.f32 %v3830_v36, %v3628_v7  ;;  %v3598_v59 = vpop.f32.mrf.mxu1  ;;  %v3629_v41 = vadd.f32 %v3554_v63, %v8150_v8 }
 0x404   : > { %4012 = vst [vmem:[%s8195_s7 + $0x38] sm:$0xff] %v3998_v22  ;;  %v3895_v0 = vadd.f32 %v8184_v1, %v3861_v6  ;;  %v3630_v11 = vadd.f32 %v3598_v59, %v8152_v62 }
 0x405   : > { %v3896_v19 = vadd.f32 %v8187_v18, %v3862_v5 }
 0x406   : > { %vm3923_vm0 = vcmp.ge.f32.partialorder %v3895_v0, 0.0  ;;  %v3951_v33 = vmul.f32 0.2, %v3895_v0 }
 0x407   : > { %vm3924_vm1 = vcmp.ge.f32.partialorder %v3896_v19, 0.0  ;;  %v3952_v32 = vmul.f32 0.2, %v3896_v19 }
 0x408   : > { %v3979_v26 = vsel %vm3923_vm0, %v3895_v0, %v3951_v33 }
 0x409   : > { %v3980_v61 = vsel %vm3924_vm1, %v3896_v19, %v3952_v32  ;;  %v3788_v45 = vpop.f32.mrf.mxu2 }
 0x40a   : > { %v3999_v57 = vpack.c.bf16 %v3980_v61, %v3979_v26  ;;  %v3863_v42 = vadd.f32 %v3788_v45, %v3629_v41  ;;  %v3832_v30 = vpop.f32.mrf.mxu3  ;;  %v3557_v13 = vpop.f32.mrf.mxu0 }
 0x40b   : > { %v3864_v49 = vadd.f32 %v3832_v30, %v3630_v11  ;;  %v3601_v24 = vpop.f32.mrf.mxu1  ;;  %v3631_v62 = vadd.f32 %v3557_v13, %v8156_v50 }
 0x40c   : > { %4013 = vst [vmem:[%s8195_s7 + $0x40] sm:$0xff] %v3999_v57  ;;  %v3897_v31 = vadd.f32 %v8184_v1, %v3863_v42  ;;  %v3632_v34 = vadd.f32 %v3601_v24, %v8158_v46 }
 0x40d   : > { %v3898_v38 = vadd.f32 %v8187_v18, %v3864_v49 }
 0x40e   : > { %vm3925_vm2 = vcmp.ge.f32.partialorder %v3897_v31, 0.0  ;;  %v3953_v39 = vmul.f32 0.2, %v3897_v31 }
 0x40f   : > { %vm3926_vm3 = vcmp.ge.f32.partialorder %v3898_v38, 0.0  ;;  %v3954_v8 = vmul.f32 0.2, %v3898_v38 }
 0x410   : > { %v3981_v54 = vsel %vm3925_vm2, %v3897_v31, %v3953_v39 }
 0x411   : > { %v3982_v9 = vsel %vm3926_vm3, %v3898_v38, %v3954_v8  ;;  %v3791_v17 = vpop.f32.mrf.mxu2 }
 0x412   : > { %v4000_v16 = vpack.c.bf16 %v3982_v9, %v3981_v54  ;;  %v3865_v47 = vadd.f32 %v3791_v17, %v3631_v62  ;;  %v3835_v4 = vpop.f32.mrf.mxu3  ;;  %v3559_v35 = vpop.f32.mrf.mxu0 }
 0x413   : > { %v3866_v56 = vadd.f32 %v3835_v4, %v3632_v34  ;;  %v3603_v2 = vpop.f32.mrf.mxu1  ;;  %v3633_v46 = vadd.f32 %v3559_v35, %v8162_v51 }
 0x414   : > { %4014 = vst [vmem:[%s8195_s7 + $0x48] sm:$0xff] %v4000_v16  ;;  %v3899_v29 = vadd.f32 %v8184_v1, %v3865_v47  ;;  %v3634_v48 = vadd.f32 %v3603_v2, %v8164_v21 }
 0x415   : > { %v3900_v53 = vadd.f32 %v8187_v18, %v3866_v56 }
 0x416   : > { %vm3927_vm4 = vcmp.ge.f32.partialorder %v3899_v29, 0.0  ;;  %v3955_v12 = vmul.f32 0.2, %v3899_v29 }
 0x417   : > { %vm3928_vm5 = vcmp.ge.f32.partialorder %v3900_v53, 0.0  ;;  %v3956_v50 = vmul.f32 0.2, %v3900_v53 }
 0x418   : > { %v3983_v43 = vsel %vm3927_vm4, %v3899_v29, %v3955_v12 }
 0x419   : > { %v3984_v10 = vsel %vm3928_vm5, %v3900_v53, %v3956_v50  ;;  %v3793_v23 = vpop.f32.mrf.mxu2 }
 0x41a   : > { %v4001_v37 = vpack.c.bf16 %v3984_v10, %v3983_v43  ;;  %v3867_v60 = vadd.f32 %v3793_v23, %v3633_v46  ;;  %v3837_v55 = vpop.f32.mrf.mxu3  ;;  %v3562_v14 = vpop.f32.mrf.mxu0 }
 0x41b   : > { %v3868_v15 = vadd.f32 %v3837_v55, %v3634_v48  ;;  %v3606_v20 = vpop.f32.mrf.mxu1  ;;  %v3635_v21 = vadd.f32 %v3562_v14, %v8168_v3 }
 0x41c   : > { %4015 = vst [vmem:[%s8195_s7 + $0x50] sm:$0xff] %v4001_v37  ;;  %v3901_v40 = vadd.f32 %v8184_v1, %v3867_v60  ;;  %v3636_v22 = vadd.f32 %v3606_v20, %v8170_v44 }
 0x41d   : > { %v3902_v52 = vadd.f32 %v8187_v18, %v3868_v15 }
 0x41e   : > { %vm3929_vm6 = vcmp.ge.f32.partialorder %v3901_v40, 0.0  ;;  %v3957_v25 = vmul.f32 0.2, %v3901_v40 }
 0x41f   : > { %vm3930_vm7 = vcmp.ge.f32.partialorder %v3902_v52, 0.0  ;;  %v3958_v51 = vmul.f32 0.2, %v3902_v52 }
 0x420   : > { %v3985_v7 = vsel %vm3929_vm6, %v3901_v40, %v3957_v25 }
 0x421   : > { %v3986_v27 = vsel %vm3930_vm7, %v3902_v52, %v3958_v51  ;;  %v3796_v6 = vpop.f32.mrf.mxu2 }
 0x422   : > { %v4002_v36 = vpack.c.bf16 %v3986_v27, %v3985_v7  ;;  %v3869_v63 = vadd.f32 %v3796_v6, %v3635_v21  ;;  %v3840_v5 = vpop.f32.mrf.mxu3  ;;  %v3564_v33 = vpop.f32.mrf.mxu0 }
 0x423   : > { %v3870_v59 = vadd.f32 %v3840_v5, %v3636_v22  ;;  %v3608_v26 = vpop.f32.mrf.mxu1  ;;  %v3637_v44 = vadd.f32 %v3564_v33, %v8174_v58 }
 0x424   : > { %4016 = vst [vmem:[%s8195_s7 + $0x58] sm:$0xff] %v4002_v36  ;;  %v3903_v0 = vadd.f32 %v8184_v1, %v3869_v63  ;;  %v3638_v11 = vadd.f32 %v3608_v26, %v8178_v28 }
 0x425   : > { %v3904_v19 = vadd.f32 %v8187_v18, %v3870_v59 }
 0x426   : > { %vm3931_vm8 = vcmp.ge.f32.partialorder %v3903_v0, 0.0  ;;  %v3959_v32 = vmul.f32 0.2, %v3903_v0 }
 0x427   : > { %vm3932_vm9 = vcmp.ge.f32.partialorder %v3904_v19, 0.0  ;;  %v3960_v3 = vmul.f32 0.2, %v3904_v19 }
 0x428   : > { %v3987_v41 = vsel %vm3931_vm8, %v3903_v0, %v3959_v32 }
 0x429   : > { %v3988_v61 = vsel %vm3932_vm9, %v3904_v19, %v3960_v3  ;;  %v3798_v45 = vpop.f32.mrf.mxu2 }
 0x42a   : > { %v4003_v57 = vpack.c.bf16 %v3988_v61, %v3987_v41  ;;  %v3871_v42 = vadd.f32 %v3798_v45, %v3637_v44  ;;  %v3842_v30 = vpop.f32.mrf.mxu3 }
 0x42b   : > { %v3872_v13 = vadd.f32 %v3842_v30, %v3638_v11 }
 0x42c   : > { %4017 = vst [vmem:[%s8195_s7 + $0x60] sm:$0xff] %v4003_v57  ;;  %v3905_v49 = vadd.f32 %v8184_v1, %v3871_v42 }
 0x42d   : > { %v3906_v24 = vadd.f32 %v8187_v18, %v3872_v13 }
 0x42e   : > { %vm3933_vm10 = vcmp.ge.f32.partialorder %v3905_v49, 0.0  ;;  %v3961_v31 = vmul.f32 0.2, %v3905_v49 }
 0x42f   : > { %vm3934_vm11 = vcmp.ge.f32.partialorder %v3906_v24, 0.0  ;;  %v3962_v38 = vmul.f32 0.2, %v3906_v24 }
 0x430   : > { %v3989_v39 = vsel %vm3933_vm10, %v3905_v49, %v3961_v31 }
 0x431   : > { %v3990_v58 = vsel %vm3934_vm11, %v3906_v24, %v3962_v38 }
 0x432   : > { %v4004_v8 = vpack.c.bf16 %v3990_v58, %v3989_v39 }
 0x434   : > { %4018 = vst [vmem:[%s8195_s7 + $0x68] sm:$0xff] %v4004_v8 }
 0x435 PF: > { %s13_s12 = sadd.s32 1, %s5821_s12  }
 0x436   : > { %p10_p5 = scmp.ge.s32.totalorder %s13_s12, 6  }
 0x438   :  { %12 = sbr.rel (!%p10_p5) target bundleno = 1 (0x1), region = 84 }

// kernel: encoder_forward.5
= control target key start
LH: loop header
LB: loop body
LE: loop exit
PB: predicated region body
PF: predicated region fallthrough
CT: control target
= control target key end

     0   :  { %s4018_s18 = smov 0   ;;  %s4020_s19 = smov 0   ;;  %s4735_s0 = inlined_call_operand.vmem [shape: bf16[8,14336], index: 0, kind: input, shape index: {}]   ;;  %s4736_s1 = inlined_call_operand.vmem [shape: bf16[14336,256], index: 1, kind: input, shape index: {}]   ;;  %s4737_s2 = inlined_call_operand.vmem [shape: f32[1,256], index: 2, kind: input, shape index: {}]   ;;  %s4738_s3 = inlined_call_operand.vmem [shape: bf16[256,128], index: 3, kind: input, shape index: {}]   ;;  %s4739_s4 = inlined_call_operand.vmem [shape: f32[1,128], index: 4, kind: input, shape index: {}]   ;;  %s4740_s5 = inlined_call_operand.vmem [shape: f32[8,128], index: 5, kind: output, shape index: {}]  }
   0x1   :  { %s4022_s20 = smov 0  }
   0x2 LB: > { %s24_s21 = sadd.s32 1, %s3981_s19  ;;  %p2565_p0 = scmp.ge.s32.totalorder %s3985_s20, 1  ;;  %s3985_s20 = sphi %s4022_s20, %s15_s20   ;;  %s3981_s19 = sphi %s4020_s19, %s4742_s19   ;;  %s3977_s18 = sphi %s4018_s18, %s4741_s18  }
   0x3   : > { %p25_p1 = scmp.ge.s32.totalorder %s24_s21, 7  ;;  %p218_p2 = scmp.lt.s32.totalorder %s3985_s20, 8 }
   0x5   : > { %s4744_s21 = smov (%p25_p1, %s24_s21), 0  ;;  %p219_p3 = pnand %p2565_p0, %p218_p2 }
   0x6   : > { %s2566_s22 = sshll.u32 (!%p219_p3), %s3977_s18, 4  ;;  %s2568_s23 = sshll.u32 (!%p219_p3), %s3977_s18, 8 }
   0x7   : > { %222 = sbr.rel (%p219_p3) target bundleno = 591 (0x24f), region = 40  ;;  %p258_p4 = scmp.lt.s32.totalorder (!%p219_p3), %s2566_s22, 111 }
   0x8   : > { %p266_p5 = scmp.lt.s32.totalorder (!%p219_p3), %s2568_s23, 1791  ;;  %p2571_p6 = scmp.ne.s32.totalorder (!%p219_p3), %s3977_s18, 0 }
   0xc   : > { %s4746_s22 = smov (!%p258_p4, %s2566_s22), 111  ;;  %s4748_s23 = smov (!%p266_p5, %s2568_s23), 1791 }
   0xd   : > { %s2567_s24 = sshll.u32 %s4746_s22, 2  ;;  %s3664_s28 = sshll.u32 %s4748_s23, 3 }
   0xe   : > { %s4043_s27 = scalar_lea.vmem %s4735_s0, %s2567_s24  ;;  %s4048_s6 = scalar_lea.vmem %s4736_s1, %s3664_s28 }
   0xf   : > { %279 = sbr.rel (%p2571_p6) target bundleno = 23 (0x17), region = 44 }
  0x14   : > { %v3987_v0 = vmov 0.0  }
  0x15   : > { %280 = vst [vmem:[#allocation2] sm:$0xff] %v3987_v0 }
  0x16   : > { %281 = vst [vmem:[#allocation2 + $0x8] sm:$0xff] %v3987_v0 }
  0x17 PF: > { %v2630_v1 = vld [vmem:[%s4048_s6 + $0x70] sm:$0xf]  ;;  %v3680_v2 = vld [vmem:[%s4048_s6 + $0x74] sm:$0xf0]  ;;  %v2622_v12 = vld [vmem:[%s4048_s6 + $0x60] sm:$0xf] }
  0x18   : > { %v2694_v3 = vld [vmem:[%s4048_s6 + $0xf0] sm:$0xf]  ;;  %v2631_v4 = vor.u32 %v3680_v2, %v2630_v1  ;;  %v3696_v5 = vld [vmem:[%s4048_s6 + $0xf4] sm:$0xf0]  ;;  %v3678_v14 = vld [vmem:[%s4048_s6 + $0x64] sm:$0xf0] }
  0x19   : > { %v2758_v6 = vld [vmem:[%s4048_s6 + $0x170] sm:$0xf]  ;;  %v3712_v7 = vld [vmem:[%s4048_s6 + $0x174] sm:$0xf0]  ;;  %v2695_v8 = vor.u32 %v3696_v5, %v2694_v3  ;;  %v2686_v15 = vld [vmem:[%s4048_s6 + $0xe0] sm:$0xf]  ;;  %v2623_v17 = vor.u32 %v3678_v14, %v2622_v12 }
  0x1a   : > { %v2759_v9 = vor.u32 %v3712_v7, %v2758_v6  ;;  %v2822_v10 = vld [vmem:[%s4048_s6 + $0x1f0] sm:$0xf]  ;;  %v3728_v11 = vld [vmem:[%s4048_s6 + $0x1f4] sm:$0xf0]  ;;  %1884 = vmatpush.bf16.msra.mxu0 %v2631_v4  ;;  %v3694_v16 = vld [vmem:[%s4048_s6 + $0xe4] sm:$0xf0] }
  0x1b   : > { %v2823_v13 = vor.u32 %v3728_v11, %v2822_v10  ;;  %1897 = vmatpush.bf16.msra.mxu1 %v2695_v8  ;;  %v2687_v18 = vor.u32 %v3694_v16, %v2686_v15  ;;  %v2750_v19 = vld [vmem:[%s4048_s6 + $0x160] sm:$0xf]  ;;  %v3710_v20 = vld [vmem:[%s4048_s6 + $0x164] sm:$0xf0]  ;;  %v2614_v24 = vld [vmem:[%s4048_s6 + $0x50] sm:$0xf] }
  0x1c   : > { %1910 = vmatpush.bf16.msra.mxu2 %v2759_v9  ;;  %v2814_v21 = vld [vmem:[%s4048_s6 + $0x1e0] sm:$0xf]  ;;  %v2751_v22 = vor.u32 %v3710_v20, %v2750_v19  ;;  %v3726_v23 = vld [vmem:[%s4048_s6 + $0x1e4] sm:$0xf0]  ;;  %v3676_v25 = vld [vmem:[%s4048_s6 + $0x54] sm:$0xf0] }
  0x1d   : > { %1923 = vmatpush.bf16.msra.mxu3 %v2823_v13  ;;  %v2815_v26 = vor.u32 %v3726_v23, %v2814_v21  ;;  %v2678_v27 = vld [vmem:[%s4048_s6 + $0xd0] sm:$0xf]  ;;  %v3692_v28 = vld [vmem:[%s4048_s6 + $0xd4] sm:$0xf0]  ;;  %v2615_v30 = vor.u32 %v3676_v25, %v2614_v24  ;;  %v2606_v36 = vld [vmem:[%s4048_s6 + $0x40] sm:$0xf] }
  0x1e   : > { %v2742_v29 = vld [vmem:[%s4048_s6 + $0x150] sm:$0xf]  ;;  %1885 = vmatpush.bf16.msra.mxu0 %v2623_v17  ;;  %v3708_v31 = vld [vmem:[%s4048_s6 + $0x154] sm:$0xf0]  ;;  %v2679_v34 = vor.u32 %v3692_v28, %v2678_v27  ;;  %v3674_v37 = vld [vmem:[%s4048_s6 + $0x44] sm:$0xf0] }
  0x1f   : > { %v2806_v32 = vld [vmem:[%s4048_s6 + $0x1d0] sm:$0xf]  ;;  %v3724_v33 = vld [vmem:[%s4048_s6 + $0x1d4] sm:$0xf0]  ;;  %1898 = vmatpush.bf16.msra.mxu1 %v2687_v18  ;;  %v2743_v35 = vor.u32 %v3708_v31, %v2742_v29  ;;  %v2670_v38 = vld [vmem:[%s4048_s6 + $0xc0] sm:$0xf]  ;;  %v2607_v45 = vor.u32 %v3674_v37, %v2606_v36 }
  0x20   : > { %1911 = vmatpush.bf16.msra.mxu2 %v2751_v22  ;;  %v2807_v39 = vor.u32 %v3724_v33, %v2806_v32  ;;  %v3690_v40 = vld [vmem:[%s4048_s6 + $0xc4] sm:$0xf0]  ;;  %v2734_v41 = vld [vmem:[%s4048_s6 + $0x140] sm:$0xf]  ;;  %v2598_v48 = vld [vmem:[%s4048_s6 + $0x30] sm:$0xf] }
  0x21   : > { %1924 = vmatpush.bf16.msra.mxu3 %v2815_v26  ;;  %v3706_v42 = vld [vmem:[%s4048_s6 + $0x144] sm:$0xf0]  ;;  %v2798_v43 = vld [vmem:[%s4048_s6 + $0x1c0] sm:$0xf]  ;;  %v2671_v46 = vor.u32 %v3690_v40, %v2670_v38  ;;  %v3672_v49 = vld [vmem:[%s4048_s6 + $0x34] sm:$0xf0] }
  0x22   : > { %v3722_v44 = vld [vmem:[%s4048_s6 + $0x1c4] sm:$0xf0]  ;;  %1886 = vmatpush.bf16.msra.mxu0 %v2615_v30  ;;  %v2735_v47 = vor.u32 %v3706_v42, %v2734_v41  ;;  %v2662_v50 = vld [vmem:[%s4048_s6 + $0xb0] sm:$0xf]  ;;  %v3688_v52 = vld [vmem:[%s4048_s6 + $0xb4] sm:$0xf0]  ;;  %v2599_v57 = vor.u32 %v3672_v49, %v2598_v48 }
  0x23   : > { %1899 = vmatpush.bf16.msra.mxu1 %v2679_v34  ;;  %v2799_v51 = vor.u32 %v3722_v44, %v2798_v43  ;;  %v2726_v53 = vld [vmem:[%s4048_s6 + $0x130] sm:$0xf]  ;;  %v3704_v54 = vld [vmem:[%s4048_s6 + $0x134] sm:$0xf0]  ;;  %v2663_v58 = vor.u32 %v3688_v52, %v2662_v50  ;;  %v2590_v60 = vld [vmem:[%s4048_s6 + $0x20] sm:$0xf] }
  0x24   : > { %1912 = vmatpush.bf16.msra.mxu2 %v2743_v35  ;;  %v2790_v55 = vld [vmem:[%s4048_s6 + $0x1b0] sm:$0xf]  ;;  %v3720_v56 = vld [vmem:[%s4048_s6 + $0x1b4] sm:$0xf0]  ;;  %v2727_v59 = vor.u32 %v3704_v54, %v2726_v53  ;;  %v3670_v61 = vld [vmem:[%s4048_s6 + $0x24] sm:$0xf0] }
  0x25   : > { %1925 = vmatpush.bf16.msra.mxu3 %v2807_v39  ;;  %v2654_v62 = vld [vmem:[%s4048_s6 + $0xa0] sm:$0xf]  ;;  %v2791_v63 = vor.u32 %v3720_v56, %v2790_v55  ;;  %v3686_v0 = vld [vmem:[%s4048_s6 + $0xa4] sm:$0xf0]  ;;  %v2591_v5 = vor.u32 %v3670_v61, %v2590_v60  ;;  %v2582_v8 = vld [vmem:[%s4048_s6 + $0x10] sm:$0xf] }
  0x26   : > { %1887 = vmatpush.bf16.msra.mxu0 %v2607_v45  ;;  %v2718_v1 = vld [vmem:[%s4048_s6 + $0x120] sm:$0xf]  ;;  %v3702_v2 = vld [vmem:[%s4048_s6 + $0x124] sm:$0xf0]  ;;  %v2655_v6 = vor.u32 %v3686_v0, %v2654_v62  ;;  %v3668_v9 = vld [vmem:[%s4048_s6 + $0x14] sm:$0xf0] }
  0x27   : > { %1900 = vmatpush.bf16.msra.mxu1 %v2671_v46  ;;  %v2782_v3 = vld [vmem:[%s4048_s6 + $0x1a0] sm:$0xf]  ;;  %v3718_v4 = vld [vmem:[%s4048_s6 + $0x1a4] sm:$0xf0]  ;;  %v2719_v7 = vor.u32 %v3702_v2, %v2718_v1  ;;  %v2646_v10 = vld [vmem:[%s4048_s6 + $0x90] sm:$0xf]  ;;  %v2583_v17 = vor.u32 %v3668_v9, %v2582_v8 }
  0x28   : > { %1913 = vmatpush.bf16.msra.mxu2 %v2735_v47  ;;  %v2783_v11 = vor.u32 %v3718_v4, %v2782_v3  ;;  %v3684_v12 = vld [vmem:[%s4048_s6 + $0x94] sm:$0xf0]  ;;  %v2710_v13 = vld [vmem:[%s4048_s6 + $0x110] sm:$0xf]  ;;  %v2574_v18 = vld [vmem:[%s4048_s6] sm:$0xf] }
  0x29   : > { %1926 = vmatpush.bf16.msra.mxu3 %v2799_v51  ;;  %v3700_v14 = vld [vmem:[%s4048_s6 + $0x114] sm:$0xf0]  ;;  %v2774_v15 = vld [vmem:[%s4048_s6 + $0x190] sm:$0xf]  ;;  %v3666_v19 = vld [vmem:[%s4048_s6 + $0x4] sm:$0xf0]  ;;  %v2647_v20 = vor.u32 %v3684_v12, %v2646_v10 }
  0x2a   : > { %1888 = vmatpush.bf16.msra.mxu0 %v2599_v57  ;;  %v3716_v16 = vld [vmem:[%s4048_s6 + $0x194] sm:$0xf0]  ;;  %v2711_v21 = vor.u32 %v3700_v14, %v2710_v13  ;;  %v2638_v22 = vld [vmem:[%s4048_s6 + $0x80] sm:$0xf]  ;;  %v3682_v23 = vld [vmem:[%s4048_s6 + $0x84] sm:$0xf0]  ;;  %v2575_v32 = vor.u32 %v3666_v19, %v2574_v18 }
  0x2b   : > { %1901 = vmatpush.bf16.msra.mxu1 %v2663_v58  ;;  %v2702_v24 = vld [vmem:[%s4048_s6 + $0x100] sm:$0xf]  ;;  %v2775_v25 = vor.u32 %v3716_v16, %v2774_v15  ;;  %v3698_v26 = vld [vmem:[%s4048_s6 + $0x104] sm:$0xf0]  ;;  %v2886_v29 = vld [vmem:[%s4048_s6 + $0x270] sm:$0xf]  ;;  %v2639_v36 = vor.u32 %v3682_v23, %v2638_v22 }
  0x2c   : > { %1914 = vmatpush.bf16.msra.mxu2 %v2727_v59  ;;  %v2766_v27 = vld [vmem:[%s4048_s6 + $0x180] sm:$0xf]  ;;  %v3714_v28 = vld [vmem:[%s4048_s6 + $0x184] sm:$0xf0]  ;;  %v3744_v30 = vld [vmem:[%s4048_s6 + $0x274] sm:$0xf0]  ;;  %v2703_v37 = vor.u32 %v3698_v26, %v2702_v24 }
  0x2d   : > { %1927 = vmatpush.bf16.msra.mxu3 %v2791_v63  ;;  %v2950_v31 = vld [vmem:[%s4048_s6 + $0x2f0] sm:$0xf]  ;;  %v3760_v33 = vld [vmem:[%s4048_s6 + $0x2f4] sm:$0xf0]  ;;  %v2767_v40 = vor.u32 %v3714_v28, %v2766_v27  ;;  %v2887_v41 = vor.u32 %v3744_v30, %v2886_v29  ;;  %v2878_v44 = vld [vmem:[%s4048_s6 + $0x260] sm:$0xf] }
  0x2e   : > { %1889 = vmatpush.bf16.msra.mxu0 %v2591_v5  ;;  %v3014_v34 = vld [vmem:[%s4048_s6 + $0x370] sm:$0xf]  ;;  %v3776_v35 = vld [vmem:[%s4048_s6 + $0x374] sm:$0xf0]  ;;  %v2951_v42 = vor.u32 %v3760_v33, %v2950_v31  ;;  %v3742_v45 = vld [vmem:[%s4048_s6 + $0x264] sm:$0xf0] }
  0x2f   : > { %1902 = vmatpush.bf16.msra.mxu1 %v2655_v6  ;;  %v3078_v38 = vld [vmem:[%s4048_s6 + $0x3f0] sm:$0xf]  ;;  %v3792_v39 = vld [vmem:[%s4048_s6 + $0x3f4] sm:$0xf0]  ;;  %v3015_v43 = vor.u32 %v3776_v35, %v3014_v34  ;;  %v2942_v46 = vld [vmem:[%s4048_s6 + $0x2e0] sm:$0xf]  ;;  %v2879_v53 = vor.u32 %v3742_v45, %v2878_v44 }
  0x30   : > { %1915 = vmatpush.bf16.msra.mxu2 %v2719_v7  ;;  %v3079_v47 = vor.u32 %v3792_v39, %v3078_v38  ;;  %v3758_v48 = vld [vmem:[%s4048_s6 + $0x2e4] sm:$0xf0]  ;;  %v3006_v49 = vld [vmem:[%s4048_s6 + $0x360] sm:$0xf]  ;;  %v2870_v54 = vld [vmem:[%s4048_s6 + $0x250] sm:$0xf] }
  0x31   : > { %1928 = vmatpush.bf16.msra.mxu3 %v2783_v11  ;;  %v3774_v50 = vld [vmem:[%s4048_s6 + $0x364] sm:$0xf0]  ;;  %v3070_v51 = vld [vmem:[%s4048_s6 + $0x3e0] sm:$0xf]  ;;  %v2943_v55 = vor.u32 %v3758_v48, %v2942_v46  ;;  %v3740_v57 = vld [vmem:[%s4048_s6 + $0x254] sm:$0xf0] }
  0x32   : > { %1890 = vmatpush.bf16.msra.mxu0 %v2583_v17  ;;  %v3790_v52 = vld [vmem:[%s4048_s6 + $0x3e4] sm:$0xf0]  ;;  %v3007_v56 = vor.u32 %v3774_v50, %v3006_v49  ;;  %v2934_v58 = vld [vmem:[%s4048_s6 + $0x2d0] sm:$0xf]  ;;  %v3756_v61 = vld [vmem:[%s4048_s6 + $0x2d4] sm:$0xf0]  ;;  %v2871_v4 = vor.u32 %v3740_v57, %v2870_v54 }
  0x33   : > { %1903 = vmatpush.bf16.msra.mxu1 %v2647_v20  ;;  %v285_v59 = vld [vmem:[%s4043_s27 + $0x8] sm:$0xff]  ;;  %v3071_v60 = vor.u32 %v3790_v52, %v3070_v51  ;;  %v2998_v62 = vld [vmem:[%s4048_s6 + $0x350] sm:$0xf]  ;;  %v3772_v63 = vld [vmem:[%s4048_s6 + $0x354] sm:$0xf0]  ;;  %v2935_v8 = vor.u32 %v3756_v61, %v2934_v58  ;;  %p3596_p7 = scmp.ne.s32.totalorder %s3977_s18, 6 }
  0x34   : > { %1916 = vmatpush.bf16.msra.mxu2 %v2711_v21  ;;  %v558_v0 = vunpack.c.l.b16 %v285_v59  ;;  %v559_v1 = vunpack.c.h.b16 %v285_v59  ;;  %v3062_v2 = vld [vmem:[%s4048_s6 + $0x3d0] sm:$0xf]  ;;  %v3788_v3 = vld [vmem:[%s4048_s6 + $0x3d4] sm:$0xf0]  ;;  %v284_v6 = vld [vmem:[%s4043_s27] sm:$0xff]  ;;  %v2999_v9 = vor.u32 %v3772_v63, %v2998_v62 }
  0x35   : > { %1929 = vmatpush.bf16.msra.mxu3 %v2775_v25  ;;  %v2862_v10 = vld [vmem:[%s4048_s6 + $0x240] sm:$0xf]  ;;  %v3738_v11 = vld [vmem:[%s4048_s6 + $0x244] sm:$0xf0]  ;;  %v556_v13 = vunpack.c.l.b16 %v284_v6  ;;  %v557_v14 = vunpack.c.h.b16 %v284_v6  ;;  %v3063_v15 = vor.u32 %v3788_v3, %v3062_v2  ;;  %v2854_v26 = vld [vmem:[%s4048_s6 + $0x230] sm:$0xf] }
  0x36   : > { %1891 = vmatpush.bf16.msra.mxu0 %v2575_v32  ;;  %v4140_v5 = vpack.c.b16 %v558_v0, %v558_v0  ;;  %v4143_v7 = vpack.c.b16 %v559_v1, %v559_v1  ;;  %v2926_v12 = vld [vmem:[%s4048_s6 + $0x2c0] sm:$0xf]  ;;  %v3754_v16 = vld [vmem:[%s4048_s6 + $0x2c4] sm:$0xf0]  ;;  %v2863_v23 = vor.u32 %v3738_v11, %v2862_v10  ;;  %v3736_v27 = vld [vmem:[%s4048_s6 + $0x234] sm:$0xf0] }
  0x37   : > { %1904 = vmatpush.bf16.msra.mxu1 %v2639_v36  ;;  %v2990_v17 = vld [vmem:[%s4048_s6 + $0x340] sm:$0xf]  ;;  %v3770_v18 = vld [vmem:[%s4048_s6 + $0x344] sm:$0xf0]  ;;  %v4154_v21 = vpack.c.b16 %v556_v13, %v556_v13  ;;  %v4157_v22 = vpack.c.b16 %v557_v14, %v557_v14  ;;  %v2927_v24 = vor.u32 %v3754_v16, %v2926_v12  ;;  %v2918_v28 = vld [vmem:[%s4048_s6 + $0x2b0] sm:$0xf]  ;;  %v2855_v35 = vor.u32 %v3736_v27, %v2854_v26 }
  0x38   : > { %1917 = vmatpush.bf16.msra.mxu2 %v2703_v37  ;;  %v3054_v19 = vld [vmem:[%s4048_s6 + $0x3c0] sm:$0xf]  ;;  %v3786_v20 = vld [vmem:[%s4048_s6 + $0x3c4] sm:$0xf0]  ;;  %v2991_v25 = vor.u32 %v3770_v18, %v2990_v17  ;;  %v3752_v30 = vld [vmem:[%s4048_s6 + $0x2b4] sm:$0xf0] }
  0x39   : > { %1930 = vmatpush.bf16.msra.mxu3 %v2767_v40  ;;  %v3055_v29 = vor.u32 %v3786_v20, %v3054_v19  ;;  %v2982_v31 = vld [vmem:[%s4048_s6 + $0x330] sm:$0xf]  ;;  %v3768_v32 = vld [vmem:[%s4048_s6 + $0x334] sm:$0xf0]  ;;  %1892 = vmatmul.bf16.vlgmr.msra.gmra.mxu0 %v4154_v21  ;;  %v2919_v36 = vor.u32 %v3752_v30, %v2918_v28  ;;  %v2846_v38 = vld [vmem:[%s4048_s6 + $0x220] sm:$0xf] }
  0x3a   : > { %1936 = vmatpush.bf16.msrb.mxu0 %v2887_v41  ;;  %v3046_v33 = vld [vmem:[%s4048_s6 + $0x3b0] sm:$0xf]  ;;  %v3784_v34 = vld [vmem:[%s4048_s6 + $0x3b4] sm:$0xf0]  ;;  %1905 = vmatmul.bf16.vlgmr.msra.gmra.mxu1 %v4157_v22  ;;  %v2983_v37 = vor.u32 %v3768_v32, %v2982_v31  ;;  %v3734_v39 = vld [vmem:[%s4048_s6 + $0x224] sm:$0xf0] }
  0x3b   : > { %1949 = vmatpush.bf16.msrb.mxu1 %v2951_v42  ;;  %1918 = vmatmul.bf16.vlgmr.msra.gmra.mxu2 %v4140_v5  ;;  %v2910_v40 = vld [vmem:[%s4048_s6 + $0x2a0] sm:$0xf]  ;;  %v3047_v41 = vor.u32 %v3784_v34, %v3046_v33  ;;  %v3750_v42 = vld [vmem:[%s4048_s6 + $0x2a4] sm:$0xf0]  ;;  %v2838_v50 = vld [vmem:[%s4048_s6 + $0x210] sm:$0xf] }
  0x3c   : > { %1962 = vmatpush.bf16.msrb.mxu2 %v3015_v43  ;;  %1931 = vmatmul.bf16.vlgmr.msra.gmra.mxu3 %v4143_v7  ;;  %v2974_v43 = vld [vmem:[%s4048_s6 + $0x320] sm:$0xf]  ;;  %v3766_v44 = vld [vmem:[%s4048_s6 + $0x324] sm:$0xf0]  ;;  %v2911_v48 = vor.u32 %v3750_v42, %v2910_v40  ;;  %v3732_v51 = vld [vmem:[%s4048_s6 + $0x214] sm:$0xf0] }
  0x3d   : > { %1975 = vmatpush.bf16.msrb.mxu3 %v3079_v47  ;;  %v3038_v45 = vld [vmem:[%s4048_s6 + $0x3a0] sm:$0xf]  ;;  %v3782_v46 = vld [vmem:[%s4048_s6 + $0x3a4] sm:$0xf0]  ;;  %v2847_v47 = vor.u32 %v3734_v39, %v2846_v38  ;;  %v2975_v49 = vor.u32 %v3766_v44, %v2974_v43  ;;  %v2902_v52 = vld [vmem:[%s4048_s6 + $0x290] sm:$0xf] }
  0x3e   : > { %1937 = vmatpush.bf16.msrb.mxu0 %v2879_v53  ;;  %v3039_v53 = vor.u32 %v3782_v46, %v3038_v45  ;;  %v3748_v54 = vld [vmem:[%s4048_s6 + $0x294] sm:$0xf0]  ;;  %v3030_v57 = vld [vmem:[%s4048_s6 + $0x390] sm:$0xf]  ;;  %v2830_v59 = vld [vmem:[%s4048_s6 + $0x200] sm:$0xf] }
  0x3f   : > { %1950 = vmatpush.bf16.msrb.mxu1 %v2943_v55  ;;  %v2966_v55 = vld [vmem:[%s4048_s6 + $0x310] sm:$0xf]  ;;  %v3780_v58 = vld [vmem:[%s4048_s6 + $0x394] sm:$0xf0]  ;;  %v3730_v61 = vld [vmem:[%s4048_s6 + $0x204] sm:$0xf0]  ;;  %v2903_v0 = vor.u32 %v3748_v54, %v2902_v52 }
  0x40   : > { %1963 = vmatpush.bf16.msrb.mxu2 %v3007_v56  ;;  %v3764_v56 = vld [vmem:[%s4048_s6 + $0x314] sm:$0xf0]  ;;  %v2894_v62 = vld [vmem:[%s4048_s6 + $0x280] sm:$0xf]  ;;  %v3746_v63 = vld [vmem:[%s4048_s6 + $0x284] sm:$0xf0]  ;;  %v3031_v6 = vor.u32 %v3780_v58, %v3030_v57  ;;  %v2831_v14 = vor.u32 %v3730_v61, %v2830_v59 }
  0x41   : > { %1976 = vmatpush.bf16.msrb.mxu3 %v3071_v60  ;;  %v2839_v60 = vor.u32 %v3732_v51, %v2838_v50  ;;  %v2967_v1 = vor.u32 %v3764_v56, %v2966_v55  ;;  %v2958_v2 = vld [vmem:[%s4048_s6 + $0x300] sm:$0xf]  ;;  %v3762_v3 = vld [vmem:[%s4048_s6 + $0x304] sm:$0xf0]  ;;  %v286_v10 = vld [vmem:[%s4043_s27 + $0x10] sm:$0xff]  ;;  %v2895_v19 = vor.u32 %v3746_v63, %v2894_v62 }
  0x42   : > { %1938 = vmatpush.bf16.msrb.mxu0 %v2871_v4  ;;  %v287_v4 = vld [vmem:[%s4043_s27 + $0x18] sm:$0xff]  ;;  %v3142_v11 = vld [vmem:[%s4048_s6 + $0x470] sm:$0xf]  ;;  %v2959_v20 = vor.u32 %v3762_v3, %v2958_v2  ;;  %v3134_v32 = vld [vmem:[%s4048_s6 + $0x460] sm:$0xf] }
  0x43   : > { %1951 = vmatpush.bf16.msrb.mxu1 %v2935_v8  ;;  %v3022_v8 = vld [vmem:[%s4048_s6 + $0x380] sm:$0xf]  ;;  %v3808_v12 = vld [vmem:[%s4048_s6 + $0x474] sm:$0xf0]  ;;  %v3206_v13 = vld [vmem:[%s4048_s6 + $0x4f0] sm:$0xf]  ;;  %v562_v18 = vunpack.c.l.b16 %v287_v4  ;;  %v563_v26 = vunpack.c.h.b16 %v287_v4 }
  0x44   : > { %1964 = vmatpush.bf16.msrb.mxu2 %v2999_v9  ;;  %v3778_v9 = vld [vmem:[%s4048_s6 + $0x384] sm:$0xf0]  ;;  %v3270_v16 = vld [vmem:[%s4048_s6 + $0x570] sm:$0xf]  ;;  %v3840_v17 = vld [vmem:[%s4048_s6 + $0x574] sm:$0xf0]  ;;  %v3143_v28 = vor.u32 %v3808_v12, %v3142_v11 }
  0x45   : > { %1977 = vmatpush.bf16.msrb.mxu3 %v3063_v15  ;;  %v3824_v15 = vld [vmem:[%s4048_s6 + $0x4f4] sm:$0xf0]  ;;  %v3023_v27 = vor.u32 %v3778_v9, %v3022_v8  ;;  %v3271_v31 = vor.u32 %v3840_v17, %v3270_v16  ;;  %v3806_v33 = vld [vmem:[%s4048_s6 + $0x464] sm:$0xf0]  ;;  %v3198_v34 = vld [vmem:[%s4048_s6 + $0x4e0] sm:$0xf]  ;;  %v4209_v39 = vpack.c.b16 %v562_v18, %v562_v18  ;;  %v4215_v43 = vpack.c.b16 %v563_v26, %v563_v26 }
  0x46   : > { %1939 = vmatpush.bf16.msrb.mxu0 %v2863_v23  ;;  %v3334_v23 = vld [vmem:[%s4048_s6 + $0x5f0] sm:$0xf]  ;;  %v3207_v30 = vor.u32 %v3824_v15, %v3206_v13  ;;  %v3838_v38 = vld [vmem:[%s4048_s6 + $0x564] sm:$0xf0]  ;;  %v3326_v40 = vld [vmem:[%s4048_s6 + $0x5e0] sm:$0xf]  ;;  %v3135_v44 = vor.u32 %v3806_v33, %v3134_v32 }
  0x47   : > { %1952 = vmatpush.bf16.msrb.mxu1 %v2927_v24  ;;  %v3856_v24 = vld [vmem:[%s4048_s6 + $0x5f4] sm:$0xf0]  ;;  %v3190_v50 = vld [vmem:[%s4048_s6 + $0x4d0] sm:$0xf]  ;;  %v3802_v61 = vld [vmem:[%s4048_s6 + $0x444] sm:$0xf0] }
  0x48   : > { %1965 = vmatpush.bf16.msrb.mxu2 %v2991_v25  ;;  %v560_v25 = vunpack.c.l.b16 %v286_v10  ;;  %v3820_v52 = vld [vmem:[%s4048_s6 + $0x4d4] sm:$0xf0]  ;;  %v3318_v55 = vld [vmem:[%s4048_s6 + $0x5d0] sm:$0xf]  ;;  %v3182_v62 = vld [vmem:[%s4048_s6 + $0x4c0] sm:$0xf] }
  0x49   : > { %1978 = vmatpush.bf16.msrb.mxu3 %v3055_v29  ;;  %v561_v29 = vunpack.c.h.b16 %v286_v10  ;;  %v3836_v54 = vld [vmem:[%s4048_s6 + $0x554] sm:$0xf0]  ;;  %v3191_v58 = vor.u32 %v3820_v52, %v3190_v50  ;;  %v3834_v2 = vld [vmem:[%s4048_s6 + $0x544] sm:$0xf0]  ;;  %v3310_v3 = vld [vmem:[%s4048_s6 + $0x5c0] sm:$0xf] }
  0x4a   : > { %1940 = vmatpush.bf16.msrb.mxu0 %v2855_v35  ;;  %v3335_v35 = vor.u32 %v3856_v24, %v3334_v23  ;;  %v4213_v42 = vpack.c.b16 %v560_v25, %v560_v25  ;;  %v3852_v56 = vld [vmem:[%s4048_s6 + $0x5d4] sm:$0xf0]  ;;  %v3850_v4 = vld [vmem:[%s4048_s6 + $0x5c4] sm:$0xf0]  ;;  %v3110_v10 = vld [vmem:[%s4048_s6 + $0x430] sm:$0xf] }
  0x4b   : > { %1953 = vmatpush.bf16.msrb.mxu1 %v2919_v36  ;;  %v3822_v36 = vld [vmem:[%s4048_s6 + $0x4e4] sm:$0xf0]  ;;  %v4217_v45 = vpack.c.b16 %v561_v29, %v561_v29  ;;  %v3319_v63 = vor.u32 %v3852_v56, %v3318_v55  ;;  %v3800_v11 = vld [vmem:[%s4048_s6 + $0x434] sm:$0xf0]  ;;  %v3174_v12 = vld [vmem:[%s4048_s6 + $0x4b0] sm:$0xf]  ;;  %v3311_v13 = vor.u32 %v3850_v4, %v3310_v3 }
  0x4c   : > { %1966 = vmatpush.bf16.msrb.mxu2 %v2983_v37  ;;  %v3262_v37 = vld [vmem:[%s4048_s6 + $0x560] sm:$0xf]  ;;  %v3199_v46 = vor.u32 %v3822_v36, %v3198_v34  ;;  %v3238_v15 = vld [vmem:[%s4048_s6 + $0x530] sm:$0xf]  ;;  %v3832_v16 = vld [vmem:[%s4048_s6 + $0x534] sm:$0xf0] }
  0x4d   : > { %1979 = vmatpush.bf16.msrb.mxu3 %v3047_v41  ;;  %v3854_v41 = vld [vmem:[%s4048_s6 + $0x5e4] sm:$0xf0]  ;;  %v3302_v17 = vld [vmem:[%s4048_s6 + $0x5b0] sm:$0xf]  ;;  %v3848_v18 = vld [vmem:[%s4048_s6 + $0x5b4] sm:$0xf0]  ;;  %v3239_v23 = vor.u32 %v3832_v16, %v3238_v15 }
  0x4e   : > { %1941 = vmatpush.bf16.msrb.mxu0 %v2847_v47  ;;  %v3263_v47 = vor.u32 %v3838_v38, %v3262_v37  ;;  %v3327_v51 = vor.u32 %v3854_v41, %v3326_v40  ;;  %v3102_v24 = vld [vmem:[%s4048_s6 + $0x420] sm:$0xf]  ;;  %v3798_v25 = vld [vmem:[%s4048_s6 + $0x424] sm:$0xf0]  ;;  %v3094_v36 = vld [vmem:[%s4048_s6 + $0x410] sm:$0xf] }
  0x4f   : > { %1954 = vmatpush.bf16.msrb.mxu1 %v2911_v48  ;;  %v3126_v48 = vld [vmem:[%s4048_s6 + $0x450] sm:$0xf]  ;;  %v3166_v26 = vld [vmem:[%s4048_s6 + $0x4a0] sm:$0xf]  ;;  %v3846_v32 = vld [vmem:[%s4048_s6 + $0x5a4] sm:$0xf0]  ;;  %v3103_v33 = vor.u32 %v3798_v25, %v3102_v24 }
  0x50   : > { %1967 = vmatpush.bf16.msrb.mxu2 %v2975_v49  ;;  %v3804_v49 = vld [vmem:[%s4048_s6 + $0x454] sm:$0xf0]  ;;  %v3230_v29 = vld [vmem:[%s4048_s6 + $0x520] sm:$0xf]  ;;  %v3158_v38 = vld [vmem:[%s4048_s6 + $0x490] sm:$0xf] }
  0x51   : > { %1980 = vmatpush.bf16.msrb.mxu3 %v3039_v53  ;;  %v3254_v53 = vld [vmem:[%s4048_s6 + $0x550] sm:$0xf]  ;;  %v3127_v57 = vor.u32 %v3804_v49, %v3126_v48  ;;  %v3796_v37 = vld [vmem:[%s4048_s6 + $0x414] sm:$0xf0]  ;;  %v3086_v49 = vld [vmem:[%s4048_s6 + $0x400] sm:$0xf] }
  0x52   : > { %1942 = vmatpush.bf16.msrb.mxu0 %v2839_v60  ;;  %v3255_v59 = vor.u32 %v3836_v54, %v3254_v53  ;;  %v3118_v60 = vld [vmem:[%s4048_s6 + $0x440] sm:$0xf]  ;;  %v3812_v41 = vld [vmem:[%s4048_s6 + $0x494] sm:$0xf0]  ;;  %v3095_v50 = vor.u32 %v3796_v37, %v3094_v36  ;;  %v3810_v53 = vld [vmem:[%s4048_s6 + $0x484] sm:$0xf0] }
  0x53   : > { %1955 = vmatpush.bf16.msrb.mxu1 %v2903_v0  ;;  %v3818_v0 = vld [vmem:[%s4048_s6 + $0x4c4] sm:$0xf0]  ;;  %v3844_v48 = vld [vmem:[%s4048_s6 + $0x594] sm:$0xf0]  ;;  %v3150_v52 = vld [vmem:[%s4048_s6 + $0x480] sm:$0xf]  ;;  %v3159_v54 = vor.u32 %v3812_v41, %v3158_v38 }
  0x54   : > { %1968 = vmatpush.bf16.msrb.mxu2 %v2967_v1  ;;  %v3246_v1 = vld [vmem:[%s4048_s6 + $0x540] sm:$0xf]  ;;  %v3183_v8 = vor.u32 %v3818_v0, %v3182_v62  ;;  %v289_v62 = vld [vmem:[%s4043_s27 + $0x28] sm:$0xff]  ;;  %v3872_v0 = vld [vmem:[%s4048_s6 + $0x674] sm:$0xf0] }
  0x55   : > { %1981 = vmatpush.bf16.msrb.mxu3 %v3031_v6  ;;  %v3119_v6 = vor.u32 %v3802_v61, %v3118_v60  ;;  %v3247_v9 = vor.u32 %v3834_v2, %v3246_v1  ;;  %v3214_v56 = vld [vmem:[%s4048_s6 + $0x500] sm:$0xf]  ;;  %v3842_v61 = vld [vmem:[%s4048_s6 + $0x584] sm:$0xf0]  ;;  %v3462_v1 = vld [vmem:[%s4048_s6 + $0x6f0] sm:$0xf] }
  0x56   : > { %1943 = vmatpush.bf16.msrb.mxu0 %v2831_v14  ;;  %v3816_v14 = vld [vmem:[%s4048_s6 + $0x4b4] sm:$0xf0]  ;;  %v3278_v60 = vld [vmem:[%s4048_s6 + $0x580] sm:$0xf]  ;;  %v3526_v4 = vld [vmem:[%s4048_s6 + $0x770] sm:$0xf] }
  0x57   : > { %1956 = vmatpush.bf16.msrb.mxu1 %v2895_v19  ;;  %v3111_v19 = vor.u32 %v3800_v11, %v3110_v10  ;;  %v3888_v3 = vld [vmem:[%s4048_s6 + $0x6f4] sm:$0xf0]  ;;  %v3590_v11 = vld [vmem:[%s4048_s6 + $0x7f0] sm:$0xf]  ;;  %v3279_v15 = vor.u32 %v3842_v61, %v3278_v60  ;;  %v3454_v24 = vld [vmem:[%s4048_s6 + $0x6e0] sm:$0xf] }
  0x58   : > { %1969 = vmatpush.bf16.msrb.mxu2 %v2959_v20  ;;  %v3175_v20 = vor.u32 %v3816_v14, %v3174_v12  ;;  %v3920_v12 = vld [vmem:[%s4048_s6 + $0x7f4] sm:$0xf0]  ;;  %v3382_v38 = vld [vmem:[%s4048_s6 + $0x650] sm:$0xf]  ;;  %v3898_v60 = vld [vmem:[%s4048_s6 + $0x744] sm:$0xf0] }
  0x59   : > { %1982 = vmatpush.bf16.msrb.mxu3 %v3023_v27  ;;  %1944 = vmatmul.bf16.vlgmr.msrb.gmra.mxu0 %v4213_v42  ;;  %v3303_v27 = vor.u32 %v3848_v18, %v3302_v17  ;;  %v567_v17 = vunpack.c.h.b16 %v289_v62  ;;  %v3463_v18 = vor.u32 %v3888_v3, %v3462_v1  ;;  %v3591_v25 = vor.u32 %v3920_v12, %v3590_v11  ;;  %v3446_v41 = vld [vmem:[%s4048_s6 + $0x6d0] sm:$0xf]  ;;  %v3566_v61 = vld [vmem:[%s4048_s6 + $0x7c0] sm:$0xf]  ;;  %v3864_v3 = vld [vmem:[%s4048_s6 + $0x634] sm:$0xf0] }
  0x5a   : > { %1988 = vmatpush.bf16.msra.mxu0 %v3143_v28  ;;  %1957 = vmatmul.bf16.vlgmr.msrb.gmra.mxu1 %v4217_v45  ;;  %v3814_v28 = vld [vmem:[%s4048_s6 + $0x4a4] sm:$0xf0]  ;;  %v3558_v11 = vld [vmem:[%s4048_s6 + $0x7b0] sm:$0xf]  ;;  %v3912_v12 = vld [vmem:[%s4048_s6 + $0x7b4] sm:$0xf0] }
  0x5b   : > { %2001 = vmatpush.bf16.msra.mxu1 %v3207_v30  ;;  %1970 = vmatmul.bf16.vlgmr.msrb.gmra.mxu2 %v4209_v39  ;;  %v3830_v30 = vld [vmem:[%s4048_s6 + $0x524] sm:$0xf0]  ;;  %v3167_v34 = vor.u32 %v3814_v28, %v3166_v26  ;;  %v3518_v28 = vld [vmem:[%s4048_s6 + $0x760] sm:$0xf] }
  0x5c   : > { %2014 = vmatpush.bf16.msra.mxu2 %v3271_v31  ;;  %1983 = vmatmul.bf16.vlgmr.msrb.gmra.mxu3 %v4215_v43  ;;  %v3294_v31 = vld [vmem:[%s4048_s6 + $0x5a0] sm:$0xf] }
  0x5d   : > { %2027 = vmatpush.bf16.msra.mxu3 %v3335_v35  ;;  %v3231_v35 = vor.u32 %v3830_v30, %v3230_v29  ;;  %v3295_v40 = vor.u32 %v3846_v32, %v3294_v31  ;;  %v3902_v29 = vld [vmem:[%s4048_s6 + $0x764] sm:$0xf0]  ;;  %v3582_v32 = vld [vmem:[%s4048_s6 + $0x7e0] sm:$0xf] }
  0x5e   : > { %1989 = vmatpush.bf16.msra.mxu0 %v3135_v44  ;;  %v3222_v44 = vld [vmem:[%s4048_s6 + $0x510] sm:$0xf]  ;;  %v3519_v37 = vor.u32 %v3902_v29, %v3518_v28 }
  0x5f   : > { %2002 = vmatpush.bf16.msra.mxu1 %v3199_v46  ;;  %v3828_v46 = vld [vmem:[%s4048_s6 + $0x514] sm:$0xf0] }
  0x60   : > { %2015 = vmatpush.bf16.msra.mxu2 %v3263_v47  ;;  %v3286_v47 = vld [vmem:[%s4048_s6 + $0x590] sm:$0xf]  ;;  %v3223_v55 = vor.u32 %v3828_v46, %v3222_v44  ;;  %v3884_v46 = vld [vmem:[%s4048_s6 + $0x6d4] sm:$0xf0] }
  0x61   : > { %2028 = vmatpush.bf16.msra.mxu3 %v3327_v51  ;;  %v3794_v51 = vld [vmem:[%s4048_s6 + $0x404] sm:$0xf0] }
  0x62   : > { %1990 = vmatpush.bf16.msra.mxu0 %v3127_v57  ;;  %v3826_v57 = vld [vmem:[%s4048_s6 + $0x504] sm:$0xf0]  ;;  %v3087_v2 = vor.u32 %v3794_v51, %v3086_v49  ;;  %v3574_v49 = vld [vmem:[%s4048_s6 + $0x7d0] sm:$0xf] }
  0x63   : > { %2003 = vmatpush.bf16.msra.mxu1 %v3191_v58  ;;  %v288_v58 = vld [vmem:[%s4043_s27 + $0x20] sm:$0xff]  ;;  %v3215_v10 = vor.u32 %v3826_v57, %v3214_v56 }
  0x64   : > { %2016 = vmatpush.bf16.msra.mxu2 %v3255_v59  ;;  %v3287_v59 = vor.u32 %v3844_v48, %v3286_v47  ;;  %v565_v14 = vunpack.c.h.b16 %v288_v58  ;;  %v3510_v47 = vld [vmem:[%s4048_s6 + $0x750] sm:$0xf]  ;;  %v3900_v48 = vld [vmem:[%s4048_s6 + $0x754] sm:$0xf0]  ;;  %v3438_v56 = vld [vmem:[%s4048_s6 + $0x6c0] sm:$0xf] }
  0x65   : > { %2029 = vmatpush.bf16.msra.mxu3 %v3319_v63  ;;  %v3398_v63 = vld [vmem:[%s4048_s6 + $0x670] sm:$0xf] }
  0x66   : > { %1991 = vmatpush.bf16.msra.mxu0 %v3119_v6  ;;  %v3904_v6 = vld [vmem:[%s4048_s6 + $0x774] sm:$0xf0]  ;;  %v3399_v16 = vor.u32 %v3872_v0, %v3398_v63  ;;  %v4291_v31 = vpack.c.b16 %v565_v14, %v565_v14 }
  0x67   : > { %2004 = vmatpush.bf16.msra.mxu1 %v3183_v8  ;;  %v564_v8 = vunpack.c.l.b16 %v288_v58  ;;  %v3882_v58 = vld [vmem:[%s4048_s6 + $0x6c4] sm:$0xf0] }
  0x68   : > { %2017 = vmatpush.bf16.msra.mxu2 %v3247_v9  ;;  %v3151_v9 = vor.u32 %v3810_v53, %v3150_v52  ;;  %v3447_v52 = vor.u32 %v3884_v46, %v3446_v41  ;;  %v3511_v53 = vor.u32 %v3900_v48, %v3510_v47  ;;  %v3439_v0 = vor.u32 %v3882_v58, %v3438_v56  ;;  %v3892_v41 = vld [vmem:[%s4048_s6 + $0x714] sm:$0xf0]  ;;  %v3342_v47 = vld [vmem:[%s4048_s6 + $0x600] sm:$0xf]  ;;  %v290_v56 = vld [vmem:[%s4043_s27 + $0x30] sm:$0xff] }
  0x69   : > { %2030 = vmatpush.bf16.msra.mxu3 %v3311_v13  ;;  %v566_v13 = vunpack.c.l.b16 %v289_v62  ;;  %v4284_v26 = vpack.c.b16 %v564_v8, %v564_v8  ;;  %v3914_v62 = vld [vmem:[%s4048_s6 + $0x7c4] sm:$0xf0]  ;;  %v3880_v8 = vld [vmem:[%s4048_s6 + $0x6b4] sm:$0xf0]  ;;  %v3534_v58 = vld [vmem:[%s4048_s6 + $0x780] sm:$0xf] }
  0x6a   : > { %1992 = vmatpush.bf16.msra.mxu0 %v3111_v19  ;;  %v3527_v19 = vor.u32 %v3904_v6, %v3526_v4  ;;  %v3430_v4 = vld [vmem:[%s4048_s6 + $0x6b0] sm:$0xf]  ;;  %v3567_v6 = vor.u32 %v3914_v62, %v3566_v61  ;;  %v3908_v46 = vld [vmem:[%s4048_s6 + $0x794] sm:$0xf0]  ;;  %v3679_v61 = vld [vmem:[%s4048_s6 + $0x74] sm:$0xf] }
  0x6b   : > { %2005 = vmatpush.bf16.msra.mxu1 %v3175_v20  ;;  %v3390_v20 = vld [vmem:[%s4048_s6 + $0x660] sm:$0xf]  ;;  %v4289_v30 = vpack.c.b16 %v566_v13, %v566_v13  ;;  %v3431_v14 = vor.u32 %v3880_v8, %v3430_v4  ;;  %v2632_v62 = vld [vmem:[%s4048_s6 + $0x78] sm:$0xf0]  ;;  %v568_v4 = vunpack.c.l.b16 %v290_v56 }
  0x6c   : > { %2018 = vmatpush.bf16.msra.mxu2 %v3239_v23  ;;  %v3870_v23 = vld [vmem:[%s4048_s6 + $0x664] sm:$0xf0] }
  0x6d   : > { %2031 = vmatpush.bf16.msra.mxu3 %v3303_v27  ;;  %v3886_v27 = vld [vmem:[%s4048_s6 + $0x6e4] sm:$0xf0] }
  0x6e   : > { %1993 = vmatpush.bf16.msra.mxu0 %v3103_v33  ;;  %v3918_v33 = vld [vmem:[%s4048_s6 + $0x7e4] sm:$0xf0]  ;;  %v3455_v36 = vor.u32 %v3886_v27, %v3454_v24 }
  0x6f   : > { %2006 = vmatpush.bf16.msra.mxu1 %v3167_v34  ;;  %v4295_v34 = vpack.c.b16 %v567_v17, %v567_v17  ;;  %v3583_v44 = vor.u32 %v3918_v33, %v3582_v32  ;;  %v3862_v17 = vld [vmem:[%s4048_s6 + $0x624] sm:$0xf0]  ;;  %v3350_v33 = vld [vmem:[%s4048_s6 + $0x610] sm:$0xf] }
  0x70   : > { %2019 = vmatpush.bf16.msra.mxu2 %v3231_v35  ;;  %v3391_v35 = vor.u32 %v3870_v23, %v3390_v20  ;;  %v3878_v20 = vld [vmem:[%s4048_s6 + $0x6a4] sm:$0xf0]  ;;  %v3486_v23 = vld [vmem:[%s4048_s6 + $0x720] sm:$0xf] }
  0x71   : > { %2032 = vmatpush.bf16.msra.mxu3 %v3295_v40  ;;  %v3868_v40 = vld [vmem:[%s4048_s6 + $0x654] sm:$0xf0]  ;;  %v3894_v24 = vld [vmem:[%s4048_s6 + $0x724] sm:$0xf0] }
  0x72   : > { %1994 = vmatpush.bf16.msra.mxu0 %v3095_v50  ;;  %v3916_v50 = vld [vmem:[%s4048_s6 + $0x7d4] sm:$0xf0]  ;;  %v3383_v51 = vor.u32 %v3868_v40, %v3382_v38  ;;  %v3910_v27 = vld [vmem:[%s4048_s6 + $0x7a4] sm:$0xf0]  ;;  %v3487_v32 = vor.u32 %v3894_v24, %v3486_v23  ;;  %v3478_v40 = vld [vmem:[%s4048_s6 + $0x710] sm:$0xf]  ;;  %v4362_v24 = vpack.c.b16 %v568_v4, %v568_v4 }
  0x73   : > { %2007 = vmatpush.bf16.msra.mxu1 %v3159_v54  ;;  %v3374_v54 = vld [vmem:[%s4048_s6 + $0x640] sm:$0xf]  ;;  %v3575_v57 = vor.u32 %v3916_v50, %v3574_v49  ;;  %v3876_v38 = vld [vmem:[%s4048_s6 + $0x694] sm:$0xf0]  ;;  %v3858_v49 = vld [vmem:[%s4048_s6 + $0x604] sm:$0xf0] }
  0x74   : > { %2020 = vmatpush.bf16.msra.mxu2 %v3223_v55  ;;  %v3866_v55 = vld [vmem:[%s4048_s6 + $0x644] sm:$0xf0]  ;;  %v3406_v50 = vld [vmem:[%s4048_s6 + $0x680] sm:$0xf]  ;;  %v3671_v4 = vld [vmem:[%s4048_s6 + $0x34] sm:$0xf] }
  0x75   : > { %2033 = vmatpush.bf16.msra.mxu3 %v3287_v59  ;;  %v3502_v59 = vld [vmem:[%s4048_s6 + $0x740] sm:$0xf]  ;;  %v3375_v63 = vor.u32 %v3866_v55, %v3374_v54  ;;  %v3890_v55 = vld [vmem:[%s4048_s6 + $0x704] sm:$0xf0] }
  0x76   : > { %1995 = vmatpush.bf16.msra.mxu0 %v3087_v2  ;;  %v3503_v1 = vor.u32 %v3898_v60, %v3502_v59  ;;  %v3366_v2 = vld [vmem:[%s4048_s6 + $0x630] sm:$0xf]  ;;  %v3470_v54 = vld [vmem:[%s4048_s6 + $0x700] sm:$0xf]  ;;  %v3906_v59 = vld [vmem:[%s4048_s6 + $0x784] sm:$0xf0] }
  0x77   : > { %2008 = vmatpush.bf16.msra.mxu1 %v3151_v9  ;;  %v3494_v9 = vld [vmem:[%s4048_s6 + $0x730] sm:$0xf]  ;;  %v3367_v13 = vor.u32 %v3864_v3, %v3366_v2  ;;  %v291_v60 = vld [vmem:[%s4043_s27 + $0x38] sm:$0xff]  ;;  %v3711_v2 = vld [vmem:[%s4048_s6 + $0x174] sm:$0xf]  ;;  %v3471_v8 = vor.u32 %v3890_v55, %v3470_v54 }
  0x78   : > { %2021 = vmatpush.bf16.msra.mxu2 %v3215_v10  ;;  %v3896_v10 = vld [vmem:[%s4048_s6 + $0x734] sm:$0xf0]  ;;  %v2760_v3 = vld [vmem:[%s4048_s6 + $0x178] sm:$0xf0] }
  0x79   : > { %2034 = vmatpush.bf16.msra.mxu3 %v3279_v15  ;;  %1996 = vmatmul.bf16.vlgmr.msra.gmra.mxu0 %v4284_v26  ;;  %v3495_v15 = vor.u32 %v3896_v10, %v3494_v9  ;;  %v3727_v9 = vld [vmem:[%s4048_s6 + $0x1f4] sm:$0xf]  ;;  %v2824_v10 = vld [vmem:[%s4048_s6 + $0x1f8] sm:$0xf0] }
  0x7a   : > { %2040 = vmatpush.bf16.msrb.mxu0 %v3399_v16  ;;  %2009 = vmatmul.bf16.vlgmr.msra.gmra.mxu1 %v4291_v31  ;;  %v3358_v16 = vld [vmem:[%s4048_s6 + $0x620] sm:$0xf]  ;;  %v2827_v23 = vor.u32 %v3727_v9, %v2824_v10  ;;  %v2664_v10 = vld [vmem:[%s4048_s6 + $0xb8] sm:$0xf0] }
  0x7b   : > { %2053 = vmatpush.bf16.msrb.mxu1 %v3463_v18  ;;  %2022 = vmatmul.bf16.vlgmr.msra.gmra.mxu2 %v4289_v30  ;;  %v3422_v18 = vld [vmem:[%s4048_s6 + $0x6a0] sm:$0xf]  ;;  %v3359_v28 = vor.u32 %v3862_v17, %v3358_v16  ;;  %v2763_v17 = vor.u32 %v3711_v2, %v2760_v3 }
  0x7c   : > { %2066 = vmatpush.bf16.msrb.mxu2 %v3527_v19  ;;  %2035 = vmatmul.bf16.vlgmr.msra.gmra.mxu3 %v4295_v34  ;;  %v3559_v19 = vor.u32 %v3912_v12, %v3558_v11  ;;  %v3423_v29 = vor.u32 %v3878_v20, %v3422_v18  ;;  %v570_v11 = vunpack.c.l.b16 %v291_v60  ;;  %v569_v12 = vunpack.c.h.b16 %v290_v56  ;;  %v3677_v18 = vld [vmem:[%s4048_s6 + $0x64] sm:$0xf] }
  0x7d   : > { %2079 = vmatpush.bf16.msrb.mxu3 %v3591_v25  ;;  %v3550_v25 = vld [vmem:[%s4048_s6 + $0x7a0] sm:$0xf]  ;;  %v3693_v20 = vld [vmem:[%s4048_s6 + $0xe4] sm:$0xf] }
  0x7e   : > { %2041 = vmatpush.bf16.msrb.mxu0 %v3391_v35  ;;  %v3860_v35 = vld [vmem:[%s4048_s6 + $0x614] sm:$0xf0]  ;;  %v3673_v56 = vld [vmem:[%s4048_s6 + $0x44] sm:$0xf] }
  0x7f   : > { %2054 = vmatpush.bf16.msrb.mxu1 %v3455_v36  ;;  %v3414_v36 = vld [vmem:[%s4048_s6 + $0x690] sm:$0xf]  ;;  %v3351_v48 = vor.u32 %v3860_v35, %v3350_v33  ;;  %v3725_v33 = vld [vmem:[%s4048_s6 + $0x1e4] sm:$0xf]  ;;  %v2816_v35 = vld [vmem:[%s4048_s6 + $0x1e8] sm:$0xf0] }
  0x80   : > { %2067 = vmatpush.bf16.msrb.mxu2 %v3519_v37  ;;  %v3551_v37 = vor.u32 %v3910_v27, %v3550_v25  ;;  %v2688_v25 = vld [vmem:[%s4048_s6 + $0xe8] sm:$0xf0]  ;;  %v3709_v27 = vld [vmem:[%s4048_s6 + $0x164] sm:$0xf] }
  0x81   : > { %2080 = vmatpush.bf16.msrb.mxu3 %v3583_v44  ;;  %v3542_v44 = vld [vmem:[%s4048_s6 + $0x790] sm:$0xf] }
  0x82   : > { %2042 = vmatpush.bf16.msrb.mxu0 %v3383_v51  ;;  %v3874_v51 = vld [vmem:[%s4048_s6 + $0x684] sm:$0xf0] }
  0x83   : > { %2055 = vmatpush.bf16.msrb.mxu1 %v3447_v52  ;;  %v3415_v52 = vor.u32 %v3876_v38, %v3414_v36  ;;  %v2691_v38 = vor.u32 %v3693_v20, %v2688_v25  ;;  %v3685_v20 = vld [vmem:[%s4048_s6 + $0xa4] sm:$0xf]  ;;  %v2656_v25 = vld [vmem:[%s4048_s6 + $0xa8] sm:$0xf0] }
  0x84   : > { %2068 = vmatpush.bf16.msrb.mxu2 %v3511_v53  ;;  %v3479_v53 = vor.u32 %v3892_v41, %v3478_v40  ;;  %v3675_v41 = vld [vmem:[%s4048_s6 + $0x54] sm:$0xf] }
  0x85   : > { %2081 = vmatpush.bf16.msrb.mxu3 %v3575_v57  ;;  %v3543_v57 = vor.u32 %v3908_v46, %v3542_v44  ;;  %v2616_v44 = vld [vmem:[%s4048_s6 + $0x58] sm:$0xf0]  ;;  %v3691_v46 = vld [vmem:[%s4048_s6 + $0xd4] sm:$0xf] }
  0x86   : > { %2043 = vmatpush.bf16.msrb.mxu0 %v3375_v63  ;;  %v3695_v63 = vld [vmem:[%s4048_s6 + $0xf4] sm:$0xf] }
  0x87   : > { %2056 = vmatpush.bf16.msrb.mxu1 %v3439_v0  ;;  %v3343_v0 = vor.u32 %v3858_v49, %v3342_v47  ;;  %v2819_v47 = vor.u32 %v3725_v33, %v2816_v35  ;;  %v3707_v49 = vld [vmem:[%s4048_s6 + $0x154] sm:$0xf]  ;;  %v3717_v33 = vld [vmem:[%s4048_s6 + $0x1a4] sm:$0xf]  ;;  %v2784_v35 = vld [vmem:[%s4048_s6 + $0x1a8] sm:$0xf0] }
  0x88   : > { %2069 = vmatpush.bf16.msrb.mxu2 %v3503_v1  ;;  %v2696_v1 = vld [vmem:[%s4048_s6 + $0xf8] sm:$0xf0] }
  0x89   : > { %2082 = vmatpush.bf16.msrb.mxu3 %v3567_v6  ;;  %v3407_v6 = vor.u32 %v3874_v51, %v3406_v50  ;;  %v2699_v16 = vor.u32 %v3695_v63, %v2696_v1  ;;  %v2744_v50 = vld [vmem:[%s4048_s6 + $0x158] sm:$0xf0]  ;;  %v3723_v51 = vld [vmem:[%s4048_s6 + $0x1d4] sm:$0xf]  ;;  %v3721_v63 = vld [vmem:[%s4048_s6 + $0x1c4] sm:$0xf] }
  0x8a   : > { %2044 = vmatpush.bf16.msrb.mxu0 %v3367_v13  ;;  %v3535_v13 = vor.u32 %v3906_v59, %v3534_v58  ;;  %v2747_v55 = vor.u32 %v3707_v49, %v2744_v50  ;;  %v3689_v58 = vld [vmem:[%s4048_s6 + $0xc4] sm:$0xf]  ;;  %v3699_v49 = vld [vmem:[%s4048_s6 + $0x114] sm:$0xf]  ;;  %v2712_v50 = vld [vmem:[%s4048_s6 + $0x118] sm:$0xf0] }
  0x8b   : > { %2057 = vmatpush.bf16.msrb.mxu1 %v3431_v14  ;;  %v2635_v14 = vor.u32 %v3679_v61, %v2632_v62  ;;  %v3705_v61 = vld [vmem:[%s4048_s6 + $0x144] sm:$0xf]  ;;  %v2736_v62 = vld [vmem:[%s4048_s6 + $0x148] sm:$0xf0] }
  0x8c   : > { %2070 = vmatpush.bf16.msrb.mxu2 %v3495_v15  ;;  %v571_v15 = vunpack.c.h.b16 %v291_v60  ;;  %v2672_v60 = vld [vmem:[%s4048_s6 + $0xc8] sm:$0xf0]  ;;  %v2739_v3 = vor.u32 %v3705_v61, %v2736_v62 }
  0x8d   : > { %2083 = vmatpush.bf16.msrb.mxu3 %v3559_v19  ;;  %v2624_v19 = vld [vmem:[%s4048_s6 + $0x68] sm:$0xf0]  ;;  %v2675_v2 = vor.u32 %v3689_v58, %v2672_v60  ;;  %v3681_v58 = vld [vmem:[%s4048_s6 + $0x84] sm:$0xf] }
  0x8e   : > { %2045 = vmatpush.bf16.msrb.mxu0 %v3359_v28  ;;  %v2752_v28 = vld [vmem:[%s4048_s6 + $0x168] sm:$0xf0]  ;;  %v4373_v36 = vpack.c.b16 %v571_v15, %v571_v15  ;;  %v3697_v60 = vld [vmem:[%s4048_s6 + $0x104] sm:$0xf] }
  0x8f   : > { %2058 = vmatpush.bf16.msrb.mxu1 %v3423_v29  ;;  %v4367_v29 = vpack.c.b16 %v570_v11, %v570_v11  ;;  %v2755_v40 = vor.u32 %v3709_v27, %v2752_v28  ;;  %v3703_v11 = vld [vmem:[%s4048_s6 + $0x134] sm:$0xf]  ;;  %v3701_v27 = vld [vmem:[%s4048_s6 + $0x124] sm:$0xf]  ;;  %v2720_v28 = vld [vmem:[%s4048_s6 + $0x128] sm:$0xf0] }
  0x90   : > { %2071 = vmatpush.bf16.msrb.mxu2 %v3487_v32  ;;  %v4369_v32 = vpack.c.b16 %v569_v12, %v569_v12  ;;  %v2728_v12 = vld [vmem:[%s4048_s6 + $0x138] sm:$0xf0]  ;;  %v2704_v62 = vld [vmem:[%s4048_s6 + $0x108] sm:$0xf0] }
  0x91   : > { %2084 = vmatpush.bf16.msrb.mxu3 %v3551_v37  ;;  %v2627_v37 = vor.u32 %v3677_v18, %v2624_v19  ;;  %v3669_v18 = vld [vmem:[%s4048_s6 + $0x24] sm:$0xf]  ;;  %v2592_v19 = vld [vmem:[%s4048_s6 + $0x28] sm:$0xf0] }
  0x92   : > { %2046 = vmatpush.bf16.msrb.mxu0 %v3351_v48  ;;  %v2680_v48 = vld [vmem:[%s4048_s6 + $0xd8] sm:$0xf0] }
  0x93   : > { %2059 = vmatpush.bf16.msrb.mxu1 %v3415_v52  ;;  %v2808_v52 = vld [vmem:[%s4048_s6 + $0x1d8] sm:$0xf0]  ;;  %v2683_v54 = vor.u32 %v3691_v46, %v2680_v48  ;;  %v3683_v46 = vld [vmem:[%s4048_s6 + $0x94] sm:$0xf] }
  0x94   : > { %2072 = vmatpush.bf16.msrb.mxu2 %v3479_v53  ;;  %v2619_v53 = vor.u32 %v3675_v41, %v2616_v44  ;;  %v2811_v59 = vor.u32 %v3723_v51, %v2808_v52  ;;  %v3667_v41 = vld [vmem:[%s4048_s6 + $0x14] sm:$0xf]  ;;  %v2584_v44 = vld [vmem:[%s4048_s6 + $0x18] sm:$0xf0] }
  0x95   : > { %2085 = vmatpush.bf16.msrb.mxu3 %v3543_v57  ;;  %v2608_v57 = vld [vmem:[%s4048_s6 + $0x48] sm:$0xf0]  ;;  %v2648_v48 = vld [vmem:[%s4048_s6 + $0x98] sm:$0xf0]  ;;  %v3715_v51 = vld [vmem:[%s4048_s6 + $0x194] sm:$0xf] }
  0x96   : > { %2047 = vmatpush.bf16.msrb.mxu0 %v3343_v0  ;;  %v2800_v0 = vld [vmem:[%s4048_s6 + $0x1c8] sm:$0xf0]  ;;  %v2611_v1 = vor.u32 %v3673_v56, %v2608_v57  ;;  %v2776_v52 = vld [vmem:[%s4048_s6 + $0x198] sm:$0xf0]  ;;  %v2651_v56 = vor.u32 %v3683_v46, %v2648_v48  ;;  %v2715_v57 = vor.u32 %v3699_v49, %v2712_v50  ;;  %v3755_v46 = vld [vmem:[%s4048_s6 + $0x2d4] sm:$0xf] }
  0x97   : > { %2060 = vmatpush.bf16.msrb.mxu1 %v3407_v6  ;;  %v2600_v6 = vld [vmem:[%s4048_s6 + $0x38] sm:$0xf0]  ;;  %v2803_v9 = vor.u32 %v3721_v63, %v2800_v0  ;;  %v2779_v61 = vor.u32 %v3715_v51, %v2776_v52  ;;  %v3713_v63 = vld [vmem:[%s4048_s6 + $0x184] sm:$0xf]  ;;  %v2768_v0 = vld [vmem:[%s4048_s6 + $0x188] sm:$0xf0] }
  0x98   : > { %2073 = vmatpush.bf16.msrb.mxu2 %v3471_v8  ;;  %v3687_v8 = vld [vmem:[%s4048_s6 + $0xb4] sm:$0xf]  ;;  %v2603_v15 = vor.u32 %v3671_v4, %v2600_v6  ;;  %v2952_v6 = vld [vmem:[%s4048_s6 + $0x2f8] sm:$0xf0] }
  0x99   : > { %2086 = vmatpush.bf16.msrb.mxu3 %v3535_v13  ;;  %2048 = vmatmul.bf16.vlgmr.msrb.gmra.mxu0 %v4362_v24  ;;  %v3719_v13 = vld [vmem:[%s4048_s6 + $0x1b4] sm:$0xf]  ;;  %v2936_v48 = vld [vmem:[%s4048_s6 + $0x2d8] sm:$0xf0] }
  0x9a   : > { %2092 = vmatpush.bf16.msra.mxu0 %v2635_v14  ;;  %2061 = vmatmul.bf16.vlgmr.msrb.gmra.mxu1 %v4369_v32  ;;  %v2792_v14 = vld [vmem:[%s4048_s6 + $0x1b8] sm:$0xf0]  ;;  %v3771_v49 = vld [vmem:[%s4048_s6 + $0x354] sm:$0xf] }
  0x9b   : > { %2105 = vmatpush.bf16.msra.mxu1 %v2699_v16  ;;  %2074 = vmatmul.bf16.vlgmr.msrb.gmra.mxu2 %v4367_v29  ;;  %v2667_v16 = vor.u32 %v3687_v8, %v2664_v10  ;;  %v3775_v8 = vld [vmem:[%s4048_s6 + $0x374] sm:$0xf]  ;;  %v3000_v50 = vld [vmem:[%s4048_s6 + $0x358] sm:$0xf0] }
  0x9c   : > { %2118 = vmatpush.bf16.msra.mxu2 %v2763_v17  ;;  %2087 = vmatmul.bf16.vlgmr.msrb.gmra.mxu3 %v4373_v36  ;;  %v2731_v17 = vor.u32 %v3703_v11, %v2728_v12  ;;  %v2707_v11 = vor.u32 %v3697_v60, %v2704_v62  ;;  %v3791_v12 = vld [vmem:[%s4048_s6 + $0x3f4] sm:$0xf]  ;;  %v3064_v52 = vld [vmem:[%s4048_s6 + $0x3d8] sm:$0xf0]  ;;  %v3785_v60 = vld [vmem:[%s4048_s6 + $0x3c4] sm:$0xf] }
  0x9d   : > { %2131 = vmatpush.bf16.msra.mxu3 %v2827_v23  ;;  %v2795_v23 = vor.u32 %v3719_v13, %v2792_v14  ;;  %v3080_v13 = vld [vmem:[%s4048_s6 + $0x3f8] sm:$0xf0]  ;;  %v2771_v14 = vor.u32 %v3713_v63, %v2768_v0  ;;  %v3787_v51 = vld [vmem:[%s4048_s6 + $0x3d4] sm:$0xf] }
  0x9e   : > { %2093 = vmatpush.bf16.msra.mxu0 %v2627_v37  ;;  %v2595_v37 = vor.u32 %v3669_v18, %v2592_v19  ;;  %v3741_v18 = vld [vmem:[%s4048_s6 + $0x264] sm:$0xf]  ;;  %v2880_v19 = vld [vmem:[%s4048_s6 + $0x268] sm:$0xf0]  ;;  %v3735_v0 = vld [vmem:[%s4048_s6 + $0x234] sm:$0xf] }
  0x9f   : > { %2106 = vmatpush.bf16.msra.mxu1 %v2691_v38  ;;  %v2659_v38 = vor.u32 %v3685_v20, %v2656_v25  ;;  %v3757_v20 = vld [vmem:[%s4048_s6 + $0x2e4] sm:$0xf]  ;;  %v2944_v25 = vld [vmem:[%s4048_s6 + $0x2e8] sm:$0xf0] }
  0xa0   : > { %2119 = vmatpush.bf16.msra.mxu2 %v2755_v40  ;;  %v2723_v40 = vor.u32 %v3701_v27, %v2720_v28  ;;  %v3773_v27 = vld [vmem:[%s4048_s6 + $0x364] sm:$0xf]  ;;  %v3008_v28 = vld [vmem:[%s4048_s6 + $0x368] sm:$0xf0] }
  0xa1   : > { %2132 = vmatpush.bf16.msra.mxu3 %v2819_v47  ;;  %v2787_v47 = vor.u32 %v3717_v33, %v2784_v35  ;;  %v3789_v33 = vld [vmem:[%s4048_s6 + $0x3e4] sm:$0xf]  ;;  %v3072_v35 = vld [vmem:[%s4048_s6 + $0x3e8] sm:$0xf0] }
  0xa2   : > { %2094 = vmatpush.bf16.msra.mxu0 %v2619_v53  ;;  %v2587_v53 = vor.u32 %v3667_v41, %v2584_v44  ;;  %v3739_v41 = vld [vmem:[%s4048_s6 + $0x254] sm:$0xf]  ;;  %v2872_v44 = vld [vmem:[%s4048_s6 + $0x258] sm:$0xf0] }
  0xa3   : > { %2107 = vmatpush.bf16.msra.mxu1 %v2683_v54  ;;  %v3665_v54 = vld [vmem:[%s4048_s6 + $0x4] sm:$0xf] }
  0xa4   : > { %2120 = vmatpush.bf16.msra.mxu2 %v2747_v55  ;;  %v2576_v55 = vld [vmem:[%s4048_s6 + $0x8] sm:$0xf0] }
  0xa5   : > { %2133 = vmatpush.bf16.msra.mxu3 %v2811_v59  ;;  %v2640_v59 = vld [vmem:[%s4048_s6 + $0x88] sm:$0xf0]  ;;  %v2579_v4 = vor.u32 %v3665_v54, %v2576_v55  ;;  %v2939_v54 = vor.u32 %v3755_v46, %v2936_v48  ;;  %v3003_v55 = vor.u32 %v3771_v49, %v3000_v50  ;;  %v3763_v48 = vld [vmem:[%s4048_s6 + $0x314] sm:$0xf]  ;;  %v2968_v49 = vld [vmem:[%s4048_s6 + $0x318] sm:$0xf0] }
  0xa6   : > { %2095 = vmatpush.bf16.msra.mxu0 %v2611_v1  ;;  %v3743_v1 = vld [vmem:[%s4048_s6 + $0x274] sm:$0xf]  ;;  %v2643_v10 = vor.u32 %v3681_v58, %v2640_v59  ;;  %v2928_v58 = vld [vmem:[%s4048_s6 + $0x2c8] sm:$0xf0] }
  0xa7   : > { %2108 = vmatpush.bf16.msra.mxu1 %v2675_v2  ;;  %v2888_v2 = vld [vmem:[%s4048_s6 + $0x278] sm:$0xf0]  ;;  %v2992_v59 = vld [vmem:[%s4048_s6 + $0x348] sm:$0xf0] }
  0xa8   : > { %2121 = vmatpush.bf16.msra.mxu2 %v2739_v3  ;;  %v3759_v3 = vld [vmem:[%s4048_s6 + $0x2f4] sm:$0xf] }
  0xa9   : > { %2134 = vmatpush.bf16.msra.mxu3 %v2803_v9  ;;  %v3016_v9 = vld [vmem:[%s4048_s6 + $0x378] sm:$0xf0] }
  0xaa   : > { %2096 = vmatpush.bf16.msra.mxu0 %v2603_v15  ;;  %v2891_v15 = vor.u32 %v3743_v1, %v2888_v2  ;;  %v2856_v1 = vld [vmem:[%s4048_s6 + $0x238] sm:$0xf0]  ;;  %v3751_v2 = vld [vmem:[%s4048_s6 + $0x2b4] sm:$0xf] }
  0xab   : > { %2109 = vmatpush.bf16.msra.mxu1 %v2667_v16  ;;  %v2955_v16 = vor.u32 %v3759_v3, %v2952_v6  ;;  %v3767_v6 = vld [vmem:[%s4048_s6 + $0x334] sm:$0xf] }
  0xac   : > { %2122 = vmatpush.bf16.msra.mxu2 %v2731_v17  ;;  %v3019_v17 = vor.u32 %v3775_v8, %v3016_v9  ;;  %v2984_v8 = vld [vmem:[%s4048_s6 + $0x338] sm:$0xf0]  ;;  %v3783_v9 = vld [vmem:[%s4048_s6 + $0x3b4] sm:$0xf] }
  0xad   : > { %2135 = vmatpush.bf16.msra.mxu3 %v2795_v23  ;;  %v3083_v23 = vor.u32 %v3791_v12, %v3080_v13  ;;  %v2987_v13 = vor.u32 %v3767_v6, %v2984_v8 }
  0xae   : > { %2097 = vmatpush.bf16.msra.mxu0 %v2595_v37  ;;  %v2883_v37 = vor.u32 %v3741_v18, %v2880_v19  ;;  %v2912_v18 = vld [vmem:[%s4048_s6 + $0x2a8] sm:$0xf0]  ;;  %v3765_v19 = vld [vmem:[%s4048_s6 + $0x324] sm:$0xf] }
  0xaf   : > { %2110 = vmatpush.bf16.msra.mxu1 %v2659_v38  ;;  %v2947_v38 = vor.u32 %v3757_v20, %v2944_v25  ;;  %v2976_v20 = vld [vmem:[%s4048_s6 + $0x328] sm:$0xf0] }
  0xb0   : > { %2123 = vmatpush.bf16.msra.mxu2 %v2723_v40  ;;  %v3011_v40 = vor.u32 %v3773_v27, %v3008_v28  ;;  %v3040_v25 = vld [vmem:[%s4048_s6 + $0x3a8] sm:$0xf0] }
  0xb1   : > { %2136 = vmatpush.bf16.msra.mxu3 %v2787_v47  ;;  %v3075_v47 = vor.u32 %v3789_v33, %v3072_v35 }
  0xb2   : > { %2098 = vmatpush.bf16.msra.mxu0 %v2587_v53  ;;  %v2875_v53 = vor.u32 %v3739_v41, %v2872_v44  ;;  %v3747_v41 = vld [vmem:[%s4048_s6 + $0x294] sm:$0xf] }
  0xb3   : > { %2111 = vmatpush.bf16.msra.mxu1 %v2651_v56  ;;  %v2864_v56 = vld [vmem:[%s4048_s6 + $0x248] sm:$0xf0] }
  0xb4   : > { %2124 = vmatpush.bf16.msra.mxu2 %v2715_v57  ;;  %v3753_v57 = vld [vmem:[%s4048_s6 + $0x2c4] sm:$0xf] }
  0xb5   : > { %2137 = vmatpush.bf16.msra.mxu3 %v2779_v61  ;;  %v2931_v62 = vor.u32 %v3753_v57, %v2928_v58  ;;  %v3745_v57 = vld [vmem:[%s4048_s6 + $0x284] sm:$0xf] }
  0xb6   : > { %2099 = vmatpush.bf16.msra.mxu0 %v2579_v4  ;;  %v2920_v4 = vld [vmem:[%s4048_s6 + $0x2b8] sm:$0xf0]  ;;  %v4479_v27 = vpop.f32.mrf.mxu0  ;;  %v3761_v58 = vld [vmem:[%s4048_s6 + $0x304] sm:$0xf] }
  0xb7   : > { %2112 = vmatpush.bf16.msra.mxu1 %v2643_v10  ;;  %v3048_v10 = vld [vmem:[%s4048_s6 + $0x3b8] sm:$0xf0]  ;;  %v2923_v12 = vor.u32 %v3751_v2, %v2920_v4  ;;  %v4481_v33 = vpop.f32.mrf.mxu1 }
  0xb8   : > { %2125 = vmatpush.bf16.msra.mxu2 %v2707_v11  ;;  %v2859_v11 = vor.u32 %v3735_v0, %v2856_v1  ;;  %v3208_v2 = vld [vmem:[%s4048_s6 + $0x4f8] sm:$0xf0] }
  0xb9   : > { %2138 = vmatpush.bf16.msra.mxu3 %v2771_v14  ;;  %2100 = vmatmul.bf16.vlgmr.msra.gmra.mxu0 %v4154_v21  ;;  %v3067_v21 = vor.u32 %v3787_v51, %v3064_v52  ;;  %v3733_v14 = vld [vmem:[%s4048_s6 + $0x224] sm:$0xf]  ;;  %v3779_v51 = vld [vmem:[%s4048_s6 + $0x394] sm:$0xf]  ;;  %v3032_v52 = vld [vmem:[%s4048_s6 + $0x398] sm:$0xf0] }
  0xba   : > { %2144 = vmatpush.bf16.msrb.mxu0 %v2891_v15  ;;  %2113 = vmatmul.bf16.vlgmr.msra.gmra.mxu1 %v4157_v22  ;;  %v3056_v22 = vld [vmem:[%s4048_s6 + $0x3c8] sm:$0xf0]  ;;  %v3272_v4 = vld [vmem:[%s4048_s6 + $0x578] sm:$0xf0] }
  0xbb   : > { %2157 = vmatpush.bf16.msrb.mxu1 %v2955_v16  ;;  %2126 = vmatmul.bf16.vlgmr.msra.gmra.mxu2 %v4140_v5  ;;  %v3737_v5 = vld [vmem:[%s4048_s6 + $0x244] sm:$0xf]  ;;  %v3059_v3 = vor.u32 %v3785_v60, %v3056_v22  ;;  %v2848_v15 = vld [vmem:[%s4048_s6 + $0x228] sm:$0xf0] }
  0xbc   : > { %2170 = vmatpush.bf16.msrb.mxu2 %v3019_v17  ;;  %2139 = vmatmul.bf16.vlgmr.msra.gmra.mxu3 %v4143_v7  ;;  %v3769_v7 = vld [vmem:[%s4048_s6 + $0x344] sm:$0xf]  ;;  %v2867_v61 = vor.u32 %v3737_v5, %v2864_v56  ;;  %v3051_v17 = vor.u32 %v3783_v9, %v3048_v10  ;;  %v2851_v28 = vor.u32 %v3733_v14, %v2848_v15  ;;  %v3024_v22 = vld [vmem:[%s4048_s6 + $0x388] sm:$0xf0]  ;;  %v3855_v10 = vld [vmem:[%s4048_s6 + $0x5f4] sm:$0xf] }
  0xbd   : > { %2183 = vmatpush.bf16.msrb.mxu3 %v3083_v23  ;;  %v2995_v63 = vor.u32 %v3769_v7, %v2992_v59  ;;  %v3749_v16 = vld [vmem:[%s4048_s6 + $0x2a4] sm:$0xf]  ;;  %v2971_v56 = vor.u32 %v3763_v48, %v2968_v49  ;;  %v3035_v7 = vor.u32 %v3779_v51, %v3032_v52  ;;  %v2960_v59 = vld [vmem:[%s4048_s6 + $0x308] sm:$0xf0]  ;;  %v3128_v48 = vld [vmem:[%s4048_s6 + $0x458] sm:$0xf0] }
  0xbe   : > { %2145 = vmatpush.bf16.msrb.mxu0 %v2883_v37  ;;  %v3781_v23 = vld [vmem:[%s4048_s6 + $0x3a4] sm:$0xf]  ;;  %v2915_v35 = vor.u32 %v3749_v16, %v2912_v18  ;;  %v2979_v37 = vor.u32 %v3765_v19, %v2976_v20  ;;  %v4486_v44 = vpop.f32.mrf.mxu2  ;;  %v1895_v0 = vpop.f32.mrf.mxu0  ;;  %v2963_v9 = vor.u32 %v3761_v58, %v2960_v59  ;;  %v3136_v19 = vld [vmem:[%s4048_s6 + $0x468] sm:$0xf0]  ;;  %v3819_v49 = vld [vmem:[%s4048_s6 + $0x4d4] sm:$0xf] }
  0xbf   : > { %2158 = vmatpush.bf16.msrb.mxu1 %v2947_v38  ;;  %v3731_v38 = vld [vmem:[%s4048_s6 + $0x214] sm:$0xf]  ;;  %v3043_v46 = vor.u32 %v3781_v23, %v3040_v25  ;;  %v4491_v50 = vpop.f32.mrf.mxu3  ;;  %v3777_v60 = vld [vmem:[%s4048_s6 + $0x384] sm:$0xf]  ;;  %v1908_v6 = vpop.f32.mrf.mxu1  ;;  %v3200_v25 = vld [vmem:[%s4048_s6 + $0x4e8] sm:$0xf0] }
  0xc0   : > { %2171 = vmatpush.bf16.msrb.mxu2 %v3011_v40  ;;  %v2840_v40 = vld [vmem:[%s4048_s6 + $0x218] sm:$0xf0]  ;;  %v3805_v18 = vld [vmem:[%s4048_s6 + $0x464] sm:$0xf]  ;;  %v3120_v58 = vld [vmem:[%s4048_s6 + $0x448] sm:$0xf0] }
  0xc1   : > { %2184 = vmatpush.bf16.msrb.mxu3 %v3075_v47  ;;  %v2904_v47 = vld [vmem:[%s4048_s6 + $0x298] sm:$0xf0]  ;;  %v3821_v20 = vld [vmem:[%s4048_s6 + $0x4e4] sm:$0xf] }
  0xc2   : > { %2146 = vmatpush.bf16.msrb.mxu0 %v2875_v53  ;;  %v2843_v53 = vor.u32 %v3731_v38, %v2840_v40  ;;  %v2907_v5 = vor.u32 %v3747_v41, %v2904_v47  ;;  %v3328_v38 = vld [vmem:[%s4048_s6 + $0x5e8] sm:$0xf0]  ;;  %v3139_v40 = vor.u32 %v3805_v18, %v3136_v19  ;;  %v3203_v41 = vor.u32 %v3821_v20, %v3200_v25  ;;  %v3803_v47 = vld [vmem:[%s4048_s6 + $0x454] sm:$0xf]  ;;  %v3192_v52 = vld [vmem:[%s4048_s6 + $0x4d8] sm:$0xf0] }
  0xc3   : > { %2159 = vmatpush.bf16.msrb.mxu1 %v2939_v54  ;;  %v3729_v54 = vld [vmem:[%s4048_s6 + $0x204] sm:$0xf] }
  0xc4   : > { %2172 = vmatpush.bf16.msrb.mxu2 %v3003_v55  ;;  %v2832_v55 = vld [vmem:[%s4048_s6 + $0x208] sm:$0xf0]  ;;  %v3833_v59 = vld [vmem:[%s4048_s6 + $0x544] sm:$0xf] }
  0xc5   : > { %2185 = vmatpush.bf16.msrb.mxu3 %v3067_v21  ;;  %v2896_v21 = vld [vmem:[%s4048_s6 + $0x288] sm:$0xf0]  ;;  %v2835_v1 = vor.u32 %v3729_v54, %v2832_v55  ;;  %v3256_v54 = vld [vmem:[%s4048_s6 + $0x558] sm:$0xf0]  ;;  %v3851_v55 = vld [vmem:[%s4048_s6 + $0x5d4] sm:$0xf] }
  0xc6   : > { %2147 = vmatpush.bf16.msrb.mxu0 %v2867_v61  ;;  %v3807_v61 = vld [vmem:[%s4048_s6 + $0x474] sm:$0xf]  ;;  %v2899_v8 = vor.u32 %v3745_v57, %v2896_v21  ;;  %v3801_v21 = vld [vmem:[%s4048_s6 + $0x444] sm:$0xf] }
  0xc7   : > { %2160 = vmatpush.bf16.msrb.mxu1 %v2931_v62  ;;  %v3144_v62 = vld [vmem:[%s4048_s6 + $0x478] sm:$0xf0]  ;;  %v1934_v15 = vpop.f32.mrf.mxu3  ;;  %v3813_v18 = vld [vmem:[%s4048_s6 + $0x4a4] sm:$0xf] }
  0xc8   : > { %2173 = vmatpush.bf16.msrb.mxu2 %v2995_v63  ;;  %v3823_v63 = vld [vmem:[%s4048_s6 + $0x4f4] sm:$0xf]  ;;  %v3147_v14 = vor.u32 %v3807_v61, %v3144_v62  ;;  %v3312_v61 = vld [vmem:[%s4048_s6 + $0x5c8] sm:$0xf0]  ;;  %v3829_v25 = vld [vmem:[%s4048_s6 + $0x524] sm:$0xf] }
  0xc9   : > { %2186 = vmatpush.bf16.msrb.mxu3 %v3059_v3  ;;  %v3839_v3 = vld [vmem:[%s4048_s6 + $0x574] sm:$0xf]  ;;  %v3211_v16 = vor.u32 %v3823_v63, %v3208_v2  ;;  %v3112_v2 = vld [vmem:[%s4048_s6 + $0x438] sm:$0xf0] }
  0xca   : > { %2148 = vmatpush.bf16.msrb.mxu0 %v2859_v11  ;;  %v3336_v11 = vld [vmem:[%s4048_s6 + $0x5f8] sm:$0xf0] }
  0xcb   : > { %2161 = vmatpush.bf16.msrb.mxu1 %v2923_v12  ;;  %v1921_v12 = vpop.f32.mrf.mxu2  ;;  %v3339_v23 = vor.u32 %v3855_v10, %v3336_v11  ;;  %v3240_v10 = vld [vmem:[%s4048_s6 + $0x538] sm:$0xf0]  ;;  %v3847_v11 = vld [vmem:[%s4048_s6 + $0x5b4] sm:$0xf] }
  0xcc   : > { %2174 = vmatpush.bf16.msrb.mxu2 %v2987_v13  ;;  %v3027_v13 = vor.u32 %v3777_v60, %v3024_v22  ;;  %v3248_v60 = vld [vmem:[%s4048_s6 + $0x548] sm:$0xf0]  ;;  %v3849_v22 = vld [vmem:[%s4048_s6 + $0x5c4] sm:$0xf]  ;;  %v3304_v12 = vld [vmem:[%s4048_s6 + $0x5b8] sm:$0xf0] }
  0xcd   : > { %2187 = vmatpush.bf16.msrb.mxu3 %v3051_v17  ;;  %v3275_v17 = vor.u32 %v3839_v3, %v3272_v4  ;;  %v3251_v0 = vor.u32 %v3833_v59, %v3248_v60  ;;  %v3815_v3 = vld [vmem:[%s4048_s6 + $0x4b4] sm:$0xf]  ;;  %v3315_v6 = vor.u32 %v3849_v22, %v3312_v61  ;;  %v3307_v20 = vor.u32 %v3847_v11, %v3304_v12  ;;  %v3152_v59 = vld [vmem:[%s4048_s6 + $0x488] sm:$0xf0]  ;;  %v3825_v60 = vld [vmem:[%s4048_s6 + $0x504] sm:$0xf] }
  0xce   : > { %2149 = vmatpush.bf16.msrb.mxu0 %v2851_v28  ;;  %v3837_v28 = vld [vmem:[%s4048_s6 + $0x564] sm:$0xf]  ;;  %v3528_v11 = vld [vmem:[%s4048_s6 + $0x778] sm:$0xf0] }
  0xcf   : > { %2162 = vmatpush.bf16.msrb.mxu1 %v2915_v35  ;;  %v3264_v35 = vld [vmem:[%s4048_s6 + $0x568] sm:$0xf0] }
  0xd0   : > { %2175 = vmatpush.bf16.msrb.mxu2 %v2979_v37  ;;  %v3853_v37 = vld [vmem:[%s4048_s6 + $0x5e4] sm:$0xf] }
  0xd1   : > { %2188 = vmatpush.bf16.msrb.mxu3 %v3043_v46  ;;  %v3267_v46 = vor.u32 %v3837_v28, %v3264_v35  ;;  %v3331_v51 = vor.u32 %v3853_v37, %v3328_v38  ;;  %v3232_v28 = vld [vmem:[%s4048_s6 + $0x528] sm:$0xf0]  ;;  %v3845_v37 = vld [vmem:[%s4048_s6 + $0x5a4] sm:$0xf] }
  0xd2   : > { %2150 = vmatpush.bf16.msrb.mxu0 %v2843_v53  ;;  %v3835_v53 = vld [vmem:[%s4048_s6 + $0x554] sm:$0xf]  ;;  %v3296_v38 = vld [vmem:[%s4048_s6 + $0x5a8] sm:$0xf0] }
  0xd3   : > { %2163 = vmatpush.bf16.msrb.mxu1 %v2907_v5  ;;  %v3320_v5 = vld [vmem:[%s4048_s6 + $0x5d8] sm:$0xf0]  ;;  %v3259_v57 = vor.u32 %v3835_v53, %v3256_v54  ;;  %v3299_v53 = vor.u32 %v3845_v37, %v3296_v38  ;;  %v3456_v38 = vld [vmem:[%s4048_s6 + $0x6e8] sm:$0xf0] }
  0xd4   : > { %2176 = vmatpush.bf16.msrb.mxu2 %v2971_v56  ;;  %v3131_v56 = vor.u32 %v3803_v47, %v3128_v48  ;;  %v3235_v47 = vor.u32 %v3829_v25, %v3232_v28  ;;  %v3795_v48 = vld [vmem:[%s4048_s6 + $0x414] sm:$0xf]  ;;  %v3160_v54 = vld [vmem:[%s4048_s6 + $0x498] sm:$0xf0]  ;;  %v3392_v25 = vld [vmem:[%s4048_s6 + $0x668] sm:$0xf0] }
  0xd5   : > { %2189 = vmatpush.bf16.msrb.mxu3 %v3035_v7  ;;  %v3184_v7 = vld [vmem:[%s4048_s6 + $0x4c8] sm:$0xf0]  ;;  %v3885_v28 = vld [vmem:[%s4048_s6 + $0x6e4] sm:$0xf] }
  0xd6   : > { %2151 = vmatpush.bf16.msrb.mxu0 %v2835_v1  ;;  %v4539_v62 = vpop.f32.mrf.mxu0  ;;  %v3799_v1 = vld [vmem:[%s4048_s6 + $0x434] sm:$0xf] }
  0xd7   : > { %2164 = vmatpush.bf16.msrb.mxu1 %v2899_v8  ;;  %v4544_v4 = vpop.f32.mrf.mxu1  ;;  %v3176_v8 = vld [vmem:[%s4048_s6 + $0x4b8] sm:$0xf0] }
  0xd8   : > { %2177 = vmatpush.bf16.msrb.mxu2 %v2963_v9  ;;  %v3831_v9 = vld [vmem:[%s4048_s6 + $0x534] sm:$0xf] }
  0xd9   : > { %2190 = vmatpush.bf16.msrb.mxu3 %v3027_v13  ;;  %2152 = vmatmul.bf16.vlgmr.msrb.gmra.mxu0 %v4213_v42  ;;  %v3817_v42 = vld [vmem:[%s4048_s6 + $0x4c4] sm:$0xf]  ;;  %v3115_v13 = vor.u32 %v3799_v1, %v3112_v2  ;;  %v3243_v15 = vor.u32 %v3831_v9, %v3240_v10  ;;  %v3871_v2 = vld [vmem:[%s4048_s6 + $0x674] sm:$0xf]  ;;  %v3464_v9 = vld [vmem:[%s4048_s6 + $0x6f8] sm:$0xf0] }
  0xda   : > { %2196 = vmatpush.bf16.msra.mxu0 %v3147_v14  ;;  %2165 = vmatmul.bf16.vlgmr.msrb.gmra.mxu1 %v4217_v45  ;;  %v3123_v45 = vor.u32 %v3801_v21, %v3120_v58  ;;  %v3187_v63 = vor.u32 %v3817_v42, %v3184_v7  ;;  %v3179_v14 = vor.u32 %v3815_v3, %v3176_v8  ;;  %v3793_v21 = vld [vmem:[%s4048_s6 + $0x404] sm:$0xf]  ;;  %v3088_v58 = vld [vmem:[%s4048_s6 + $0x408] sm:$0xf0]  ;;  %v3400_v3 = vld [vmem:[%s4048_s6 + $0x678] sm:$0xf0] }
  0xdb   : > { %2209 = vmatpush.bf16.msra.mxu1 %v3211_v16  ;;  %2178 = vmatmul.bf16.vlgmr.msrb.gmra.mxu2 %v4209_v39  ;;  %v3195_v39 = vor.u32 %v3819_v49, %v3192_v52  ;;  %v3797_v16 = vld [vmem:[%s4048_s6 + $0x424] sm:$0xf]  ;;  %v3096_v49 = vld [vmem:[%s4048_s6 + $0x418] sm:$0xf0]  ;;  %v3091_v8 = vor.u32 %v3793_v21, %v3088_v58  ;;  %v3903_v10 = vld [vmem:[%s4048_s6 + $0x774] sm:$0xf] }
  0xdc   : > { %2222 = vmatpush.bf16.msra.mxu2 %v3275_v17  ;;  %2191 = vmatmul.bf16.vlgmr.msrb.gmra.mxu3 %v4215_v43  ;;  %v3323_v43 = vor.u32 %v3851_v55, %v3320_v5  ;;  %v3104_v17 = vld [vmem:[%s4048_s6 + $0x428] sm:$0xf0]  ;;  %v3827_v55 = vld [vmem:[%s4048_s6 + $0x514] sm:$0xf]  ;;  %v3224_v5 = vld [vmem:[%s4048_s6 + $0x518] sm:$0xf0] }
  0xdd   : > { %2235 = vmatpush.bf16.msra.mxu3 %v3339_v23  ;;  %v3168_v23 = vld [vmem:[%s4048_s6 + $0x4a8] sm:$0xf0]  ;;  %v3809_v7 = vld [vmem:[%s4048_s6 + $0x484] sm:$0xf] }
  0xde   : > { %2197 = vmatpush.bf16.msra.mxu0 %v3139_v40  ;;  %v4554_v19 = vpop.f32.mrf.mxu2  ;;  %v3107_v40 = vor.u32 %v3797_v16, %v3104_v17  ;;  %v3155_v12 = vor.u32 %v3809_v7, %v3152_v59  ;;  %v3403_v17 = vor.u32 %v3871_v2, %v3400_v3  ;;  %v3440_v59 = vld [vmem:[%s4048_s6 + $0x6c8] sm:$0xf0]  ;;  %v3863_v3 = vld [vmem:[%s4048_s6 + $0x634] sm:$0xf] }
  0xdf   : > { %2210 = vmatpush.bf16.msra.mxu1 %v3203_v41  ;;  %v4559_v35 = vpop.f32.mrf.mxu3  ;;  %v1947_v41 = vpop.f32.mrf.mxu0 }
  0xe0   : > { %2223 = vmatpush.bf16.msra.mxu2 %v3267_v46  ;;  %v3171_v46 = vor.u32 %v3813_v18, %v3168_v23  ;;  %v1960_v52 = vpop.f32.mrf.mxu1  ;;  %v3869_v23 = vld [vmem:[%s4048_s6 + $0x664] sm:$0xf]  ;;  %v3520_v41 = vld [vmem:[%s4048_s6 + $0x768] sm:$0xf0] }
  0xe1   : > { %2236 = vmatpush.bf16.msra.mxu3 %v3331_v51  ;;  %v3811_v51 = vld [vmem:[%s4048_s6 + $0x494] sm:$0xf] }
  0xe2   : > { %2198 = vmatpush.bf16.msra.mxu0 %v3131_v56  ;;  %v3843_v56 = vld [vmem:[%s4048_s6 + $0x594] sm:$0xf]  ;;  %v3163_v42 = vor.u32 %v3811_v51, %v3160_v54  ;;  %v3459_v51 = vor.u32 %v3885_v28, %v3456_v38  ;;  %v3384_v54 = vld [vmem:[%s4048_s6 + $0x658] sm:$0xf0]  ;;  %v3893_v38 = vld [vmem:[%s4048_s6 + $0x724] sm:$0xf] }
  0xe3   : > { %2211 = vmatpush.bf16.msra.mxu1 %v3195_v39  ;;  %v3288_v39 = vld [vmem:[%s4048_s6 + $0x598] sm:$0xf0] }
  0xe4   : > { %2224 = vmatpush.bf16.msra.mxu2 %v3259_v57  ;;  %v3099_v57 = vor.u32 %v3795_v48, %v3096_v49  ;;  %v3291_v61 = vor.u32 %v3843_v56, %v3288_v39  ;;  %v3395_v48 = vor.u32 %v3869_v23, %v3392_v25  ;;  %v1907_v49 = vadd.f32 %v4481_v33, %v4479_v27  ;;  %v3448_v56 = vld [vmem:[%s4048_s6 + $0x6d8] sm:$0xf0]  ;;  %v3899_v39 = vld [vmem:[%s4048_s6 + $0x754] sm:$0xf]  ;;  %v3877_v23 = vld [vmem:[%s4048_s6 + $0x6a4] sm:$0xf] }
  0xe5   : > { %2237 = vmatpush.bf16.msra.mxu3 %v3323_v43  ;;  %v3227_v43 = vor.u32 %v3827_v55, %v3224_v5  ;;  %v3883_v55 = vld [vmem:[%s4048_s6 + $0x6d4] sm:$0xf]  ;;  %v3576_v33 = vld [vmem:[%s4048_s6 + $0x7d8] sm:$0xf0] }
  0xe6   : > { %2199 = vmatpush.bf16.msra.mxu0 %v3123_v45  ;;  %v1973_v22 = vpop.f32.mrf.mxu2  ;;  %v3216_v45 = vld [vmem:[%s4048_s6 + $0x508] sm:$0xf0]  ;;  %v3915_v27 = vld [vmem:[%s4048_s6 + $0x7d4] sm:$0xf]  ;;  %v1920_v21 = vadd.f32 %v4486_v44, %v1907_v49  ;;  %v3451_v58 = vor.u32 %v3883_v55, %v3448_v56  ;;  %v3352_v55 = vld [vmem:[%s4048_s6 + $0x618] sm:$0xf0] }
  0xe7   : > { %2212 = vmatpush.bf16.msra.mxu1 %v3187_v63  ;;  %v3841_v63 = vld [vmem:[%s4048_s6 + $0x584] sm:$0xf]  ;;  %v1986_v1 = vpop.f32.mrf.mxu3  ;;  %v3579_v7 = vor.u32 %v3915_v27, %v3576_v33  ;;  %v3568_v44 = vld [vmem:[%s4048_s6 + $0x7c8] sm:$0xf0]  ;;  %v3480_v27 = vld [vmem:[%s4048_s6 + $0x718] sm:$0xf0] }
  0xe8   : > { %2225 = vmatpush.bf16.msra.mxu2 %v3251_v0  ;;  %v3280_v0 = vld [vmem:[%s4048_s6 + $0x588] sm:$0xf0]  ;;  %v3907_v33 = vld [vmem:[%s4048_s6 + $0x794] sm:$0xf] }
  0xe9   : > { %2238 = vmatpush.bf16.msra.mxu3 %v3315_v6  ;;  %v3887_v6 = vld [vmem:[%s4048_s6 + $0x6f4] sm:$0xf]  ;;  %v3283_v16 = vor.u32 %v3841_v63, %v3280_v0  ;;  %v1933_v0 = vadd.f32 %v4491_v50, %v1920_v21 }
  0xea   : > { %2200 = vmatpush.bf16.msra.mxu0 %v3115_v13  ;;  %v3219_v13 = vor.u32 %v3825_v60, %v3216_v45  ;;  %v3467_v18 = vor.u32 %v3887_v6, %v3464_v9  ;;  %v3504_v60 = vld [vmem:[%s4048_s6 + $0x748] sm:$0xf0]  ;;  %v3368_v6 = vld [vmem:[%s4048_s6 + $0x638] sm:$0xf0] }
  0xeb   : > { %2213 = vmatpush.bf16.msra.mxu1 %v3179_v14  ;;  %v3919_v14 = vld [vmem:[%s4048_s6 + $0x7f4] sm:$0xf]  ;;  %v3371_v50 = vor.u32 %v3863_v3, %v3368_v6 }
  0xec   : > { %2226 = vmatpush.bf16.msra.mxu2 %v3243_v15  ;;  %v3592_v15 = vld [vmem:[%s4048_s6 + $0x7f8] sm:$0xf0] }
  0xed   : > { %2239 = vmatpush.bf16.msra.mxu3 %v3307_v20  ;;  %v3531_v20 = vor.u32 %v3903_v10, %v3528_v11  ;;  %v3595_v37 = vor.u32 %v3919_v14, %v3592_v15  ;;  %v3432_v10 = vld [vmem:[%s4048_s6 + $0x6b8] sm:$0xf0]  ;;  %v3895_v11 = vld [vmem:[%s4048_s6 + $0x734] sm:$0xf]  ;;  %v1946_v15 = vadd.f32 %v4539_v62, %v1933_v0  ;;  %v3909_v62 = vld [vmem:[%s4048_s6 + $0x7a4] sm:$0xf] }
  0xee   : > { %2201 = vmatpush.bf16.msra.mxu0 %v3107_v40  ;;  %v3901_v40 = vld [vmem:[%s4048_s6 + $0x764] sm:$0xf]  ;;  %v3560_v14 = vld [vmem:[%s4048_s6 + $0x7b8] sm:$0xf0] }
  0xef   : > { %2214 = vmatpush.bf16.msra.mxu1 %v3171_v46  ;;  %v3917_v46 = vld [vmem:[%s4048_s6 + $0x7e4] sm:$0xf]  ;;  %v3523_v52 = vor.u32 %v3901_v40, %v3520_v41  ;;  %v3488_v40 = vld [vmem:[%s4048_s6 + $0x728] sm:$0xf0] }
  0xf0   : > { %2227 = vmatpush.bf16.msra.mxu2 %v3235_v47  ;;  %v3584_v47 = vld [vmem:[%s4048_s6 + $0x7e8] sm:$0xf0] }
  0xf1   : > { %2240 = vmatpush.bf16.msra.mxu3 %v3299_v53  ;;  %v3867_v53 = vld [vmem:[%s4048_s6 + $0x654] sm:$0xf]  ;;  %v3587_v5 = vor.u32 %v3917_v46, %v3584_v47  ;;  %v3552_v46 = vld [vmem:[%s4048_s6 + $0x7a8] sm:$0xf0] }
  0xf2   : > { %2202 = vmatpush.bf16.msra.mxu0 %v3099_v57  ;;  %v3512_v57 = vld [vmem:[%s4048_s6 + $0x758] sm:$0xf0]  ;;  %v3555_v56 = vor.u32 %v3909_v62, %v3552_v46 }
  0xf3   : > { %2215 = vmatpush.bf16.msra.mxu1 %v3163_v42  ;;  %v3515_v42 = vor.u32 %v3899_v39, %v3512_v57  ;;  %v3416_v39 = vld [vmem:[%s4048_s6 + $0x698] sm:$0xf0]  ;;  %v3891_v57 = vld [vmem:[%s4048_s6 + $0x714] sm:$0xf] }
  0xf4   : > { %2228 = vmatpush.bf16.msra.mxu2 %v3227_v43  ;;  %v3376_v43 = vld [vmem:[%s4048_s6 + $0x648] sm:$0xf0] }
  0xf5   : > { %2241 = vmatpush.bf16.msra.mxu3 %v3291_v61  ;;  %v3913_v61 = vld [vmem:[%s4048_s6 + $0x7c4] sm:$0xf] }
  0xf6   : > { %2203 = vmatpush.bf16.msra.mxu0 %v3091_v8  ;;  %v4616_v22 = vpop.f32.mrf.mxu0  ;;  %v3879_v8 = vld [vmem:[%s4048_s6 + $0x6b4] sm:$0xf]  ;;  %v3571_v9 = vor.u32 %v3913_v61, %v3568_v44  ;;  %v3905_v44 = vld [vmem:[%s4048_s6 + $0x784] sm:$0xf] }
  0xf7   : > { %2216 = vmatpush.bf16.msra.mxu1 %v3155_v12  ;;  %v4620_v63 = vpop.f32.mrf.mxu1  ;;  %v3496_v12 = vld [vmem:[%s4048_s6 + $0x738] sm:$0xf0] }
  0xf8   : > { %2229 = vmatpush.bf16.msra.mxu2 %v3219_v13  ;;  %v3911_v13 = vld [vmem:[%s4048_s6 + $0x7b4] sm:$0xf] }
  0xf9   : > { %2242 = vmatpush.bf16.msra.mxu3 %v3283_v16  ;;  %2204 = vmatmul.bf16.vlgmr.msra.gmra.mxu0 %v4284_v26  ;;  %v3387_v26 = vor.u32 %v3867_v53, %v3384_v54  ;;  %v3435_v16 = vor.u32 %v3879_v8, %v3432_v10  ;;  %v3563_v25 = vor.u32 %v3911_v13, %v3560_v14  ;;  %v3859_v54 = vld [vmem:[%s4048_s6 + $0x614] sm:$0xf] }
  0xfa   : > { %2248 = vmatpush.bf16.msrb.mxu0 %v3403_v17  ;;  %2217 = vmatmul.bf16.vlgmr.msra.gmra.mxu1 %v4291_v31  ;;  %v3881_v31 = vld [vmem:[%s4048_s6 + $0x6c4] sm:$0xf]  ;;  %v3499_v17 = vor.u32 %v3895_v11, %v3496_v12  ;;  %v3491_v53 = vor.u32 %v3893_v38, %v3488_v40 }
  0xfb   : > { %2261 = vmatpush.bf16.msrb.mxu1 %v3467_v18  ;;  %2230 = vmatmul.bf16.vlgmr.msra.gmra.mxu2 %v4289_v30  ;;  %v3865_v30 = vld [vmem:[%s4048_s6 + $0x644] sm:$0xf]  ;;  %v3443_v1 = vor.u32 %v3881_v31, %v3440_v59  ;;  %v3408_v59 = vld [vmem:[%s4048_s6 + $0x688] sm:$0xf0] }
  0xfc   : > { %2274 = vmatpush.bf16.msrb.mxu2 %v3531_v20  ;;  %2243 = vmatmul.bf16.vlgmr.msra.gmra.mxu3 %v4295_v34  ;;  %v3897_v34 = vld [vmem:[%s4048_s6 + $0x744] sm:$0xf]  ;;  %v3379_v45 = vor.u32 %v3865_v30, %v3376_v43  ;;  %v3360_v20 = vld [vmem:[%s4048_s6 + $0x628] sm:$0xf0] }
  0xfd   : > { %2287 = vmatpush.bf16.msrb.mxu3 %v3595_v37  ;;  %v3507_v2 = vor.u32 %v3897_v34, %v3504_v60  ;;  %v3861_v18 = vld [vmem:[%s4048_s6 + $0x624] sm:$0xf]  ;;  %v3424_v37 = vld [vmem:[%s4048_s6 + $0x6a8] sm:$0xf0] }
  0xfe   : > { %2249 = vmatpush.bf16.msrb.mxu0 %v3395_v48  ;;  %v4635_v28 = vpop.f32.mrf.mxu2  ;;  %v1999_v47 = vpop.f32.mrf.mxu0  ;;  %v3363_v48 = vor.u32 %v3861_v18, %v3360_v20  ;;  %v3857_v30 = vld [vmem:[%s4048_s6 + $0x604] sm:$0xf]  ;;  %v3344_v43 = vld [vmem:[%s4048_s6 + $0x608] sm:$0xf0] }
  0xff   : > { %2262 = vmatpush.bf16.msrb.mxu1 %v3459_v51  ;;  %v2036_v41 = vpop.f32.mrf.mxu3  ;;  %v2012_v49 = vpop.f32.mrf.mxu1  ;;  %v1959_v51 = vadd.f32 %v4544_v4, %v1946_v15  ;;  %v3544_v4 = vld [vmem:[%s4048_s6 + $0x798] sm:$0xf0]  ;;  %v3873_v31 = vld [vmem:[%s4048_s6 + $0x684] sm:$0xf]  ;;  %v3472_v60 = vld [vmem:[%s4048_s6 + $0x708] sm:$0xf0] }
 0x100   : > { %2275 = vmatpush.bf16.msrb.mxu2 %v3523_v52  ;;  %v3427_v52 = vor.u32 %v3877_v23, %v3424_v37  ;;  %v3889_v34 = vld [vmem:[%s4048_s6 + $0x704] sm:$0xf] }
 0x101   : > { %2288 = vmatpush.bf16.msrb.mxu3 %v3587_v5  ;;  %v3875_v5 = vld [vmem:[%s4048_s6 + $0x694] sm:$0xf]  ;;  %v1972_v21 = vadd.f32 %v4554_v19, %v1959_v51  ;;  %v3475_v3 = vor.u32 %v3889_v34, %v3472_v60 }
 0x102   : > { %2250 = vmatpush.bf16.msrb.mxu0 %v3387_v26  ;;  %v3355_v26 = vor.u32 %v3859_v54, %v3352_v55 }
 0x103   : > { %2263 = vmatpush.bf16.msrb.mxu1 %v3451_v58  ;;  %v3419_v58 = vor.u32 %v3875_v5, %v3416_v39  ;;  %v1985_v19 = vadd.f32 %v4559_v35, %v1972_v21 }
 0x104   : > { %2276 = vmatpush.bf16.msrb.mxu2 %v3515_v42  ;;  %v3483_v42 = vor.u32 %v3891_v57, %v3480_v27 }
 0x105   : > { %2289 = vmatpush.bf16.msrb.mxu3 %v3579_v7  ;;  %v3547_v7 = vor.u32 %v3907_v33, %v3544_v4  ;;  %v1998_v8 = vadd.f32 %v4616_v22, %v1985_v19 }
 0x106   : > { %2251 = vmatpush.bf16.msrb.mxu0 %v3379_v45  ;;  %v2025_v61 = vpop.f32.mrf.mxu2  ;;  %v3536_v45 = vld [vmem:[%s4048_s6 + $0x788] sm:$0xf0] }
 0x107   : > { %2264 = vmatpush.bf16.msrb.mxu1 %v3443_v1  ;;  %v2038_v0 = vpop.f32.mrf.mxu3  ;;  %v3347_v1 = vor.u32 %v3857_v30, %v3344_v43  ;;  %v3539_v6 = vor.u32 %v3905_v44, %v3536_v45 }
 0x108   : > { %2277 = vmatpush.bf16.msrb.mxu2 %v3507_v2  ;;  %v3411_v2 = vor.u32 %v3873_v31, %v3408_v59 }
 0x109   : > { %2290 = vmatpush.bf16.msrb.mxu3 %v3571_v9  ;;  %v2011_v9 = vadd.f32 %v4620_v63, %v1998_v8  ;;  %v282_v63 = vld [vmem:[#allocation2] sm:$0xff] }
 0x10a   : > { %2252 = vmatpush.bf16.msrb.mxu0 %v3371_v50 }
 0x10b   : > { %2265 = vmatpush.bf16.msrb.mxu1 %v3435_v16  ;;  %v2024_v35 = vadd.f32 %v4635_v28, %v2011_v9 }
 0x10c   : > { %2278 = vmatpush.bf16.msrb.mxu2 %v3499_v17 }
 0x10d   : > { %2291 = vmatpush.bf16.msrb.mxu3 %v3563_v25  ;;  %v2037_v10 = vadd.f32 %v2036_v41, %v2024_v35 }
 0x10e   : > { %2253 = vmatpush.bf16.msrb.mxu0 %v3363_v48 }
 0x10f   : > { %2266 = vmatpush.bf16.msrb.mxu1 %v3427_v52 }
 0x110   : > { %2279 = vmatpush.bf16.msrb.mxu2 %v3491_v53 }
 0x111   : > { %2292 = vmatpush.bf16.msrb.mxu3 %v3555_v56 }
 0x112   : > { %2254 = vmatpush.bf16.msrb.mxu0 %v3355_v26 }
 0x113   : > { %2267 = vmatpush.bf16.msrb.mxu1 %v3419_v58 }
 0x114   : > { %2280 = vmatpush.bf16.msrb.mxu2 %v3483_v42 }
 0x115   : > { %2293 = vmatpush.bf16.msrb.mxu3 %v3547_v7 }
 0x116   : > { %2255 = vmatpush.bf16.msrb.mxu0 %v3347_v1  ;;  %v2049_v11 = vpop.f32.mrf.mxu0 }
 0x117   : > { %2268 = vmatpush.bf16.msrb.mxu1 %v3411_v2  ;;  %v2062_v12 = vpop.f32.mrf.mxu1  ;;  %v2050_v22 = vadd.f32 %v2049_v11, %v2037_v10  ;;  %v283_v2 = vld [vmem:[#allocation2 + $0x8] sm:$0xff] }
 0x118   : > { %2281 = vmatpush.bf16.msrb.mxu2 %v3475_v3 }
 0x119   : > { %2294 = vmatpush.bf16.msrb.mxu3 %v3539_v6  ;;  %2256 = vmatmul.bf16.vlgmr.msrb.gmra.mxu0 %v4362_v24  ;;  %v2063_v13 = vadd.f32 %v2062_v12, %v2050_v22 }
 0x11a   : > { %2269 = vmatmul.bf16.vlgmr.msrb.gmra.mxu1 %v4369_v32 }
 0x11b   : > { %2282 = vmatmul.bf16.vlgmr.msrb.gmra.mxu2 %v4367_v29 }
 0x11c   : > { %2295 = vmatmul.bf16.vlgmr.msrb.gmra.mxu3 %v4373_v36 }
 0x11e   : > { %v2075_v14 = vpop.f32.mrf.mxu2  ;;  %v2051_v16 = vpop.f32.mrf.mxu0 }
 0x11f   : > { %v2076_v50 = vadd.f32 %v2075_v14, %v2063_v13  ;;  %v2088_v15 = vpop.f32.mrf.mxu3  ;;  %v2064_v17 = vpop.f32.mrf.mxu1 }
 0x121   : > { %v2089_v24 = vadd.f32 %v2088_v15, %v2076_v50 }
 0x123   : > { %v2300_v18 = vadd.f32 %v2089_v24, %v282_v63 }
 0x125   : > { %2302 = vst [vmem:[#allocation2] sm:$0xff] %v2300_v18 }
 0x126   : > { %v2077_v32 = vpop.f32.mrf.mxu2 }
 0x127   : > { %v2090_v29 = vpop.f32.mrf.mxu3 }
 0x136   : > { %v2101_v20 = vpop.f32.mrf.mxu0 }
 0x137   : > { %v2114_v23 = vpop.f32.mrf.mxu1 }
 0x138   : > { %v2115_v25 = vadd.f32 %v2114_v23, %v2101_v20 }
 0x13e   : > { %v2127_v36 = vpop.f32.mrf.mxu2  ;;  %v2103_v40 = vpop.f32.mrf.mxu0 }
 0x13f   : > { %v2128_v28 = vadd.f32 %v2127_v36, %v2115_v25  ;;  %v2140_v37 = vpop.f32.mrf.mxu3  ;;  %v2116_v41 = vpop.f32.mrf.mxu1 }
 0x141   : > { %v2141_v38 = vadd.f32 %v2140_v37, %v2128_v28 }
 0x146   : > { %v2129_v62 = vpop.f32.mrf.mxu2 }
 0x147   : > { %v2142_v46 = vpop.f32.mrf.mxu3 }
 0x156   : > { %v2153_v47 = vpop.f32.mrf.mxu0 }
 0x157   : > { %v2166_v48 = vpop.f32.mrf.mxu1  ;;  %v2154_v39 = vadd.f32 %v2153_v47, %v2141_v38 }
 0x159   : > { %v2167_v4 = vadd.f32 %v2166_v48, %v2154_v39 }
 0x15e   : > { %v2179_v49 = vpop.f32.mrf.mxu2  ;;  %v2155_v52 = vpop.f32.mrf.mxu0 }
 0x15f   : > { %v2192_v51 = vpop.f32.mrf.mxu3  ;;  %v2168_v53 = vpop.f32.mrf.mxu1  ;;  %v2180_v21 = vadd.f32 %v2179_v49, %v2167_v4 }
 0x161   : > { %v2193_v30 = vadd.f32 %v2192_v51, %v2180_v21 }
 0x166   : > { %v2181_v54 = vpop.f32.mrf.mxu2 }
 0x167   : > { %v2194_v55 = vpop.f32.mrf.mxu3 }
 0x176   : > { %v2205_v5 = vpop.f32.mrf.mxu0 }
 0x177   : > { %v2218_v56 = vpop.f32.mrf.mxu1  ;;  %v2206_v43 = vadd.f32 %v2205_v5, %v2193_v30 }
 0x179   : > { %v2219_v31 = vadd.f32 %v2218_v56, %v2206_v43 }
 0x17e   : > { %v2231_v57 = vpop.f32.mrf.mxu2  ;;  %v2207_v33 = vpop.f32.mrf.mxu0 }
 0x17f   : > { %v2244_v27 = vpop.f32.mrf.mxu3  ;;  %v2220_v26 = vpop.f32.mrf.mxu1  ;;  %v2232_v7 = vadd.f32 %v2231_v57, %v2219_v31 }
 0x181   : > { %v2245_v59 = vadd.f32 %v2244_v27, %v2232_v7 }
 0x186   : > { %v2233_v58 = vpop.f32.mrf.mxu2 }
 0x187   : > { %v2246_v42 = vpop.f32.mrf.mxu3 }
 0x196   : > { %v2257_v34 = vpop.f32.mrf.mxu0 }
 0x197   : > { %v2270_v60 = vpop.f32.mrf.mxu1  ;;  %v2258_v61 = vadd.f32 %v2257_v34, %v2245_v59 }
 0x199   : > { %v2271_v44 = vadd.f32 %v2270_v60, %v2258_v61 }
 0x19e   : > { %v2283_v45 = vpop.f32.mrf.mxu2  ;;  %v2259_v19 = vpop.f32.mrf.mxu0 }
 0x19f   : > { %v2284_v0 = vadd.f32 %v2283_v45, %v2271_v44  ;;  %v2296_v1 = vpop.f32.mrf.mxu3  ;;  %v2272_v3 = vpop.f32.mrf.mxu1 }
 0x1a1   : > { %v2297_v6 = vadd.f32 %v2296_v1, %v2284_v0 }
 0x1a3   : > { %v2301_v8 = vadd.f32 %v2297_v6, %v283_v2  ;;  %2307 = sbr.rel (%p3596_p7) target bundleno = 591 (0x24f), region = 48 }
 0x1a5   : > { %2303 = vst [vmem:[#allocation2 + $0x8] sm:$0xff] %v2301_v8 }
 0x1a6   : > { %v2285_v9 = vpop.f32.mrf.mxu2 }
 0x1a7   : > { %v2298_v35 = vpop.f32.mrf.mxu3 }
 0x1a8   : > { %v3928_v10 = vld [vmem:[%s4738_s3 + $0x38] sm:$0xff]  ;;  %v3927_v12 = vld [vmem:[%s4738_s3 + $0x30] sm:$0xff]  ;;  %v3926_v13 = vld [vmem:[%s4738_s3 + $0x28] sm:$0xff] }
 0x1a9   : > { %v3936_v11 = vld [vmem:[%s4738_s3 + $0x78] sm:$0xff]  ;;  %2458 = vmatpush.bf16.msra.mxu0 %v3928_v10  ;;  %v3935_v22 = vld [vmem:[%s4738_s3 + $0x70] sm:$0xff]  ;;  %v3934_v14 = vld [vmem:[%s4738_s3 + $0x68] sm:$0xff] }
 0x1aa   : > { %2471 = vmatpush.bf16.msra.mxu1 %v3936_v11  ;;  %v3925_v50 = vld [vmem:[%s4738_s3 + $0x20] sm:$0xff]  ;;  %v3924_v63 = vld [vmem:[%s4738_s3 + $0x18] sm:$0xff]  ;;  %v3923_v20 = vld [vmem:[%s4738_s3 + $0x10] sm:$0xff] }
 0x1ab   : > { %v3933_v15 = vld [vmem:[%s4738_s3 + $0x60] sm:$0xff]  ;;  %v3932_v17 = vld [vmem:[%s4738_s3 + $0x58] sm:$0xff]  ;;  %v3931_v23 = vld [vmem:[%s4738_s3 + $0x50] sm:$0xff] }
 0x1ac   : > { %v2310_v16 = vld [vmem:[%s4737_s2] sm:$0x3]  ;;  %v2309_v29 = vld [vmem:[#allocation2 + $0x8] sm:$0xff] }
 0x1ad   : > { %2459 = vmatpush.bf16.msra.mxu0 %v3927_v12  ;;  %v2312_v24 = vperm.slane %v2310_v16, 0  ;;  %v2313_v18 = vperm.slane %v2310_v16, 1  ;;  %v2308_v32 = vld [vmem:[#allocation2] sm:$0xff]  ;;  %v3922_v28 = vld [vmem:[%s4738_s3 + $0x8] sm:$0xff] }
 0x1ae   : > { %2472 = vmatpush.bf16.msra.mxu1 %v3935_v22  ;;  %v3930_v37 = vld [vmem:[%s4738_s3 + $0x48] sm:$0xff]  ;;  %v3921_v41 = vld [vmem:[%s4738_s3] sm:$0xff] }
 0x1af   : > { %v2316_v25 = vadd.f32 %v2312_v24, %v2308_v32  ;;  %v2317_v36 = vadd.f32 %v2313_v18, %v2309_v29  ;;  %v3929_v62 = vld [vmem:[%s4738_s3 + $0x40] sm:$0xff] }
 0x1b0   : > { %v3962_v51 = vld [vmem:[%s4739_s4] ss:$0 sm:$0xff] }
 0x1b1   : > { %2460 = vmatpush.bf16.msra.mxu0 %v3926_v13  ;;  %v2320_v38 = vmul.f32 0.2, %v2316_v25  ;;  %v2321_v40 = vmul.f32 0.2, %v2317_v36  ;;  %vm2318_vm0 = vcmp.ge.f32.partialorder %v2316_v25, 0.0  ;;  %vm2319_vm1 = vcmp.ge.f32.partialorder %v2317_v36, 0.0 }
 0x1b2   : > { %2473 = vmatpush.bf16.msra.mxu1 %v3934_v14 }
 0x1b3   : > { %v2322_v46 = vsel %vm2318_vm0, %v2316_v25, %v2320_v38  ;;  %v2323_v47 = vsel %vm2319_vm1, %v2317_v36, %v2321_v40 }
 0x1b4   : > { %v2324_v48 = vpack.c.bf16 %v2322_v46, %v2322_v46  ;;  %v2325_v49 = vpack.c.bf16 %v2323_v47, %v2323_v47 }
 0x1b5   : > { %2461 = vmatpush.bf16.msra.mxu0 %v3925_v50 }
 0x1b6   : > { %2474 = vmatpush.bf16.msra.mxu1 %v3933_v15 }
 0x1b9   : > { %2462 = vmatpush.bf16.msra.mxu0 %v3924_v63 }
 0x1ba   : > { %2475 = vmatpush.bf16.msra.mxu1 %v3932_v17 }
 0x1bd   : > { %2463 = vmatpush.bf16.msra.mxu0 %v3923_v20 }
 0x1be   : > { %2476 = vmatpush.bf16.msra.mxu1 %v3931_v23 }
 0x1c1   : > { %2464 = vmatpush.bf16.msra.mxu0 %v3922_v28 }
 0x1c2   : > { %2477 = vmatpush.bf16.msra.mxu1 %v3930_v37 }
 0x1c5   : > { %2465 = vmatpush.bf16.msra.mxu0 %v3921_v41 }
 0x1c6   : > { %2478 = vmatpush.bf16.msra.mxu1 %v3929_v62 }
 0x1c8   : > { %2466 = vmatmul.bf16.vlgmr.msra.gmra.mxu0 %v2324_v48 }
 0x1c9   : > { %2479 = vmatmul.bf16.vlgmr.msra.gmra.mxu1 %v2325_v49 }
 0x245   : > { %v2467_v52 = vpop.f32.mrf.mxu0 }
 0x246   : > { %v2480_v53 = vpop.f32.mrf.mxu1  ;;  %v2468_v54 = vadd.f32 %v3962_v51, %v2467_v52 }
 0x248   : > { %v2481_v55 = vadd.f32 %v2480_v53, %v2468_v54 }
 0x24a   : > { %2484 = vst [vmem:[%s4740_s5] sm:$0xff] %v2481_v55 }
 0x24d   : > { %v2469_v5 = vpop.f32.mrf.mxu0 }
 0x24e   : > { %v2482_v56 = vpop.f32.mrf.mxu1 }
 0x24f PF: > { %s15_s20 = sadd.s32 1, %s3985_s20   ;;  %s4741_s18 = smov %s3981_s19 }
 0x250   : > { %p12_p8 = scmp.ge.s32.totalorder %s15_s20, 9   ;;  %s4742_s19 = smov %s4744_s21 }
 0x252   :  { %14 = sbr.rel (!%p12_p8) target bundleno = 2 (0x2), region = 81 }

</bundles_post_ra>
